<compile_context>
chip_gen: v7x
topology: tpu7x:2x2x1
jax: 0.10.0
libtpu: 0.0.40
codegen_flags: <defaults>
</compile_context>

<pallas_src>
import functools

import jax
import jax.numpy as jnp
from jax.experimental import pallas as pl
from jax.experimental.pallas import tpu as pltpu


# -----------------------------------------------------------------------------
# Fused Block kernel (single invocation).
#
#   x_ref   : (N, Cin*H,  W)   raw NCHW input, free reshape of (N,Cin,H,W)
#   t_ref   : (3, W, W)        dx-shift matrices (T[1] == identity)
#   w1_ref  : (Cout*H, 3*Cin*H)  stage-1 folded weights (BN1 scale folded)
#   b1_ref  : (Cout*H, 1)        BN1 bias, replicated over H
#   w2_ref  : (Cout*H, 3*Cout*H) stage-2 folded weights (BN2 scale folded)
#   b2_ref  : (Cout*H, 1)        BN2 bias + skip-BN bias, replicated over H
#   skw_ref : (Cout*H, Cin*H)    skip 1x1 weights (skip-BN scale folded)
#   o_ref   : (N, Cout*H, W)   output, free reshape to (N,Cout,H,W)
# -----------------------------------------------------------------------------
def _block_kernel(x_ref, t_ref, w1_ref, b1_ref, w2_ref, b2_ref, skw_ref,
                  o_ref, *, N):
    # Hoist all weight loads out of the (static, tiny) batch loop.
    t0 = t_ref[0]                       # picks column w-1 (zero at boundary)
    t2 = t_ref[2]                       # picks column w+1 (zero at boundary)
    w1 = w1_ref[...]
    w2 = w2_ref[...]
    skw = skw_ref[...]
    b1 = b1_ref[...]
    b2 = b2_ref[...]

    for n in range(N):
        x = x_ref[n]                                        # (Cin*H, W) raw
        # ---- stage 1: ReLU -> sepconv1 -> BN1 (scale folded into w1) -------
        a1 = jnp.maximum(x, 0.0)
        r1 = jnp.concatenate(
            [jnp.dot(a1, t0, preferred_element_type=jnp.float32),
             a1,
             jnp.dot(a1, t2, preferred_element_type=jnp.float32)],
            axis=0)                                         # (3*Cin*H, W)
        h1 = jnp.dot(w1, r1, preferred_element_type=jnp.float32) + b1

        # ---- stage 2: ReLU -> sepconv2 -> BN2 (scale folded into w2) -------
        a2 = jnp.maximum(h1, 0.0)
        r2 = jnp.concatenate(
            [jnp.dot(a2, t0, preferred_element_type=jnp.float32),
             a2,
             jnp.dot(a2, t2, preferred_element_type=jnp.float32)],
            axis=0)                                         # (3*Cout*H, W)
        h2 = jnp.dot(w2, r2, preferred_element_type=jnp.float32)

        # ---- skip branch: 1x1 conv -> BN (scale folded), on the RAW input --
        sk = jnp.dot(skw, x, preferred_element_type=jnp.float32)

        # ---- residual add; skip-BN bias is already folded into b2 ----------
        o_ref[n] = h2 + sk + b2


# -----------------------------------------------------------------------------
# Parameter preparation: fold BatchNorm, build the folded conv matrices in the
# NCHW-native (C*H, W) layout.  Done once, outside the kernel.
# -----------------------------------------------------------------------------
def _fold_bn(gamma, beta, mean, var, eps=1e-5):
    scale = gamma / jnp.sqrt(var + eps)
    return scale, beta - mean * scale


def _hband_weight(dw, pw_scaled, H):
    """Fold depthwise-3x3 + pointwise-1x1 (BN scale folded into pw) into one
    left-multiplied matrix acting on (Cin*H, W)-packed activations.

    dw: (3, 3, ci)  depthwise weights (dy, dx, c)
    pw_scaled: (ci, co)
    returns (co*H, 3*ci*H) with
      M[d*H + h', dx*(ci*H) + c*H + h] = dw[h - h' + 1, dx, c] * pw[c, d]
    (entries only for h - h' + 1 in {0,1,2}; out-of-range h is simply absent,
     which implements the H zero-padding).
    """
    ci, co = pw_scaled.shape
    hp = jnp.arange(H)[:, None, None]                       # (H,1,1)  h'
    dy = jnp.arange(3)[None, :, None]                       # (1,3,1)
    h = jnp.arange(H)[None, None, :]                        # (1,1,H)
    hband = (h == hp + dy - 1).astype(pw_scaled.dtype)      # (H,3,H)
    M = jnp.einsum("pyh,yxc,cd->dpxch", hband, dw, pw_scaled)  # (co,H,3,ci,H)
    return M.reshape(co * H, 3 * ci * H)


def _shift_mats(W):
    """T[dx][w', w] = 1 iff w' == w + dx - 1  (so  A @ T[dx] shifts columns
    by dx-1 with zero fill; T[1] is the identity)."""
    wp = jnp.arange(W)[:, None]
    w = jnp.arange(W)[None, :]
    return jnp.stack([(wp == w + d - 1).astype(jnp.float32) for d in range(3)],
                     axis=0)                                 # (3,W,W)


def prepare_block_params(p, H, W):
    s1, b1 = _fold_bn(*p["bn1"])
    s2, b2 = _fold_bn(*p["bn2"])
    ss, sb = _fold_bn(*p["skip_bn"])
    cout = p["pw1"].shape[1]
    return dict(
        t=_shift_mats(W),
        w1=_hband_weight(p["dw1"], p["pw1"] * s1[None, :], H),
        b1=jnp.repeat(b1, H).reshape(cout * H, 1),
        w2=_hband_weight(p["dw2"], p["pw2"] * s2[None, :], H),
        # skip-BN bias pre-folded into the stage-2 bias.
        b2=jnp.repeat(b2 + sb, H).reshape(cout * H, 1),
        skw=jnp.kron((p["skip_w"] * ss[None, :]).T,
                     jnp.eye(H, dtype=jnp.float32)),
    )


# -----------------------------------------------------------------------------
# Forward pass: reshape (free) -> single fused pallas_call -> reshape (free).
# -----------------------------------------------------------------------------
def block_forward_pallas(x_nchw, packed):
    """x_nchw: (N, Cin, H, W) like the PyTorch module; returns (N, Cout, H, W)."""
    N, Cin, H, W = x_nchw.shape
    CoutH = packed["w1"].shape[0]
    Cout = CoutH // H

    x2 = x_nchw.astype(jnp.float32).reshape(N, Cin * H, W)   # metadata-only

    kern = functools.partial(_block_kernel, N=N)
    out = pl.pallas_call(
        kern,
        out_shape=jax.ShapeDtypeStruct((N, CoutH, W), jnp.float32),
        grid=(1,),
        in_specs=[
            pl.BlockSpec((N, Cin * H, W), lambda i: (0, 0, 0)),
            pl.BlockSpec(packed["t"].shape, lambda i: (0, 0, 0)),
            pl.BlockSpec(packed["w1"].shape, lambda i: (0, 0)),
            pl.BlockSpec(packed["b1"].shape, lambda i: (0, 0)),
            pl.BlockSpec(packed["w2"].shape, lambda i: (0, 0)),
            pl.BlockSpec(packed["b2"].shape, lambda i: (0, 0)),
            pl.BlockSpec(packed["skw"].shape, lambda i: (0, 0)),
        ],
        out_specs=pl.BlockSpec((N, CoutH, W), lambda i: (0, 0, 0)),
        compiler_params=pltpu.CompilerParams(
            dimension_semantics=("arbitrary",)),
    )(x2, packed["t"], packed["w1"], packed["b1"], packed["w2"],
      packed["b2"], packed["skw"])

    return out.reshape(N, Cout, H, W)                        # metadata-only


# -----------------------------------------------------------------------------
# Deterministic synthetic parameters (same structure as the PyTorch module).
# -----------------------------------------------------------------------------
def make_block_params(key, cin, cout):
    ks = jax.random.split(key, 12)
    p = {}
    # SeparableConv2d #1: depthwise (torch (cin,1,3,3)) stored as (3,3,cin)
    p["dw1"] = jax.random.normal(ks[0], (3, 3, cin), jnp.float32) * 0.1
    # pointwise (torch (cout,cin,1,1)) stored as (cin,cout)
    p["pw1"] = jax.random.normal(ks[1], (cin, cout), jnp.float32) * 0.1
    p["bn1"] = (jax.random.normal(ks[2], (cout,)) * 0.1 + 1.0,            # gamma
                jax.random.normal(ks[3], (cout,)) * 0.1,                  # beta
                jax.random.normal(ks[4], (cout,)) * 0.1,                  # running_mean
                jnp.abs(jax.random.normal(ks[5], (cout,))) * 0.1 + 0.5)   # running_var
    # SeparableConv2d #2 (cout -> cout)
    p["dw2"] = jax.random.normal(ks[6], (3, 3, cout), jnp.float32) * 0.1
    p["pw2"] = jax.random.normal(ks[7], (cout, cout), jnp.float32) * 0.1
    p["bn2"] = (jax.random.normal(ks[8], (cout,)) * 0.1 + 1.0,
                jax.random.normal(ks[9], (cout,)) * 0.1,
                jax.random.normal(ks[10], (cout,)) * 0.1,
                jnp.abs(jax.random.normal(ks[11], (cout,))) * 0.1 + 0.5)
    # skip 1x1 conv + skip BN
    ks2 = jax.random.split(jax.random.fold_in(key, 123), 5)
    p["skip_w"] = jax.random.normal(ks2[0], (cin, cout), jnp.float32) * 0.1
    p["skip_bn"] = (jax.random.normal(ks2[1], (cout,)) * 0.1 + 1.0,
                    jax.random.normal(ks2[2], (cout,)) * 0.1,
                    jax.random.normal(ks2[3], (cout,)) * 0.1,
                    jnp.abs(jax.random.normal(ks2[4], (cout,))) * 0.1 + 0.5)
    return p


# -----------------------------------------------------------------------------
# Pure-JAX reference (straightforward NHWC math, inference-mode BN) for
# validation.
# -----------------------------------------------------------------------------
def _ref_sep_bn(x, dw, pw, scale, bias, relu):
    if relu:
        x = jnp.maximum(x, 0.0)
    N, H, W, C = x.shape
    xp = jnp.pad(x, ((0, 0), (1, 1), (1, 1), (0, 0)))
    acc = jnp.zeros((N, H, W, C), jnp.float32)
    for dy in range(3):
        for dx in range(3):
            acc = acc + xp[:, dy:dy + H, dx:dx + W, :] * dw[dy, dx, :]
    y = jnp.einsum("nhwc,cd->nhwd", acc, pw)
    return y * scale + bias


def block_forward_ref(x_nchw, p):
    x = jnp.transpose(x_nchw, (0, 2, 3, 1)).astype(jnp.float32)
    s1, b1 = _fold_bn(*p["bn1"])
    s2, b2 = _fold_bn(*p["bn2"])
    ss, sb = _fold_bn(*p["skip_bn"])
    h = _ref_sep_bn(x, p["dw1"], p["pw1"], s1, b1, True)
    h = _ref_sep_bn(h, p["dw2"], p["pw2"], s2, b2, True)
    skip = jnp.einsum("nhwc,cd->nhwd", x, p["skip_w"]) * ss + sb
    return jnp.transpose(h + skip, (0, 3, 1, 2))


if __name__ == "__main__":
    key = jax.random.PRNGKey(0)
    k_x, k_p = jax.random.split(key)

    N, CIN, COUT, H, W = 2, 8, 16, 16, 16
    x = jax.random.normal(k_x, (N, CIN, H, W), jnp.float32)   # NCHW like PyTorch
    params = make_block_params(k_p, CIN, COUT)
    packed = prepare_block_params(params, H, W)                # done once (weight prep)

    fwd = jax.jit(block_forward_pallas)
    out = jax.block_until_ready(fwd(x, packed))

    ref = block_forward_ref(x, params)
    assert out.shape == (N, COUT, H, W), out.shape
    max_err = float(jnp.max(jnp.abs(out - ref)))
    assert jnp.allclose(out, ref, rtol=1e-3, atol=1e-3), max_err

    print("KERNEL_OK")
</pallas_src>

<mosaic_0001>
module attributes {stable_mosaic.version = 11 : i64} {
  func.func @_block_kernel(%arg0: i32, %arg1: memref<2x128x16xf32, #tpu.memory_space<vmem>>, %arg2: memref<3x16x16xf32, #tpu.memory_space<vmem>>, %arg3: memref<256x384xf32, #tpu.memory_space<vmem>>, %arg4: memref<256x1xf32, #tpu.memory_space<vmem>>, %arg5: memref<256x768xf32, #tpu.memory_space<vmem>>, %arg6: memref<256x1xf32, #tpu.memory_space<vmem>>, %arg7: memref<256x128xf32, #tpu.memory_space<vmem>>, %arg8: memref<2x256x16xf32, #tpu.memory_space<vmem>>) attributes {dimension_semantics = [#tpu.dimension_semantics<arbitrary>], iteration_bounds = array<i64: 1>, scalar_prefetch = 0 : i64, scratch_operands = 0 : i64, tpu.core_type = #tpu.core_type<tc>, window_params = [{pipeline_mode = #tpu.pipeline_mode<synchronous>, transform_indices = @transform_0, window_bounds = array<i64: 2, 128, 16>}, {pipeline_mode = #tpu.pipeline_mode<synchronous>, transform_indices = @transform_1, window_bounds = array<i64: 3, 16, 16>}, {pipeline_mode = #tpu.pipeline_mode<synchronous>, transform_indices = @transform_2, window_bounds = array<i64: 256, 384>}, {pipeline_mode = #tpu.pipeline_mode<synchronous>, transform_indices = @transform_3, window_bounds = array<i64: 256, 1>}, {pipeline_mode = #tpu.pipeline_mode<synchronous>, transform_indices = @transform_4, window_bounds = array<i64: 256, 768>}, {pipeline_mode = #tpu.pipeline_mode<synchronous>, transform_indices = @transform_5, window_bounds = array<i64: 256, 1>}, {pipeline_mode = #tpu.pipeline_mode<synchronous>, transform_indices = @transform_6, window_bounds = array<i64: 256, 128>}, {pipeline_mode = #tpu.pipeline_mode<synchronous>, transform_indices = @transform_7, window_bounds = array<i64: 2, 256, 16>}]} {
    %c0 = arith.constant 0 : index
    %c0_0 = arith.constant 0 : index
    %c0_1 = arith.constant 0 : index
    %0 = vector.load %arg2[%c0, %c0_0, %c0_1] : memref<3x16x16xf32, #tpu.memory_space<vmem>>, vector<1x16x16xf32>
    %1 = vector.shape_cast %0 : vector<1x16x16xf32> to vector<16x16xf32>
    %c2 = arith.constant 2 : index
    %c0_2 = arith.constant 0 : index
    %c0_3 = arith.constant 0 : index
    %2 = vector.load %arg2[%c2, %c0_2, %c0_3] : memref<3x16x16xf32, #tpu.memory_space<vmem>>, vector<1x16x16xf32>
    %3 = vector.shape_cast %2 : vector<1x16x16xf32> to vector<16x16xf32>
    %c0_4 = arith.constant 0 : index
    %c0_5 = arith.constant 0 : index
    %4 = vector.load %arg3[%c0_4, %c0_5] : memref<256x384xf32, #tpu.memory_space<vmem>>, vector<256x384xf32>
    %c0_6 = arith.constant 0 : index
    %c0_7 = arith.constant 0 : index
    %5 = vector.load %arg5[%c0_6, %c0_7] : memref<256x768xf32, #tpu.memory_space<vmem>>, vector<256x768xf32>
    %c0_8 = arith.constant 0 : index
    %c0_9 = arith.constant 0 : index
    %6 = vector.load %arg7[%c0_8, %c0_9] : memref<256x128xf32, #tpu.memory_space<vmem>>, vector<256x128xf32>
    %c0_10 = arith.constant 0 : index
    %c0_11 = arith.constant 0 : index
    %7 = vector.load %arg4[%c0_10, %c0_11] : memref<256x1xf32, #tpu.memory_space<vmem>>, vector<256x1xf32>
    %c0_12 = arith.constant 0 : index
    %c0_13 = arith.constant 0 : index
    %8 = vector.load %arg6[%c0_12, %c0_13] : memref<256x1xf32, #tpu.memory_space<vmem>>, vector<256x1xf32>
    %c0_14 = arith.constant 0 : index
    %c0_15 = arith.constant 0 : index
    %c0_16 = arith.constant 0 : index
    %9 = vector.load %arg1[%c0_14, %c0_15, %c0_16] : memref<2x128x16xf32, #tpu.memory_space<vmem>>, vector<1x128x16xf32>
    %10 = vector.shape_cast %9 : vector<1x128x16xf32> to vector<128x16xf32>
    %cst = arith.constant 0.000000e+00 : f32
    %11 = vector.broadcast %cst : f32 to vector<128x16xf32>
    %12 = arith.maximumf %10, %11 : vector<128x16xf32>
    %cst_17 = arith.constant dense<0.000000e+00> : vector<128x16xf32>
    %13 = tpu.matmul %12, %1, %cst_17 {dimension_numbers = #tpu.dot_dimension_numbers<[1], [0], [0], [1], [0, 0, 1, 1], [], []>} : vector<128x16xf32>, vector<16x16xf32>, vector<128x16xf32> -> vector<128x16xf32>
    %cst_18 = arith.constant dense<0.000000e+00> : vector<128x16xf32>
    %14 = tpu.matmul %12, %3, %cst_18 {dimension_numbers = #tpu.dot_dimension_numbers<[1], [0], [0], [1], [0, 0, 1, 1], [], []>} : vector<128x16xf32>, vector<16x16xf32>, vector<128x16xf32> -> vector<128x16xf32>
    %15 = tpu.concatenate %13, %12, %14 in 0 : vector<128x16xf32>, vector<128x16xf32>, vector<128x16xf32> -> vector<384x16xf32>
    %cst_19 = arith.constant dense<0.000000e+00> : vector<256x16xf32>
    %16 = tpu.matmul %4, %15, %cst_19 {dimension_numbers = #tpu.dot_dimension_numbers<[1], [0], [0], [1], [0, 0, 1, 1], [], []>} : vector<256x384xf32>, vector<384x16xf32>, vector<256x16xf32> -> vector<256x16xf32>
    %17 = vector.broadcast %7 : vector<256x1xf32> to vector<256x16xf32>
    %18 = arith.addf %16, %17 : vector<256x16xf32>
    %cst_20 = arith.constant 0.000000e+00 : f32
    %19 = vector.broadcast %cst_20 : f32 to vector<256x16xf32>
    %20 = arith.maximumf %18, %19 : vector<256x16xf32>
    %cst_21 = arith.constant dense<0.000000e+00> : vector<256x16xf32>
    %21 = tpu.matmul %20, %1, %cst_21 {dimension_numbers = #tpu.dot_dimension_numbers<[1], [0], [0], [1], [0, 0, 1, 1], [], []>} : vector<256x16xf32>, vector<16x16xf32>, vector<256x16xf32> -> vector<256x16xf32>
    %cst_22 = arith.constant dense<0.000000e+00> : vector<256x16xf32>
    %22 = tpu.matmul %20, %3, %cst_22 {dimension_numbers = #tpu.dot_dimension_numbers<[1], [0], [0], [1], [0, 0, 1, 1], [], []>} : vector<256x16xf32>, vector<16x16xf32>, vector<256x16xf32> -> vector<256x16xf32>
    %23 = tpu.concatenate %21, %20, %22 in 0 : vector<256x16xf32>, vector<256x16xf32>, vector<256x16xf32> -> vector<768x16xf32>
    %cst_23 = arith.constant dense<0.000000e+00> : vector<256x16xf32>
    %24 = tpu.matmul %5, %23, %cst_23 {dimension_numbers = #tpu.dot_dimension_numbers<[1], [0], [0], [1], [0, 0, 1, 1], [], []>} : vector<256x768xf32>, vector<768x16xf32>, vector<256x16xf32> -> vector<256x16xf32>
    %cst_24 = arith.constant dense<0.000000e+00> : vector<256x16xf32>
    %25 = tpu.matmul %6, %10, %cst_24 {dimension_numbers = #tpu.dot_dimension_numbers<[1], [0], [0], [1], [0, 0, 1, 1], [], []>} : vector<256x128xf32>, vector<128x16xf32>, vector<256x16xf32> -> vector<256x16xf32>
    %26 = arith.addf %24, %25 : vector<256x16xf32>
    %27 = vector.broadcast %8 : vector<256x1xf32> to vector<256x16xf32>
    %28 = arith.addf %26, %27 : vector<256x16xf32>
    %c0_25 = arith.constant 0 : index
    %c0_26 = arith.constant 0 : index
    %c0_27 = arith.constant 0 : index
    %29 = vector.load %arg8[%c0_25, %c0_26, %c0_27] : memref<2x256x16xf32, #tpu.memory_space<vmem>>, vector<1x256x16xf32>
    %30 = vector.shape_cast %29 : vector<1x256x16xf32> to vector<256x16xf32>
    %31 = vector.shape_cast %28 : vector<256x16xf32> to vector<1x256x16xf32>
    tpu.vector_store %arg8[%c0_25, %c0_26, %c0_27], %31 {strides = array<i32>} : memref<2x256x16xf32, #tpu.memory_space<vmem>>, vector<1x256x16xf32>,
    %c1 = arith.constant 1 : index
    %c0_28 = arith.constant 0 : index
    %c0_29 = arith.constant 0 : index
    %32 = vector.load %arg1[%c1, %c0_28, %c0_29] : memref<2x128x16xf32, #tpu.memory_space<vmem>>, vector<1x128x16xf32>
    %33 = vector.shape_cast %32 : vector<1x128x16xf32> to vector<128x16xf32>
    %cst_30 = arith.constant 0.000000e+00 : f32
    %34 = vector.broadcast %cst_30 : f32 to vector<128x16xf32>
    %35 = arith.maximumf %33, %34 : vector<128x16xf32>
    %cst_31 = arith.constant dense<0.000000e+00> : vector<128x16xf32>
    %36 = tpu.matmul %35, %1, %cst_31 {dimension_numbers = #tpu.dot_dimension_numbers<[1], [0], [0], [1], [0, 0, 1, 1], [], []>} : vector<128x16xf32>, vector<16x16xf32>, vector<128x16xf32> -> vector<128x16xf32>
    %cst_32 = arith.constant dense<0.000000e+00> : vector<128x16xf32>
    %37 = tpu.matmul %35, %3, %cst_32 {dimension_numbers = #tpu.dot_dimension_numbers<[1], [0], [0], [1], [0, 0, 1, 1], [], []>} : vector<128x16xf32>, vector<16x16xf32>, vector<128x16xf32> -> vector<128x16xf32>
    %38 = tpu.concatenate %36, %35, %37 in 0 : vector<128x16xf32>, vector<128x16xf32>, vector<128x16xf32> -> vector<384x16xf32>
    %cst_33 = arith.constant dense<0.000000e+00> : vector<256x16xf32>
    %39 = tpu.matmul %4, %38, %cst_33 {dimension_numbers = #tpu.dot_dimension_numbers<[1], [0], [0], [1], [0, 0, 1, 1], [], []>} : vector<256x384xf32>, vector<384x16xf32>, vector<256x16xf32> -> vector<256x16xf32>
    %40 = vector.broadcast %7 : vector<256x1xf32> to vector<256x16xf32>
    %41 = arith.addf %39, %40 : vector<256x16xf32>
    %cst_34 = arith.constant 0.000000e+00 : f32
    %42 = vector.broadcast %cst_34 : f32 to vector<256x16xf32>
    %43 = arith.maximumf %41, %42 : vector<256x16xf32>
    %cst_35 = arith.constant dense<0.000000e+00> : vector<256x16xf32>
    %44 = tpu.matmul %43, %1, %cst_35 {dimension_numbers = #tpu.dot_dimension_numbers<[1], [0], [0], [1], [0, 0, 1, 1], [], []>} : vector<256x16xf32>, vector<16x16xf32>, vector<256x16xf32> -> vector<256x16xf32>
    %cst_36 = arith.constant dense<0.000000e+00> : vector<256x16xf32>
    %45 = tpu.matmul %43, %3, %cst_36 {dimension_numbers = #tpu.dot_dimension_numbers<[1], [0], [0], [1], [0, 0, 1, 1], [], []>} : vector<256x16xf32>, vector<16x16xf32>, vector<256x16xf32> -> vector<256x16xf32>
    %46 = tpu.concatenate %44, %43, %45 in 0 : vector<256x16xf32>, vector<256x16xf32>, vector<256x16xf32> -> vector<768x16xf32>
    %cst_37 = arith.constant dense<0.000000e+00> : vector<256x16xf32>
    %47 = tpu.matmul %5, %46, %cst_37 {dimension_numbers = #tpu.dot_dimension_numbers<[1], [0], [0], [1], [0, 0, 1, 1], [], []>} : vector<256x768xf32>, vector<768x16xf32>, vector<256x16xf32> -> vector<256x16xf32>
    %cst_38 = arith.constant dense<0.000000e+00> : vector<256x16xf32>
    %48 = tpu.matmul %6, %33, %cst_38 {dimension_numbers = #tpu.dot_dimension_numbers<[1], [0], [0], [1], [0, 0, 1, 1], [], []>} : vector<256x128xf32>, vector<128x16xf32>, vector<256x16xf32> -> vector<256x16xf32>
    %49 = arith.addf %47, %48 : vector<256x16xf32>
    %50 = vector.broadcast %8 : vector<256x1xf32> to vector<256x16xf32>
    %51 = arith.addf %49, %50 : vector<256x16xf32>
    %c1_39 = arith.constant 1 : index
    %c0_40 = arith.constant 0 : index
    %c0_41 = arith.constant 0 : index
    %52 = vector.load %arg8[%c1_39, %c0_40, %c0_41] : memref<2x256x16xf32, #tpu.memory_space<vmem>>, vector<1x256x16xf32>
    %53 = vector.shape_cast %52 : vector<1x256x16xf32> to vector<256x16xf32>
    %54 = vector.shape_cast %51 : vector<256x16xf32> to vector<1x256x16xf32>
    tpu.vector_store %arg8[%c1_39, %c0_40, %c0_41], %54 {strides = array<i32>} : memref<2x256x16xf32, #tpu.memory_space<vmem>>, vector<1x256x16xf32>,
    return
  }
  func.func @transform_0(%arg0: i32) -> (i32, i32, i32) {
    %c0_i32 = arith.constant 0 : i32
    %c0_i32_0 = arith.constant 0 : i32
    %c0_i32_1 = arith.constant 0 : i32
    %c0_i32_2 = arith.constant 0 : i32
    return %c0_i32, %c0_i32_0, %c0_i32_1 : i32, i32, i32
  }
  func.func @transform_1(%arg0: i32) -> (i32, i32, i32) {
    %c0_i32 = arith.constant 0 : i32
    %c0_i32_0 = arith.constant 0 : i32
    %c0_i32_1 = arith.constant 0 : i32
    %c0_i32_2 = arith.constant 0 : i32
    return %c0_i32, %c0_i32_0, %c0_i32_1 : i32, i32, i32
  }
  func.func @transform_2(%arg0: i32) -> (i32, i32) {
    %c0_i32 = arith.constant 0 : i32
    %c0_i32_0 = arith.constant 0 : i32
    %c0_i32_1 = arith.constant 0 : i32
    return %c0_i32, %c0_i32_0 : i32, i32
  }
  func.func @transform_3(%arg0: i32) -> (i32, i32) {
    %c0_i32 = arith.constant 0 : i32
    %c0_i32_0 = arith.constant 0 : i32
    %c0_i32_1 = arith.constant 0 : i32
    return %c0_i32, %c0_i32_0 : i32, i32
  }
  func.func @transform_4(%arg0: i32) -> (i32, i32) {
    %c0_i32 = arith.constant 0 : i32
    %c0_i32_0 = arith.constant 0 : i32
    %c0_i32_1 = arith.constant 0 : i32
    return %c0_i32, %c0_i32_0 : i32, i32
  }
  func.func @transform_5(%arg0: i32) -> (i32, i32) {
    %c0_i32 = arith.constant 0 : i32
    %c0_i32_0 = arith.constant 0 : i32
    %c0_i32_1 = arith.constant 0 : i32
    return %c0_i32, %c0_i32_0 : i32, i32
  }
  func.func @transform_6(%arg0: i32) -> (i32, i32) {
    %c0_i32 = arith.constant 0 : i32
    %c0_i32_0 = arith.constant 0 : i32
    %c0_i32_1 = arith.constant 0 : i32
    return %c0_i32, %c0_i32_0 : i32, i32
  }
  func.func @transform_7(%arg0: i32) -> (i32, i32, i32) {
    %c0_i32 = arith.constant 0 : i32
    %c0_i32_0 = arith.constant 0 : i32
    %c0_i32_1 = arith.constant 0 : i32
    %c0_i32_2 = arith.constant 0 : i32
    return %c0_i32, %c0_i32_0, %c0_i32_1 : i32, i32, i32
  }
}

</mosaic_0001>

<bundles_post_ra>
// kernel: block_forward_pallas.1
= control target key start
LH: loop header
LB: loop body
LE: loop exit
PB: predicated region body
PF: predicated region fallthrough
CT: control target
= control target key end

     0   :  { %12 = vsyncpa [#allocation3], 0  ;;  %s10522_s0 = inlined_call_operand.vmem [shape: f32[2,128,16], index: 0, kind: input, shape index: {}]   ;;  %s10523_s1 = inlined_call_operand.hbm [shape: f32[3,16,16], index: 1, kind: input, shape index: {}]   ;;  %s10524_s2 = inlined_call_operand.hbm [shape: f32[256,384], index: 2, kind: input, shape index: {}]   ;;  %s10525_s3 = inlined_call_operand.vmem [shape: f32[256,1], index: 3, kind: input, shape index: {}]   ;;  %s10526_s4 = inlined_call_operand.hbm [shape: f32[256,768], index: 4, kind: input, shape index: {}]   ;;  %s10527_s5 = inlined_call_operand.vmem [shape: f32[256,1], index: 5, kind: input, shape index: {}]   ;;  %s10528_s6 = inlined_call_operand.vmem [shape: f32[256,128], index: 6, kind: input, shape index: {}]   ;;  %s10529_s7 = inlined_call_operand.hbm [shape: f32[2,256,16], index: 7, kind: output, shape index: {}]  }
   0x1   :  { %13 = vsyncpa [#allocation6], 0 }
   0x2   :  { %14 = vsyncpa [#allocation4], 0  ;;  %s7774_s24 = smov [#allocation5]   ;;  %s7680_s28 = scalar_lea.hbm %s10524_s2, 12288 }
   0x3   :  { %s34_s25 = sshll.u32 %s7774_s24, 4  ;;  %p7681_p0 = scmp.ne.s32.totalorder %s10524_s2, %s7680_s28  ;;  %s35_s25 = int_to_ptr.vmem [resolvable:$true] %s34_s25 }
   0x4   :  { %p7684_p1 = scmp.lt.u32.totalorder %s7680_s28, %s10524_s2 }
   0x6   :  { %p7686_p2 = pnand %p7684_p1, %p7681_p0 }
   0x8   :  { %7689 = shalt.err (!%p7686_p2)
}
   0x9   :  { %s7690_s10 = scalar_lea.vmem %s35_s25, 12288  ;;  %p7695_p4 = scmp.lt.s32.totalorder %s35_s25, %s35_s25 }
   0xa   :  { %p7691_p3 = scmp.ne.s32.totalorder %s35_s25, %s7690_s10  ;;  %p7696_p5 = scmp.lt.s32.totalorder %s7690_s10, %s7690_s10 }
   0xc   :  { %p7697_p6 = por %p7696_p5, %p7695_p4 }
   0xe   :  { %p7698_p7 = pnand %p7697_p6, %p7691_p3 }
  0x10   :  { %7701 = shalt.err (!%p7698_p7)
}
  0x11   :  { %s7775_s11 = smov 384   ;;  %s7776_s12 = smov 24  }
  0x12   :  { %40 = dma.hbm_to_vmem [thread:$0]  %s10524_s2, 12288, %s35_s25, [#allocation6], %s7775_s11, %s7775_s11, %s7776_s12  }
  0x13   :  { %s7777_s15 = smov [#allocation2]   ;;  %s7702_s19 = scalar_lea.hbm %s10523_s1, 768 }
  0x14   :  { %s22_s16 = sshll.u32 %s7777_s15, 4  ;;  %p7703_p8 = scmp.ne.s32.totalorder %s10523_s1, %s7702_s19  ;;  %s23_s16 = int_to_ptr.vmem [resolvable:$true] %s22_s16 }
  0x15   :  { %p7706_p9 = scmp.lt.u32.totalorder %s7702_s19, %s10523_s1 }
  0x17   :  { %p7708_p10 = pnand %p7706_p9, %p7703_p8 }
  0x19   :  { %7711 = shalt.err (!%p7708_p10)
}
  0x1a   :  { %s7712_s24 = scalar_lea.vmem %s23_s16, 768  ;;  %p7717_p12 = scmp.lt.s32.totalorder %s23_s16, %s23_s16 }
  0x1b   :  { %p7713_p11 = scmp.ne.s32.totalorder %s23_s16, %s7712_s24  ;;  %p7718_p13 = scmp.lt.s32.totalorder %s7712_s24, %s7712_s24 }
  0x1d   :  { %p7719_p0 = por %p7718_p13, %p7717_p12 }
  0x1f   :  { %p7720_p1 = pnand %p7719_p0, %p7713_p11 }
  0x21   :  { %7723 = shalt.err (!%p7720_p1)
}
  0x22   :  { %s7778_s2 = smov 128   ;;  %s7779_s25 = smov 8  }
  0x23   :  { %28 = dma.hbm_to_vmem [thread:$0]  %s10523_s1, 768, %s23_s16, [#allocation3], %s7778_s2, %s7778_s2, %s7779_s25  }
  0x24   :  { %s7780_s28 = smov [#allocation7]   ;;  %s7724_s9 = scalar_lea.hbm %s10526_s4, 24576 }
  0x25   :  { %s48_s29 = sshll.u32 %s7780_s28, 4  ;;  %p7725_p2 = scmp.ne.s32.totalorder %s10526_s4, %s7724_s9  ;;  %s49_s29 = int_to_ptr.vmem [resolvable:$true] %s48_s29 }
  0x26   :  { %p7728_p3 = scmp.lt.u32.totalorder %s7724_s9, %s10526_s4 }
  0x28   :  { %p7730_p4 = pnand %p7728_p3, %p7725_p2 }
  0x2a   :  { %7733 = shalt.err (!%p7730_p4)
}
  0x2b   :  { %s7734_s14 = scalar_lea.vmem %s49_s29, 24576  ;;  %p7739_p6 = scmp.lt.s32.totalorder %s49_s29, %s49_s29 }
  0x2c   :  { %p7735_p5 = scmp.ne.s32.totalorder %s49_s29, %s7734_s14  ;;  %p7740_p7 = scmp.lt.s32.totalorder %s7734_s14, %s7734_s14 }
  0x2e   :  { %p7741_p8 = por %p7740_p7, %p7739_p6 }
  0x30   :  { %p7742_p9 = pnand %p7741_p8, %p7735_p5 }
  0x32   :  { %7745 = shalt.err (!%p7742_p9)
}
  0x33   :  { %s7781_s1 = smov 768   ;;  %s7782_s15 = smov 48  }
  0x34   :  { %54 = dma.hbm_to_vmem [thread:$0]  %s10526_s4, 24576, %s49_s29, [#allocation6], %s7781_s1, %s7781_s1, %s7782_s15  }
  0x35   :  { %7768 = dma.done.wait [#allocation3], 768  }
  0x36   :  { %7769 = vsyncadd [#allocation3], 4294966528 }
  0x37   :  { %7770 = dma.done.wait [#allocation6], 36864  }
  0x38   :  { %7771 = vsyncadd [#allocation6], 4294930432  ;;  %v68_v0 = vld [vmem:[#allocation2] sm:$0xff]  ;;  %v69_v1 = vld [vmem:[#allocation2 + $0x8] sm:$0xff]  ;;  %vm489_vm0 = vcmask 130048   ;;  %v10547_v38 = vmov 0.0|0.0  }
  0x39   :  { %v457_v2 = vld [vmem:[%s10522_s0] sm:$0xff]  ;;  %v7868_v3 = vpack.c.bf16 %v69_v1, %v68_v0  ;;  %v458_v5 = vld [vmem:[%s10522_s0 + $0x8] sm:$0xff]  ;;  %v459_v6 = vld [vmem:[%s10522_s0 + $0x10] sm:$0xff]  ;;  %v7784_v39 = vmov 0  }
  0x3a   :  { %v7870_v4 = vmax.f32 %v457_v2, 0.0  ;;  %v7881_v7 = vmax.f32 %v458_v5, 0.0  ;;  %v7884_v8 = vmax.f32 %v459_v6, 0.0  ;;  %v460_v9 = vld [vmem:[%s10522_s0 + $0x18] sm:$0xff]  ;;  %v461_v10 = vld [vmem:[%s10522_s0 + $0x20] sm:$0xff]  ;;  %v72_v12 = vld [vmem:[#allocation2 + $0x28] sm:$0xff]  ;;  %7326 = vset.pattern.permute.xlu0 %v7784_v39  ;;  %7327 = vset.pattern.permute.xlu1 %v7784_v39 }
  0x3b   :  { %6771 = vmatprep.subr.bf16.mxu0 %v7868_v3  ;;  %v71_v11 = vld [vmem:[#allocation2 + $0x20] sm:$0xff]  ;;  %v7896_v13 = vmax.f32 %v460_v9, 0.0  ;;  %v7902_v15 = vmax.f32 %v461_v10, 0.0  ;;  %v462_v16 = vld [vmem:[%s10522_s0 + $0x28] sm:$0xff]  ;;  %v463_v17 = vld [vmem:[%s10522_s0 + $0x30] sm:$0xff] }
  0x3c   :  { %6134 = vmatprep.mubr.msk.f32.mxu0 %vm489_vm0, %v7870_v4  ;;  %6773 = vmatpush3.bf16.msra.mxu0 %v7868_v3  ;;  %v7898_v14 = vpack.c.bf16 %v72_v12, %v71_v11  ;;  %v7914_v18 = vmax.f32 %v462_v16, 0.0  ;;  %v7918_v19 = vmax.f32 %v463_v17, 0.0  ;;  %v464_v20 = vld [vmem:[%s10522_s0 + $0x38] sm:$0xff]  ;;  %v465_v21 = vld [vmem:[%s10522_s0 + $0x40] sm:$0xff]  ;;  %v466_v24 = vld [vmem:[%s10522_s0 + $0x48] sm:$0xff] }
  0x3d   :  { %6162 = vmatprep.mubr.msk.f32.mxu1 %vm489_vm0, %v7870_v4  ;;  %v7932_v22 = vmax.f32 %v464_v20, 0.0  ;;  %v7936_v23 = vmax.f32 %v465_v21, 0.0  ;;  %v467_v25 = vld [vmem:[%s10522_s0 + $0x50] sm:$0xff]  ;;  %v7950_v26 = vmax.f32 %v466_v24, 0.0  ;;  %v468_v28 = vld [vmem:[%s10522_s0 + $0x58] sm:$0xff]  ;;  %v469_v29 = vld [vmem:[%s10522_s0 + $0x60] sm:$0xff]  ;;  %6778 = vmatprep.subr.bf16.mxu0 %v10547_v38 }
  0x3e   :  { %6775 = vmatprep.subr.bf16.mxu1 %v7898_v14  ;;  %v7954_v27 = vmax.f32 %v467_v25, 0.0  ;;  %v7968_v30 = vmax.f32 %v468_v28, 0.0  ;;  %v7972_v31 = vmax.f32 %v469_v29, 0.0  ;;  %v470_v32 = vld [vmem:[%s10522_s0 + $0x68] sm:$0xff]  ;;  %v471_v33 = vld [vmem:[%s10522_s0 + $0x70] sm:$0xff]  ;;  %v472_v36 = vld [vmem:[%s10522_s0 + $0x78] sm:$0xff] }
  0x3f   :  { %6135 = vmatmul.mubr.msk.f32.vlgmr.msra.gmra.mrb[0].mxu0 %vm489_vm0, %v7881_v7  ;;  %6777 = vmatpush3.bf16.msra.mxu1 %v7898_v14  ;;  %v7986_v34 = vmax.f32 %v470_v32, 0.0  ;;  %v7990_v35 = vmax.f32 %v471_v33, 0.0  ;;  %v8001_v37 = vmax.f32 %v472_v36, 0.0  ;;  %v393_v40 = vld [vmem:[%s10525_s3] sm:$0xff]  ;;  %v394_v41 = vld [vmem:[%s10525_s3 + $0x8] sm:$0xff]  ;;  %v395_v42 = vld [vmem:[%s10525_s3 + $0x10] sm:$0xff] }
  0x40   :  { %6137 = vmatprep.mubr.msk.f32.mxu0 %vm489_vm0, %v7884_v8  ;;  %830 = vperm.xlu0 %7326, %v393_v40   ;;  %v397_v43 = vld [vmem:[%s10525_s3 + $0x20] sm:$0xff]  ;;  %v74_v44 = vld [vmem:[#allocation5 + $0x8] sm:$0xff]  ;;  %v399_v47 = vld [vmem:[%s10525_s3 + $0x30] sm:$0xff] }
  0x41   :  { %840 = vperm.xlu1 %7327, %v395_v42   ;;  %v75_v45 = vld [vmem:[#allocation5 + $0x10] sm:$0xff]  ;;  %v396_v46 = vld [vmem:[%s10525_s3 + $0x18] sm:$0xff]  ;;  %v398_v48 = vld [vmem:[%s10525_s3 + $0x28] sm:$0xff] }
  0x42   :  { %6163 = vmatmul.mubr.msk.f32.vlgmr.msra.gmra.mrb[0].mxu1 %vm489_vm0, %v7881_v7  ;;  %v401_v49 = vld [vmem:[%s10525_s3 + $0x40] sm:$0xff]  ;;  %v400_v50 = vld [vmem:[%s10525_s3 + $0x38] sm:$0xff]  ;;  %v403_v51 = vld [vmem:[%s10525_s3 + $0x50] sm:$0xff] }
  0x43   :  { %6138 = vmatmul.mubr.msk.f32.gmra.mrb[2].mxu0 %vm489_vm0, %v7896_v13  ;;  %6165 = vmatprep.mubr.msk.f32.mxu1 %vm489_vm0, %v7884_v8  ;;  %v402_v52 = vld [vmem:[%s10525_s3 + $0x48] sm:$0xff]  ;;  %v405_v53 = vld [vmem:[%s10525_s3 + $0x60] sm:$0xff]  ;;  %v404_v54 = vld [vmem:[%s10525_s3 + $0x58] sm:$0xff] }
  0x44   :  { %6140 = vmatprep.mubr.msk.f32.mxu0 %vm489_vm0, %v7902_v15  ;;  %835 = vperm.xlu0 %7326, %v394_v41   ;;  %v407_v55 = vld [vmem:[%s10525_s3 + $0x70] sm:$0xff]  ;;  %v406_v56 = vld [vmem:[%s10525_s3 + $0x68] sm:$0xff]  ;;  %v409_v57 = vld [vmem:[%s10525_s3 + $0x80] sm:$0xff] }
  0x45   :  { %845 = vperm.xlu1 %7327, %v396_v46   ;;  %v408_v58 = vld [vmem:[%s10525_s3 + $0x78] sm:$0xff]  ;;  %v411_v59 = vld [vmem:[%s10525_s3 + $0x90] sm:$0xff]  ;;  %v410_v60 = vld [vmem:[%s10525_s3 + $0x88] sm:$0xff] }
  0x46   :  { %6166 = vmatmul.mubr.msk.f32.gmra.mrb[2].mxu1 %vm489_vm0, %v7896_v13  ;;  %v413_v61 = vld [vmem:[%s10525_s3 + $0xa0] sm:$0xff]  ;;  %v412_v62 = vld [vmem:[%s10525_s3 + $0x98] sm:$0xff]  ;;  %v415_v63 = vld [vmem:[%s10525_s3 + $0xb0] sm:$0xff] }
  0x47   :  { %6141 = vmatmul.mubr.msk.f32.gmra.mrb[4].mxu0 %vm489_vm0, %v7914_v18  ;;  %6168 = vmatprep.mubr.msk.f32.mxu1 %vm489_vm0, %v7902_v15  ;;  %v414_v0 = vld [vmem:[%s10525_s3 + $0xa8] sm:$0xff]  ;;  %v417_v1 = vld [vmem:[%s10525_s3 + $0xc0] sm:$0xff]  ;;  %v416_v2 = vld [vmem:[%s10525_s3 + $0xb8] sm:$0xff] }
  0x48   :  { %6143 = vmatprep.mubr.msk.f32.mxu0 %vm489_vm0, %v7918_v19  ;;  %850 = vperm.xlu0 %7326, %v397_v43   ;;  %v419_v5 = vld [vmem:[%s10525_s3 + $0xd0] sm:$0xff]  ;;  %v418_v6 = vld [vmem:[%s10525_s3 + $0xc8] sm:$0xff]  ;;  %v421_v9 = vld [vmem:[%s10525_s3 + $0xe0] sm:$0xff] }
  0x49   :  { %855 = vperm.xlu1 %7327, %v398_v48   ;;  %v420_v10 = vld [vmem:[%s10525_s3 + $0xd8] sm:$0xff]  ;;  %v423_v11 = vld [vmem:[%s10525_s3 + $0xf0] sm:$0xff]  ;;  %v422_v12 = vld [vmem:[%s10525_s3 + $0xe8] sm:$0xff] }
  0x4a   :  { %6169 = vmatmul.mubr.msk.f32.gmra.mrb[4].mxu1 %vm489_vm0, %v7914_v18  ;;  %v425_v16 = vld [vmem:[%s10527_s5] sm:$0xff]  ;;  %v424_v17 = vld [vmem:[%s10525_s3 + $0xf8] sm:$0xff]  ;;  %v427_v20 = vld [vmem:[%s10527_s5 + $0x10] sm:$0xff] }
  0x4b   :  { %6144 = vmatmul.mubr.msk.f32.gmra.mrb[6].mxu0 %vm489_vm0, %v7932_v22  ;;  %6171 = vmatprep.mubr.msk.f32.mxu1 %vm489_vm0, %v7918_v19  ;;  %v426_v21 = vld [vmem:[%s10527_s5 + $0x8] sm:$0xff]  ;;  %v429_v24 = vld [vmem:[%s10527_s5 + $0x20] sm:$0xff]  ;;  %v428_v32 = vld [vmem:[%s10527_s5 + $0x18] sm:$0xff] }
  0x4c   :  { %6146 = vmatprep.mubr.msk.f32.mxu0 %vm489_vm0, %v7936_v23  ;;  %860 = vperm.xlu0 %7326, %v399_v47   ;;  %v431_v33 = vld [vmem:[%s10527_s5 + $0x30] sm:$0xff]  ;;  %v430_v43 = vld [vmem:[%s10527_s5 + $0x28] sm:$0xff] }
  0x4d   :  { %865 = vperm.xlu1 %7327, %v400_v50  }
  0x4e   :  { %6172 = vmatmul.mubr.msk.f32.gmra.mrb[6].mxu1 %vm489_vm0, %v7932_v22 }
  0x4f   :  { %6147 = vmatmul.mubr.msk.f32.gmra.mrb[8].mxu0 %vm489_vm0, %v7950_v26  ;;  %6174 = vmatprep.mubr.msk.f32.mxu1 %vm489_vm0, %v7936_v23 }
  0x50   :  { %6149 = vmatprep.mubr.msk.f32.mxu0 %vm489_vm0, %v7954_v27  ;;  %870 = vperm.xlu0 %7326, %v401_v49  }
  0x51   :  { %875 = vperm.xlu1 %7327, %v402_v52   ;;  %v435_v52 = vld [vmem:[%s10527_s5 + $0x50] sm:$0xff] }
  0x52   :  { %6175 = vmatmul.mubr.msk.f32.gmra.mrb[8].mxu1 %vm489_vm0, %v7950_v26 }
  0x53   :  { %6150 = vmatmul.mubr.msk.f32.gmra.mrb[10].mxu0 %vm489_vm0, %v7968_v30  ;;  %6177 = vmatprep.mubr.msk.f32.mxu1 %vm489_vm0, %v7954_v27 }
  0x54   :  { %6152 = vmatprep.mubr.msk.f32.mxu0 %vm489_vm0, %v7972_v31  ;;  %880 = vperm.xlu0 %7326, %v403_v51   ;;  %v432_v51 = vld [vmem:[%s10527_s5 + $0x38] sm:$0xff] }
  0x55   :  { %885 = vperm.xlu1 %7327, %v404_v54  }
  0x56   :  { %6178 = vmatmul.mubr.msk.f32.gmra.mrb[10].mxu1 %vm489_vm0, %v7968_v30 }
  0x57   :  { %6153 = vmatmul.mubr.msk.f32.gmra.mrb[12].mxu0 %vm489_vm0, %v7986_v34  ;;  %6180 = vmatprep.mubr.msk.f32.mxu1 %vm489_vm0, %v7972_v31 }
  0x58   :  { %6155 = vmatprep.mubr.msk.f32.mxu0 %vm489_vm0, %v7990_v35  ;;  %890 = vperm.xlu0 %7326, %v405_v53  }
  0x59   :  { %895 = vperm.xlu1 %7327, %v406_v56  }
  0x5a   :  { %6181 = vmatmul.mubr.msk.f32.gmra.mrb[12].mxu1 %vm489_vm0, %v7986_v34 }
  0x5b   :  { %6156 = vmatmul.mubr.msk.f32.gmra.mrb[14].mxu0 %vm489_vm0, %v8001_v37  ;;  %6183 = vmatprep.mubr.msk.f32.mxu1 %vm489_vm0, %v7990_v35 }
  0x5c   :  { %1052 = vmatprep.mubr.f32.mxu0 %v74_v44  ;;  %900 = vperm.xlu0 %7326, %v407_v55   ;;  %v433_v44 = vld [vmem:[%s10527_s5 + $0x40] sm:$0xff] }
  0x5d   :  { %905 = vperm.xlu1 %7327, %v408_v58  }
  0x5e   :  { %6184 = vmatmul.mubr.msk.f32.gmra.mrb[14].mxu1 %vm489_vm0, %v8001_v37 }
  0x5f   :  { %6218 = vmatprep.mubr.f32.mxu1 %v75_v45 }
  0x60   :  { %910 = vperm.xlu0 %7326, %v409_v57  }
  0x61   :  { %915 = vperm.xlu1 %7327, %v410_v60   ;;  %v437_v60 = vld [vmem:[%s10527_s5 + $0x60] sm:$0xff] }
  0x64   :  { %920 = vperm.xlu0 %7326, %v411_v59   ;;  %v434_v59 = vld [vmem:[%s10527_s5 + $0x48] sm:$0xff] }
  0x65   :  { %925 = vperm.xlu1 %7327, %v412_v62  }
  0x68   :  { %930 = vperm.xlu0 %7326, %v413_v61  }
  0x69   :  { %935 = vperm.xlu1 %7327, %v414_v0  }
  0x6c   :  { %940 = vperm.xlu0 %7326, %v415_v63  }
  0x6d   :  { %945 = vperm.xlu1 %7327, %v416_v2  }
  0x70   :  { %950 = vperm.xlu0 %7326, %v417_v1  }
  0x71   :  { %955 = vperm.xlu1 %7327, %v418_v6   ;;  %v439_v6 = vld [vmem:[%s10527_s5 + $0x70] sm:$0xff] }
  0x74   :  { %960 = vperm.xlu0 %7326, %v419_v5   ;;  %v436_v5 = vld [vmem:[%s10527_s5 + $0x58] sm:$0xff] }
  0x75   :  { %965 = vperm.xlu1 %7327, %v420_v10  }
  0x78   :  { %970 = vperm.xlu0 %7326, %v421_v9  }
  0x79   :  { %975 = vperm.xlu1 %7327, %v422_v12  }
  0x7c   :  { %980 = vperm.xlu0 %7326, %v423_v11  }
  0x7d   :  { %985 = vperm.xlu1 %7327, %v424_v17  }
  0x80   :  { %2918 = vperm.xlu0 %7326, %v425_v16  }
  0x81   :  { %2923 = vperm.xlu1 %7327, %v426_v21   ;;  %v441_v21 = vld [vmem:[%s10527_s5 + $0x80] sm:$0xff] }
  0x84   :  { %2928 = vperm.xlu0 %7326, %v427_v20   ;;  %v438_v20 = vld [vmem:[%s10527_s5 + $0x68] sm:$0xff] }
  0x85   :  { %2933 = vperm.xlu1 %7327, %v428_v32  }
  0x88   :  { %2938 = vperm.xlu0 %7326, %v429_v24  }
  0x89   :  { %2943 = vperm.xlu1 %7327, %v430_v43  }
  0x8c   :  { %2948 = vperm.xlu0 %7326, %v431_v33  }
  0x8d   :  { %2953 = vperm.xlu1 %7327, %v432_v51  }
  0x90   :  { %2958 = vperm.xlu0 %7326, %v433_v44  }
  0x91   :  { %2963 = vperm.xlu1 %7327, %v434_v59   ;;  %v451_v59 = vld [vmem:[%s10527_s5 + $0xd0] sm:$0xff] }
  0x94   :  { %2968 = vperm.xlu0 %7326, %v435_v52   ;;  %v444_v52 = vld [vmem:[%s10527_s5 + $0x98] sm:$0xff] }
  0x95   :  { %2973 = vperm.xlu1 %7327, %v436_v5   ;;  %v454_v5 = vld [vmem:[%s10527_s5 + $0xe8] sm:$0xff] }
  0x98   :  { %2978 = vperm.xlu0 %7326, %v437_v60   ;;  %v90_v60 = vld [vmem:[#allocation5 + $0x88] sm:$0xff] }
  0x99   :  { %2983 = vperm.xlu1 %7327, %v438_v20   ;;  %v76_v20 = vld [vmem:[#allocation5 + $0x18] sm:$0xff] }
  0x9c   :  { %2988 = vperm.xlu0 %7326, %v439_v6   ;;  %v6821_v6 = vpack.c.bf16 %v7986_v34, %v7972_v31  ;;  %v114_v31 = vld [vmem:[#allocation5 + $0x148] sm:$0xff]  ;;  %v73_v34 = vld [vmem:[#allocation5] sm:$0xff] }
  0xa0   :  { %2998 = vperm.xlu0 %7326, %v441_v21   ;;  %v126_v21 = vld [vmem:[#allocation5 + $0x1a8] sm:$0xff] }
 0x112   :  { %v6136_v25 = vpop.f32.mrb[0].mxu0 }
 0x113   :  { %v604_v28 = vpop.f32.mrb[1].mxu0 }
 0x114   :  { %v6779_v29 = vpack.c.bf16 %v6136_v25, %v604_v28 }
 0x115   :  { %v6164_v41 = vpop.f32.mrb[0].mxu1 }
 0x116   :  { %v6139_v36 = vpop.f32.mrb[2].mxu0  ;;  %6780 = vmatpush1.bf16.msra.mxu0 %v6779_v29  ;;  %v749_v42 = vpop.f32.mrb[1].mxu1 }
 0x117   :  { %v614_v39 = vpop.f32.mrb[3].mxu0  ;;  %6781 = vmatprep.subr.bf16.mxu0 %v10547_v38  ;;  %v6826_v46 = vpack.c.bf16 %v6164_v41, %v749_v42 }
 0x118   :  { %v6782_v40 = vpack.c.bf16 %v6139_v36, %v614_v39  ;;  %v440_v36 = vld [vmem:[%s10527_s5 + $0x78] sm:$0xff]  ;;  %v443_v39 = vld [vmem:[%s10527_s5 + $0x90] sm:$0xff] }
 0x119   :  { %v6167_v49 = vpop.f32.mrb[2].mxu1  ;;  %6827 = vmatprep.subr.bf16.mxu1 %v6826_v46  ;;  %2993 = vperm.xlu1 %7327, %v440_v36   ;;  %v86_v36 = vld [vmem:[#allocation5 + $0x68] sm:$0xff] }
 0x11a   :  { %v6142_v45 = vpop.f32.mrb[4].mxu0  ;;  %6783 = vmatpush1.bf16.msra.mxu0 %v6782_v40  ;;  %v759_v50 = vpop.f32.mrb[3].mxu1  ;;  %6829 = vmatpush3.bf16.msra.mxu1 %v6826_v46  ;;  %v442_v46 = vld [vmem:[%s10527_s5 + $0x88] sm:$0xff] }
 0x11b   :  { %v624_v47 = vpop.f32.mrb[5].mxu0  ;;  %6784 = vmatprep.subr.bf16.mxu0 %v10547_v38  ;;  %v6830_v54 = vpack.c.bf16 %v6167_v49, %v759_v50  ;;  %3008 = vperm.xlu0 %7326, %v443_v39   ;;  %v138_v39 = vld [vmem:[#allocation5 + $0x208] sm:$0xff] }
 0x11c   :  { %v6785_v48 = vpack.c.bf16 %v6142_v45, %v624_v47  ;;  %v445_v47 = vld [vmem:[%s10527_s5 + $0xa0] sm:$0xff] }
 0x11d   :  { %v6170_v57 = vpop.f32.mrb[4].mxu1  ;;  %6831 = vmatprep.subr.bf16.mxu1 %v6830_v54  ;;  %3003 = vperm.xlu1 %7327, %v442_v46   ;;  %v92_v46 = vld [vmem:[#allocation5 + $0x98] sm:$0xff] }
 0x11e   :  { %v6145_v53 = vpop.f32.mrb[6].mxu0  ;;  %6786 = vmatpush1.bf16.msra.mxu0 %v6785_v48  ;;  %v769_v58 = vpop.f32.mrb[5].mxu1  ;;  %6833 = vmatpush3.bf16.msra.mxu1 %v6830_v54  ;;  %v6803_v48 = vpack.c.bf16 %v7881_v7, %v7870_v4  ;;  %v6806_v4 = vpack.c.bf16 %v7896_v13, %v7884_v8  ;;  %v78_v54 = vld [vmem:[#allocation5 + $0x28] sm:$0xff]  ;;  %v6809_v8 = vpack.c.bf16 %v7914_v18, %v7902_v15  ;;  %v81_v13 = vld [vmem:[#allocation5 + $0x40] sm:$0xff]  ;;  %v87_v18 = vld [vmem:[#allocation5 + $0x70] sm:$0xff] }
 0x11f   :  { %v634_v55 = vpop.f32.mrb[7].mxu0  ;;  %6787 = vmatprep.subr.bf16.mxu0 %v10547_v38  ;;  %v6834_v62 = vpack.c.bf16 %v6170_v57, %v769_v58  ;;  %3018 = vperm.xlu0 %7326, %v445_v47   ;;  %v84_v57 = vld [vmem:[#allocation5 + $0x58] sm:$0xff]  ;;  %v448_v58 = vld [vmem:[%s10527_s5 + $0xb8] sm:$0xff]  ;;  %v6812_v15 = vpack.c.bf16 %v7932_v22, %v7918_v19  ;;  %v6815_v19 = vpack.c.bf16 %v7950_v26, %v7936_v23  ;;  %v93_v22 = vld [vmem:[#allocation5 + $0xa0] sm:$0xff] }
 0x120   :  { %v6788_v56 = vpack.c.bf16 %v6145_v53, %v634_v55  ;;  %v447_v53 = vld [vmem:[%s10527_s5 + $0xb0] sm:$0xff]  ;;  %v446_v55 = vld [vmem:[%s10527_s5 + $0xa8] sm:$0xff]  ;;  %v6818_v23 = vpack.c.bf16 %v7968_v30, %v7954_v27  ;;  %v99_v26 = vld [vmem:[#allocation5 + $0xd0] sm:$0xff] }
 0x121   :  { %v6173_v1 = vpop.f32.mrb[6].mxu1  ;;  %6835 = vmatprep.subr.bf16.mxu1 %v6834_v62  ;;  %3013 = vperm.xlu1 %7327, %v444_v52   ;;  %v108_v27 = vld [vmem:[#allocation5 + $0x118] sm:$0xff]  ;;  %v456_v30 = vld [vmem:[%s10527_s5 + $0xf8] sm:$0xff] }
 0x122   :  { %v6148_v61 = vpop.f32.mrb[8].mxu0  ;;  %6789 = vmatpush1.bf16.msra.mxu0 %v6788_v56  ;;  %v779_v2 = vpop.f32.mrb[7].mxu1  ;;  %6837 = vmatpush3.bf16.msra.mxu1 %v6834_v62  ;;  %v449_v56 = vld [vmem:[%s10527_s5 + $0xc0] sm:$0xff]  ;;  %v150_v47 = vld [vmem:[#allocation5 + $0x268] sm:$0xff] }
 0x123   :  { %v644_v63 = vpop.f32.mrb[9].mxu0  ;;  %6790 = vmatprep.subr.bf16.mxu0 %v10547_v38  ;;  %v6838_v10 = vpack.c.bf16 %v6173_v1, %v779_v2  ;;  %3028 = vperm.xlu0 %7326, %v447_v53   ;;  %v453_v62 = vld [vmem:[%s10527_s5 + $0xe0] sm:$0xff]  ;;  %v455_v1 = vld [vmem:[%s10527_s5 + $0xf0] sm:$0xff]  ;;  %v102_v2 = vld [vmem:[#allocation5 + $0xe8] sm:$0xff] }
 0x124   :  { %v6791_v0 = vpack.c.bf16 %v6148_v61, %v644_v63  ;;  %v450_v61 = vld [vmem:[%s10527_s5 + $0xc8] sm:$0xff]  ;;  %v94_v52 = vld [vmem:[#allocation5 + $0xa8] sm:$0xff]  ;;  %v159_v53 = vld [vmem:[#allocation5 + $0x2b0] sm:$0xff] }
 0x125   :  { %v6176_v16 = vpop.f32.mrb[8].mxu1  ;;  %6839 = vmatprep.subr.bf16.mxu1 %v6838_v10  ;;  %3023 = vperm.xlu1 %7327, %v446_v55   ;;  %v96_v63 = vld [vmem:[#allocation5 + $0xb8] sm:$0xff]  ;;  %v165_v55 = vld [vmem:[#allocation5 + $0x2e0] sm:$0xff] }
 0x126   :  { %v6151_v9 = vpop.f32.mrb[10].mxu0  ;;  %6792 = vmatpush1.bf16.msra.mxu0 %v6791_v0  ;;  %v789_v17 = vpop.f32.mrb[9].mxu1  ;;  %6841 = vmatpush3.bf16.msra.mxu1 %v6838_v10  ;;  %v452_v0 = vld [vmem:[%s10527_s5 + $0xd8] sm:$0xff]  ;;  %v6824_v10 = vpack.c.bf16 %v8001_v37, %v7990_v35  ;;  %v123_v35 = vld [vmem:[#allocation5 + $0x190] sm:$0xff]  ;;  %v80_v37 = vld [vmem:[#allocation5 + $0x38] sm:$0xff] }
 0x127   :  { %v654_v11 = vpop.f32.mrb[11].mxu0  ;;  %6793 = vmatprep.subr.bf16.mxu0 %v10547_v38  ;;  %v6842_v25 = vpack.c.bf16 %v6176_v16, %v789_v17  ;;  %3038 = vperm.xlu0 %7326, %v449_v56   ;;  %v77_v16 = vld [vmem:[#allocation5 + $0x20] sm:$0xff]  ;;  %v120_v17 = vld [vmem:[#allocation5 + $0x178] sm:$0xff] }
 0x128   :  { %v6794_v12 = vpack.c.bf16 %v6151_v9, %v654_v11  ;;  %v105_v9 = vld [vmem:[#allocation5 + $0x100] sm:$0xff]  ;;  %v111_v11 = vld [vmem:[#allocation5 + $0x130] sm:$0xff] }
 0x129   :  { %v6179_v32 = vpop.f32.mrb[10].mxu1  ;;  %6843 = vmatprep.subr.bf16.mxu1 %v6842_v25  ;;  %3033 = vperm.xlu1 %7327, %v448_v58   ;;  %v101_v56 = vld [vmem:[#allocation5 + $0xe0] sm:$0xff]  ;;  %v103_v58 = vld [vmem:[#allocation5 + $0xf0] sm:$0xff] }
 0x12a   :  { %v6154_v24 = vpop.f32.mrb[12].mxu0  ;;  %6795 = vmatpush1.bf16.msra.mxu0 %v6794_v12  ;;  %v799_v33 = vpop.f32.mrb[11].mxu1  ;;  %6845 = vmatpush3.bf16.msra.mxu1 %v6842_v25  ;;  %v117_v12 = vld [vmem:[#allocation5 + $0x160] sm:$0xff] }
 0x12b   :  { %v664_v28 = vpop.f32.mrb[13].mxu0  ;;  %6796 = vmatprep.subr.bf16.mxu0 %v10547_v38  ;;  %v6846_v41 = vpack.c.bf16 %v6179_v32, %v799_v33  ;;  %3048 = vperm.xlu0 %7326, %v451_v59   ;;  %v129_v25 = vld [vmem:[#allocation5 + $0x1c0] sm:$0xff]  ;;  %v82_v32 = vld [vmem:[#allocation5 + $0x48] sm:$0xff]  ;;  %v135_v33 = vld [vmem:[#allocation5 + $0x1f0] sm:$0xff] }
 0x12c   :  { %v6797_v29 = vpack.c.bf16 %v6154_v24, %v664_v28  ;;  %v79_v24 = vld [vmem:[#allocation5 + $0x30] sm:$0xff] }
 0x12d   :  { %v6182_v44 = vpop.f32.mrb[12].mxu1  ;;  %6847 = vmatprep.subr.bf16.mxu1 %v6846_v41  ;;  %3043 = vperm.xlu1 %7327, %v450_v61   ;;  %v83_v28 = vld [vmem:[#allocation5 + $0x50] sm:$0xff]  ;;  %v113_v61 = vld [vmem:[#allocation5 + $0x140] sm:$0xff] }
 0x12e   :  { %v6157_v40 = vpop.f32.mrb[14].mxu0  ;;  %6798 = vmatpush1.bf16.msra.mxu0 %v6797_v29  ;;  %v809_v45 = vpop.f32.mrb[13].mxu1  ;;  %6849 = vmatpush3.bf16.msra.mxu1 %v6846_v41  ;;  %v132_v29 = vld [vmem:[#allocation5 + $0x1d8] sm:$0xff]  ;;  %v141_v41 = vld [vmem:[#allocation5 + $0x220] sm:$0xff]  ;;  %v107_v59 = vld [vmem:[#allocation5 + $0x110] sm:$0xff] }
 0x12f   :  { %v674_v42 = vpop.f32.mrb[15].mxu0  ;;  %6799 = vmatprep.subr.bf16.mxu0 %v10547_v38  ;;  %v6850_v49 = vpack.c.bf16 %v6182_v44, %v809_v45  ;;  %3058 = vperm.xlu0 %7326, %v453_v62   ;;  %v88_v44 = vld [vmem:[#allocation5 + $0x78] sm:$0xff]  ;;  %v147_v45 = vld [vmem:[#allocation5 + $0x250] sm:$0xff] }
 0x130   :  { %v6800_v43 = vpack.c.bf16 %v6157_v40, %v674_v42  ;;  %v85_v40 = vld [vmem:[#allocation5 + $0x60] sm:$0xff]  ;;  %v112_v62 = vld [vmem:[#allocation5 + $0x138] sm:$0xff] }
 0x131   :  { %v6185_v50 = vpop.f32.mrb[14].mxu1  ;;  %6851 = vmatprep.subr.bf16.mxu1 %v6850_v49  ;;  %3053 = vperm.xlu1 %7327, %v452_v0   ;;  %v89_v42 = vld [vmem:[#allocation5 + $0x80] sm:$0xff]  ;;  %v118_v0 = vld [vmem:[#allocation5 + $0x168] sm:$0xff] }
 0x132   :  { %6801 = vmatpush1.bf16.msra.mxu0 %v6800_v43  ;;  %v819_v51 = vpop.f32.mrb[15].mxu1  ;;  %6853 = vmatpush3.bf16.msra.mxu1 %v6850_v49  ;;  %v144_v43 = vld [vmem:[#allocation5 + $0x238] sm:$0xff]  ;;  %v153_v49 = vld [vmem:[#allocation5 + $0x280] sm:$0xff] }
 0x133   :  { %6802 = vmatprep.subr.bf16.mxu0 %v10547_v38  ;;  %v6854_v7 = vpack.c.bf16 %v6185_v50, %v819_v51  ;;  %3068 = vperm.xlu0 %7326, %v455_v1   ;;  %v95_v50 = vld [vmem:[#allocation5 + $0xb0] sm:$0xff]  ;;  %v156_v51 = vld [vmem:[#allocation5 + $0x298] sm:$0xff]  ;;  %v122_v1 = vld [vmem:[#allocation5 + $0x188] sm:$0xff] }
 0x135   :  { %6855 = vmatprep.subr.bf16.mxu1 %v6854_v7  ;;  %3063 = vperm.xlu1 %7327, %v454_v5   ;;  %v128_v5 = vld [vmem:[#allocation5 + $0x1b8] sm:$0xff] }
 0x136   :  { %6804 = vmatpush1.bf16.msra.mxu0 %v6803_v48  ;;  %6857 = vmatpush3.bf16.msra.mxu1 %v6854_v7  ;;  %v91_v48 = vld [vmem:[#allocation5 + $0x90] sm:$0xff]  ;;  %v162_v7 = vld [vmem:[#allocation5 + $0x2c8] sm:$0xff] }
 0x137   :  { %6805 = vmatprep.subr.bf16.mxu0 %v10547_v38  ;;  %6859 = vmatprep.subr.bf16.mxu1 %v7868_v3 }
 0x139   :  { %6219 = vmatmul.mubr.f32.vlgmr.msra.gmra.mrb[16].mxu1 %v78_v54  ;;  %3073 = vperm.xlu1 %7327, %v456_v30   ;;  %v97_v54 = vld [vmem:[#allocation5 + $0xc0] sm:$0xff]  ;;  %v134_v30 = vld [vmem:[#allocation5 + $0x1e8] sm:$0xff] }
 0x13a   :  { %6807 = vmatpush1.bf16.msra.mxu0 %v6806_v4  ;;  %6221 = vmatprep.mubr.f32.mxu1 %v81_v13  ;;  %v98_v4 = vld [vmem:[#allocation5 + $0xc8] sm:$0xff]  ;;  %v100_v13 = vld [vmem:[#allocation5 + $0xd8] sm:$0xff] }
 0x13b   :  { %6808 = vmatprep.subr.bf16.mxu0 %v10547_v38  ;;  %6861 = vmatpush3.bf16.msra.mxu1 %v7868_v3 }
 0x13c   :  { %6863 = vmatprep.subr.bf16.mxu1 %v7898_v14 }
 0x13d   :  { %6222 = vmatmul.mubr.f32.gmra.mrb[18].mxu1 %v84_v57  ;;  %v104_v57 = vld [vmem:[#allocation5 + $0xf8] sm:$0xff] }
 0x13e   :  { %6810 = vmatpush1.bf16.msra.mxu0 %v6809_v8  ;;  %6224 = vmatprep.mubr.f32.mxu1 %v87_v18  ;;  %v168_v8 = vld [vmem:[#allocation5 + $0x2f8] sm:$0xff]  ;;  %v110_v18 = vld [vmem:[#allocation5 + $0x128] sm:$0xff] }
 0x13f   :  { %6811 = vmatprep.subr.bf16.mxu0 %v10547_v38 }
 0x141   :  { %6225 = vmatmul.mubr.f32.gmra.mrb[20].mxu1 %v90_v60  ;;  %v109_v60 = vld [vmem:[#allocation5 + $0x120] sm:$0xff] }
 0x142   :  { %6813 = vmatpush1.bf16.msra.mxu0 %v6812_v15  ;;  %6227 = vmatprep.mubr.f32.mxu1 %v93_v22  ;;  %v106_v15 = vld [vmem:[#allocation5 + $0x108] sm:$0xff]  ;;  %v115_v22 = vld [vmem:[#allocation5 + $0x150] sm:$0xff] }
 0x143   :  { %6814 = vmatprep.subr.bf16.mxu0 %v10547_v38 }
 0x145   :  { %6228 = vmatmul.mubr.f32.gmra.mrb[22].mxu1 %v96_v63  ;;  %v119_v63 = vld [vmem:[#allocation5 + $0x170] sm:$0xff] }
 0x146   :  { %6816 = vmatpush1.bf16.msra.mxu0 %v6815_v19  ;;  %6230 = vmatprep.mubr.f32.mxu1 %v99_v26  ;;  %v116_v19 = vld [vmem:[#allocation5 + $0x158] sm:$0xff]  ;;  %v125_v26 = vld [vmem:[#allocation5 + $0x1a0] sm:$0xff] }
 0x147   :  { %6817 = vmatprep.subr.bf16.mxu0 %v10547_v38 }
 0x149   :  { %6231 = vmatmul.mubr.f32.gmra.mrb[24].mxu1 %v102_v2  ;;  %v124_v2 = vld [vmem:[#allocation5 + $0x198] sm:$0xff] }
 0x14a   :  { %6819 = vmatpush1.bf16.msra.mxu0 %v6818_v23  ;;  %6233 = vmatprep.mubr.f32.mxu1 %v105_v9  ;;  %v121_v23 = vld [vmem:[#allocation5 + $0x180] sm:$0xff]  ;;  %v131_v9 = vld [vmem:[#allocation5 + $0x1d0] sm:$0xff] }
 0x14b   :  { %6820 = vmatprep.subr.bf16.mxu0 %v10547_v38 }
 0x14d   :  { %6234 = vmatmul.mubr.f32.gmra.mrb[26].mxu1 %v108_v27  ;;  %v130_v27 = vld [vmem:[#allocation5 + $0x1c8] sm:$0xff] }
 0x14e   :  { %6822 = vmatpush1.bf16.msra.mxu0 %v6821_v6  ;;  %6236 = vmatprep.mubr.f32.mxu1 %v111_v11  ;;  %v127_v6 = vld [vmem:[#allocation5 + $0x1b0] sm:$0xff]  ;;  %v137_v11 = vld [vmem:[#allocation5 + $0x200] sm:$0xff] }
 0x14f   :  { %6823 = vmatprep.subr.bf16.mxu0 %v10547_v38 }
 0x151   :  { %6237 = vmatmul.mubr.f32.gmra.mrb[28].mxu1 %v114_v31  ;;  %v136_v31 = vld [vmem:[#allocation5 + $0x1f8] sm:$0xff] }
 0x152   :  { %6825 = vmatpush1.bf16.msra.mxu0 %v6824_v10  ;;  %6239 = vmatprep.mubr.f32.mxu1 %v117_v12  ;;  %v133_v10 = vld [vmem:[#allocation5 + $0x1e0] sm:$0xff]  ;;  %v139_v12 = vld [vmem:[#allocation5 + $0x210] sm:$0xff] }
 0x153   :  { %6946 = vmatprep.subr.bf16.mxu0 %v10547_v38 }
 0x155   :  { %1053 = vmatmul.mubr.f32.vlgmr.msra.gmra.mrb[16].mxu0 %v73_v34  ;;  %6240 = vmatmul.mubr.f32.gmra.mrb[30].mxu1 %v120_v17  ;;  %v140_v34 = vld [vmem:[#allocation5 + $0x218] sm:$0xff]  ;;  %v142_v17 = vld [vmem:[#allocation5 + $0x228] sm:$0xff] }
 0x156   :  { %1057 = vmatprep.mubr.f32.mxu0 %v77_v16  ;;  %6242 = vmatprep.mubr.f32.mxu1 %v123_v35  ;;  %v143_v16 = vld [vmem:[#allocation5 + $0x230] sm:$0xff]  ;;  %v145_v35 = vld [vmem:[#allocation5 + $0x240] sm:$0xff] }
 0x159   :  { %1058 = vmatmul.mubr.f32.gmra.mrb[18].mxu0 %v76_v20  ;;  %6243 = vmatmul.mubr.f32.gmra.mrb[32].mxu1 %v126_v21  ;;  %v146_v20 = vld [vmem:[#allocation5 + $0x248] sm:$0xff]  ;;  %v148_v21 = vld [vmem:[#allocation5 + $0x258] sm:$0xff] }
 0x15a   :  { %1062 = vmatprep.mubr.f32.mxu0 %v80_v37  ;;  %6245 = vmatprep.mubr.f32.mxu1 %v129_v25  ;;  %v149_v37 = vld [vmem:[#allocation5 + $0x260] sm:$0xff]  ;;  %v151_v25 = vld [vmem:[#allocation5 + $0x270] sm:$0xff] }
 0x15d   :  { %1063 = vmatmul.mubr.f32.gmra.mrb[20].mxu0 %v79_v24  ;;  %6246 = vmatmul.mubr.f32.gmra.mrb[34].mxu1 %v132_v29  ;;  %v152_v24 = vld [vmem:[#allocation5 + $0x278] sm:$0xff]  ;;  %v154_v29 = vld [vmem:[#allocation5 + $0x288] sm:$0xff] }
 0x15e   :  { %1067 = vmatprep.mubr.f32.mxu0 %v83_v28  ;;  %6248 = vmatprep.mubr.f32.mxu1 %v135_v33  ;;  %v155_v28 = vld [vmem:[#allocation5 + $0x290] sm:$0xff]  ;;  %v157_v33 = vld [vmem:[#allocation5 + $0x2a0] sm:$0xff] }
 0x161   :  { %1068 = vmatmul.mubr.f32.gmra.mrb[22].mxu0 %v82_v32  ;;  %6249 = vmatmul.mubr.f32.gmra.mrb[36].mxu1 %v138_v39  ;;  %v158_v32 = vld [vmem:[#allocation5 + $0x2a8] sm:$0xff]  ;;  %v160_v39 = vld [vmem:[#allocation5 + $0x2b8] sm:$0xff] }
 0x162   :  { %1072 = vmatprep.mubr.f32.mxu0 %v86_v36  ;;  %6251 = vmatprep.mubr.f32.mxu1 %v141_v41  ;;  %v161_v36 = vld [vmem:[#allocation5 + $0x2c0] sm:$0xff]  ;;  %v163_v41 = vld [vmem:[#allocation5 + $0x2d0] sm:$0xff] }
 0x165   :  { %1073 = vmatmul.mubr.f32.gmra.mrb[24].mxu0 %v85_v40  ;;  %6252 = vmatmul.mubr.f32.gmra.mrb[38].mxu1 %v144_v43  ;;  %v164_v40 = vld [vmem:[#allocation5 + $0x2d8] sm:$0xff]  ;;  %v166_v43 = vld [vmem:[#allocation5 + $0x2e8] sm:$0xff] }
 0x166   :  { %1077 = vmatprep.mubr.f32.mxu0 %v89_v42  ;;  %6254 = vmatprep.mubr.f32.mxu1 %v147_v45  ;;  %v167_v42 = vld [vmem:[#allocation5 + $0x2f0] sm:$0xff] }
 0x169   :  { %1078 = vmatmul.mubr.f32.gmra.mrb[26].mxu0 %v88_v44  ;;  %6255 = vmatmul.mubr.f32.gmra.mrb[40].mxu1 %v150_v47 }
 0x16a   :  { %1082 = vmatprep.mubr.f32.mxu0 %v92_v46  ;;  %6257 = vmatprep.mubr.f32.mxu1 %v153_v49 }
 0x16d   :  { %1083 = vmatmul.mubr.f32.gmra.mrb[28].mxu0 %v91_v48  ;;  %6258 = vmatmul.mubr.f32.gmra.mrb[42].mxu1 %v156_v51 }
 0x16e   :  { %1087 = vmatprep.mubr.f32.mxu0 %v95_v50  ;;  %6260 = vmatprep.mubr.f32.mxu1 %v159_v53 }
 0x171   :  { %1088 = vmatmul.mubr.f32.gmra.mrb[30].mxu0 %v94_v52  ;;  %6261 = vmatmul.mubr.f32.gmra.mrb[44].mxu1 %v162_v7 }
 0x172   :  { %1092 = vmatprep.mubr.f32.mxu0 %v98_v4  ;;  %6263 = vmatprep.mubr.f32.mxu1 %v165_v55 }
 0x175   :  { %1093 = vmatmul.mubr.f32.gmra.mrb[32].mxu0 %v97_v54  ;;  %6264 = vmatmul.mubr.f32.gmra.mrb[46].mxu1 %v168_v8  ;;  %v8259_v54 = vpop.permute.xlu0 %830 }
 0x176   :  { %1097 = vmatprep.mubr.f32.mxu0 %v101_v56  ;;  %10596 = vst [vmem:[#allocation12_spill] sm:$0xff] %v8259_v54 }
 0x179   :  { %1098 = vmatmul.mubr.f32.gmra.mrb[34].mxu0 %v100_v13 }
 0x17a   :  { %1102 = vmatprep.mubr.f32.mxu0 %v104_v57 }
 0x17d   :  { %1103 = vmatmul.mubr.f32.gmra.mrb[36].mxu0 %v103_v58  ;;  %v8266_v58 = vpop.permute.xlu0 %835 }
 0x17e   :  { %1107 = vmatprep.mubr.f32.mxu0 %v107_v59  ;;  %10597 = vst [vmem:[#allocation13_spill] sm:$0xff] %v8266_v58 }
 0x181   :  { %1108 = vmatmul.mubr.f32.gmra.mrb[38].mxu0 %v106_v15 }
 0x182   :  { %1112 = vmatprep.mubr.f32.mxu0 %v110_v18 }
 0x185   :  { %1113 = vmatmul.mubr.f32.gmra.mrb[40].mxu0 %v109_v60 }
 0x186   :  { %1117 = vmatprep.mubr.f32.mxu0 %v113_v61  ;;  %v8272_v61 = vpop.permute.xlu1 %840 }
 0x187   :  { %10598 = vst [vmem:[#allocation14_spill] sm:$0xff] %v8272_v61 }
 0x189   :  { %1118 = vmatmul.mubr.f32.gmra.mrb[42].mxu0 %v112_v62 }
 0x18a   :  { %1122 = vmatprep.mubr.f32.mxu0 %v116_v19 }
 0x18d   :  { %1123 = vmatmul.mubr.f32.gmra.mrb[44].mxu0 %v115_v22 }
 0x18e   :  { %1127 = vmatprep.mubr.f32.mxu0 %v119_v63  ;;  %v172_v63 = vld [vmem:[#allocation7 + $0x18] sm:$0xff] }
 0x191   :  { %1128 = vmatmul.mubr.f32.gmra.mrb[46].mxu0 %v118_v0 }
 0x192   :  { %1132 = vmatprep.mubr.f32.mxu0 %v122_v1 }
 0x195   :  { %1133 = vmatmul.mubr.f32.gmra.mrb[48].mxu0 %v121_v23 }
 0x196   :  { %1137 = vmatprep.mubr.f32.mxu0 %v125_v26 }
 0x199   :  { %1138 = vmatmul.mubr.f32.gmra.mrb[50].mxu0 %v124_v2 }
 0x19a   :  { %1142 = vmatprep.mubr.f32.mxu0 %v128_v5 }
 0x19d   :  { %1143 = vmatmul.mubr.f32.gmra.mrb[52].mxu0 %v127_v6 }
 0x19e   :  { %1147 = vmatprep.mubr.f32.mxu0 %v131_v9  ;;  %v8286_v9 = vpop.permute.xlu1 %845 }
 0x19f   :  { %10599 = vst [vmem:[#allocation15_spill] sm:$0xff] %v8286_v9 }
 0x1a1   :  { %1148 = vmatmul.mubr.f32.gmra.mrb[54].mxu0 %v130_v27 }
 0x1a2   :  { %1152 = vmatprep.mubr.f32.mxu0 %v134_v30 }
 0x1a5   :  { %1153 = vmatmul.mubr.f32.gmra.mrb[56].mxu0 %v133_v10 }
 0x1a6   :  { %1157 = vmatprep.mubr.f32.mxu0 %v137_v11 }
 0x1a9   :  { %1158 = vmatmul.mubr.f32.gmra.mrb[58].mxu0 %v136_v31 }
 0x1aa   :  { %1162 = vmatprep.mubr.f32.mxu0 %v140_v34 }
 0x1ad   :  { %1163 = vmatmul.mubr.f32.gmra.mrb[60].mxu0 %v139_v12 }
 0x1ae   :  { %1167 = vmatprep.mubr.f32.mxu0 %v143_v16 }
 0x1b1   :  { %1168 = vmatmul.mubr.f32.gmra.mrb[62].mxu0 %v142_v17  ;;  %v8301_v17 = vpop.permute.xlu0 %850 }
 0x1b2   :  { %1172 = vmatprep.mubr.f32.mxu0 %v146_v20  ;;  %10600 = vst [vmem:[#allocation16_spill] sm:$0xff] %v8301_v17 }
 0x1b5   :  { %1173 = vmatmul.mubr.f32.gmra.mrb[64].mxu0 %v145_v35 }
 0x1b6   :  { %1177 = vmatprep.mubr.f32.mxu0 %v149_v37 }
 0x1b9   :  { %1178 = vmatmul.mubr.f32.gmra.mrb[66].mxu0 %v148_v21 }
 0x1ba   :  { %1182 = vmatprep.mubr.f32.mxu0 %v152_v24 }
 0x1bd   :  { %1183 = vmatmul.mubr.f32.gmra.mrb[68].mxu0 %v151_v25 }
 0x1be   :  { %1187 = vmatprep.mubr.f32.mxu0 %v155_v28 }
 0x1c1   :  { %1188 = vmatmul.mubr.f32.gmra.mrb[70].mxu0 %v154_v29  ;;  %v8312_v29 = vpop.permute.xlu1 %855 }
 0x1c2   :  { %1192 = vmatprep.mubr.f32.mxu0 %v158_v32  ;;  %10601 = vst [vmem:[#allocation17_spill] sm:$0xff] %v8312_v29 }
 0x1c5   :  { %1193 = vmatmul.mubr.f32.gmra.mrb[72].mxu0 %v157_v33 }
 0x1c6   :  { %1197 = vmatprep.mubr.f32.mxu0 %v161_v36 }
 0x1c9   :  { %1198 = vmatmul.mubr.f32.gmra.mrb[74].mxu0 %v160_v39 }
 0x1ca   :  { %1202 = vmatprep.mubr.f32.mxu0 %v164_v40 }
 0x1cd   :  { %1203 = vmatmul.mubr.f32.gmra.mrb[76].mxu0 %v163_v41 }
 0x1ce   :  { %1207 = vmatprep.mubr.f32.mxu0 %v167_v42 }
 0x1d1   :  { %1208 = vmatmul.mubr.f32.gmra.mrb[78].mxu0 %v166_v43 }
 0x1d2   :  { %2530 = vmatprep.mubr.f32.mxu0 %v172_v63 }
 0x20c   :  { %v6220_v44 = vpop.f32.mrb[16].mxu1 }
 0x20d   :  { %v1279_v45 = vpop.f32.mrb[17].mxu1 }
 0x210   :  { %v6223_v46 = vpop.f32.mrb[18].mxu1 }
 0x211   :  { %v1289_v47 = vpop.f32.mrb[19].mxu1 }
 0x214   :  { %v8245_v48 = vpop.f32.mrb[20].mxu1 }
 0x215   :  { %v1299_v49 = vpop.f32.mrb[21].mxu1 }
 0x218   :  { %v8247_v50 = vpop.f32.mrb[22].mxu1 }
 0x219   :  { %v8249_v51 = vpop.f32.mrb[23].mxu1 }
 0x21c   :  { %v8251_v52 = vpop.f32.mrb[24].mxu1 }
 0x21d   :  { %v8253_v53 = vpop.f32.mrb[25].mxu1 }
 0x220   :  { %v8255_v4 = vpop.f32.mrb[26].mxu1 }
 0x221   :  { %v8257_v7 = vpop.f32.mrb[27].mxu1 }
 0x224   :  { %v8261_v55 = vpop.f32.mrb[28].mxu1 }
 0x225   :  { %v8263_v8 = vpop.f32.mrb[29].mxu1 }
 0x228   :  { %v1054_v56 = vpop.f32.mrb[16].mxu0  ;;  %v8268_v15 = vpop.f32.mrb[30].mxu1 }
 0x229   :  { %v1055_v13 = vadd.f32 %v1054_v56, %v8259_v54  ;;  %v1056_v57 = vpop.f32.mrb[17].mxu0  ;;  %v8270_v60 = vpop.f32.mrb[31].mxu1 }
 0x22b   :  { %v1280_v59 = vadd.f32 %v1279_v45, %v1055_v13 }
 0x22c   :  { %v1059_v18 = vpop.f32.mrb[18].mxu0  ;;  %v8279_v1 = vpop.f32.mrb[32].mxu1 }
 0x22d   :  { %v8274_v62 = vmax.f32 %v1280_v59, 0.0  ;;  %v1060_v19 = vadd.f32 %v1059_v18, %v8266_v58  ;;  %v1061_v22 = vpop.f32.mrb[19].mxu0  ;;  %v8281_v26 = vpop.f32.mrb[33].mxu1 }
 0x22e   :  { %v8338_v59 = vpop.permute.xlu1 %865 }
 0x22f   :  { %v1285_v0 = vadd.f32 %v6220_v44, %v1060_v19  ;;  %6270 = vmatprep.mubr.msk.f32.mxu1 %vm489_vm0, %v8274_v62  ;;  %v8326_v44 = vpop.permute.xlu0 %860  ;;  %10603 = vst [vmem:[#allocation19_spill] sm:$0xff] %v8338_v59 }
 0x230   :  { %v1064_v23 = vpop.f32.mrb[20].mxu0  ;;  %v8292_v10 = vpop.f32.mrb[34].mxu1  ;;  %10602 = vst [vmem:[#allocation18_spill] sm:$0xff] %v8326_v44 }
 0x231   :  { %v8283_v2 = vmax.f32 %v1285_v0, 0.0  ;;  %v1065_v5 = vadd.f32 %v1064_v23, %v8272_v61  ;;  %v1066_v6 = vpop.f32.mrb[21].mxu0  ;;  %v8294_v31 = vpop.f32.mrb[35].mxu1 }
 0x233   :  { %v1290_v27 = vadd.f32 %v1289_v47, %v1065_v5  ;;  %6271 = vmatmul.mubr.msk.f32.vlgmr.msra.gmra.mrb[48].mxu1 %vm489_vm0, %v8283_v2  ;;  %v6947_v30 = vpack.c.bf16 %v8283_v2, %v8274_v62 }
 0x234   :  { %v1069_v11 = vpop.f32.mrb[22].mxu0  ;;  %6865 = vmatpush3.bf16.msra.mxu1 %v7898_v14  ;;  %v8305_v35 = vpop.f32.mrb[36].mxu1 }
 0x235   :  { %v8297_v34 = vmax.f32 %v1290_v27, 0.0  ;;  %v1070_v12 = vadd.f32 %v1069_v11, %v8286_v9  ;;  %v1071_v16 = vpop.f32.mrb[23].mxu0  ;;  %6948 = vmatpush1.bf16.msra.mxu0 %v6947_v30  ;;  %v8307_v21 = vpop.f32.mrb[37].mxu1  ;;  %v308_v9 = vld [vmem:[#allocation7 + $0x458] sm:$0xff] }
 0x236   :  { %6949 = vmatprep.subr.bf16.mxu0 %v10547_v38 }
 0x237   :  { %v1295_v20 = vadd.f32 %v6223_v46, %v1070_v12  ;;  %6273 = vmatprep.mubr.msk.f32.mxu1 %vm489_vm0, %v8297_v34 }
 0x238   :  { %v1074_v37 = vpop.f32.mrb[24].mxu0  ;;  %v8318_v36 = vpop.f32.mrb[38].mxu1 }
 0x239   :  { %v8309_v24 = vmax.f32 %v1295_v20, 0.0  ;;  %v1075_v25 = vadd.f32 %v1074_v37, %v8301_v17  ;;  %v1076_v28 = vpop.f32.mrb[25].mxu0  ;;  %v8320_v40 = vpop.f32.mrb[39].mxu1  ;;  %v302_v17 = vld [vmem:[#allocation7 + $0x428] sm:$0xff] }
 0x23a   :  { %v8365_v37 = vpop.permute.xlu1 %875 }
 0x23b   :  { %v1300_v32 = vadd.f32 %v1299_v49, %v1075_v25  ;;  %6274 = vmatmul.mubr.msk.f32.gmra.mrb[50].mxu1 %vm489_vm0, %v8309_v24  ;;  %v6950_v33 = vpack.c.bf16 %v8309_v24, %v8297_v34  ;;  %10605 = vst [vmem:[#allocation21_spill] sm:$0xff] %v8365_v37 }
 0x23c   :  { %v1079_v39 = vpop.f32.mrb[26].mxu0  ;;  %v8331_v46 = vpop.f32.mrb[40].mxu1 }
 0x23d   :  { %v8322_v41 = vmax.f32 %v1300_v32, 0.0  ;;  %v1080_v42 = vadd.f32 %v1079_v39, %v8312_v29  ;;  %v1081_v43 = vpop.f32.mrb[27].mxu0  ;;  %6951 = vmatpush1.bf16.msra.mxu0 %v6950_v33  ;;  %v8333_v49 = vpop.f32.mrb[41].mxu1 }
 0x23e   :  { %6952 = vmatprep.subr.bf16.mxu0 %v10547_v38 }
 0x23f   :  { %v1305_v45 = vadd.f32 %v8245_v48, %v1080_v42  ;;  %6276 = vmatprep.mubr.msk.f32.mxu1 %vm489_vm0, %v8322_v41 }
 0x240   :  { %v1084_v47 = vpop.f32.mrb[28].mxu0  ;;  %v8345_v19 = vpop.f32.mrb[42].mxu1 }
 0x241   :  { %v8335_v56 = vmax.f32 %v1305_v45, 0.0  ;;  %v1085_v13 = vadd.f32 %v1084_v47, %v8326_v44  ;;  %v1086_v57 = vpop.f32.mrb[29].mxu0  ;;  %v8347_v63 = vpop.f32.mrb[43].mxu1 }
 0x243   :  { %v1310_v18 = vadd.f32 %v8249_v51, %v1085_v13  ;;  %6277 = vmatmul.mubr.msk.f32.gmra.mrb[52].mxu1 %vm489_vm0, %v8335_v56  ;;  %v6953_v48 = vpack.c.bf16 %v8335_v56, %v8322_v41  ;;  %v8353_v51 = vpop.permute.xlu0 %870 }
 0x244   :  { %v1089_v22 = vpop.f32.mrb[30].mxu0  ;;  %10604 = vst [vmem:[#allocation20_spill] sm:$0xff] %v8353_v51  ;;  %v8358_v27 = vpop.f32.mrb[44].mxu1 }
 0x245   :  { %v8349_v0 = vmax.f32 %v1310_v18, 0.0  ;;  %v1090_v23 = vadd.f32 %v1089_v22, %v8338_v59  ;;  %v1091_v5 = vpop.f32.mrb[31].mxu0  ;;  %6954 = vmatpush1.bf16.msra.mxu0 %v6953_v48  ;;  %v8360_v11 = vpop.f32.mrb[45].mxu1 }
 0x246   :  { %6955 = vmatprep.subr.bf16.mxu0 %v10547_v38 }
 0x247   :  { %v1315_v6 = vadd.f32 %v8247_v50, %v1090_v23  ;;  %6279 = vmatprep.mubr.msk.f32.mxu1 %vm489_vm0, %v8349_v0  ;;  %v8383_v45 = vpop.permute.xlu0 %880 }
 0x248   :  { %v1094_v30 = vpop.f32.mrb[32].mxu0  ;;  %v8372_v28 = vpop.f32.mrb[46].mxu1  ;;  %10606 = vst [vmem:[#allocation22_spill] sm:$0xff] %v8383_v45 }
 0x249   :  { %v8362_v12 = vmax.f32 %v1315_v6, 0.0  ;;  %v1095_v16 = vadd.f32 %v1094_v30, %v8353_v51  ;;  %v1096_v20 = vpop.f32.mrb[33].mxu0  ;;  %v8374_v33 = vpop.f32.mrb[47].mxu1 }
 0x24b   :  { %v1320_v25 = vadd.f32 %v8253_v53, %v1095_v16  ;;  %6280 = vmatmul.mubr.msk.f32.gmra.mrb[54].mxu1 %vm489_vm0, %v8362_v12  ;;  %v6956_v50 = vpack.c.bf16 %v8362_v12, %v8349_v0 }
 0x24c   :  { %v1099_v32 = vpop.f32.mrb[34].mxu0 }
 0x24d   :  { %v8376_v39 = vmax.f32 %v1320_v25, 0.0  ;;  %v1100_v42 = vadd.f32 %v1099_v32, %v8365_v37  ;;  %v1101_v43 = vpop.f32.mrb[35].mxu0  ;;  %6957 = vmatpush1.bf16.msra.mxu0 %v6956_v50  ;;  %v296_v37 = vld [vmem:[#allocation7 + $0x3f8] sm:$0xff] }
 0x24e   :  { %6958 = vmatprep.subr.bf16.mxu0 %v10547_v38 }
 0x24f   :  { %v1325_v53 = vadd.f32 %v8251_v52, %v1100_v42  ;;  %6282 = vmatprep.mubr.msk.f32.mxu1 %vm489_vm0, %v8376_v39  ;;  %v8393_v52 = vpop.permute.xlu1 %885 }
 0x250   :  { %v1104_v47 = vpop.f32.mrb[36].mxu0  ;;  %10607 = vst [vmem:[#allocation23_spill] sm:$0xff] %v8393_v52 }
 0x251   :  { %v8385_v13 = vmax.f32 %v1325_v53, 0.0  ;;  %v1105_v57 = vadd.f32 %v1104_v47, %v8383_v45  ;;  %v1106_v18 = vpop.f32.mrb[37].mxu0  ;;  %v290_v45 = vld [vmem:[#allocation7 + $0x3c8] sm:$0xff] }
 0x253   :  { %v1330_v48 = vadd.f32 %v8257_v7, %v1105_v57  ;;  %6283 = vmatmul.mubr.msk.f32.gmra.mrb[56].mxu1 %vm489_vm0, %v8385_v13  ;;  %v6959_v22 = vpack.c.bf16 %v8385_v13, %v8376_v39  ;;  %v8402_v7 = vpop.permute.xlu0 %890 }
 0x254   :  { %v1109_v23 = vpop.f32.mrb[38].mxu0  ;;  %10608 = vst [vmem:[#allocation24_spill] sm:$0xff] %v8402_v7 }
 0x255   :  { %v8395_v5 = vmax.f32 %v1330_v48, 0.0  ;;  %v1110_v6 = vadd.f32 %v1109_v23, %v8393_v52  ;;  %v1111_v30 = vpop.f32.mrb[39].mxu0  ;;  %6960 = vmatpush1.bf16.msra.mxu0 %v6959_v22 }
 0x256   :  { %6961 = vmatprep.subr.bf16.mxu0 %v10547_v38 }
 0x257   :  { %v1335_v16 = vadd.f32 %v8255_v4, %v1110_v6  ;;  %6285 = vmatprep.mubr.msk.f32.mxu1 %vm489_vm0, %v8395_v5  ;;  %v8412_v4 = vpop.permute.xlu1 %895 }
 0x258   :  { %v1114_v20 = vpop.f32.mrb[40].mxu0  ;;  %10609 = vst [vmem:[#allocation25_spill] sm:$0xff] %v8412_v4 }
 0x259   :  { %v8404_v25 = vmax.f32 %v1335_v16, 0.0  ;;  %v1115_v50 = vadd.f32 %v1114_v20, %v8402_v7  ;;  %v1116_v32 = vpop.f32.mrb[41].mxu0 }
 0x25b   :  { %v1340_v42 = vadd.f32 %v8263_v8, %v1115_v50  ;;  %6286 = vmatmul.mubr.msk.f32.gmra.mrb[58].mxu1 %vm489_vm0, %v8404_v25  ;;  %v6962_v43 = vpack.c.bf16 %v8404_v25, %v8395_v5  ;;  %v8421_v8 = vpop.permute.xlu0 %900 }
 0x25c   :  { %v1119_v53 = vpop.f32.mrb[42].mxu0  ;;  %10610 = vst [vmem:[#allocation26_spill] sm:$0xff] %v8421_v8 }
 0x25d   :  { %v8414_v47 = vmax.f32 %v1340_v42, 0.0  ;;  %v1120_v57 = vadd.f32 %v1119_v53, %v8412_v4  ;;  %v1121_v18 = vpop.f32.mrb[43].mxu0  ;;  %6963 = vmatpush1.bf16.msra.mxu0 %v6962_v43 }
 0x25e   :  { %6964 = vmatprep.subr.bf16.mxu0 %v10547_v38 }
 0x25f   :  { %v1345_v48 = vadd.f32 %v8261_v55, %v1120_v57  ;;  %6288 = vmatprep.mubr.msk.f32.mxu1 %vm489_vm0, %v8414_v47  ;;  %v8431_v55 = vpop.permute.xlu1 %905  ;;  %v7329_v57 = vld [vmem:[%s10522_s0 + $0x8] sm:$0xff] }
 0x260   :  { %v1124_v22 = vpop.f32.mrb[44].mxu0  ;;  %10611 = vst [vmem:[#allocation27_spill] sm:$0xff] %v8431_v55 }
 0x261   :  { %v8423_v23 = vmax.f32 %v1345_v48, 0.0  ;;  %v1125_v6 = vadd.f32 %v1124_v22, %v8421_v8  ;;  %v1126_v30 = vpop.f32.mrb[45].mxu0  ;;  %v8448_v48 = vpop.permute.xlu0 %910 }
 0x262   :  { %10612 = vst [vmem:[#allocation28_spill] sm:$0xff] %v8448_v48 }
 0x263   :  { %v1350_v16 = vadd.f32 %v8270_v60, %v1125_v6  ;;  %6289 = vmatmul.mubr.msk.f32.gmra.mrb[60].mxu1 %vm489_vm0, %v8423_v23  ;;  %v6965_v20 = vpack.c.bf16 %v8423_v23, %v8414_v47  ;;  %v7328_v60 = vld [vmem:[%s10522_s0] sm:$0xff] }
 0x264   :  { %v1129_v50 = vpop.f32.mrb[46].mxu0  ;;  %v8446_v18 = vpack.c.bf16 %v7329_v57, %v7328_v60 }
 0x265   :  { %v8433_v32 = vmax.f32 %v1350_v16, 0.0  ;;  %v1130_v42 = vadd.f32 %v1129_v50, %v8431_v55  ;;  %v1131_v43 = vpop.f32.mrb[47].mxu0  ;;  %6966 = vmatpush1.bf16.msra.mxu0 %v6965_v20  ;;  %v8459_v50 = vpop.permute.xlu1 %915  ;;  %v284_v55 = vld [vmem:[#allocation7 + $0x398] sm:$0xff] }
 0x266   :  { %6967 = vmatprep.subr.bf16.mxu0 %v10547_v38  ;;  %6867 = vmatprep.subr.bf16.mxu1 %v8446_v18  ;;  %10613 = vst [vmem:[#allocation29_spill] sm:$0xff] %v8459_v50 }
 0x267   :  { %v1355_v53 = vadd.f32 %v8268_v15, %v1130_v42  ;;  %6291 = vmatprep.mubr.msk.f32.mxu1 %vm489_vm0, %v8433_v32 }
 0x268   :  { %v1134_v22 = vpop.f32.mrb[48].mxu0 }
 0x269   :  { %v8450_v6 = vmax.f32 %v1355_v53, 0.0  ;;  %v1135_v15 = vadd.f32 %v1134_v22, %v8448_v48  ;;  %v1136_v30 = vpop.f32.mrb[49].mxu0 }
 0x26b   :  { %v1360_v16 = vadd.f32 %v8281_v26, %v1135_v15  ;;  %6292 = vmatmul.mubr.msk.f32.gmra.mrb[62].mxu1 %vm489_vm0, %v8450_v6  ;;  %v6968_v20 = vpack.c.bf16 %v8450_v6, %v8433_v32  ;;  %v8468_v26 = vpop.permute.xlu0 %920 }
 0x26c   :  { %v1139_v42 = vpop.f32.mrb[50].mxu0  ;;  %10614 = vst [vmem:[#allocation30_spill] sm:$0xff] %v8468_v26 }
 0x26d   :  { %v8461_v43 = vmax.f32 %v1360_v16, 0.0  ;;  %v1140_v53 = vadd.f32 %v1139_v42, %v8459_v50  ;;  %v1141_v60 = vpop.f32.mrb[51].mxu0  ;;  %6969 = vmatpush1.bf16.msra.mxu0 %v6968_v20 }
 0x26e   :  { %6970 = vmatprep.subr.bf16.mxu0 %v10547_v38 }
 0x26f   :  { %v1365_v57 = vadd.f32 %v8279_v1, %v1140_v53  ;;  %6294 = vmatprep.mubr.msk.f32.mxu1 %vm489_vm0, %v8461_v43  ;;  %v8478_v1 = vpop.permute.xlu1 %925 }
 0x270   :  { %v1144_v22 = vpop.f32.mrb[52].mxu0  ;;  %10615 = vst [vmem:[#allocation31_spill] sm:$0xff] %v8478_v1 }
 0x271   :  { %v8470_v15 = vmax.f32 %v1365_v57, 0.0  ;;  %v1145_v30 = vadd.f32 %v1144_v22, %v8468_v26  ;;  %v1146_v16 = vpop.f32.mrb[53].mxu0 }
 0x273   :  { %v1370_v48 = vadd.f32 %v8294_v31, %v1145_v30  ;;  %6295 = vmatmul.mubr.msk.f32.gmra.mrb[64].mxu1 %vm489_vm0, %v8470_v15  ;;  %v6971_v20 = vpack.c.bf16 %v8470_v15, %v8461_v43  ;;  %v8487_v31 = vpop.permute.xlu0 %930 }
 0x274   :  { %v1149_v42 = vpop.f32.mrb[54].mxu0  ;;  %10616 = vst [vmem:[#allocation32_spill] sm:$0xff] %v8487_v31 }
 0x275   :  { %v8480_v53 = vmax.f32 %v1370_v48, 0.0  ;;  %v1150_v60 = vadd.f32 %v1149_v42, %v8478_v1  ;;  %v1151_v57 = vpop.f32.mrb[55].mxu0  ;;  %6972 = vmatpush1.bf16.msra.mxu0 %v6971_v20 }
 0x276   :  { %6973 = vmatprep.subr.bf16.mxu0 %v10547_v38 }
 0x277   :  { %v1375_v22 = vadd.f32 %v8292_v10, %v1150_v60  ;;  %6297 = vmatprep.mubr.msk.f32.mxu1 %vm489_vm0, %v8480_v53  ;;  %v8497_v10 = vpop.permute.xlu1 %935 }
 0x278   :  { %v1154_v30 = vpop.f32.mrb[56].mxu0  ;;  %10617 = vst [vmem:[#allocation33_spill] sm:$0xff] %v8497_v10 }
 0x279   :  { %v8489_v16 = vmax.f32 %v1375_v22, 0.0  ;;  %v1155_v26 = vadd.f32 %v1154_v30, %v8487_v31  ;;  %v1156_v48 = vpop.f32.mrb[57].mxu0 }
 0x27b   :  { %v1380_v50 = vadd.f32 %v8307_v21, %v1155_v26  ;;  %6298 = vmatmul.mubr.msk.f32.gmra.mrb[66].mxu1 %vm489_vm0, %v8489_v16  ;;  %v6974_v20 = vpack.c.bf16 %v8489_v16, %v8480_v53  ;;  %v8506_v21 = vpop.permute.xlu0 %940 }
 0x27c   :  { %v1159_v42 = vpop.f32.mrb[58].mxu0  ;;  %10618 = vst [vmem:[#allocation34_spill] sm:$0xff] %v8506_v21 }
 0x27d   :  { %v8499_v60 = vmax.f32 %v1380_v50, 0.0  ;;  %v1160_v57 = vadd.f32 %v1159_v42, %v8497_v10  ;;  %v1161_v22 = vpop.f32.mrb[59].mxu0  ;;  %6975 = vmatpush1.bf16.msra.mxu0 %v6974_v20 }
 0x27e   :  { %6976 = vmatprep.subr.bf16.mxu0 %v10547_v38 }
 0x27f   :  { %v1385_v30 = vadd.f32 %v8305_v35, %v1160_v57  ;;  %6300 = vmatprep.mubr.msk.f32.mxu1 %vm489_vm0, %v8499_v60  ;;  %v8516_v35 = vpop.permute.xlu1 %945 }
 0x280   :  { %v1164_v26 = vpop.f32.mrb[60].mxu0  ;;  %10619 = vst [vmem:[#allocation35_spill] sm:$0xff] %v8516_v35 }
 0x281   :  { %v8508_v48 = vmax.f32 %v1385_v30, 0.0  ;;  %v1165_v31 = vadd.f32 %v1164_v26, %v8506_v21  ;;  %v1166_v50 = vpop.f32.mrb[61].mxu0 }
 0x283   :  { %v1390_v1 = vadd.f32 %v8320_v40, %v1165_v31  ;;  %6301 = vmatmul.mubr.msk.f32.gmra.mrb[68].mxu1 %vm489_vm0, %v8508_v48  ;;  %v6977_v20 = vpack.c.bf16 %v8508_v48, %v8499_v60  ;;  %v8525_v40 = vpop.permute.xlu0 %950 }
 0x284   :  { %v1169_v42 = vpop.f32.mrb[62].mxu0  ;;  %10620 = vst [vmem:[#allocation36_spill] sm:$0xff] %v8525_v40 }
 0x285   :  { %v8518_v57 = vmax.f32 %v1390_v1, 0.0  ;;  %v1170_v22 = vadd.f32 %v1169_v42, %v8516_v35  ;;  %v1171_v30 = vpop.f32.mrb[63].mxu0  ;;  %6978 = vmatpush1.bf16.msra.mxu0 %v6977_v20 }
 0x286   :  { %6979 = vmatprep.subr.bf16.mxu0 %v10547_v38 }
 0x287   :  { %v1395_v26 = vadd.f32 %v8318_v36, %v1170_v22  ;;  %6303 = vmatprep.mubr.msk.f32.mxu1 %vm489_vm0, %v8518_v57  ;;  %v8535_v36 = vpop.permute.xlu1 %955 }
 0x288   :  { %v1174_v31 = vpop.f32.mrb[64].mxu0  ;;  %10621 = vst [vmem:[#allocation37_spill] sm:$0xff] %v8535_v36 }
 0x289   :  { %v8527_v50 = vmax.f32 %v1395_v26, 0.0  ;;  %v1175_v21 = vadd.f32 %v1174_v31, %v8525_v40  ;;  %v1176_v1 = vpop.f32.mrb[65].mxu0 }
 0x28b   :  { %v1400_v10 = vadd.f32 %v8333_v49, %v1175_v21  ;;  %6304 = vmatmul.mubr.msk.f32.gmra.mrb[70].mxu1 %vm489_vm0, %v8527_v50  ;;  %v6980_v20 = vpack.c.bf16 %v8527_v50, %v8518_v57  ;;  %v8544_v49 = vpop.permute.xlu0 %960 }
 0x28c   :  { %v1179_v42 = vpop.f32.mrb[66].mxu0  ;;  %10622 = vst [vmem:[#allocation38_spill] sm:$0xff] %v8544_v49 }
 0x28d   :  { %v8537_v22 = vmax.f32 %v1400_v10, 0.0  ;;  %v1180_v30 = vadd.f32 %v1179_v42, %v8535_v36  ;;  %v1181_v26 = vpop.f32.mrb[67].mxu0  ;;  %6981 = vmatpush1.bf16.msra.mxu0 %v6980_v20 }
 0x28e   :  { %6982 = vmatprep.subr.bf16.mxu0 %v10547_v38 }
 0x28f   :  { %v1405_v31 = vadd.f32 %v8331_v46, %v1180_v30  ;;  %6306 = vmatprep.mubr.msk.f32.mxu1 %vm489_vm0, %v8537_v22  ;;  %v8554_v46 = vpop.permute.xlu1 %965 }
 0x290   :  { %v1184_v21 = vpop.f32.mrb[68].mxu0  ;;  %10623 = vst [vmem:[#allocation39_spill] sm:$0xff] %v8554_v46 }
 0x291   :  { %v8546_v1 = vmax.f32 %v1405_v31, 0.0  ;;  %v1185_v40 = vadd.f32 %v1184_v21, %v8544_v49  ;;  %v1186_v10 = vpop.f32.mrb[69].mxu0 }
 0x293   :  { %v1410_v35 = vadd.f32 %v8347_v63, %v1185_v40  ;;  %6307 = vmatmul.mubr.msk.f32.gmra.mrb[72].mxu1 %vm489_vm0, %v8546_v1  ;;  %v6983_v20 = vpack.c.bf16 %v8546_v1, %v8537_v22  ;;  %v8563_v63 = vpop.permute.xlu0 %970 }
 0x294   :  { %v1189_v42 = vpop.f32.mrb[70].mxu0  ;;  %10624 = vst [vmem:[#allocation40_spill] sm:$0xff] %v8563_v63 }
 0x295   :  { %v8556_v30 = vmax.f32 %v1410_v35, 0.0  ;;  %v1190_v26 = vadd.f32 %v1189_v42, %v8554_v46  ;;  %v1191_v31 = vpop.f32.mrb[71].mxu0  ;;  %6984 = vmatpush1.bf16.msra.mxu0 %v6983_v20 }
 0x296   :  { %6985 = vmatprep.subr.bf16.mxu0 %v10547_v38 }
 0x297   :  { %v1415_v21 = vadd.f32 %v8345_v19, %v1190_v26  ;;  %6309 = vmatprep.mubr.msk.f32.mxu1 %vm489_vm0, %v8556_v30  ;;  %v8573_v19 = vpop.permute.xlu1 %975 }
 0x298   :  { %v1194_v40 = vpop.f32.mrb[72].mxu0  ;;  %10625 = vst [vmem:[#allocation41_spill] sm:$0xff] %v8573_v19 }
 0x299   :  { %v8565_v10 = vmax.f32 %v1415_v21, 0.0  ;;  %v1195_v49 = vadd.f32 %v1194_v40, %v8563_v63  ;;  %v1196_v35 = vpop.f32.mrb[73].mxu0 }
 0x29b   :  { %v1420_v36 = vadd.f32 %v8360_v11, %v1195_v49  ;;  %6310 = vmatmul.mubr.msk.f32.gmra.mrb[74].mxu1 %vm489_vm0, %v8565_v10  ;;  %v6986_v20 = vpack.c.bf16 %v8565_v10, %v8556_v30  ;;  %v8582_v11 = vpop.permute.xlu0 %980 }
 0x29c   :  { %v1199_v42 = vpop.f32.mrb[74].mxu0  ;;  %10626 = vst [vmem:[#allocation42_spill] sm:$0xff] %v8582_v11 }
 0x29d   :  { %v8575_v26 = vmax.f32 %v1420_v36, 0.0  ;;  %v1200_v31 = vadd.f32 %v1199_v42, %v8573_v19  ;;  %v1201_v21 = vpop.f32.mrb[75].mxu0  ;;  %6987 = vmatpush1.bf16.msra.mxu0 %v6986_v20  ;;  %v259_v19 = vld [vmem:[#allocation7 + $0x2d0] sm:$0xff] }
 0x29e   :  { %6988 = vmatprep.subr.bf16.mxu0 %v10547_v38 }
 0x29f   :  { %v1425_v40 = vadd.f32 %v8358_v27, %v1200_v31  ;;  %6312 = vmatprep.mubr.msk.f32.mxu1 %vm489_vm0, %v8575_v26  ;;  %v8592_v27 = vpop.permute.xlu1 %985 }
 0x2a0   :  { %v1204_v49 = vpop.f32.mrb[76].mxu0  ;;  %10627 = vst [vmem:[#allocation43_spill] sm:$0xff] %v8592_v27 }
 0x2a1   :  { %v8584_v35 = vmax.f32 %v1425_v40, 0.0  ;;  %v1205_v63 = vadd.f32 %v1204_v49, %v8582_v11  ;;  %v1206_v36 = vpop.f32.mrb[77].mxu0  ;;  %v253_v11 = vld [vmem:[#allocation7 + $0x2a0] sm:$0xff] }
 0x2a2   :  { %v178_v36 = vld [vmem:[#allocation7 + $0x48] sm:$0xff] }
 0x2a3   :  { %v1430_v46 = vadd.f32 %v8374_v33, %v1205_v63  ;;  %6313 = vmatmul.mubr.msk.f32.gmra.mrb[76].mxu1 %vm489_vm0, %v8584_v35  ;;  %v6989_v20 = vpack.c.bf16 %v8584_v35, %v8575_v26  ;;  %v171_v63 = vld [vmem:[#allocation7 + $0x10] sm:$0xff] }
 0x2a4   :  { %v1209_v42 = vpop.f32.mrb[78].mxu0 }
 0x2a5   :  { %v8594_v31 = vmax.f32 %v1430_v46, 0.0  ;;  %v1210_v21 = vadd.f32 %v1209_v42, %v8592_v27  ;;  %v1211_v40 = vpop.f32.mrb[79].mxu0  ;;  %6990 = vmatpush1.bf16.msra.mxu0 %v6989_v20  ;;  %v7331_v20 = vld [vmem:[%s10522_s0 + $0x18] sm:$0xff]  ;;  %v247_v27 = vld [vmem:[#allocation7 + $0x270] sm:$0xff] }
 0x2a6   :  { %6991 = vmatprep.subr.bf16.mxu0 %v10547_v38 }
 0x2a7   :  { %v1435_v49 = vadd.f32 %v8372_v28, %v1210_v21  ;;  %6315 = vmatprep.mubr.msk.f32.mxu1 %vm489_vm0, %v8594_v31  ;;  %v7330_v28 = vld [vmem:[%s10522_s0 + $0x10] sm:$0xff]  ;;  %v184_v21 = vld [vmem:[#allocation7 + $0x78] sm:$0xff] }
 0x2a8   :  { %v6870_v42 = vpack.c.bf16 %v7331_v20, %v7330_v28  ;;  %v7337_v28 = vld [vmem:[%s10522_s0 + $0x48] sm:$0xff] }
 0x2a9   :  { %v8601_v33 = vmax.f32 %v1435_v49, 0.0  ;;  %v190_v49 = vld [vmem:[#allocation7 + $0xa8] sm:$0xff] }
 0x2ab   :  { %6316 = vmatmul.mubr.msk.f32.gmra.mrb[78].mxu1 %vm489_vm0, %v8601_v33  ;;  %v6992_v46 = vpack.c.bf16 %v8601_v33, %v8594_v31 }
 0x2ac   :  { %6322 = vmatprep.mubr.msk.f32.mxu1 %vm489_vm0, %v8274_v62  ;;  %v177_v62 = vld [vmem:[#allocation7 + $0x40] sm:$0xff] }
 0x2ad   :  { %6993 = vmatpush1.bf16.msra.mxu0 %v6992_v46  ;;  %v7335_v46 = vld [vmem:[%s10522_s0 + $0x38] sm:$0xff] }
 0x2ae   :  { %7043 = vmatprep.subr.bf16.mxu0 %v7868_v3 }
 0x2af   :  { %6323 = vmatmul.mubr.msk.f32.vlgmr.msra.gmra.mrb[80].mxu1 %vm489_vm0, %v8283_v2  ;;  %v7332_v2 = vld [vmem:[%s10522_s0 + $0x20] sm:$0xff] }
 0x2b0   :  { %6325 = vmatprep.mubr.msk.f32.mxu1 %vm489_vm0, %v8297_v34  ;;  %2531 = vmatmul.mubr.f32.vlgmr.msra.gmra.mrb[80].mxu0 %v171_v63  ;;  %v7333_v34 = vld [vmem:[%s10522_s0 + $0x28] sm:$0xff] }
 0x2b1   :  { %2535 = vmatprep.mubr.f32.mxu0 %v178_v36  ;;  %7045 = vmatpush3.bf16.msra.mxu0 %v7868_v3  ;;  %v6874_v40 = vpack.c.bf16 %v7333_v34, %v7332_v2  ;;  %v196_v36 = vld [vmem:[#allocation7 + $0xd8] sm:$0xff] }
 0x2b2   :  { %6869 = vmatpush3.bf16.msra.mxu1 %v8446_v18  ;;  %7047 = vmatprep.subr.bf16.mxu0 %v7898_v14  ;;  %v183_v18 = vld [vmem:[#allocation7 + $0x70] sm:$0xff]  ;;  %v208_v2 = vld [vmem:[#allocation7 + $0x138] sm:$0xff] }
 0x2b3   :  { %6326 = vmatmul.mubr.msk.f32.gmra.mrb[82].mxu1 %vm489_vm0, %v8309_v24  ;;  %6871 = vmatprep.subr.bf16.mxu1 %v6870_v42  ;;  %v7334_v24 = vld [vmem:[%s10522_s0 + $0x30] sm:$0xff]  ;;  %v7341_v34 = vld [vmem:[%s10522_s0 + $0x68] sm:$0xff] }
 0x2b4   :  { %6328 = vmatprep.mubr.msk.f32.mxu1 %vm489_vm0, %v8322_v41  ;;  %2536 = vmatmul.mubr.f32.gmra.mrb[82].mxu0 %v177_v62  ;;  %v6878_v63 = vpack.c.bf16 %v7335_v46, %v7334_v24  ;;  %v189_v41 = vld [vmem:[#allocation7 + $0xa0] sm:$0xff]  ;;  %v7339_v62 = vld [vmem:[%s10522_s0 + $0x58] sm:$0xff]  ;;  %v220_v46 = vld [vmem:[#allocation7 + $0x198] sm:$0xff] }
 0x2b5   :  { %2540 = vmatprep.mubr.f32.mxu0 %v184_v21 }
 0x2b6   :  { %6873 = vmatpush3.bf16.msra.mxu1 %v6870_v42  ;;  %v202_v42 = vld [vmem:[#allocation7 + $0x108] sm:$0xff] }
 0x2b7   :  { %6329 = vmatmul.mubr.msk.f32.gmra.mrb[84].mxu1 %vm489_vm0, %v8335_v56  ;;  %6875 = vmatprep.subr.bf16.mxu1 %v6874_v40  ;;  %v7336_v56 = vld [vmem:[%s10522_s0 + $0x40] sm:$0xff] }
 0x2b8   :  { %6331 = vmatprep.mubr.msk.f32.mxu1 %vm489_vm0, %v8349_v0  ;;  %2541 = vmatmul.mubr.f32.gmra.mrb[84].mxu0 %v183_v18  ;;  %v6882_v20 = vpack.c.bf16 %v7337_v28, %v7336_v56  ;;  %v195_v0 = vld [vmem:[#allocation7 + $0xd0] sm:$0xff]  ;;  %v214_v18 = vld [vmem:[#allocation7 + $0x168] sm:$0xff]  ;;  %v273_v56 = vld [vmem:[#allocation7 + $0x340] sm:$0xff] }
 0x2b9   :  { %2545 = vmatprep.mubr.f32.mxu0 %v190_v49  ;;  %v7343_v49 = vld [vmem:[%s10522_s0 + $0x78] sm:$0xff]  ;;  %v365_v28 = vld [vmem:[%s10528_s6 + $0x20] sm:$0xff] }
 0x2ba   :  { %6877 = vmatpush3.bf16.msra.mxu1 %v6874_v40 }
 0x2bb   :  { %6332 = vmatmul.mubr.msk.f32.gmra.mrb[86].mxu1 %vm489_vm0, %v8362_v12  ;;  %6879 = vmatprep.subr.bf16.mxu1 %v6878_v63  ;;  %v7338_v12 = vld [vmem:[%s10522_s0 + $0x50] sm:$0xff] }
 0x2bc   :  { %6334 = vmatprep.mubr.msk.f32.mxu1 %vm489_vm0, %v8376_v39  ;;  %2546 = vmatmul.mubr.f32.gmra.mrb[86].mxu0 %v189_v41  ;;  %v6886_v21 = vpack.c.bf16 %v7339_v62, %v7338_v12  ;;  %v201_v39 = vld [vmem:[#allocation7 + $0x100] sm:$0xff]  ;;  %v238_v41 = vld [vmem:[#allocation7 + $0x228] sm:$0xff] }
 0x2bd   :  { %2550 = vmatprep.mubr.f32.mxu0 %v196_v36  ;;  %v274_v36 = vld [vmem:[#allocation7 + $0x348] sm:$0xff]  ;;  %v367_v12 = vld [vmem:[%s10528_s6 + $0x30] sm:$0xff] }
 0x2be   :  { %6881 = vmatpush3.bf16.msra.mxu1 %v6878_v63  ;;  %v226_v63 = vld [vmem:[#allocation7 + $0x1c8] sm:$0xff] }
 0x2bf   :  { %6335 = vmatmul.mubr.msk.f32.gmra.mrb[88].mxu1 %vm489_vm0, %v8385_v13  ;;  %6883 = vmatprep.subr.bf16.mxu1 %v6882_v20  ;;  %v7340_v13 = vld [vmem:[%s10522_s0 + $0x60] sm:$0xff]  ;;  %v286_v62 = vld [vmem:[#allocation7 + $0x3a8] sm:$0xff] }
 0x2c0   :  { %6337 = vmatprep.mubr.msk.f32.mxu1 %vm489_vm0, %v8395_v5  ;;  %2551 = vmatmul.mubr.f32.gmra.mrb[88].mxu0 %v195_v0  ;;  %v6890_v40 = vpack.c.bf16 %v7341_v34, %v7340_v13  ;;  %v207_v5 = vld [vmem:[#allocation7 + $0x130] sm:$0xff]  ;;  %v366_v0 = vld [vmem:[%s10528_s6 + $0x28] sm:$0xff] }
 0x2c1   :  { %2555 = vmatprep.mubr.f32.mxu0 %v202_v42  ;;  %v279_v42 = vld [vmem:[#allocation7 + $0x370] sm:$0xff]  ;;  %v292_v13 = vld [vmem:[#allocation7 + $0x3d8] sm:$0xff] }
 0x2c2   :  { %6885 = vmatpush3.bf16.msra.mxu1 %v6882_v20  ;;  %v280_v20 = vld [vmem:[#allocation7 + $0x378] sm:$0xff] }
 0x2c3   :  { %6338 = vmatmul.mubr.msk.f32.gmra.mrb[90].mxu1 %vm489_vm0, %v8404_v25  ;;  %6887 = vmatprep.subr.bf16.mxu1 %v6886_v21  ;;  %v7342_v25 = vld [vmem:[%s10522_s0 + $0x70] sm:$0xff]  ;;  %v370_v34 = vld [vmem:[%s10528_s6 + $0x48] sm:$0xff] }
 0x2c4   :  { %6340 = vmatprep.mubr.msk.f32.mxu1 %vm489_vm0, %v8414_v47  ;;  %2556 = vmatmul.mubr.f32.gmra.mrb[90].mxu0 %v201_v39  ;;  %v6894_v24 = vpack.c.bf16 %v7343_v49, %v7342_v25  ;;  %v213_v47 = vld [vmem:[#allocation7 + $0x160] sm:$0xff]  ;;  %v372_v25 = vld [vmem:[%s10528_s6 + $0x58] sm:$0xff] }
 0x2c5   :  { %2560 = vmatprep.mubr.f32.mxu0 %v208_v2  ;;  %v285_v39 = vld [vmem:[#allocation7 + $0x3a0] sm:$0xff]  ;;  %v369_v2 = vld [vmem:[%s10528_s6 + $0x40] sm:$0xff] }
 0x2c6   :  { %6889 = vmatpush3.bf16.msra.mxu1 %v6886_v21  ;;  %v368_v21 = vld [vmem:[%s10528_s6 + $0x38] sm:$0xff]  ;;  %v297_v49 = vld [vmem:[#allocation7 + $0x400] sm:$0xff] }
 0x2c7   :  { %6341 = vmatmul.mubr.msk.f32.gmra.mrb[92].mxu1 %vm489_vm0, %v8423_v23  ;;  %6891 = vmatprep.subr.bf16.mxu1 %v6890_v40  ;;  %v219_v23 = vld [vmem:[#allocation7 + $0x190] sm:$0xff] }
 0x2c8   :  { %6343 = vmatprep.mubr.msk.f32.mxu1 %vm489_vm0, %v8433_v32  ;;  %2561 = vmatmul.mubr.f32.gmra.mrb[92].mxu0 %v207_v5  ;;  %v225_v32 = vld [vmem:[#allocation7 + $0x1c0] sm:$0xff] }
 0x2c9   :  { %2565 = vmatprep.mubr.f32.mxu0 %v214_v18  ;;  %v371_v5 = vld [vmem:[%s10528_s6 + $0x50] sm:$0xff]  ;;  %v298_v18 = vld [vmem:[#allocation7 + $0x408] sm:$0xff] }
 0x2ca   :  { %6893 = vmatpush3.bf16.msra.mxu1 %v6890_v40  ;;  %v291_v40 = vld [vmem:[#allocation7 + $0x3d0] sm:$0xff] }
 0x2cb   :  { %6344 = vmatmul.mubr.msk.f32.gmra.mrb[94].mxu1 %vm489_vm0, %v8450_v6  ;;  %6895 = vmatprep.subr.bf16.mxu1 %v6894_v24  ;;  %v232_v6 = vld [vmem:[#allocation7 + $0x1f8] sm:$0xff] }
 0x2cc   :  { %6346 = vmatprep.mubr.msk.f32.mxu1 %vm489_vm0, %v8461_v43  ;;  %2566 = vmatmul.mubr.f32.gmra.mrb[94].mxu0 %v213_v47  ;;  %v231_v43 = vld [vmem:[#allocation7 + $0x1f0] sm:$0xff]  ;;  %v304_v47 = vld [vmem:[#allocation7 + $0x438] sm:$0xff] }
 0x2cd   :  { %2570 = vmatprep.mubr.f32.mxu0 %v220_v46  ;;  %v374_v46 = vld [vmem:[%s10528_s6 + $0x68] sm:$0xff] }
 0x2ce   :  { %6897 = vmatpush3.bf16.msra.mxu1 %v6894_v24  ;;  %v373_v24 = vld [vmem:[%s10528_s6 + $0x60] sm:$0xff] }
 0x2cf   :  { %6347 = vmatmul.mubr.msk.f32.gmra.mrb[96].mxu1 %vm489_vm0, %v8470_v15  ;;  %6898 = vmatprep.subr.bf16.mxu1 %v10547_v38  ;;  %v237_v15 = vld [vmem:[#allocation7 + $0x220] sm:$0xff] }
 0x2d0   :  { %6349 = vmatprep.mubr.msk.f32.mxu1 %vm489_vm0, %v8480_v53  ;;  %2571 = vmatmul.mubr.f32.gmra.mrb[96].mxu0 %v219_v23  ;;  %v244_v53 = vld [vmem:[#allocation7 + $0x258] sm:$0xff]  ;;  %v303_v23 = vld [vmem:[#allocation7 + $0x430] sm:$0xff] }
 0x2d1   :  { %2575 = vmatprep.mubr.f32.mxu0 %v226_v63  ;;  %v375_v63 = vld [vmem:[%s10528_s6 + $0x70] sm:$0xff] }
 0x2d3   :  { %6350 = vmatmul.mubr.msk.f32.gmra.mrb[98].mxu1 %vm489_vm0, %v8489_v16  ;;  %v243_v16 = vld [vmem:[#allocation7 + $0x250] sm:$0xff] }
 0x2d4   :  { %6352 = vmatprep.mubr.msk.f32.mxu1 %vm489_vm0, %v8499_v60  ;;  %2576 = vmatmul.mubr.f32.gmra.mrb[98].mxu0 %v225_v32  ;;  %v250_v60 = vld [vmem:[#allocation7 + $0x288] sm:$0xff] }
 0x2d5   :  { %2580 = vmatprep.mubr.f32.mxu0 %v232_v6  ;;  %v310_v6 = vld [vmem:[#allocation7 + $0x468] sm:$0xff] }
 0x2d7   :  { %6353 = vmatmul.mubr.msk.f32.gmra.mrb[100].mxu1 %vm489_vm0, %v8508_v48  ;;  %v249_v48 = vld [vmem:[#allocation7 + $0x280] sm:$0xff] }
 0x2d8   :  { %6355 = vmatprep.mubr.msk.f32.mxu1 %vm489_vm0, %v8518_v57  ;;  %2581 = vmatmul.mubr.f32.gmra.mrb[100].mxu0 %v231_v43  ;;  %v256_v57 = vld [vmem:[#allocation7 + $0x2b8] sm:$0xff] }
 0x2d9   :  { %2585 = vmatprep.mubr.f32.mxu0 %v238_v41 }
 0x2db   :  { %6356 = vmatmul.mubr.msk.f32.gmra.mrb[102].mxu1 %vm489_vm0, %v8527_v50  ;;  %v255_v50 = vld [vmem:[#allocation7 + $0x2b0] sm:$0xff] }
 0x2dc   :  { %6358 = vmatprep.mubr.msk.f32.mxu1 %vm489_vm0, %v8537_v22  ;;  %2586 = vmatmul.mubr.f32.gmra.mrb[102].mxu0 %v237_v15  ;;  %v262_v22 = vld [vmem:[#allocation7 + $0x2e8] sm:$0xff] }
 0x2dd   :  { %2590 = vmatprep.mubr.f32.mxu0 %v244_v53  ;;  %v376_v15 = vld [vmem:[%s10528_s6 + $0x78] sm:$0xff]  ;;  %v309_v53 = vld [vmem:[#allocation7 + $0x460] sm:$0xff] }
 0x2df   :  { %6359 = vmatmul.mubr.msk.f32.gmra.mrb[104].mxu1 %vm489_vm0, %v8546_v1  ;;  %v261_v1 = vld [vmem:[#allocation7 + $0x2e0] sm:$0xff] }
 0x2e0   :  { %6361 = vmatprep.mubr.msk.f32.mxu1 %vm489_vm0, %v8556_v30  ;;  %2591 = vmatmul.mubr.f32.gmra.mrb[104].mxu0 %v243_v16  ;;  %v361_v30 = vld [vmem:[%s10528_s6] sm:$0xff] }
 0x2e1   :  { %2595 = vmatprep.mubr.f32.mxu0 %v250_v60  ;;  %v377_v16 = vld [vmem:[%s10528_s6 + $0x80] sm:$0xff]  ;;  %v316_v60 = vld [vmem:[#allocation7 + $0x498] sm:$0xff] }
 0x2e3   :  { %6362 = vmatmul.mubr.msk.f32.gmra.mrb[106].mxu1 %vm489_vm0, %v8565_v10  ;;  %v268_v10 = vld [vmem:[#allocation7 + $0x318] sm:$0xff] }
 0x2e4   :  { %6364 = vmatprep.mubr.msk.f32.mxu1 %vm489_vm0, %v8575_v26  ;;  %2596 = vmatmul.mubr.f32.gmra.mrb[106].mxu0 %v249_v48  ;;  %v362_v26 = vld [vmem:[%s10528_s6 + $0x8] sm:$0xff] }
 0x2e5   :  { %2600 = vmatprep.mubr.f32.mxu0 %v256_v57  ;;  %v378_v48 = vld [vmem:[%s10528_s6 + $0x88] sm:$0xff]  ;;  %v315_v57 = vld [vmem:[#allocation7 + $0x490] sm:$0xff] }
 0x2e7   :  { %6365 = vmatmul.mubr.msk.f32.gmra.mrb[108].mxu1 %vm489_vm0, %v8584_v35  ;;  %v267_v35 = vld [vmem:[#allocation7 + $0x310] sm:$0xff] }
 0x2e8   :  { %6367 = vmatprep.mubr.msk.f32.mxu1 %vm489_vm0, %v8594_v31  ;;  %2601 = vmatmul.mubr.f32.gmra.mrb[108].mxu0 %v255_v50  ;;  %v363_v31 = vld [vmem:[%s10528_s6 + $0x10] sm:$0xff] }
 0x2e9   :  { %2605 = vmatprep.mubr.f32.mxu0 %v262_v22  ;;  %v379_v50 = vld [vmem:[%s10528_s6 + $0x90] sm:$0xff] }
 0x2eb   :  { %6368 = vmatmul.mubr.msk.f32.gmra.mrb[110].mxu1 %vm489_vm0, %v8601_v33  ;;  %v364_v33 = vld [vmem:[%s10528_s6 + $0x18] sm:$0xff] }
 0x2ec   :  { %2606 = vmatmul.mubr.f32.gmra.mrb[110].mxu0 %v261_v1  ;;  %6402 = vmatprep.mubr.f32.mxu1 %v361_v30  ;;  %v322_v1 = vld [vmem:[#allocation7 + $0x4c8] sm:$0xff] }
 0x2ed   :  { %2610 = vmatprep.mubr.f32.mxu0 %v268_v10 }
 0x2ef   :  { %6403 = vmatmul.mubr.f32.vlgmr.msra.gmra.mrb[112].mxu1 %v362_v26  ;;  %v380_v26 = vld [vmem:[%s10528_s6 + $0x98] sm:$0xff] }
 0x2f0   :  { %2611 = vmatmul.mubr.f32.gmra.mrb[112].mxu0 %v267_v35  ;;  %6405 = vmatprep.mubr.f32.mxu1 %v363_v31  ;;  %v321_v35 = vld [vmem:[#allocation7 + $0x4c0] sm:$0xff]  ;;  %v381_v31 = vld [vmem:[%s10528_s6 + $0xa0] sm:$0xff] }
 0x2f1   :  { %2615 = vmatprep.mubr.f32.mxu0 %v274_v36  ;;  %v328_v36 = vld [vmem:[#allocation7 + $0x4f8] sm:$0xff] }
 0x2f3   :  { %6406 = vmatmul.mubr.f32.gmra.mrb[114].mxu1 %v364_v33  ;;  %v382_v33 = vld [vmem:[%s10528_s6 + $0xa8] sm:$0xff] }
 0x2f4   :  { %2616 = vmatmul.mubr.f32.gmra.mrb[114].mxu0 %v273_v56  ;;  %6408 = vmatprep.mubr.f32.mxu1 %v365_v28  ;;  %v327_v56 = vld [vmem:[#allocation7 + $0x4f0] sm:$0xff]  ;;  %v383_v28 = vld [vmem:[%s10528_s6 + $0xb0] sm:$0xff] }
 0x2f5   :  { %2620 = vmatprep.mubr.f32.mxu0 %v280_v20 }
 0x2f7   :  { %6409 = vmatmul.mubr.f32.gmra.mrb[116].mxu1 %v366_v0  ;;  %v334_v0 = vld [vmem:[#allocation7 + $0x528] sm:$0xff] }
 0x2f8   :  { %2621 = vmatmul.mubr.f32.gmra.mrb[116].mxu0 %v279_v42  ;;  %6411 = vmatprep.mubr.f32.mxu1 %v367_v12 }
 0x2f9   :  { %2625 = vmatprep.mubr.f32.mxu0 %v286_v62  ;;  %v384_v62 = vld [vmem:[%s10528_s6 + $0xb8] sm:$0xff] }
 0x2fb   :  { %6412 = vmatmul.mubr.f32.gmra.mrb[118].mxu1 %v368_v21  ;;  %v333_v21 = vld [vmem:[#allocation7 + $0x520] sm:$0xff] }
 0x2fc   :  { %2626 = vmatmul.mubr.f32.gmra.mrb[118].mxu0 %v285_v39  ;;  %6414 = vmatprep.mubr.f32.mxu1 %v369_v2  ;;  %v385_v39 = vld [vmem:[%s10528_s6 + $0xc0] sm:$0xff]  ;;  %v340_v2 = vld [vmem:[#allocation7 + $0x558] sm:$0xff] }
 0x2fd   :  { %2630 = vmatprep.mubr.f32.mxu0 %v292_v13  ;;  %v386_v13 = vld [vmem:[%s10528_s6 + $0xc8] sm:$0xff] }
 0x2ff   :  { %6415 = vmatmul.mubr.f32.gmra.mrb[120].mxu1 %v370_v34  ;;  %v339_v34 = vld [vmem:[#allocation7 + $0x550] sm:$0xff] }
 0x300   :  { %2631 = vmatmul.mubr.f32.gmra.mrb[120].mxu0 %v291_v40  ;;  %6417 = vmatprep.mubr.f32.mxu1 %v371_v5  ;;  %v387_v40 = vld [vmem:[%s10528_s6 + $0xd0] sm:$0xff] }
 0x301   :  { %2635 = vmatprep.mubr.f32.mxu0 %v298_v18  ;;  %v346_v18 = vld [vmem:[#allocation7 + $0x588] sm:$0xff] }
 0x303   :  { %6418 = vmatmul.mubr.f32.gmra.mrb[122].mxu1 %v372_v25 }
 0x304   :  { %2636 = vmatmul.mubr.f32.gmra.mrb[122].mxu0 %v297_v49  ;;  %6420 = vmatprep.mubr.f32.mxu1 %v373_v24  ;;  %v388_v24 = vld [vmem:[%s10528_s6 + $0xd8] sm:$0xff] }
 0x305   :  { %2640 = vmatprep.mubr.f32.mxu0 %v304_v47  ;;  %v345_v47 = vld [vmem:[#allocation7 + $0x580] sm:$0xff] }
 0x306   :  { %v6272_v32 = vpop.f32.mrb[48].mxu1 }
 0x307   :  { %v1632_v43 = vpop.f32.mrb[49].mxu1  ;;  %6421 = vmatmul.mubr.f32.gmra.mrb[124].mxu1 %v374_v46  ;;  %v389_v46 = vld [vmem:[%s10528_s6 + $0xe0] sm:$0xff] }
 0x308   :  { %v6899_v41 = vpack.c.bf16 %v6272_v32, %v1632_v43  ;;  %2641 = vmatmul.mubr.f32.gmra.mrb[124].mxu0 %v303_v23  ;;  %6423 = vmatprep.mubr.f32.mxu1 %v375_v63  ;;  %v352_v23 = vld [vmem:[#allocation7 + $0x5b8] sm:$0xff]  ;;  %v351_v32 = vld [vmem:[#allocation7 + $0x5b0] sm:$0xff] }
 0x309   :  { %2645 = vmatprep.mubr.f32.mxu0 %v310_v6  ;;  %v390_v63 = vld [vmem:[%s10528_s6 + $0xe8] sm:$0xff]  ;;  %v391_v6 = vld [vmem:[%s10528_s6 + $0xf0] sm:$0xff] }
 0x30a   :  { %6900 = vmatpush1.bf16.msra.mxu1 %v6899_v41  ;;  %v358_v41 = vld [vmem:[#allocation7 + $0x5e8] sm:$0xff] }
 0x30b   :  { %6901 = vmatprep.subr.bf16.mxu1 %v10547_v38  ;;  %6424 = vmatmul.mubr.f32.gmra.mrb[126].mxu1 %v376_v15  ;;  %v5618_v15 = vld [vmem:[%s10522_s0 + $0x80] sm:$0xff] }
 0x30c   :  { %2646 = vmatmul.mubr.f32.gmra.mrb[126].mxu0 %v309_v53  ;;  %6426 = vmatprep.mubr.f32.mxu1 %v377_v16 }
 0x30d   :  { %2650 = vmatprep.mubr.f32.mxu0 %v316_v60  ;;  %v392_v60 = vld [vmem:[%s10528_s6 + $0xf8] sm:$0xff] }
 0x30e   :  { %v6275_v22 = vpop.f32.mrb[50].mxu1 }
 0x30f   :  { %v1642_v30 = vpop.f32.mrb[51].mxu1  ;;  %6427 = vmatmul.mubr.f32.gmra.mrb[128].mxu1 %v378_v48  ;;  %v357_v48 = vld [vmem:[#allocation7 + $0x5e0] sm:$0xff] }
 0x310   :  { %v6902_v10 = vpack.c.bf16 %v6275_v22, %v1642_v30  ;;  %2651 = vmatmul.mubr.f32.gmra.mrb[128].mxu0 %v315_v57  ;;  %6429 = vmatprep.mubr.f32.mxu1 %v379_v50  ;;  %v8821_v57 = vmax.f32 %v5618_v15, 0.0  ;;  %v5619_v50 = vld [vmem:[%s10522_s0 + $0x88] sm:$0xff]  ;;  %v170_v22 = vld [vmem:[#allocation7 + $0x8] sm:$0xff] }
 0x311   :  { %2655 = vmatprep.mubr.f32.mxu0 %v322_v1  ;;  %v5620_v1 = vld [vmem:[%s10522_s0 + $0x90] sm:$0xff]  ;;  %v8830_v30 = vmax.f32 %v5619_v50, 0.0 }
 0x312   :  { %6903 = vmatpush1.bf16.msra.mxu1 %v6902_v10  ;;  %v8834_v10 = vmax.f32 %v5620_v1, 0.0 }
 0x313   :  { %6904 = vmatprep.subr.bf16.mxu1 %v10547_v38  ;;  %6430 = vmatmul.mubr.f32.gmra.mrb[130].mxu1 %v380_v26  ;;  %v5621_v26 = vld [vmem:[%s10522_s0 + $0x98] sm:$0xff] }
 0x314   :  { %2656 = vmatmul.mubr.f32.gmra.mrb[130].mxu0 %v321_v35  ;;  %6432 = vmatprep.mubr.f32.mxu1 %v381_v31  ;;  %v5622_v31 = vld [vmem:[%s10522_s0 + $0xa0] sm:$0xff] }
 0x315   :  { %2660 = vmatprep.mubr.f32.mxu0 %v328_v36 }
 0x316   :  { %v6278_v20 = vpop.f32.mrb[52].mxu1 }
 0x317   :  { %v1652_v42 = vpop.f32.mrb[53].mxu1  ;;  %6433 = vmatmul.mubr.f32.gmra.mrb[132].mxu1 %v382_v33 }
 0x318   :  { %v6905_v12 = vpack.c.bf16 %v6278_v20, %v1652_v42  ;;  %2661 = vmatmul.mubr.f32.gmra.mrb[132].mxu0 %v327_v56  ;;  %6435 = vmatprep.mubr.f32.mxu1 %v383_v28  ;;  %v8844_v56 = vmax.f32 %v5621_v26, 0.0  ;;  %v8848_v28 = vmax.f32 %v5622_v31, 0.0  ;;  %v5623_v20 = vld [vmem:[%s10522_s0 + $0xa8] sm:$0xff] }
 0x319   :  { %2665 = vmatprep.mubr.f32.mxu0 %v334_v0  ;;  %v5624_v0 = vld [vmem:[%s10522_s0 + $0xb0] sm:$0xff]  ;;  %v8861_v42 = vmax.f32 %v5623_v20, 0.0 }
 0x31a   :  { %6906 = vmatpush1.bf16.msra.mxu1 %v6905_v12  ;;  %v8865_v12 = vmax.f32 %v5624_v0, 0.0 }
 0x31b   :  { %6907 = vmatprep.subr.bf16.mxu1 %v10547_v38  ;;  %6436 = vmatmul.mubr.f32.gmra.mrb[134].mxu1 %v384_v62  ;;  %v5625_v62 = vld [vmem:[%s10522_s0 + $0xb8] sm:$0xff] }
 0x31c   :  { %2666 = vmatmul.mubr.f32.gmra.mrb[134].mxu0 %v333_v21  ;;  %6438 = vmatprep.mubr.f32.mxu1 %v385_v39  ;;  %v5626_v39 = vld [vmem:[%s10522_s0 + $0xc0] sm:$0xff] }
 0x31d   :  { %2670 = vmatprep.mubr.f32.mxu0 %v340_v2 }
 0x31e   :  { %v6281_v5 = vpop.f32.mrb[54].mxu1 }
 0x31f   :  { %v1662_v25 = vpop.f32.mrb[55].mxu1  ;;  %6439 = vmatmul.mubr.f32.gmra.mrb[136].mxu1 %v386_v13 }
 0x320   :  { %v6908_v49 = vpack.c.bf16 %v6281_v5, %v1662_v25  ;;  %2671 = vmatmul.mubr.f32.gmra.mrb[136].mxu0 %v339_v34  ;;  %6441 = vmatprep.mubr.f32.mxu1 %v387_v40  ;;  %v8875_v34 = vmax.f32 %v5625_v62, 0.0  ;;  %v8879_v40 = vmax.f32 %v5626_v39, 0.0  ;;  %v5627_v5 = vld [vmem:[%s10522_s0 + $0xc8] sm:$0xff] }
 0x321   :  { %2675 = vmatprep.mubr.f32.mxu0 %v346_v18  ;;  %v5628_v18 = vld [vmem:[%s10522_s0 + $0xd0] sm:$0xff]  ;;  %v8890_v25 = vmax.f32 %v5627_v5, 0.0 }
 0x322   :  { %6909 = vmatpush1.bf16.msra.mxu1 %v6908_v49  ;;  %v8894_v49 = vmax.f32 %v5628_v18, 0.0 }
 0x323   :  { %6910 = vmatprep.subr.bf16.mxu1 %v10547_v38  ;;  %6442 = vmatmul.mubr.f32.gmra.mrb[138].mxu1 %v388_v24  ;;  %v5629_v24 = vld [vmem:[%s10522_s0 + $0xd8] sm:$0xff] }
 0x324   :  { %2676 = vmatmul.mubr.f32.gmra.mrb[138].mxu0 %v345_v47  ;;  %6444 = vmatprep.mubr.f32.mxu1 %v389_v46  ;;  %v5630_v46 = vld [vmem:[%s10522_s0 + $0xe0] sm:$0xff] }
 0x325   :  { %2680 = vmatprep.mubr.f32.mxu0 %v352_v23 }
 0x326   :  { %v6284_v43 = vpop.f32.mrb[56].mxu1 }
 0x327   :  { %v1672_v53 = vpop.f32.mrb[57].mxu1  ;;  %6445 = vmatmul.mubr.f32.gmra.mrb[140].mxu1 %v390_v63 }
 0x328   :  { %v6911_v16 = vpack.c.bf16 %v6284_v43, %v1672_v53  ;;  %2681 = vmatmul.mubr.f32.gmra.mrb[140].mxu0 %v351_v32  ;;  %6447 = vmatprep.mubr.f32.mxu1 %v391_v6  ;;  %v8904_v32 = vmax.f32 %v5629_v24, 0.0  ;;  %v8908_v6 = vmax.f32 %v5630_v46, 0.0  ;;  %v5631_v43 = vld [vmem:[%s10522_s0 + $0xe8] sm:$0xff] }
 0x329   :  { %2685 = vmatprep.mubr.f32.mxu0 %v358_v41  ;;  %v5632_v41 = vld [vmem:[%s10522_s0 + $0xf0] sm:$0xff]  ;;  %v8919_v15 = vmax.f32 %v5631_v43, 0.0 }
 0x32a   :  { %6912 = vmatpush1.bf16.msra.mxu1 %v6911_v16  ;;  %v8923_v53 = vmax.f32 %v5632_v41, 0.0  ;;  %v5633_v16 = vld [vmem:[%s10522_s0 + $0xf8] sm:$0xff] }
 0x32b   :  { %6913 = vmatprep.subr.bf16.mxu1 %v10547_v38  ;;  %6448 = vmatmul.mubr.f32.gmra.mrb[142].mxu1 %v392_v60 }
 0x32c   :  { %2686 = vmatmul.mubr.f32.gmra.mrb[142].mxu0 %v357_v48  ;;  %2305 = vmatprep.mubr.f32.mxu1 %v170_v22  ;;  %v8930_v22 = vmax.f32 %v5633_v16, 0.0 }
 0x32d   :  { %6454 = vmatprep.mubr.msk.f32.mxu0 %vm489_vm0, %v8821_v57 }
 0x32e   :  { %v6287_v35 = vpop.f32.mrb[58].mxu1 }
 0x32f   :  { %v1682_v36 = vpop.f32.mrb[59].mxu1 }
 0x330   :  { %v6914_v33 = vpack.c.bf16 %v6287_v35, %v1682_v36  ;;  %6455 = vmatmul.mubr.msk.f32.vlgmr.msra.gmra.mrb[144].mxu0 %vm489_vm0, %v8830_v30 }
 0x331   :  { %6457 = vmatprep.mubr.msk.f32.mxu0 %vm489_vm0, %v8834_v10  ;;  %7049 = vmatpush3.bf16.msra.mxu0 %v7898_v14 }
 0x332   :  { %6915 = vmatpush1.bf16.msra.mxu1 %v6914_v33  ;;  %7050 = vmatprep.subr.bf16.mxu0 %v10547_v38 }
 0x333   :  { %6916 = vmatprep.subr.bf16.mxu1 %v10547_v38 }
 0x334   :  { %6458 = vmatmul.mubr.msk.f32.gmra.mrb[146].mxu0 %vm489_vm0, %v8844_v56 }
 0x335   :  { %6460 = vmatprep.mubr.msk.f32.mxu0 %vm489_vm0, %v8848_v28 }
 0x336   :  { %v6290_v21 = vpop.f32.mrb[60].mxu1 }
 0x337   :  { %v1692_v2 = vpop.f32.mrb[61].mxu1 }
 0x338   :  { %v6917_v13 = vpack.c.bf16 %v6290_v21, %v1692_v2  ;;  %6461 = vmatmul.mubr.msk.f32.gmra.mrb[148].mxu0 %vm489_vm0, %v8861_v42 }
 0x339   :  { %6463 = vmatprep.mubr.msk.f32.mxu0 %vm489_vm0, %v8865_v12 }
 0x33a   :  { %6918 = vmatpush1.bf16.msra.mxu1 %v6917_v13  ;;  %v7344_v13 = vld [vmem:[#allocation5 + $0x8] sm:$0xff] }
 0x33b   :  { %6919 = vmatprep.subr.bf16.mxu1 %v10547_v38 }
 0x33c   :  { %6464 = vmatmul.mubr.msk.f32.gmra.mrb[150].mxu0 %vm489_vm0, %v8875_v34 }
 0x33d   :  { %6466 = vmatprep.mubr.msk.f32.mxu0 %vm489_vm0, %v8879_v40 }
 0x33e   :  { %v6293_v47 = vpop.f32.mrb[62].mxu1 }
 0x33f   :  { %v1702_v23 = vpop.f32.mrb[63].mxu1 }
 0x340   :  { %v6920_v63 = vpack.c.bf16 %v6293_v47, %v1702_v23  ;;  %6467 = vmatmul.mubr.msk.f32.gmra.mrb[152].mxu0 %vm489_vm0, %v8890_v25 }
 0x341   :  { %6469 = vmatprep.mubr.msk.f32.mxu0 %vm489_vm0, %v8894_v49 }
 0x342   :  { %6921 = vmatpush1.bf16.msra.mxu1 %v6920_v63 }
 0x343   :  { %6922 = vmatprep.subr.bf16.mxu1 %v10547_v38 }
 0x344   :  { %6470 = vmatmul.mubr.msk.f32.gmra.mrb[154].mxu0 %vm489_vm0, %v8904_v32 }
 0x345   :  { %6472 = vmatprep.mubr.msk.f32.mxu0 %vm489_vm0, %v8908_v6 }
 0x346   :  { %v6296_v60 = vpop.f32.mrb[64].mxu1 }
 0x347   :  { %v1712_v48 = vpop.f32.mrb[65].mxu1 }
 0x348   :  { %v6923_v50 = vpack.c.bf16 %v6296_v60, %v1712_v48  ;;  %6473 = vmatmul.mubr.msk.f32.gmra.mrb[156].mxu0 %vm489_vm0, %v8919_v15  ;;  %v169_v60 = vld [vmem:[#allocation7] sm:$0xff] }
 0x349   :  { %6475 = vmatprep.mubr.msk.f32.mxu0 %vm489_vm0, %v8923_v53 }
 0x34a   :  { %6924 = vmatpush1.bf16.msra.mxu1 %v6923_v50 }
 0x34b   :  { %6925 = vmatprep.subr.bf16.mxu1 %v10547_v38 }
 0x34c   :  { %6476 = vmatmul.mubr.msk.f32.gmra.mrb[158].mxu0 %vm489_vm0, %v8930_v22 }
 0x34d   :  { %6482 = vmatprep.mubr.msk.f32.mxu0 %vm489_vm0, %v8821_v57 }
 0x34e   :  { %v6299_v1 = vpop.f32.mrb[66].mxu1 }
 0x34f   :  { %v1722_v26 = vpop.f32.mrb[67].mxu1 }
 0x350   :  { %v6926_v35 = vpack.c.bf16 %v6299_v1, %v1722_v26  ;;  %6483 = vmatmul.mubr.msk.f32.vlgmr.msra.gmra.mrb[160].mxu0 %vm489_vm0, %v8830_v30  ;;  %v176_v1 = vld [vmem:[#allocation7 + $0x38] sm:$0xff] }
 0x351   :  { %6485 = vmatprep.mubr.msk.f32.mxu0 %vm489_vm0, %v8834_v10 }
 0x352   :  { %6927 = vmatpush1.bf16.msra.mxu1 %v6926_v35 }
 0x353   :  { %6928 = vmatprep.subr.bf16.mxu1 %v10547_v38 }
 0x354   :  { %6486 = vmatmul.mubr.msk.f32.gmra.mrb[162].mxu0 %vm489_vm0, %v8844_v56 }
 0x355   :  { %6488 = vmatprep.mubr.msk.f32.mxu0 %vm489_vm0, %v8848_v28 }
 0x356   :  { %v6302_v31 = vpop.f32.mrb[68].mxu1 }
 0x357   :  { %v1732_v36 = vpop.f32.mrb[69].mxu1 }
 0x358   :  { %v6929_v33 = vpack.c.bf16 %v6302_v31, %v1732_v36  ;;  %6489 = vmatmul.mubr.msk.f32.gmra.mrb[164].mxu0 %vm489_vm0, %v8861_v42  ;;  %v175_v36 = vld [vmem:[#allocation7 + $0x30] sm:$0xff] }
 0x359   :  { %6491 = vmatprep.mubr.msk.f32.mxu0 %vm489_vm0, %v8865_v12 }
 0x35a   :  { %6930 = vmatpush1.bf16.msra.mxu1 %v6929_v33 }
 0x35b   :  { %6931 = vmatprep.subr.bf16.mxu1 %v10547_v38 }
 0x35c   :  { %6492 = vmatmul.mubr.msk.f32.gmra.mrb[166].mxu0 %vm489_vm0, %v8875_v34 }
 0x35d   :  { %6494 = vmatprep.mubr.msk.f32.mxu0 %vm489_vm0, %v8879_v40 }
 0x35e   :  { %v6305_v20 = vpop.f32.mrb[70].mxu1 }
 0x35f   :  { %v1742_v0 = vpop.f32.mrb[71].mxu1 }
 0x360   :  { %v6932_v62 = vpack.c.bf16 %v6305_v20, %v1742_v0  ;;  %6495 = vmatmul.mubr.msk.f32.gmra.mrb[168].mxu0 %vm489_vm0, %v8890_v25  ;;  %v182_v0 = vld [vmem:[#allocation7 + $0x68] sm:$0xff] }
 0x361   :  { %6497 = vmatprep.mubr.msk.f32.mxu0 %vm489_vm0, %v8894_v49 }
 0x362   :  { %6933 = vmatpush1.bf16.msra.mxu1 %v6932_v62 }
 0x363   :  { %6934 = vmatprep.subr.bf16.mxu1 %v10547_v38 }
 0x364   :  { %6498 = vmatmul.mubr.msk.f32.gmra.mrb[170].mxu0 %vm489_vm0, %v8904_v32 }
 0x365   :  { %6500 = vmatprep.mubr.msk.f32.mxu0 %vm489_vm0, %v8908_v6 }
 0x366   :  { %v6308_v21 = vpop.f32.mrb[72].mxu1 }
 0x367   :  { %v1752_v39 = vpop.f32.mrb[73].mxu1 }
 0x368   :  { %v6935_v2 = vpack.c.bf16 %v6308_v21, %v1752_v39  ;;  %6501 = vmatmul.mubr.msk.f32.gmra.mrb[172].mxu0 %vm489_vm0, %v8919_v15 }
 0x369   :  { %6503 = vmatprep.mubr.msk.f32.mxu0 %vm489_vm0, %v8923_v53 }
 0x36a   :  { %6936 = vmatpush1.bf16.msra.mxu1 %v6935_v2  ;;  %v181_v2 = vld [vmem:[#allocation7 + $0x60] sm:$0xff] }
 0x36b   :  { %6937 = vmatprep.subr.bf16.mxu1 %v10547_v38 }
 0x36c   :  { %6504 = vmatmul.mubr.msk.f32.gmra.mrb[174].mxu0 %vm489_vm0, %v8930_v22 }
 0x36d   :  { %3575 = vmatprep.mubr.f32.mxu0 %v7344_v13 }
 0x36e   :  { %v6311_v5 = vpop.f32.mrb[74].mxu1 }
 0x36f   :  { %v1762_v18 = vpop.f32.mrb[75].mxu1 }
 0x370   :  { %v6938_v24 = vpack.c.bf16 %v6311_v5, %v1762_v18  ;;  %v188_v18 = vld [vmem:[#allocation7 + $0x98] sm:$0xff] }
 0x372   :  { %6939 = vmatpush1.bf16.msra.mxu1 %v6938_v24 }
 0x373   :  { %6940 = vmatprep.subr.bf16.mxu1 %v10547_v38 }
 0x376   :  { %v6314_v47 = vpop.f32.mrb[76].mxu1 }
 0x377   :  { %v1772_v46 = vpop.f32.mrb[77].mxu1 }
 0x378   :  { %v6941_v23 = vpack.c.bf16 %v6314_v47, %v1772_v46 }
 0x37a   :  { %6942 = vmatpush1.bf16.msra.mxu1 %v6941_v23  ;;  %v187_v23 = vld [vmem:[#allocation7 + $0x90] sm:$0xff] }
 0x37b   :  { %6943 = vmatprep.subr.bf16.mxu1 %v10547_v38 }
 0x37e   :  { %v6317_v63 = vpop.f32.mrb[78].mxu1 }
 0x37f   :  { %v1782_v43 = vpop.f32.mrb[79].mxu1 }
 0x380   :  { %v6944_v41 = vpack.c.bf16 %v6317_v63, %v1782_v43 }
 0x382   :  { %v6324_v16 = vpop.f32.mrb[80].mxu1  ;;  %6945 = vmatpush1.bf16.msra.mxu1 %v6944_v41  ;;  %v194_v41 = vld [vmem:[#allocation7 + $0xc8] sm:$0xff] }
 0x383   :  { %v1857_v48 = vpop.f32.mrb[81].mxu1  ;;  %v8975_v50 = vpop.f32.mrb[80].mxu0  ;;  %6994 = vmatprep.subr.bf16.mxu1 %v10547_v38 }
 0x384   :  { %v6995_v26 = vpack.c.bf16 %v6324_v16, %v1857_v48  ;;  %v2534_v35 = vpop.f32.mrb[81].mxu0 }
 0x385   :  { %2306 = vmatmul.mubr.f32.vlgmr.msra.gmra.mrb[144].mxu1 %v169_v60 }
 0x386   :  { %v6327_v31 = vpop.f32.mrb[82].mxu1  ;;  %6996 = vmatpush1.bf16.msra.mxu1 %v6995_v26  ;;  %2310 = vmatprep.mubr.f32.mxu1 %v176_v1  ;;  %v193_v1 = vld [vmem:[#allocation7 + $0xc0] sm:$0xff] }
 0x387   :  { %v1867_v33 = vpop.f32.mrb[83].mxu1  ;;  %v8978_v20 = vpop.f32.mrb[82].mxu0  ;;  %6997 = vmatprep.subr.bf16.mxu1 %v10547_v38 }
 0x388   :  { %v6998_v62 = vpack.c.bf16 %v6327_v31, %v1867_v33  ;;  %v2539_v21 = vpop.f32.mrb[83].mxu0  ;;  %v200_v31 = vld [vmem:[#allocation7 + $0xf8] sm:$0xff] }
 0x389   :  { %2311 = vmatmul.mubr.f32.gmra.mrb[146].mxu1 %v175_v36 }
 0x38a   :  { %v6330_v39 = vpop.f32.mrb[84].mxu1  ;;  %6999 = vmatpush1.bf16.msra.mxu1 %v6998_v62  ;;  %2315 = vmatprep.mubr.f32.mxu1 %v182_v0  ;;  %v199_v62 = vld [vmem:[#allocation7 + $0xf0] sm:$0xff] }
 0x38b   :  { %v1877_v13 = vpop.f32.mrb[85].mxu1  ;;  %v8981_v5 = vpop.f32.mrb[84].mxu0  ;;  %7000 = vmatprep.subr.bf16.mxu1 %v10547_v38 }
 0x38c   :  { %v7001_v24 = vpack.c.bf16 %v6330_v39, %v1877_v13  ;;  %v2544_v47 = vpop.f32.mrb[85].mxu0 }
 0x38d   :  { %2316 = vmatmul.mubr.f32.gmra.mrb[148].mxu1 %v181_v2  ;;  %v206_v2 = vld [vmem:[#allocation7 + $0x128] sm:$0xff]  ;;  %v205_v47 = vld [vmem:[#allocation7 + $0x120] sm:$0xff] }
 0x38e   :  { %v6333_v46 = vpop.f32.mrb[86].mxu1  ;;  %7002 = vmatpush1.bf16.msra.mxu1 %v7001_v24  ;;  %2320 = vmatprep.mubr.f32.mxu1 %v188_v18 }
 0x38f   :  { %v1887_v63 = vpop.f32.mrb[87].mxu1  ;;  %v8984_v43 = vpop.f32.mrb[86].mxu0  ;;  %7003 = vmatprep.subr.bf16.mxu1 %v10547_v38 }
 0x390   :  { %v7004_v16 = vpack.c.bf16 %v6333_v46, %v1887_v63  ;;  %v2549_v60 = vpop.f32.mrb[87].mxu0  ;;  %v212_v63 = vld [vmem:[#allocation7 + $0x158] sm:$0xff] }
 0x391   :  { %2321 = vmatmul.mubr.f32.gmra.mrb[150].mxu1 %v187_v23 }
 0x392   :  { %v6336_v48 = vpop.f32.mrb[88].mxu1  ;;  %7005 = vmatpush1.bf16.msra.mxu1 %v7004_v16  ;;  %2325 = vmatprep.mubr.f32.mxu1 %v194_v41 }
 0x393   :  { %v1897_v26 = vpop.f32.mrb[89].mxu1  ;;  %v8987_v35 = vpop.f32.mrb[88].mxu0  ;;  %7006 = vmatprep.subr.bf16.mxu1 %v10547_v38 }
 0x394   :  { %v7007_v36 = vpack.c.bf16 %v6336_v48, %v1897_v26  ;;  %v2554_v33 = vpop.f32.mrb[89].mxu0  ;;  %v211_v48 = vld [vmem:[#allocation7 + $0x150] sm:$0xff] }
 0x395   :  { %2326 = vmatmul.mubr.f32.gmra.mrb[152].mxu1 %v193_v1 }
 0x396   :  { %v6339_v0 = vpop.f32.mrb[90].mxu1  ;;  %7008 = vmatpush1.bf16.msra.mxu1 %v7007_v36  ;;  %2330 = vmatprep.mubr.f32.mxu1 %v200_v31  ;;  %v218_v31 = vld [vmem:[#allocation7 + $0x188] sm:$0xff] }
 0x397   :  { %v1907_v21 = vpop.f32.mrb[91].mxu1  ;;  %v8990_v39 = vpop.f32.mrb[90].mxu0  ;;  %7009 = vmatprep.subr.bf16.mxu1 %v10547_v38 }
 0x398   :  { %v7010_v13 = vpack.c.bf16 %v6339_v0, %v1907_v21  ;;  %v2559_v18 = vpop.f32.mrb[91].mxu0 }
 0x399   :  { %2331 = vmatmul.mubr.f32.gmra.mrb[154].mxu1 %v199_v62  ;;  %v217_v62 = vld [vmem:[#allocation7 + $0x180] sm:$0xff] }
 0x39a   :  { %v6342_v24 = vpop.f32.mrb[92].mxu1  ;;  %7011 = vmatpush1.bf16.msra.mxu1 %v7010_v13  ;;  %2335 = vmatprep.mubr.f32.mxu1 %v206_v2  ;;  %v224_v13 = vld [vmem:[#allocation7 + $0x1b8] sm:$0xff] }
 0x39b   :  { %v1917_v46 = vpop.f32.mrb[93].mxu1  ;;  %v8993_v23 = vpop.f32.mrb[92].mxu0  ;;  %7012 = vmatprep.subr.bf16.mxu1 %v10547_v38 }
 0x39c   :  { %v7013_v41 = vpack.c.bf16 %v6342_v24, %v1917_v46  ;;  %v2564_v16 = vpop.f32.mrb[93].mxu0  ;;  %v223_v46 = vld [vmem:[#allocation7 + $0x1b0] sm:$0xff] }
 0x39d   :  { %2336 = vmatmul.mubr.f32.gmra.mrb[156].mxu1 %v205_v47  ;;  %v230_v16 = vld [vmem:[#allocation7 + $0x1e8] sm:$0xff] }
 0x39e   :  { %v6345_v60 = vpop.f32.mrb[94].mxu1  ;;  %7014 = vmatpush1.bf16.msra.mxu1 %v7013_v41  ;;  %2340 = vmatprep.mubr.f32.mxu1 %v212_v63 }
 0x39f   :  { %v1927_v1 = vpop.f32.mrb[95].mxu1  ;;  %v8996_v26 = vpop.f32.mrb[94].mxu0  ;;  %7015 = vmatprep.subr.bf16.mxu1 %v10547_v38 }
 0x3a0   :  { %v7016_v36 = vpack.c.bf16 %v6345_v60, %v1927_v1  ;;  %v2569_v33 = vpop.f32.mrb[95].mxu0 }
 0x3a1   :  { %2341 = vmatmul.mubr.f32.gmra.mrb[158].mxu1 %v211_v48 }
 0x3a2   :  { %v6348_v0 = vpop.f32.mrb[96].mxu1  ;;  %7017 = vmatpush1.bf16.msra.mxu1 %v7016_v36  ;;  %2345 = vmatprep.mubr.f32.mxu1 %v218_v31  ;;  %v229_v31 = vld [vmem:[#allocation7 + $0x1e0] sm:$0xff] }
 0x3a3   :  { %v1937_v21 = vpop.f32.mrb[97].mxu1  ;;  %v8999_v2 = vpop.f32.mrb[96].mxu0  ;;  %7018 = vmatprep.subr.bf16.mxu1 %v10547_v38 }
 0x3a4   :  { %v7019_v18 = vpack.c.bf16 %v6348_v0, %v1937_v21  ;;  %v2574_v24 = vpop.f32.mrb[97].mxu0  ;;  %v236_v0 = vld [vmem:[#allocation7 + $0x218] sm:$0xff] }
 0x3a5   :  { %2346 = vmatmul.mubr.f32.gmra.mrb[160].mxu1 %v217_v62 }
 0x3a6   :  { %v6351_v47 = vpop.f32.mrb[98].mxu1  ;;  %7020 = vmatpush1.bf16.msra.mxu1 %v7019_v18  ;;  %2350 = vmatprep.mubr.f32.mxu1 %v224_v13  ;;  %v235_v18 = vld [vmem:[#allocation7 + $0x210] sm:$0xff] }
 0x3a7   :  { %v1947_v63 = vpop.f32.mrb[99].mxu1  ;;  %v9002_v41 = vpop.f32.mrb[98].mxu0  ;;  %7021 = vmatprep.subr.bf16.mxu1 %v10547_v38 }
 0x3a8   :  { %v7022_v60 = vpack.c.bf16 %v6351_v47, %v1947_v63  ;;  %v2579_v48 = vpop.f32.mrb[99].mxu0 }
 0x3a9   :  { %2351 = vmatmul.mubr.f32.gmra.mrb[162].mxu1 %v223_v46  ;;  %v242_v46 = vld [vmem:[#allocation7 + $0x248] sm:$0xff]  ;;  %v241_v48 = vld [vmem:[#allocation7 + $0x240] sm:$0xff] }
 0x3aa   :  { %v6354_v1 = vpop.f32.mrb[100].mxu1  ;;  %7023 = vmatpush1.bf16.msra.mxu1 %v7022_v60  ;;  %2355 = vmatprep.mubr.f32.mxu1 %v230_v16 }
 0x3ab   :  { %v1957_v36 = vpop.f32.mrb[101].mxu1  ;;  %v9005_v33 = vpop.f32.mrb[100].mxu0  ;;  %7024 = vmatprep.subr.bf16.mxu1 %v10547_v38 }
 0x3ac   :  { %v7025_v62 = vpack.c.bf16 %v6354_v1, %v1957_v36  ;;  %v2584_v21 = vpop.f32.mrb[101].mxu0 }
 0x3ad   :  { %2356 = vmatmul.mubr.f32.gmra.mrb[164].mxu1 %v229_v31  ;;  %v248_v31 = vld [vmem:[#allocation7 + $0x278] sm:$0xff] }
 0x3ae   :  { %v6357_v13 = vpop.f32.mrb[102].mxu1  ;;  %7026 = vmatpush1.bf16.msra.mxu1 %v7025_v62  ;;  %2360 = vmatprep.mubr.f32.mxu1 %v236_v0 }
 0x3af   :  { %v1967_v24 = vpop.f32.mrb[103].mxu1  ;;  %v9008_v47 = vpop.f32.mrb[102].mxu0  ;;  %7027 = vmatprep.subr.bf16.mxu1 %v10547_v38 }
 0x3b0   :  { %v7028_v63 = vpack.c.bf16 %v6357_v13, %v1967_v24  ;;  %v2589_v16 = vpop.f32.mrb[103].mxu0 }
 0x3b1   :  { %2361 = vmatmul.mubr.f32.gmra.mrb[166].mxu1 %v235_v18  ;;  %v254_v18 = vld [vmem:[#allocation7 + $0x2a8] sm:$0xff] }
 0x3b2   :  { %v6360_v60 = vpop.f32.mrb[104].mxu1  ;;  %7029 = vmatpush1.bf16.msra.mxu1 %v7028_v63  ;;  %2365 = vmatprep.mubr.f32.mxu1 %v242_v46 }
 0x3b3   :  { %v1977_v1 = vpop.f32.mrb[105].mxu1  ;;  %v9011_v36 = vpop.f32.mrb[104].mxu0  ;;  %7030 = vmatprep.subr.bf16.mxu1 %v10547_v38 }
 0x3b4   :  { %v7031_v0 = vpack.c.bf16 %v6360_v60, %v1977_v1  ;;  %v2594_v62 = vpop.f32.mrb[105].mxu0 }
 0x3b5   :  { %2366 = vmatmul.mubr.f32.gmra.mrb[168].mxu1 %v241_v48  ;;  %v260_v48 = vld [vmem:[#allocation7 + $0x2d8] sm:$0xff] }
 0x3b6   :  { %v6363_v21 = vpop.f32.mrb[106].mxu1  ;;  %7032 = vmatpush1.bf16.msra.mxu1 %v7031_v0  ;;  %2370 = vmatprep.mubr.f32.mxu1 %v248_v31 }
 0x3b7   :  { %v1987_v13 = vpop.f32.mrb[107].mxu1  ;;  %v9014_v24 = vpop.f32.mrb[106].mxu0  ;;  %7033 = vmatprep.subr.bf16.mxu1 %v10547_v38 }
 0x3b8   :  { %v7034_v46 = vpack.c.bf16 %v6363_v21, %v1987_v13  ;;  %v2599_v63 = vpop.f32.mrb[107].mxu0 }
 0x3b9   :  { %2371 = vmatmul.mubr.f32.gmra.mrb[170].mxu1 %v247_v27  ;;  %v266_v27 = vld [vmem:[#allocation7 + $0x308] sm:$0xff]  ;;  %v265_v63 = vld [vmem:[#allocation7 + $0x300] sm:$0xff] }
 0x3ba   :  { %v6366_v16 = vpop.f32.mrb[108].mxu1  ;;  %7035 = vmatpush1.bf16.msra.mxu1 %v7034_v46  ;;  %2375 = vmatprep.mubr.f32.mxu1 %v254_v18 }
 0x3bb   :  { %v1997_v60 = vpop.f32.mrb[109].mxu1  ;;  %v9017_v1 = vpop.f32.mrb[108].mxu0  ;;  %7036 = vmatprep.subr.bf16.mxu1 %v10547_v38 }
 0x3bc   :  { %v7037_v31 = vpack.c.bf16 %v6366_v16, %v1997_v60  ;;  %v2604_v0 = vpop.f32.mrb[109].mxu0 }
 0x3bd   :  { %2376 = vmatmul.mubr.f32.gmra.mrb[172].mxu1 %v253_v11  ;;  %v272_v11 = vld [vmem:[#allocation7 + $0x338] sm:$0xff] }
 0x3be   :  { %v6369_v62 = vpop.f32.mrb[110].mxu1  ;;  %7038 = vmatpush1.bf16.msra.mxu1 %v7037_v31  ;;  %2380 = vmatprep.mubr.f32.mxu1 %v260_v48  ;;  %v271_v31 = vld [vmem:[#allocation7 + $0x330] sm:$0xff] }
 0x3bf   :  { %v2007_v21 = vpop.f32.mrb[111].mxu1  ;;  %v9020_v13 = vpop.f32.mrb[110].mxu0  ;;  %7039 = vmatprep.subr.bf16.mxu1 %v10547_v38 }
 0x3c0   :  { %10628 = vst [vmem:[#allocation44_spill] sm:$0xff] %v9020_v13  ;;  %v7040_v18 = vpack.c.bf16 %v6369_v62, %v2007_v21  ;;  %v2609_v46 = vpop.f32.mrb[111].mxu0  ;;  %v278_v62 = vld [vmem:[#allocation7 + $0x368] sm:$0xff] }
 0x3c1   :  { %2381 = vmatmul.mubr.f32.gmra.mrb[174].mxu1 %v259_v19 }
 0x3c2   :  { %7041 = vmatpush1.bf16.msra.mxu1 %v7040_v18  ;;  %2385 = vmatprep.mubr.f32.mxu1 %v266_v27  ;;  %v9023_v8 = vpop.f32.mrb[112].mxu1  ;;  %v277_v27 = vld [vmem:[#allocation7 + $0x360] sm:$0xff] }
 0x3c3   :  { %v9025_v16 = vpop.f32.mrb[112].mxu0  ;;  %v9027_v60 = vpop.f32.mrb[113].mxu1 }
 0x3c4   :  { %10629 = vst [vmem:[#allocation45_spill] sm:$0xff] %v9025_v16  ;;  %v2614_v48 = vpop.f32.mrb[113].mxu0  ;;  %v332_v16 = vld [vmem:[#allocation7 + $0x518] sm:$0xff] }
 0x3c5   :  { %2386 = vmatmul.mubr.f32.gmra.mrb[176].mxu1 %v265_v63 }
 0x3c6   :  { %2390 = vmatprep.mubr.f32.mxu1 %v272_v11  ;;  %v9029_v0 = vpop.f32.mrb[114].mxu1  ;;  %v283_v11 = vld [vmem:[#allocation7 + $0x390] sm:$0xff] }
 0x3c7   :  { %v9031_v38 = vpop.f32.mrb[114].mxu0  ;;  %v9033_v19 = vpop.f32.mrb[115].mxu1 }
 0x3c8   :  { %10630 = vst [vmem:[#allocation46_spill] sm:$0xff] %v9031_v38  ;;  %v2619_v21 = vpop.f32.mrb[115].mxu0  ;;  %v326_v38 = vld [vmem:[#allocation7 + $0x4e8] sm:$0xff] }
 0x3c9   :  { %2391 = vmatmul.mubr.f32.gmra.mrb[178].mxu1 %v271_v31 }
 0x3ca   :  { %2395 = vmatprep.mubr.f32.mxu1 %v278_v62  ;;  %v9035_v18 = vpop.f32.mrb[116].mxu1  ;;  %v289_v62 = vld [vmem:[#allocation7 + $0x3c0] sm:$0xff] }
 0x3cb   :  { %v9037_v46 = vpop.f32.mrb[116].mxu0  ;;  %v9039_v48 = vpop.f32.mrb[117].mxu1 }
 0x3cc   :  { %10631 = vst [vmem:[#allocation47_spill] sm:$0xff] %v9037_v46  ;;  %v2624_v63 = vpop.f32.mrb[117].mxu0 }
 0x3cd   :  { %2396 = vmatmul.mubr.f32.gmra.mrb[180].mxu1 %v277_v27  ;;  %v295_v27 = vld [vmem:[#allocation7 + $0x3f0] sm:$0xff] }
 0x3ce   :  { %2400 = vmatprep.mubr.f32.mxu1 %v284_v55  ;;  %v9041_v7 = vpop.f32.mrb[118].mxu1 }
 0x3cf   :  { %v9043_v4 = vpop.f32.mrb[118].mxu0  ;;  %v9045_v21 = vpop.f32.mrb[119].mxu1 }
 0x3d0   :  { %10632 = vst [vmem:[#allocation48_spill] sm:$0xff] %v9043_v4  ;;  %v2629_v31 = vpop.f32.mrb[119].mxu0  ;;  %v320_v4 = vld [vmem:[#allocation7 + $0x4b8] sm:$0xff] }
 0x3d1   :  { %2401 = vmatmul.mubr.f32.gmra.mrb[182].mxu1 %v283_v11  ;;  %v301_v11 = vld [vmem:[#allocation7 + $0x420] sm:$0xff] }
 0x3d2   :  { %2405 = vmatprep.mubr.f32.mxu1 %v290_v45  ;;  %v9047_v52 = vpop.f32.mrb[120].mxu1 }
 0x3d3   :  { %v9049_v51 = vpop.f32.mrb[120].mxu0  ;;  %v9051_v63 = vpop.f32.mrb[121].mxu1 }
 0x3d4   :  { %10633 = vst [vmem:[#allocation49_spill] sm:$0xff] %v9049_v51  ;;  %v2634_v55 = vpop.f32.mrb[121].mxu0 }
 0x3d5   :  { %2406 = vmatmul.mubr.f32.gmra.mrb[184].mxu1 %v289_v62  ;;  %v307_v62 = vld [vmem:[#allocation7 + $0x450] sm:$0xff] }
 0x3d6   :  { %2410 = vmatprep.mubr.f32.mxu1 %v296_v37  ;;  %v9053_v44 = vpop.f32.mrb[122].mxu1 }
 0x3d7   :  { %v9055_v59 = vpop.f32.mrb[122].mxu0  ;;  %v9057_v31 = vpop.f32.mrb[123].mxu1 }
 0x3d8   :  { %10634 = vst [vmem:[#allocation50_spill] sm:$0xff] %v9055_v59  ;;  %v2639_v45 = vpop.f32.mrb[123].mxu0  ;;  %v314_v59 = vld [vmem:[#allocation7 + $0x488] sm:$0xff] }
 0x3d9   :  { %2411 = vmatmul.mubr.f32.gmra.mrb[186].mxu1 %v295_v27  ;;  %v313_v27 = vld [vmem:[#allocation7 + $0x480] sm:$0xff] }
 0x3da   :  { %2415 = vmatprep.mubr.f32.mxu1 %v302_v17  ;;  %v9059_v29 = vpop.f32.mrb[124].mxu1 }
 0x3db   :  { %v9061_v61 = vpop.f32.mrb[124].mxu0  ;;  %v9063_v55 = vpop.f32.mrb[125].mxu1 }
 0x3dc   :  { %10635 = vst [vmem:[#allocation51_spill] sm:$0xff] %v9061_v61  ;;  %v2644_v37 = vpop.f32.mrb[125].mxu0 }
 0x3dd   :  { %2416 = vmatmul.mubr.f32.gmra.mrb[188].mxu1 %v301_v11  ;;  %v319_v11 = vld [vmem:[#allocation7 + $0x4b0] sm:$0xff] }
 0x3de   :  { %2420 = vmatprep.mubr.f32.mxu1 %v308_v9  ;;  %v9065_v54 = vpop.f32.mrb[126].mxu1 }
 0x3df   :  { %v9067_v58 = vpop.f32.mrb[126].mxu0  ;;  %v9069_v45 = vpop.f32.mrb[127].mxu1 }
 0x3e0   :  { %10636 = vst [vmem:[#allocation52_spill] sm:$0xff] %v9067_v58  ;;  %v2649_v17 = vpop.f32.mrb[127].mxu0 }
 0x3e1   :  { %2421 = vmatmul.mubr.f32.gmra.mrb[190].mxu1 %v307_v62  ;;  %v325_v62 = vld [vmem:[#allocation7 + $0x4e0] sm:$0xff] }
 0x3e2   :  { %2425 = vmatprep.mubr.f32.mxu1 %v314_v59  ;;  %v9071_v51 = vpop.f32.mrb[128].mxu1 }
 0x3e3   :  { %10637 = vst [vmem:[#allocation53_spill] sm:$0xff] %v9071_v51  ;;  %v9073_v61 = vpop.f32.mrb[128].mxu0  ;;  %v9075_v37 = vpop.f32.mrb[129].mxu1 }
 0x3e4   :  { %10638 = vst [vmem:[#allocation54_spill] sm:$0xff] %v9073_v61  ;;  %10639 = vst [vmem:[#allocation55_spill] sm:$0xff] %v9075_v37  ;;  %v2654_v9 = vpop.f32.mrb[129].mxu0 }
 0x3e5   :  { %2426 = vmatmul.mubr.f32.gmra.mrb[192].mxu1 %v313_v27  ;;  %v331_v27 = vld [vmem:[#allocation7 + $0x510] sm:$0xff] }
 0x3e6   :  { %2430 = vmatprep.mubr.f32.mxu1 %v320_v4  ;;  %v9077_v46 = vpop.f32.mrb[130].mxu1 }
 0x3e7   :  { %10640 = vst [vmem:[#allocation56_spill] sm:$0xff] %v9077_v46  ;;  %v9079_v58 = vpop.f32.mrb[130].mxu0  ;;  %v9081_v17 = vpop.f32.mrb[131].mxu1 }
 0x3e8   :  { %10641 = vst [vmem:[#allocation57_spill] sm:$0xff] %v9079_v58  ;;  %10642 = vst [vmem:[#allocation58_spill] sm:$0xff] %v9081_v17  ;;  %v2659_v59 = vpop.f32.mrb[131].mxu0  ;;  %v338_v17 = vld [vmem:[#allocation7 + $0x548] sm:$0xff] }
 0x3e9   :  { %2431 = vmatmul.mubr.f32.gmra.mrb[194].mxu1 %v319_v11  ;;  %v337_v11 = vld [vmem:[#allocation7 + $0x540] sm:$0xff] }
 0x3ea   :  { %2435 = vmatprep.mubr.f32.mxu1 %v326_v38  ;;  %v9083_v51 = vpop.f32.mrb[132].mxu1 }
 0x3eb   :  { %10643 = vst [vmem:[#allocation59_spill] sm:$0xff] %v9083_v51  ;;  %v9085_v61 = vpop.f32.mrb[132].mxu0  ;;  %v9087_v9 = vpop.f32.mrb[133].mxu1 }
 0x3ec   :  { %10644 = vst [vmem:[#allocation60_spill] sm:$0xff] %v9085_v61  ;;  %10645 = vst [vmem:[#allocation61_spill] sm:$0xff] %v9087_v9  ;;  %v2664_v4 = vpop.f32.mrb[133].mxu0  ;;  %v344_v9 = vld [vmem:[#allocation7 + $0x578] sm:$0xff] }
 0x3ed   :  { %2436 = vmatmul.mubr.f32.gmra.mrb[196].mxu1 %v325_v62  ;;  %v343_v62 = vld [vmem:[#allocation7 + $0x570] sm:$0xff] }
 0x3ee   :  { %2440 = vmatprep.mubr.f32.mxu1 %v332_v16  ;;  %v9089_v46 = vpop.f32.mrb[134].mxu1 }
 0x3ef   :  { %10646 = vst [vmem:[#allocation62_spill] sm:$0xff] %v9089_v46  ;;  %v9091_v58 = vpop.f32.mrb[134].mxu0  ;;  %v9093_v59 = vpop.f32.mrb[135].mxu1 }
 0x3f0   :  { %10647 = vst [vmem:[#allocation63_spill] sm:$0xff] %v9091_v58  ;;  %10648 = vst [vmem:[#allocation64_spill] sm:$0xff] %v9093_v59  ;;  %v2669_v38 = vpop.f32.mrb[135].mxu0  ;;  %v350_v59 = vld [vmem:[#allocation7 + $0x5a8] sm:$0xff] }
 0x3f1   :  { %2441 = vmatmul.mubr.f32.gmra.mrb[198].mxu1 %v331_v27  ;;  %v349_v27 = vld [vmem:[#allocation7 + $0x5a0] sm:$0xff] }
 0x3f2   :  { %2445 = vmatprep.mubr.f32.mxu1 %v338_v17  ;;  %v9095_v51 = vpop.f32.mrb[136].mxu1 }
 0x3f3   :  { %10649 = vst [vmem:[#allocation65_spill] sm:$0xff] %v9095_v51  ;;  %v9097_v61 = vpop.f32.mrb[136].mxu0  ;;  %v9099_v4 = vpop.f32.mrb[137].mxu1 }
 0x3f4   :  { %10650 = vst [vmem:[#allocation66_spill] sm:$0xff] %v9097_v61  ;;  %10651 = vst [vmem:[#allocation67_spill] sm:$0xff] %v9099_v4  ;;  %v2674_v16 = vpop.f32.mrb[137].mxu0  ;;  %v356_v4 = vld [vmem:[#allocation7 + $0x5d8] sm:$0xff] }
 0x3f5   :  { %2446 = vmatmul.mubr.f32.gmra.mrb[200].mxu1 %v337_v11  ;;  %v355_v11 = vld [vmem:[#allocation7 + $0x5d0] sm:$0xff] }
 0x3f6   :  { %2450 = vmatprep.mubr.f32.mxu1 %v344_v9  ;;  %v9101_v46 = vpop.f32.mrb[138].mxu1 }
 0x3f7   :  { %10652 = vst [vmem:[#allocation68_spill] sm:$0xff] %v9101_v46  ;;  %v9103_v58 = vpop.f32.mrb[138].mxu0  ;;  %v9105_v38 = vpop.f32.mrb[139].mxu1 }
 0x3f8   :  { %10653 = vst [vmem:[#allocation69_spill] sm:$0xff] %v9103_v58  ;;  %10654 = vst [vmem:[#allocation70_spill] sm:$0xff] %v9105_v38  ;;  %v2679_v17 = vpop.f32.mrb[139].mxu0  ;;  %v174_v38 = vld [vmem:[#allocation7 + $0x28] sm:$0xff] }
 0x3f9   :  { %2451 = vmatmul.mubr.f32.gmra.mrb[202].mxu1 %v343_v62  ;;  %v173_v62 = vld [vmem:[#allocation7 + $0x20] sm:$0xff] }
 0x3fa   :  { %2455 = vmatprep.mubr.f32.mxu1 %v350_v59  ;;  %v9107_v51 = vpop.f32.mrb[140].mxu1 }
 0x3fb   :  { %10655 = vst [vmem:[#allocation71_spill] sm:$0xff] %v9107_v51  ;;  %v9109_v61 = vpop.f32.mrb[140].mxu0  ;;  %v9111_v16 = vpop.f32.mrb[141].mxu1 }
 0x3fc   :  { %10656 = vst [vmem:[#allocation72_spill] sm:$0xff] %v9109_v61  ;;  %10657 = vst [vmem:[#allocation73_spill] sm:$0xff] %v9111_v16  ;;  %v2684_v9 = vpop.f32.mrb[141].mxu0  ;;  %v180_v61 = vld [vmem:[#allocation7 + $0x58] sm:$0xff]  ;;  %v10661_v16 = vmov 0.0|0.0  }
 0x3fd   :  { %2456 = vmatmul.mubr.f32.gmra.mrb[204].mxu1 %v349_v27  ;;  %v179_v27 = vld [vmem:[#allocation7 + $0x50] sm:$0xff]  ;;  %v186_v9 = vld [vmem:[#allocation7 + $0x88] sm:$0xff] }
 0x3fe   :  { %2460 = vmatprep.mubr.f32.mxu1 %v356_v4  ;;  %v9113_v46 = vpop.f32.mrb[142].mxu1 }
 0x3ff   :  { %10658 = vst [vmem:[#allocation74_spill] sm:$0xff] %v9113_v46  ;;  %v9115_v58 = vpop.f32.mrb[142].mxu0  ;;  %v9117_v17 = vpop.f32.mrb[143].mxu1 }
 0x400   :  { %10659 = vst [vmem:[#allocation75_spill] sm:$0xff] %v9115_v58  ;;  %10660 = vst [vmem:[#allocation76_spill] sm:$0xff] %v9117_v17  ;;  %v2689_v59 = vpop.f32.mrb[143].mxu0 }
 0x401   :  { %2461 = vmatmul.mubr.f32.gmra.mrb[206].mxu1 %v355_v11  ;;  %v185_v59 = vld [vmem:[#allocation7 + $0x80] sm:$0xff] }
 0x402   :  { %2755 = vmatprep.mubr.f32.mxu1 %v174_v38  ;;  %v192_v38 = vld [vmem:[#allocation7 + $0xb8] sm:$0xff] }
 0x403   :  { %v6456_v51 = vpop.f32.mrb[144].mxu0 }
 0x404   :  { %v3287_v37 = vpop.f32.mrb[145].mxu0 }
 0x405   :  { %v7051_v13 = vpack.c.bf16 %v6456_v51, %v3287_v37  ;;  %2756 = vmatmul.mubr.f32.vlgmr.msra.gmra.mrb[208].mxu1 %v173_v62 }
 0x406   :  { %2760 = vmatprep.mubr.f32.mxu1 %v180_v61  ;;  %v191_v61 = vld [vmem:[#allocation7 + $0xb0] sm:$0xff] }
 0x407   :  { %v6459_v4 = vpop.f32.mrb[146].mxu0  ;;  %7052 = vmatpush1.bf16.msra.mxu0 %v7051_v13  ;;  %v198_v13 = vld [vmem:[#allocation7 + $0xe8] sm:$0xff] }
 0x408   :  { %v3297_v46 = vpop.f32.mrb[147].mxu0  ;;  %7053 = vmatprep.subr.bf16.mxu0 %v10661_v16 }
 0x409   :  { %v7054_v58 = vpack.c.bf16 %v6459_v4, %v3297_v46  ;;  %2761 = vmatmul.mubr.f32.gmra.mrb[210].mxu1 %v179_v27  ;;  %v197_v27 = vld [vmem:[#allocation7 + $0xe0] sm:$0xff] }
 0x40a   :  { %2765 = vmatprep.mubr.f32.mxu1 %v186_v9 }
 0x40b   :  { %v6462_v11 = vpop.f32.mrb[148].mxu0  ;;  %7055 = vmatpush1.bf16.msra.mxu0 %v7054_v58  ;;  %v204_v58 = vld [vmem:[#allocation7 + $0x118] sm:$0xff] }
 0x40c   :  { %v3307_v17 = vpop.f32.mrb[149].mxu0  ;;  %7056 = vmatprep.subr.bf16.mxu0 %v10661_v16 }
 0x40d   :  { %v7057_v51 = vpack.c.bf16 %v6462_v11, %v3307_v17  ;;  %2766 = vmatmul.mubr.f32.gmra.mrb[212].mxu1 %v185_v59  ;;  %v203_v59 = vld [vmem:[#allocation7 + $0x110] sm:$0xff] }
 0x40e   :  { %2770 = vmatprep.mubr.f32.mxu1 %v192_v38  ;;  %v210_v38 = vld [vmem:[#allocation7 + $0x148] sm:$0xff] }
 0x40f   :  { %v6465_v37 = vpop.f32.mrb[150].mxu0  ;;  %7058 = vmatpush1.bf16.msra.mxu0 %v7057_v51 }
 0x410   :  { %v3317_v62 = vpop.f32.mrb[151].mxu0  ;;  %7059 = vmatprep.subr.bf16.mxu0 %v10661_v16 }
 0x411   :  { %v7060_v46 = vpack.c.bf16 %v6465_v37, %v3317_v62  ;;  %2771 = vmatmul.mubr.f32.gmra.mrb[214].mxu1 %v191_v61  ;;  %v209_v61 = vld [vmem:[#allocation7 + $0x140] sm:$0xff]  ;;  %v216_v62 = vld [vmem:[#allocation7 + $0x178] sm:$0xff] }
 0x412   :  { %2775 = vmatprep.mubr.f32.mxu1 %v198_v13 }
 0x413   :  { %v6468_v4 = vpop.f32.mrb[152].mxu0  ;;  %7061 = vmatpush1.bf16.msra.mxu0 %v7060_v46 }
 0x414   :  { %v3327_v9 = vpop.f32.mrb[153].mxu0  ;;  %7062 = vmatprep.subr.bf16.mxu0 %v10661_v16 }
 0x415   :  { %v7063_v17 = vpack.c.bf16 %v6468_v4, %v3327_v9  ;;  %2776 = vmatmul.mubr.f32.gmra.mrb[216].mxu1 %v197_v27  ;;  %v215_v27 = vld [vmem:[#allocation7 + $0x170] sm:$0xff]  ;;  %v222_v9 = vld [vmem:[#allocation7 + $0x1a8] sm:$0xff] }
 0x416   :  { %2780 = vmatprep.mubr.f32.mxu1 %v204_v58 }
 0x417   :  { %v6471_v11 = vpop.f32.mrb[154].mxu0  ;;  %7064 = vmatpush1.bf16.msra.mxu0 %v7063_v17 }
 0x418   :  { %v3337_v51 = vpop.f32.mrb[155].mxu0  ;;  %7065 = vmatprep.subr.bf16.mxu0 %v10661_v16 }
 0x419   :  { %v7066_v37 = vpack.c.bf16 %v6471_v11, %v3337_v51  ;;  %2781 = vmatmul.mubr.f32.gmra.mrb[218].mxu1 %v203_v59  ;;  %v221_v59 = vld [vmem:[#allocation7 + $0x1a0] sm:$0xff]  ;;  %v7075_v51 = vpack.c.bf16 %v8830_v30, %v8821_v57 }
 0x41a   :  { %2785 = vmatprep.mubr.f32.mxu1 %v210_v38  ;;  %v233_v30 = vld [vmem:[#allocation7 + $0x200] sm:$0xff] }
 0x41b   :  { %v6474_v13 = vpop.f32.mrb[156].mxu0  ;;  %7067 = vmatpush1.bf16.msra.mxu0 %v7066_v37  ;;  %v228_v37 = vld [vmem:[#allocation7 + $0x1d8] sm:$0xff] }
 0x41c   :  { %v3347_v46 = vpop.f32.mrb[157].mxu0  ;;  %7068 = vmatprep.subr.bf16.mxu0 %v10661_v16 }
 0x41d   :  { %v7069_v4 = vpack.c.bf16 %v6474_v13, %v3347_v46  ;;  %2786 = vmatmul.mubr.f32.gmra.mrb[220].mxu1 %v209_v61  ;;  %v7078_v46 = vpack.c.bf16 %v8844_v56, %v8834_v10 }
 0x41e   :  { %2790 = vmatprep.mubr.f32.mxu1 %v216_v62  ;;  %v227_v62 = vld [vmem:[#allocation7 + $0x1d0] sm:$0xff] }
 0x41f   :  { %v6477_v58 = vpop.f32.mrb[158].mxu0  ;;  %7070 = vmatpush1.bf16.msra.mxu0 %v7069_v4  ;;  %v234_v4 = vld [vmem:[#allocation7 + $0x208] sm:$0xff] }
 0x420   :  { %v3357_v17 = vpop.f32.mrb[159].mxu0  ;;  %7071 = vmatprep.subr.bf16.mxu0 %v10661_v16 }
 0x421   :  { %v7072_v11 = vpack.c.bf16 %v6477_v58, %v3357_v17  ;;  %2791 = vmatmul.mubr.f32.gmra.mrb[222].mxu1 %v215_v27  ;;  %v240_v17 = vld [vmem:[#allocation7 + $0x238] sm:$0xff] }
 0x422   :  { %2795 = vmatprep.mubr.f32.mxu1 %v222_v9  ;;  %v7081_v9 = vpack.c.bf16 %v8861_v42, %v8848_v28 }
 0x423   :  { %v6484_v38 = vpop.f32.mrb[160].mxu0  ;;  %7073 = vmatpush1.bf16.msra.mxu0 %v7072_v11 }
 0x424   :  { %v3432_v13 = vpop.f32.mrb[161].mxu0  ;;  %7074 = vmatprep.subr.bf16.mxu0 %v10661_v16 }
 0x425   :  { %v7098_v61 = vpack.c.bf16 %v6484_v38, %v3432_v13  ;;  %2796 = vmatmul.mubr.f32.gmra.mrb[224].mxu1 %v221_v59  ;;  %v239_v59 = vld [vmem:[#allocation7 + $0x230] sm:$0xff]  ;;  %v7084_v38 = vpack.c.bf16 %v8875_v34, %v8865_v12  ;;  %v245_v13 = vld [vmem:[#allocation7 + $0x260] sm:$0xff] }
 0x426   :  { %2800 = vmatprep.mubr.f32.mxu1 %v228_v37 }
 0x427   :  { %7076 = vmatpush1.bf16.msra.mxu0 %v7075_v51  ;;  %7099 = vmatprep.subr.bf16.mxu1 %v7098_v61  ;;  %v6487_v27 = vpop.f32.mrb[162].mxu0  ;;  %v246_v51 = vld [vmem:[#allocation7 + $0x268] sm:$0xff] }
 0x428   :  { %7101 = vmatpush3.bf16.msra.mxu1 %v7098_v61  ;;  %7077 = vmatprep.subr.bf16.mxu0 %v10661_v16  ;;  %v3442_v58 = vpop.f32.mrb[163].mxu0  ;;  %v7087_v61 = vpack.c.bf16 %v8890_v25, %v8879_v40 }
 0x429   :  { %2801 = vmatmul.mubr.f32.gmra.mrb[226].mxu1 %v227_v62  ;;  %v7102_v57 = vpack.c.bf16 %v6487_v27, %v3442_v58  ;;  %v252_v62 = vld [vmem:[#allocation7 + $0x298] sm:$0xff]  ;;  %v7090_v27 = vpack.c.bf16 %v8904_v32, %v8894_v49  ;;  %v258_v58 = vld [vmem:[#allocation7 + $0x2c8] sm:$0xff] }
 0x42a   :  { %2805 = vmatprep.mubr.f32.mxu1 %v234_v4  ;;  %v251_v4 = vld [vmem:[#allocation7 + $0x290] sm:$0xff] }
 0x42b   :  { %7079 = vmatpush1.bf16.msra.mxu0 %v7078_v46  ;;  %7103 = vmatprep.subr.bf16.mxu1 %v7102_v57  ;;  %v6490_v11 = vpop.f32.mrb[164].mxu0 }
 0x42c   :  { %7080 = vmatprep.subr.bf16.mxu0 %v10661_v16  ;;  %7105 = vmatpush3.bf16.msra.mxu1 %v7102_v57  ;;  %v3452_v10 = vpop.f32.mrb[165].mxu0 }
 0x42d   :  { %2806 = vmatmul.mubr.f32.gmra.mrb[228].mxu1 %v233_v30  ;;  %v7106_v56 = vpack.c.bf16 %v6490_v11, %v3452_v10  ;;  %v257_v30 = vld [vmem:[#allocation7 + $0x2c0] sm:$0xff]  ;;  %v263_v10 = vld [vmem:[#allocation7 + $0x2f0] sm:$0xff] }
 0x42e   :  { %2810 = vmatprep.mubr.f32.mxu1 %v240_v17  ;;  %v264_v17 = vld [vmem:[#allocation7 + $0x2f8] sm:$0xff] }
 0x42f   :  { %7082 = vmatpush1.bf16.msra.mxu0 %v7081_v9  ;;  %7107 = vmatprep.subr.bf16.mxu1 %v7106_v56  ;;  %v6493_v37 = vpop.f32.mrb[166].mxu0  ;;  %v7093_v9 = vpack.c.bf16 %v8919_v15, %v8908_v6 }
 0x430   :  { %7083 = vmatprep.subr.bf16.mxu0 %v10661_v16  ;;  %7109 = vmatpush3.bf16.msra.mxu1 %v7106_v56  ;;  %v3462_v28 = vpop.f32.mrb[167].mxu0  ;;  %v7096_v56 = vpack.c.bf16 %v8930_v22, %v8923_v53  ;;  %v7345_v53 = vld [vmem:[#allocation5] sm:$0xff]  ;;  %v275_v22 = vld [vmem:[#allocation7 + $0x350] sm:$0xff] }
 0x431   :  { %2811 = vmatmul.mubr.f32.gmra.mrb[230].mxu1 %v239_v59  ;;  %v7110_v42 = vpack.c.bf16 %v6493_v37, %v3462_v28  ;;  %v270_v59 = vld [vmem:[#allocation7 + $0x328] sm:$0xff]  ;;  %v276_v37 = vld [vmem:[#allocation7 + $0x358] sm:$0xff]  ;;  %v7346_v28 = vld [vmem:[#allocation5 + $0x20] sm:$0xff] }
 0x432   :  { %2815 = vmatprep.mubr.f32.mxu1 %v246_v51  ;;  %v269_v51 = vld [vmem:[#allocation7 + $0x320] sm:$0xff] }
 0x433   :  { %7085 = vmatpush1.bf16.msra.mxu0 %v7084_v38  ;;  %7111 = vmatprep.subr.bf16.mxu1 %v7110_v42  ;;  %v6496_v46 = vpop.f32.mrb[168].mxu0 }
 0x434   :  { %7086 = vmatprep.subr.bf16.mxu0 %v10661_v16  ;;  %7113 = vmatpush3.bf16.msra.mxu1 %v7110_v42  ;;  %v3472_v12 = vpop.f32.mrb[169].mxu0  ;;  %v282_v42 = vld [vmem:[#allocation7 + $0x388] sm:$0xff] }
 0x435   :  { %2816 = vmatmul.mubr.f32.gmra.mrb[232].mxu1 %v245_v13  ;;  %v7114_v34 = vpack.c.bf16 %v6496_v46, %v3472_v12  ;;  %v7347_v13 = vld [vmem:[#allocation5 + $0x18] sm:$0xff]  ;;  %v7349_v12 = vld [vmem:[#allocation5 + $0x30] sm:$0xff] }
 0x436   :  { %2820 = vmatprep.mubr.f32.mxu1 %v252_v62  ;;  %v7348_v62 = vld [vmem:[#allocation5 + $0x38] sm:$0xff] }
 0x437   :  { %7088 = vmatpush1.bf16.msra.mxu0 %v7087_v61  ;;  %7115 = vmatprep.subr.bf16.mxu1 %v7114_v34  ;;  %v6499_v57 = vpop.f32.mrb[170].mxu0  ;;  %v281_v61 = vld [vmem:[#allocation7 + $0x380] sm:$0xff]  ;;  %v288_v46 = vld [vmem:[#allocation7 + $0x3b8] sm:$0xff] }
 0x438   :  { %7089 = vmatprep.subr.bf16.mxu0 %v10661_v16  ;;  %7117 = vmatpush3.bf16.msra.mxu1 %v7114_v34  ;;  %v3482_v40 = vpop.f32.mrb[171].mxu0  ;;  %v287_v34 = vld [vmem:[#allocation7 + $0x3b0] sm:$0xff] }
 0x439   :  { %2821 = vmatmul.mubr.f32.gmra.mrb[234].mxu1 %v251_v4  ;;  %v7118_v25 = vpack.c.bf16 %v6499_v57, %v3482_v40  ;;  %v7350_v4 = vld [vmem:[#allocation5 + $0x50] sm:$0xff]  ;;  %v7352_v57 = vld [vmem:[#allocation5 + $0x68] sm:$0xff]  ;;  %v300_v40 = vld [vmem:[#allocation7 + $0x418] sm:$0xff] }
 0x43a   :  { %2825 = vmatprep.mubr.f32.mxu1 %v258_v58  ;;  %v293_v58 = vld [vmem:[#allocation7 + $0x3e0] sm:$0xff] }
 0x43b   :  { %7091 = vmatpush1.bf16.msra.mxu0 %v7090_v27  ;;  %7119 = vmatprep.subr.bf16.mxu1 %v7118_v25  ;;  %v6502_v11 = vpop.f32.mrb[172].mxu0  ;;  %v294_v27 = vld [vmem:[#allocation7 + $0x3e8] sm:$0xff] }
 0x43c   :  { %7092 = vmatprep.subr.bf16.mxu0 %v10661_v16  ;;  %7121 = vmatpush3.bf16.msra.mxu1 %v7118_v25  ;;  %v3492_v49 = vpop.f32.mrb[173].mxu0  ;;  %v7353_v25 = vld [vmem:[#allocation5 + $0x60] sm:$0xff] }
 0x43d   :  { %2826 = vmatmul.mubr.f32.gmra.mrb[236].mxu1 %v257_v30  ;;  %v7122_v32 = vpack.c.bf16 %v6502_v11, %v3492_v49  ;;  %v299_v30 = vld [vmem:[#allocation7 + $0x410] sm:$0xff] }
 0x43e   :  { %2830 = vmatprep.mubr.f32.mxu1 %v264_v17  ;;  %v306_v17 = vld [vmem:[#allocation7 + $0x448] sm:$0xff] }
 0x43f   :  { %7094 = vmatpush1.bf16.msra.mxu0 %v7093_v9  ;;  %v6505_v38 = vpop.f32.mrb[174].mxu0  ;;  %7123 = vmatprep.subr.bf16.mxu1 %v7122_v32  ;;  %v7354_v9 = vld [vmem:[#allocation5 + $0x80] sm:$0xff] }
 0x440   :  { %7095 = vmatprep.subr.bf16.mxu0 %v10661_v16  ;;  %v3502_v6 = vpop.f32.mrb[175].mxu0  ;;  %7125 = vmatpush3.bf16.msra.mxu1 %v7122_v32 }
 0x441   :  { %2831 = vmatmul.mubr.f32.gmra.mrb[238].mxu1 %v263_v10  ;;  %v7126_v15 = vpack.c.bf16 %v6505_v38, %v3502_v6  ;;  %v7355_v10 = vld [vmem:[#allocation5 + $0x78] sm:$0xff] }
 0x442   :  { %2835 = vmatprep.mubr.f32.mxu1 %v270_v59  ;;  %v7356_v59 = vld [vmem:[#allocation5 + $0x98] sm:$0xff] }
 0x443   :  { %7097 = vmatpush1.bf16.msra.mxu0 %v7096_v56  ;;  %7127 = vmatprep.subr.bf16.mxu1 %v7126_v15  ;;  %v305_v56 = vld [vmem:[#allocation7 + $0x440] sm:$0xff]  ;;  %v312_v38 = vld [vmem:[#allocation7 + $0x478] sm:$0xff] }
 0x444   :  { %7129 = vmatpush3.bf16.msra.mxu1 %v7126_v15  ;;  %7135 = vmatprep.subr.bf16.mxu0 %v7898_v14 }
 0x445   :  { %2836 = vmatmul.mubr.f32.gmra.mrb[240].mxu1 %v269_v51  ;;  %7131 = vmatprep.subr.bf16.mxu1 %v7868_v3 }
 0x446   :  { %3576 = vmatmul.mubr.f32.vlgmr.msra.gmra.mrb[176].mxu0 %v7345_v53  ;;  %2840 = vmatprep.mubr.f32.mxu1 %v276_v37  ;;  %v7357_v53 = vld [vmem:[#allocation5 + $0x90] sm:$0xff] }
 0x447   :  { %3580 = vmatprep.mubr.f32.mxu0 %v7346_v28  ;;  %7137 = vmatpush3.bf16.msra.mxu0 %v7898_v14  ;;  %v7351_v14 = vld [vmem:[#allocation5 + $0x48] sm:$0xff] }
 0x448   :  { %7170 = vmatprep.subr.bf16.mxu0 %v10661_v16  ;;  %v318_v28 = vld [vmem:[#allocation7 + $0x4a8] sm:$0xff] }
 0x449   :  { %2841 = vmatmul.mubr.f32.gmra.mrb[242].mxu1 %v275_v22  ;;  %v7358_v22 = vld [vmem:[#allocation5 + $0xb0] sm:$0xff] }
 0x44a   :  { %3581 = vmatmul.mubr.f32.gmra.mrb[178].mxu0 %v7347_v13  ;;  %2845 = vmatprep.mubr.f32.mxu1 %v282_v42 }
 0x44b   :  { %3585 = vmatprep.mubr.f32.mxu0 %v7348_v62  ;;  %v7359_v62 = vld [vmem:[#allocation5 + $0xa8] sm:$0xff] }
 0x44d   :  { %2846 = vmatmul.mubr.f32.gmra.mrb[244].mxu1 %v281_v61 }
 0x44e   :  { %3586 = vmatmul.mubr.f32.gmra.mrb[180].mxu0 %v7349_v12  ;;  %2850 = vmatprep.mubr.f32.mxu1 %v288_v46  ;;  %v7360_v46 = vld [vmem:[#allocation5 + $0xc8] sm:$0xff]  ;;  %v324_v12 = vld [vmem:[#allocation7 + $0x4d8] sm:$0xff] }
 0x44f   :  { %3590 = vmatprep.mubr.f32.mxu0 %v7350_v4 }
 0x451   :  { %2851 = vmatmul.mubr.f32.gmra.mrb[246].mxu1 %v287_v34 }
 0x452   :  { %3591 = vmatmul.mubr.f32.gmra.mrb[182].mxu0 %v7351_v14  ;;  %2855 = vmatprep.mubr.f32.mxu1 %v294_v27  ;;  %v7361_v14 = vld [vmem:[#allocation5 + $0xc0] sm:$0xff] }
 0x453   :  { %3595 = vmatprep.mubr.f32.mxu0 %v7352_v57  ;;  %v330_v57 = vld [vmem:[#allocation7 + $0x508] sm:$0xff] }
 0x455   :  { %2856 = vmatmul.mubr.f32.gmra.mrb[248].mxu1 %v293_v58  ;;  %v7362_v58 = vld [vmem:[#allocation5 + $0xe0] sm:$0xff] }
 0x456   :  { %3596 = vmatmul.mubr.f32.gmra.mrb[184].mxu0 %v7353_v25  ;;  %2860 = vmatprep.mubr.f32.mxu1 %v300_v40 }
 0x457   :  { %3600 = vmatprep.mubr.f32.mxu0 %v7354_v9  ;;  %v7363_v9 = vld [vmem:[#allocation5 + $0xd8] sm:$0xff] }
 0x458   :  { %v2307_v11 = vpop.f32.mrb[144].mxu1 }
 0x459   :  { %v2308_v49 = vadd.f32 %v2307_v11, %v9027_v60  ;;  %2861 = vmatmul.mubr.f32.gmra.mrb[250].mxu1 %v299_v30  ;;  %v2309_v32 = vpop.f32.mrb[145].mxu1  ;;  %v311_v60 = vld [vmem:[#allocation7 + $0x470] sm:$0xff]  ;;  %v336_v11 = vld [vmem:[#allocation7 + $0x538] sm:$0xff] }
 0x45a   :  { %3601 = vmatmul.mubr.f32.gmra.mrb[186].mxu0 %v7355_v10  ;;  %2865 = vmatprep.mubr.f32.mxu1 %v306_v17  ;;  %v7364_v17 = vld [vmem:[#allocation5 + $0xf8] sm:$0xff] }
 0x45b   :  { %3605 = vmatprep.mubr.f32.mxu0 %v7356_v59  ;;  %v9156_v6 = vadd.f32 %v8975_v50, %v2308_v49  ;;  %v7366_v59 = vld [vmem:[#allocation5 + $0x110] sm:$0xff] }
 0x45c   :  { %v2312_v15 = vpop.f32.mrb[146].mxu1 }
 0x45d   :  { %v2313_v51 = vadd.f32 %v9023_v8, %v2312_v15  ;;  %2866 = vmatmul.mubr.f32.gmra.mrb[252].mxu1 %v305_v56  ;;  %v2314_v37 = vpop.f32.mrb[147].mxu1  ;;  %v317_v8 = vld [vmem:[#allocation7 + $0x4a0] sm:$0xff]  ;;  %v7365_v56 = vld [vmem:[#allocation5 + $0xf0] sm:$0xff] }
 0x45e   :  { %3606 = vmatmul.mubr.f32.gmra.mrb[188].mxu0 %v7357_v53  ;;  %2870 = vmatprep.mubr.f32.mxu1 %v312_v38  ;;  %v342_v38 = vld [vmem:[#allocation7 + $0x568] sm:$0xff] }
 0x45f   :  { %3610 = vmatprep.mubr.f32.mxu0 %v7358_v22  ;;  %v9160_v42 = vadd.f32 %v8978_v20, %v2313_v51  ;;  %v7367_v53 = vld [vmem:[#allocation5 + $0x108] sm:$0xff]  ;;  %v348_v22 = vld [vmem:[#allocation7 + $0x598] sm:$0xff] }
 0x460   :  { %v2317_v13 = vpop.f32.mrb[148].mxu1 }
 0x461   :  { %v2318_v61 = vadd.f32 %v2317_v13, %v9033_v19  ;;  %2871 = vmatmul.mubr.f32.gmra.mrb[254].mxu1 %v311_v60  ;;  %v2319_v50 = vpop.f32.mrb[149].mxu1  ;;  %v323_v19 = vld [vmem:[#allocation7 + $0x4d0] sm:$0xff]  ;;  %v7368_v60 = vld [vmem:[#allocation5 + $0x128] sm:$0xff] }
 0x462   :  { %3611 = vmatmul.mubr.f32.gmra.mrb[190].mxu0 %v7359_v62  ;;  %2875 = vmatprep.mubr.f32.mxu1 %v318_v28  ;;  %v7369_v50 = vld [vmem:[#allocation5 + $0x120] sm:$0xff] }
 0x463   :  { %3615 = vmatprep.mubr.f32.mxu0 %v7360_v46  ;;  %v9164_v34 = vadd.f32 %v8981_v5, %v2318_v61  ;;  %v7370_v62 = vld [vmem:[#allocation5 + $0x140] sm:$0xff] }
 0x464   :  { %v2322_v4 = vpop.f32.mrb[150].mxu1 }
 0x465   :  { %v2323_v27 = vadd.f32 %v9029_v0, %v2322_v4  ;;  %2876 = vmatmul.mubr.f32.gmra.mrb[0].mxu1 %v317_v8  ;;  %v2324_v20 = vpop.f32.mrb[151].mxu1  ;;  %v329_v0 = vld [vmem:[#allocation7 + $0x500] sm:$0xff]  ;;  %v354_v8 = vld [vmem:[#allocation7 + $0x5c8] sm:$0xff] }
 0x466   :  { %3616 = vmatmul.mubr.f32.gmra.mrb[192].mxu0 %v7361_v14  ;;  %2880 = vmatprep.mubr.f32.mxu1 %v324_v12  ;;  %v7372_v20 = vld [vmem:[#allocation5 + $0x158] sm:$0xff] }
 0x467   :  { %3620 = vmatprep.mubr.f32.mxu0 %v7362_v58  ;;  %v9168_v40 = vadd.f32 %v8984_v43, %v2323_v27  ;;  %v7371_v27 = vld [vmem:[#allocation5 + $0x138] sm:$0xff] }
 0x468   :  { %v2327_v25 = vpop.f32.mrb[152].mxu1  ;;  %v360_v14 = vld [vmem:[#allocation7 + $0x5f8] sm:$0xff] }
 0x469   :  { %v2328_v30 = vadd.f32 %v2327_v25, %v9039_v48  ;;  %2881 = vmatmul.mubr.f32.gmra.mrb[2].mxu1 %v323_v19  ;;  %v2329_v5 = vpop.f32.mrb[153].mxu1  ;;  %v335_v48 = vld [vmem:[#allocation7 + $0x530] sm:$0xff] }
 0x46a   :  { %3621 = vmatmul.mubr.f32.gmra.mrb[194].mxu0 %v7363_v9  ;;  %2885 = vmatprep.mubr.f32.mxu1 %v330_v57  ;;  %v7373_v25 = vld [vmem:[#allocation5 + $0x150] sm:$0xff] }
 0x46b   :  { %3625 = vmatprep.mubr.f32.mxu0 %v7364_v17  ;;  %v9172_v49 = vadd.f32 %v8987_v35, %v2328_v30  ;;  %v7374_v30 = vld [vmem:[#allocation5 + $0x170] sm:$0xff]  ;;  %v7375_v17 = vld [vmem:[#allocation5 + $0x168] sm:$0xff] }
 0x46c   :  { %v2332_v32 = vpop.f32.mrb[154].mxu1 }
 0x46d   :  { %v2333_v10 = vadd.f32 %v9035_v18, %v2332_v32  ;;  %2886 = vmatmul.mubr.f32.gmra.mrb[4].mxu1 %v329_v0  ;;  %v2334_v43 = vpop.f32.mrb[155].mxu1  ;;  %v341_v18 = vld [vmem:[#allocation7 + $0x560] sm:$0xff] }
 0x46e   :  { %3626 = vmatmul.mubr.f32.gmra.mrb[196].mxu0 %v7365_v56  ;;  %2890 = vmatprep.mubr.f32.mxu1 %v336_v11  ;;  %v7376_v11 = vld [vmem:[#allocation5 + $0x10] sm:$0xff]  ;;  %v7378_v56 = vld [vmem:[#allocation5 + $0x28] sm:$0xff] }
 0x46f   :  { %3630 = vmatprep.mubr.f32.mxu0 %v7366_v59  ;;  %v9176_v15 = vadd.f32 %v8990_v39, %v2333_v10  ;;  %v7381_v59 = vld [vmem:[#allocation5 + $0x1a0] sm:$0xff] }
 0x470   :  { %v2337_v51 = vpop.f32.mrb[156].mxu1 }
 0x471   :  { %v2338_v37 = vadd.f32 %v2337_v51, %v9045_v21  ;;  %2891 = vmatmul.mubr.f32.gmra.mrb[6].mxu1 %v335_v48  ;;  %v2339_v35 = vpop.f32.mrb[157].mxu1  ;;  %v347_v21 = vld [vmem:[#allocation7 + $0x590] sm:$0xff]  ;;  %v7379_v48 = vld [vmem:[#allocation5 + $0x180] sm:$0xff] }
 0x472   :  { %3631 = vmatmul.mubr.f32.gmra.mrb[198].mxu0 %v7367_v53  ;;  %2895 = vmatprep.mubr.f32.mxu1 %v342_v38  ;;  %v7383_v35 = vld [vmem:[#allocation5 + $0x198] sm:$0xff]  ;;  %v7384_v53 = vld [vmem:[#allocation5 + $0x70] sm:$0xff] }
 0x473   :  { %3635 = vmatprep.mubr.f32.mxu0 %v7368_v60  ;;  %v9180_v28 = vadd.f32 %v8993_v23, %v2338_v37  ;;  %v7382_v37 = vld [vmem:[#allocation5 + $0x58] sm:$0xff] }
 0x474   :  { %v2342_v13 = vpop.f32.mrb[158].mxu1 }
 0x475   :  { %v2343_v61 = vadd.f32 %v9041_v7, %v2342_v13  ;;  %2896 = vmatmul.mubr.f32.gmra.mrb[8].mxu1 %v341_v18  ;;  %v2344_v39 = vpop.f32.mrb[159].mxu1  ;;  %v353_v7 = vld [vmem:[#allocation7 + $0x5c0] sm:$0xff]  ;;  %v7385_v18 = vld [vmem:[#allocation5 + $0x1b8] sm:$0xff]  ;;  %v7386_v13 = vld [vmem:[#allocation5 + $0x88] sm:$0xff] }
 0x476   :  { %3636 = vmatmul.mubr.f32.gmra.mrb[200].mxu0 %v7369_v50  ;;  %2900 = vmatprep.mubr.f32.mxu1 %v348_v22  ;;  %v7389_v39 = vld [vmem:[#allocation5 + $0x1d0] sm:$0xff] }
 0x477   :  { %3640 = vmatprep.mubr.f32.mxu0 %v7370_v62  ;;  %v9184_v46 = vadd.f32 %v8996_v26, %v2343_v61  ;;  %v7387_v61 = vld [vmem:[#allocation5 + $0x1b0] sm:$0xff] }
 0x478   :  { %v2347_v12 = vpop.f32.mrb[160].mxu1 }
 0x479   :  { %v2348_v4 = vadd.f32 %v2347_v12, %v9051_v63  ;;  %2901 = vmatmul.mubr.f32.gmra.mrb[10].mxu1 %v347_v21  ;;  %v2349_v23 = vpop.f32.mrb[161].mxu1  ;;  %v359_v63 = vld [vmem:[#allocation7 + $0x5f0] sm:$0xff]  ;;  %v7391_v12 = vld [vmem:[#allocation5 + $0x1c8] sm:$0xff] }
 0x47a   :  { %3641 = vmatmul.mubr.f32.gmra.mrb[202].mxu0 %v7371_v27  ;;  %2905 = vmatprep.mubr.f32.mxu1 %v354_v8 }
 0x47b   :  { %3645 = vmatprep.mubr.f32.mxu0 %v7372_v20  ;;  %v9188_v19 = vadd.f32 %v8999_v2, %v2348_v4  ;;  %v7393_v4 = vld [vmem:[#allocation5 + $0x1e8] sm:$0xff] }
 0x47c   :  { %v2352_v58 = vpop.f32.mrb[162].mxu1 }
 0x47d   :  { %v2353_v57 = vadd.f32 %v9047_v52, %v2352_v58  ;;  %2906 = vmatmul.mubr.f32.gmra.mrb[12].mxu1 %v353_v7  ;;  %v2354_v26 = vpop.f32.mrb[163].mxu1  ;;  %v7377_v52 = vld [vmem:[#allocation5 + $0x188] sm:$0xff]  ;;  %v7397_v58 = vld [vmem:[#allocation5 + $0x200] sm:$0xff] }
 0x47e   :  { %3646 = vmatmul.mubr.f32.gmra.mrb[204].mxu0 %v7373_v25  ;;  %2910 = vmatprep.mubr.f32.mxu1 %v360_v14  ;;  %v7395_v14 = vld [vmem:[#allocation5 + $0x1e0] sm:$0xff] }
 0x47f   :  { %3650 = vmatprep.mubr.f32.mxu0 %v7374_v30  ;;  %v9192_v5 = vadd.f32 %v9002_v41, %v2353_v57  ;;  %v10662_v57 = vld [vmem:[#allocation44_spill] sm:$0xff] }
 0x480   :  { %v2357_v9 = vpop.f32.mrb[164].mxu1 }
 0x481   :  { %v2358_v0 = vadd.f32 %v2357_v9, %v9057_v31  ;;  %2911 = vmatmul.mubr.f32.gmra.mrb[14].mxu1 %v359_v63  ;;  %v2359_v2 = vpop.f32.mrb[165].mxu1  ;;  %v7380_v31 = vld [vmem:[#allocation5 + $0x40] sm:$0xff]  ;;  %v10663_v63 = vld [vmem:[#allocation55_spill] sm:$0xff] }
 0x482   :  { %3651 = vmatmul.mubr.f32.gmra.mrb[206].mxu0 %v7375_v17  ;;  %6538 = vmatprep.mubr.f32.mxu1 %v7376_v11  ;;  %v7401_v2 = vld [vmem:[#allocation5 + $0x218] sm:$0xff]  ;;  %v10664_v17 = vld [vmem:[#allocation45_spill] sm:$0xff] }
 0x483   :  { %3655 = vmatprep.mubr.f32.mxu0 %v7377_v52  ;;  %v9196_v32 = vadd.f32 %v9005_v33, %v2358_v0  ;;  %v7399_v0 = vld [vmem:[#allocation5 + $0x1f8] sm:$0xff] }
 0x484   :  { %v2362_v10 = vpop.f32.mrb[166].mxu1 }
 0x485   :  { %v2363_v43 = vadd.f32 %v9053_v44, %v2362_v10  ;;  %6539 = vmatmul.mubr.f32.vlgmr.msra.gmra.mrb[16].mxu1 %v7378_v56  ;;  %v2364_v41 = vpop.f32.mrb[167].mxu1  ;;  %v10665_v10 = vld [vmem:[#allocation53_spill] sm:$0xff] }
 0x486   :  { %3656 = vmatmul.mubr.f32.gmra.mrb[208].mxu0 %v7379_v48  ;;  %6541 = vmatprep.mubr.f32.mxu1 %v7380_v31  ;;  %v7402_v56 = vld [vmem:[#allocation5 + $0x148] sm:$0xff]  ;;  %v7403_v48 = vld [vmem:[#allocation5 + $0x210] sm:$0xff]  ;;  %v7404_v31 = vld [vmem:[#allocation5 + $0x160] sm:$0xff] }
 0x487   :  { %3660 = vmatprep.mubr.f32.mxu0 %v7381_v59  ;;  %v9200_v38 = vadd.f32 %v9008_v47, %v2363_v43  ;;  %7133 = vmatpush3.bf16.msra.mxu1 %v7868_v3  ;;  %v7405_v59 = vld [vmem:[#allocation5 + $0x230] sm:$0xff] }
 0x488   :  { %v2367_v51 = vpop.f32.mrb[168].mxu1 }
 0x489   :  { %v2368_v33 = vadd.f32 %v2367_v51, %v9063_v55  ;;  %6542 = vmatmul.mubr.f32.gmra.mrb[18].mxu1 %v7382_v37  ;;  %v2369_v44 = vpop.f32.mrb[169].mxu1  ;;  %v7388_v55 = vld [vmem:[#allocation5 + $0xa0] sm:$0xff]  ;;  %v10666_v51 = vld [vmem:[#allocation46_spill] sm:$0xff] }
 0x48a   :  { %3661 = vmatmul.mubr.f32.gmra.mrb[210].mxu0 %v7383_v35  ;;  %6544 = vmatprep.mubr.f32.mxu1 %v7384_v53  ;;  %v10667_v44 = vld [vmem:[#allocation58_spill] sm:$0xff]  ;;  %v7406_v53 = vld [vmem:[#allocation5 + $0x178] sm:$0xff] }
 0x48b   :  { %3665 = vmatprep.mubr.f32.mxu0 %v7385_v18  ;;  %v9205_v60 = vadd.f32 %v9011_v36, %v2368_v33  ;;  %v7390_v36 = vld [vmem:[#allocation5 + $0xb8] sm:$0xff] }
 0x48c   :  { %v2372_v22 = vpop.f32.mrb[170].mxu1 }
 0x48d   :  { %v2373_v47 = vadd.f32 %v9059_v29, %v2372_v22  ;;  %6545 = vmatmul.mubr.f32.gmra.mrb[20].mxu1 %v7386_v13  ;;  %v2374_v3 = vpop.f32.mrb[171].mxu1  ;;  %v7392_v29 = vld [vmem:[#allocation5 + $0xd0] sm:$0xff]  ;;  %v7407_v22 = vld [vmem:[#allocation5 + $0x228] sm:$0xff] }
 0x48e   :  { %3666 = vmatmul.mubr.f32.gmra.mrb[212].mxu0 %v7387_v61  ;;  %6547 = vmatprep.mubr.f32.mxu1 %v7388_v55  ;;  %v7409_v13 = vld [vmem:[#allocation5 + $0x248] sm:$0xff]  ;;  %v10668_v3 = vld [vmem:[#allocation47_spill] sm:$0xff] }
 0x48f   :  { %3670 = vmatprep.mubr.f32.mxu0 %v7389_v39  ;;  %v9209_v50 = vadd.f32 %v9014_v24, %v2373_v47  ;;  %v7394_v24 = vld [vmem:[#allocation5 + $0xe8] sm:$0xff]  ;;  %v7408_v47 = vld [vmem:[#allocation5 + $0x190] sm:$0xff]  ;;  %v10669_v39 = vld [vmem:[#allocation56_spill] sm:$0xff] }
 0x490   :  { %v2377_v21 = vpop.f32.mrb[172].mxu1 }
 0x491   :  { %v2378_v62 = vadd.f32 %v2377_v21, %v9069_v45  ;;  %6548 = vmatmul.mubr.f32.gmra.mrb[22].mxu1 %v7390_v36  ;;  %v2379_v8 = vpop.f32.mrb[173].mxu1  ;;  %v7396_v45 = vld [vmem:[#allocation5 + $0x100] sm:$0xff] }
 0x492   :  { %3671 = vmatmul.mubr.f32.gmra.mrb[214].mxu0 %v7391_v12  ;;  %6550 = vmatprep.mubr.f32.mxu1 %v7392_v29  ;;  %v7411_v8 = vld [vmem:[#allocation5 + $0x240] sm:$0xff] }
 0x493   :  { %3675 = vmatprep.mubr.f32.mxu0 %v7393_v4  ;;  %v9213_v23 = vadd.f32 %v9017_v1, %v2378_v62  ;;  %v7398_v1 = vld [vmem:[#allocation5 + $0x118] sm:$0xff]  ;;  %v7410_v62 = vld [vmem:[#allocation5 + $0x1a8] sm:$0xff]  ;;  %v7412_v12 = vld [vmem:[#allocation5 + $0x1c0] sm:$0xff] }
 0x494   :  { %v2382_v27 = vpop.f32.mrb[174].mxu1  ;;  %v7413_v29 = vld [vmem:[#allocation5 + $0x260] sm:$0xff] }
 0x495   :  { %v2383_v7 = vadd.f32 %v9065_v54, %v2382_v27  ;;  %6551 = vmatmul.mubr.f32.gmra.mrb[24].mxu1 %v7394_v24  ;;  %v2384_v20 = vpop.f32.mrb[175].mxu1  ;;  %v7400_v54 = vld [vmem:[#allocation5 + $0x130] sm:$0xff]  ;;  %v10670_v4 = vld [vmem:[#allocation48_spill] sm:$0xff]  ;;  %v10671_v24 = vld [vmem:[#allocation61_spill] sm:$0xff] }
 0x496   :  { %3676 = vmatmul.mubr.f32.gmra.mrb[216].mxu0 %v7395_v14  ;;  %6553 = vmatprep.mubr.f32.mxu1 %v7396_v45  ;;  %v7414_v14 = vld [vmem:[#allocation5 + $0x1d8] sm:$0xff] }
 0x497   :  { %3680 = vmatprep.mubr.f32.mxu0 %v7397_v58  ;;  %v9217_v26 = vadd.f32 %v10662_v57, %v2383_v7  ;;  %v7415_v58 = vld [vmem:[#allocation5 + $0x258] sm:$0xff]  ;;  %v7416_v57 = vld [vmem:[#allocation5 + $0x1f0] sm:$0xff] }
 0x498   :  { %v2387_v25 = vpop.f32.mrb[176].mxu1 }
 0x499   :  { %v2388_v30 = vadd.f32 %v2387_v25, %v10663_v63  ;;  %6554 = vmatmul.mubr.f32.gmra.mrb[26].mxu1 %v7398_v1  ;;  %v2389_v9 = vpop.f32.mrb[177].mxu1  ;;  %v7417_v25 = vld [vmem:[#allocation5 + $0x278] sm:$0xff]  ;;  %v10672_v63 = vld [vmem:[#allocation49_spill] sm:$0xff] }
 0x49a   :  { %3681 = vmatmul.mubr.f32.gmra.mrb[218].mxu0 %v7399_v0  ;;  %6556 = vmatprep.mubr.f32.mxu1 %v7400_v54  ;;  %v10673_v9 = vld [vmem:[#allocation59_spill] sm:$0xff]  ;;  %v7418_v54 = vld [vmem:[#allocation5 + $0x208] sm:$0xff] }
 0x49b   :  { %3685 = vmatprep.mubr.f32.mxu0 %v7401_v2  ;;  %v9221_v11 = vadd.f32 %v10664_v17, %v2388_v30  ;;  %v7419_v17 = vld [vmem:[#allocation5 + $0x270] sm:$0xff] }
 0x49c   :  { %v2392_v52 = vpop.f32.mrb[178].mxu1 }
 0x49d   :  { %v2393_v43 = vadd.f32 %v10665_v10, %v2392_v52  ;;  %6557 = vmatmul.mubr.f32.gmra.mrb[28].mxu1 %v7402_v56  ;;  %v2394_v41 = vpop.f32.mrb[179].mxu1  ;;  %v7420_v52 = vld [vmem:[#allocation5 + $0x220] sm:$0xff]  ;;  %v7421_v10 = vld [vmem:[#allocation5 + $0x290] sm:$0xff] }
 0x49e   :  { %3686 = vmatmul.mubr.f32.gmra.mrb[220].mxu0 %v7403_v48  ;;  %6559 = vmatprep.mubr.f32.mxu1 %v7404_v31  ;;  %v10675_v48 = vld [vmem:[#allocation64_spill] sm:$0xff] }
 0x49f   :  { %3690 = vmatprep.mubr.f32.mxu0 %v7405_v59  ;;  %v9225_v33 = vadd.f32 %v10666_v51, %v2393_v43  ;;  %v10674_v43 = vld [vmem:[#allocation50_spill] sm:$0xff]  ;;  %v7422_v59 = vld [vmem:[#allocation5 + $0x238] sm:$0xff] }
 0x4a0   :  { %v2397_v37 = vpop.f32.mrb[180].mxu1 }
 0x4a1   :  { %v2398_v35 = vadd.f32 %v2397_v37, %v10667_v44  ;;  %6560 = vmatmul.mubr.f32.gmra.mrb[30].mxu1 %v7406_v53  ;;  %v2399_v18 = vpop.f32.mrb[181].mxu1  ;;  %v7423_v37 = vld [vmem:[#allocation5 + $0x288] sm:$0xff]  ;;  %v7424_v44 = vld [vmem:[#allocation5 + $0x250] sm:$0xff]  ;;  %v10676_v53 = vld [vmem:[#allocation51_spill] sm:$0xff] }
 0x4a2   :  { %3691 = vmatmul.mubr.f32.gmra.mrb[222].mxu0 %v7407_v22  ;;  %6562 = vmatprep.mubr.f32.mxu1 %v7408_v47  ;;  %v10677_v47 = vld [vmem:[#allocation62_spill] sm:$0xff] }
 0x4a3   :  { %3695 = vmatprep.mubr.f32.mxu0 %v7409_v13  ;;  %v9229_v61 = vadd.f32 %v10668_v3, %v2398_v35  ;;  %v7425_v35 = vld [vmem:[#allocation5 + $0x2a8] sm:$0xff] }
 0x4a4   :  { %v2402_v55 = vpop.f32.mrb[182].mxu1  ;;  %v7426_v3 = vld [vmem:[#allocation5 + $0x268] sm:$0xff] }
 0x4a5   :  { %v2403_v21 = vadd.f32 %v10669_v39, %v2402_v55  ;;  %6563 = vmatmul.mubr.f32.gmra.mrb[32].mxu1 %v7410_v62  ;;  %v2404_v36 = vpop.f32.mrb[183].mxu1  ;;  %v7427_v39 = vld [vmem:[#allocation5 + $0x2a0] sm:$0xff] }
 0x4a6   :  { %3696 = vmatmul.mubr.f32.gmra.mrb[224].mxu0 %v7411_v8  ;;  %6565 = vmatprep.mubr.f32.mxu1 %v7412_v12  ;;  %v7429_v62 = vld [vmem:[#allocation5 + $0x2c0] sm:$0xff] }
 0x4a7   :  { %3700 = vmatprep.mubr.f32.mxu0 %v7413_v29  ;;  %v9233_v27 = vadd.f32 %v10670_v4, %v2403_v21  ;;  %v7428_v21 = vld [vmem:[#allocation5 + $0x280] sm:$0xff]  ;;  %v10679_v29 = vld [vmem:[#allocation67_spill] sm:$0xff] }
 0x4a8   :  { %v2407_v7 = vpop.f32.mrb[184].mxu1  ;;  %v10678_v36 = vld [vmem:[#allocation52_spill] sm:$0xff] }
 0x4a9   :  { %v2408_v20 = vadd.f32 %v2407_v7, %v10671_v24  ;;  %6566 = vmatmul.mubr.f32.gmra.mrb[34].mxu1 %v7414_v14  ;;  %v2409_v45 = vpop.f32.mrb[185].mxu1  ;;  %v7430_v7 = vld [vmem:[#allocation5 + $0x298] sm:$0xff]  ;;  %v7432_v14 = vld [vmem:[#allocation5 + $0x2b0] sm:$0xff] }
 0x4aa   :  { %3701 = vmatmul.mubr.f32.gmra.mrb[226].mxu0 %v7415_v58  ;;  %6568 = vmatprep.mubr.f32.mxu1 %v7416_v57  ;;  %v7433_v45 = vld [vmem:[#allocation5 + $0x2d8] sm:$0xff]  ;;  %v10680_v58 = vld [vmem:[#allocation54_spill] sm:$0xff] }
 0x4ab   :  { %3705 = vmatprep.mubr.f32.mxu0 %v7417_v25  ;;  %v9237_v30 = vadd.f32 %v10672_v63, %v2408_v20  ;;  %v7431_v20 = vld [vmem:[#allocation5 + $0x2b8] sm:$0xff]  ;;  %v10681_v63 = vld [vmem:[#allocation65_spill] sm:$0xff] }
 0x4ac   :  { %v2412_v1 = vpop.f32.mrb[186].mxu1 }
 0x4ad   :  { %v2413_v0 = vadd.f32 %v10673_v9, %v2412_v1  ;;  %6569 = vmatmul.mubr.f32.gmra.mrb[36].mxu1 %v7418_v54  ;;  %v2414_v2 = vpop.f32.mrb[187].mxu1  ;;  %v7434_v9 = vld [vmem:[#allocation5 + $0x2c8] sm:$0xff]  ;;  %v7435_v54 = vld [vmem:[#allocation5 + $0x2d0] sm:$0xff] }
 0x4ae   :  { %3706 = vmatmul.mubr.f32.gmra.mrb[228].mxu0 %v7419_v17  ;;  %6571 = vmatprep.mubr.f32.mxu1 %v7420_v52  ;;  %v7436_v2 = vld [vmem:[#allocation5 + $0x2e0] sm:$0xff]  ;;  %v7437_v17 = vld [vmem:[#allocation5 + $0x2f0] sm:$0xff]  ;;  %v10682_v52 = vld [vmem:[#allocation57_spill] sm:$0xff] }
 0x4af   :  { %3710 = vmatprep.mubr.f32.mxu0 %v7421_v10  ;;  %v9241_v56 = vadd.f32 %v10674_v43, %v2413_v0 }
 0x4b0   :  { %v2417_v41 = vpop.f32.mrb[188].mxu1 }
 0x4b1   :  { %v2418_v31 = vadd.f32 %v2417_v41, %v10675_v48  ;;  %6572 = vmatmul.mubr.f32.gmra.mrb[38].mxu1 %v7422_v59  ;;  %v2419_v51 = vpop.f32.mrb[189].mxu1  ;;  %v10683_v41 = vld [vmem:[#allocation70_spill] sm:$0xff] }
 0x4b2   :  { %3711 = vmatmul.mubr.f32.gmra.mrb[230].mxu0 %v7423_v37  ;;  %6574 = vmatprep.mubr.f32.mxu1 %v7424_v44  ;;  %v7439_v51 = vld [vmem:[#allocation5 + $0x2e8] sm:$0xff]  ;;  %v10684_v37 = vld [vmem:[#allocation60_spill] sm:$0xff] }
 0x4b3   :  { %3715 = vmatprep.mubr.f32.mxu0 %v7425_v35  ;;  %v9245_v18 = vadd.f32 %v10676_v53, %v2418_v31  ;;  %v7438_v31 = vld [vmem:[#allocation5 + $0x2f8] sm:$0xff]  ;;  %v10685_v53 = vld [vmem:[#allocation68_spill] sm:$0xff] }
 0x4b4   :  { %v2422_v22 = vpop.f32.mrb[190].mxu1 }
 0x4b5   :  { %v2423_v13 = vadd.f32 %v10677_v47, %v2422_v22  ;;  %6575 = vmatmul.mubr.f32.gmra.mrb[40].mxu1 %v7426_v3  ;;  %v2424_v55 = vpop.f32.mrb[191].mxu1 }
 0x4b6   :  { %3716 = vmatmul.mubr.f32.gmra.mrb[232].mxu0 %v7427_v39  ;;  %6577 = vmatprep.mubr.f32.mxu1 %v7428_v21  ;;  %v10687_v39 = vld [vmem:[#allocation73_spill] sm:$0xff] }
 0x4b7   :  { %3720 = vmatprep.mubr.f32.mxu0 %v7429_v62  ;;  %v9249_v8 = vadd.f32 %v10678_v36, %v2423_v13  ;;  %v10686_v13 = vld [vmem:[#allocation63_spill] sm:$0xff]  ;;  %v10688_v36 = vld [vmem:[#allocation66_spill] sm:$0xff] }
 0x4b8   :  { %v2427_v12 = vpop.f32.mrb[192].mxu1 }
 0x4b9   :  { %v2428_v4 = vadd.f32 %v2427_v12, %v10679_v29  ;;  %6578 = vmatmul.mubr.f32.gmra.mrb[42].mxu1 %v7430_v7  ;;  %v2429_v24 = vpop.f32.mrb[193].mxu1 }
 0x4ba   :  { %3721 = vmatmul.mubr.f32.gmra.mrb[234].mxu0 %v7431_v20  ;;  %6580 = vmatprep.mubr.f32.mxu1 %v7432_v14  ;;  %v10690_v20 = vld [vmem:[#allocation69_spill] sm:$0xff] }
 0x4bb   :  { %3725 = vmatprep.mubr.f32.mxu0 %v7433_v45  ;;  %v9253_v57 = vadd.f32 %v10680_v58, %v2428_v4  ;;  %v10689_v4 = vld [vmem:[#allocation71_spill] sm:$0xff]  ;;  %v10691_v58 = vld [vmem:[#allocation76_spill] sm:$0xff] }
 0x4bc   :  { %v2432_v25 = vpop.f32.mrb[194].mxu1 }
 0x4bd   :  { %v2433_v1 = vadd.f32 %v10681_v63, %v2432_v25  ;;  %6581 = vmatmul.mubr.f32.gmra.mrb[44].mxu1 %v7434_v9  ;;  %v2434_v0 = vpop.f32.mrb[195].mxu1 }
 0x4be   :  { %3726 = vmatmul.mubr.f32.gmra.mrb[236].mxu0 %v7435_v54  ;;  %6583 = vmatprep.mubr.f32.mxu1 %v7436_v2  ;;  %v10693_v54 = vld [vmem:[#allocation74_spill] sm:$0xff] }
 0x4bf   :  { %3730 = vmatprep.mubr.f32.mxu0 %v7437_v17  ;;  %v9257_v10 = vadd.f32 %v10682_v52, %v2433_v1  ;;  %v10692_v1 = vld [vmem:[#allocation72_spill] sm:$0xff]  ;;  %v10694_v52 = vld [vmem:[#allocation75_spill] sm:$0xff] }
 0x4c0   :  { %v2437_v43 = vpop.f32.mrb[196].mxu1 }
 0x4c1   :  { %v2438_v48 = vadd.f32 %v2437_v43, %v10683_v41  ;;  %6584 = vmatmul.mubr.f32.gmra.mrb[46].mxu1 %v7438_v31  ;;  %v2439_v59 = vpop.f32.mrb[197].mxu1 }
 0x4c2   :  { %3731 = vmatmul.mubr.f32.gmra.mrb[238].mxu0 %v7439_v51  ;;  %v9284_v59 = vpop.permute.xlu0 %2918 }
 0x4c3   :  { %v9261_v44 = vadd.f32 %v10684_v37, %v2438_v48  ;;  %10695 = vst [vmem:[#allocation44_spill] sm:$0xff] %v9284_v59 }
 0x4c4   :  { %v2442_v35 = vpop.f32.mrb[198].mxu1 }
 0x4c5   :  { %v2443_v22 = vadd.f32 %v10685_v53, %v2442_v35  ;;  %v2444_v47 = vpop.f32.mrb[199].mxu1 }
 0x4c7   :  { %v9265_v3 = vadd.f32 %v10686_v13, %v2443_v22  ;;  %v9289_v22 = vpop.permute.xlu1 %2923 }
 0x4c8   :  { %v2447_v55 = vpop.f32.mrb[200].mxu1  ;;  %10696 = vst [vmem:[#allocation55_spill] sm:$0xff] %v9289_v22 }
 0x4c9   :  { %v2448_v21 = vadd.f32 %v2447_v55, %v10687_v39  ;;  %v2449_v62 = vpop.f32.mrb[201].mxu1  ;;  %v9294_v39 = vpop.permute.xlu0 %2928 }
 0x4ca   :  { %10697 = vst [vmem:[#allocation45_spill] sm:$0xff] %v9294_v39 }
 0x4cb   :  { %v9269_v12 = vadd.f32 %v10688_v36, %v2448_v21 }
 0x4cc   :  { %v2452_v29 = vpop.f32.mrb[202].mxu1 }
 0x4cd   :  { %v2453_v7 = vadd.f32 %v10689_v4, %v2452_v29  ;;  %v2454_v24 = vpop.f32.mrb[203].mxu1  ;;  %v9299_v29 = vpop.permute.xlu1 %2933 }
 0x4ce   :  { %10698 = vst [vmem:[#allocation53_spill] sm:$0xff] %v9299_v29 }
 0x4cf   :  { %v9273_v14 = vadd.f32 %v10690_v20, %v2453_v7  ;;  %v9304_v20 = vpop.permute.xlu0 %2938 }
 0x4d0   :  { %v2457_v45 = vpop.f32.mrb[204].mxu1  ;;  %10699 = vst [vmem:[#allocation46_spill] sm:$0xff] %v9304_v20 }
 0x4d1   :  { %v2458_v25 = vadd.f32 %v2457_v45, %v10691_v58  ;;  %v2459_v63 = vpop.f32.mrb[205].mxu1 }
 0x4d2   :  { %v9309_v63 = vpop.permute.xlu1 %2943 }
 0x4d3   :  { %v9277_v9 = vadd.f32 %v10692_v1, %v2458_v25  ;;  %10700 = vst [vmem:[#allocation58_spill] sm:$0xff] %v9309_v63 }
 0x4d4   :  { %v2462_v0 = vpop.f32.mrb[206].mxu1 }
 0x4d5   :  { %v2463_v2 = vadd.f32 %v10693_v54, %v2462_v0  ;;  %v2464_v17 = vpop.f32.mrb[207].mxu1 }
 0x4d7   :  { %v9281_v43 = vadd.f32 %v10694_v52, %v2463_v2  ;;  %v9314_v2 = vpop.permute.xlu0 %2948 }
 0x4d8   :  { %v2757_v41 = vpop.f32.mrb[208].mxu1  ;;  %10701 = vst [vmem:[#allocation47_spill] sm:$0xff] %v9314_v2 }
 0x4d9   :  { %v2758_v48 = vadd.f32 %v2757_v41, %v9156_v6  ;;  %v2759_v31 = vpop.f32.mrb[209].mxu1 }
 0x4db   :  { %v3076_v51 = vadd.f32 %v9284_v59, %v2758_v48  ;;  %v9319_v48 = vpop.permute.xlu1 %2953 }
 0x4dc   :  { %v2762_v37 = vpop.f32.mrb[210].mxu1  ;;  %10702 = vst [vmem:[#allocation56_spill] sm:$0xff] %v9319_v48 }
 0x4dd   :  { %3108 = vst.msk [vmem:[#allocation8] sm:$0xff] %vm489_vm0, %v3076_v51  ;;  %v2763_v35 = vadd.f32 %v2762_v37, %v9160_v42  ;;  %v2764_v53 = vpop.f32.mrb[211].mxu1 }
 0x4df   :  { %v3077_v47 = vadd.f32 %v9289_v22, %v2763_v35  ;;  %v9324_v35 = vpop.permute.xlu0 %2958 }
 0x4e0   :  { %v2767_v13 = vpop.f32.mrb[212].mxu1  ;;  %10703 = vst [vmem:[#allocation48_spill] sm:$0xff] %v9324_v35 }
 0x4e1   :  { %3109 = vst.msk [vmem:[#allocation8 + $0x8] sm:$0xff] %vm489_vm0, %v3077_v47  ;;  %v2768_v6 = vadd.f32 %v2767_v13, %v9164_v34  ;;  %v2769_v55 = vpop.f32.mrb[213].mxu1 }
 0x4e2   :  { %v7441_v55 = vld [vmem:[%s10522_s0 + $0x88] sm:$0xff] }
 0x4e3   :  { %v3078_v21 = vadd.f32 %v9294_v39, %v2768_v6  ;;  %v7440_v6 = vld [vmem:[%s10522_s0 + $0x80] sm:$0xff] }
 0x4e4   :  { %v2772_v62 = vpop.f32.mrb[214].mxu1 }
 0x4e5   :  { %3110 = vst.msk [vmem:[#allocation8 + $0x10] sm:$0xff] %vm489_vm0, %v3078_v21  ;;  %v2773_v42 = vadd.f32 %v2772_v62, %v9168_v40  ;;  %v2774_v36 = vpop.f32.mrb[215].mxu1  ;;  %v9337_v21 = vpop.permute.xlu1 %2963 }
 0x4e6   :  { %10704 = vst [vmem:[#allocation61_spill] sm:$0xff] %v9337_v21 }
 0x4e7   :  { %v3079_v4 = vadd.f32 %v9299_v29, %v2773_v42 }
 0x4e8   :  { %v2777_v7 = vpop.f32.mrb[216].mxu1 }
 0x4e9   :  { %3111 = vst.msk [vmem:[#allocation8 + $0x18] sm:$0xff] %vm489_vm0, %v3079_v4  ;;  %v2778_v34 = vadd.f32 %v2777_v7, %v9172_v49  ;;  %v2779_v24 = vpop.f32.mrb[217].mxu1  ;;  %v9343_v4 = vpop.permute.xlu0 %2968 }
 0x4ea   :  { %10705 = vst [vmem:[#allocation49_spill] sm:$0xff] %v9343_v4 }
 0x4eb   :  { %v3080_v45 = vadd.f32 %v9304_v20, %v2778_v34 }
 0x4ec   :  { %v2782_v58 = vpop.f32.mrb[218].mxu1 }
 0x4ed   :  { %3112 = vst.msk [vmem:[#allocation8 + $0x20] sm:$0xff] %vm489_vm0, %v3080_v45  ;;  %v2783_v40 = vadd.f32 %v2782_v58, %v9176_v15  ;;  %v2784_v25 = vpop.f32.mrb[219].mxu1  ;;  %v9348_v58 = vpop.permute.xlu1 %2973 }
 0x4ee   :  { %10706 = vst [vmem:[#allocation59_spill] sm:$0xff] %v9348_v58 }
 0x4ef   :  { %v3081_v1 = vadd.f32 %v9309_v63, %v2783_v40  ;;  %v7630_v63 = vld [vmem:[#allocation7 + $0x178] sm:$0xff] }
 0x4f0   :  { %v2787_v0 = vpop.f32.mrb[220].mxu1 }
 0x4f1   :  { %3113 = vst.msk [vmem:[#allocation8 + $0x28] sm:$0xff] %vm489_vm0, %v3081_v1  ;;  %v2788_v49 = vadd.f32 %v2787_v0, %v9180_v28  ;;  %v2789_v54 = vpop.f32.mrb[221].mxu1  ;;  %v9353_v0 = vpop.permute.xlu0 %2978 }
 0x4f2   :  { %10707 = vst [vmem:[#allocation50_spill] sm:$0xff] %v9353_v0 }
 0x4f3   :  { %v3082_v17 = vadd.f32 %v9314_v2, %v2788_v49  ;;  %v7628_v2 = vld [vmem:[#allocation7 + $0x148] sm:$0xff] }
 0x4f4   :  { %v2792_v52 = vpop.f32.mrb[222].mxu1 }
 0x4f5   :  { %3114 = vst.msk [vmem:[#allocation8 + $0x30] sm:$0xff] %vm489_vm0, %v3082_v17  ;;  %v2793_v15 = vadd.f32 %v2792_v52, %v9184_v46  ;;  %v2794_v41 = vpop.f32.mrb[223].mxu1  ;;  %v9358_v52 = vpop.permute.xlu1 %2983 }
 0x4f6   :  { %10708 = vst [vmem:[#allocation64_spill] sm:$0xff] %v9358_v52 }
 0x4f7   :  { %v3083_v31 = vadd.f32 %v9319_v48, %v2793_v15  ;;  %v7626_v48 = vld [vmem:[#allocation7 + $0x118] sm:$0xff] }
 0x4f8   :  { %v2797_v51 = vpop.f32.mrb[224].mxu1 }
 0x4f9   :  { %3115 = vst.msk [vmem:[#allocation8 + $0x38] sm:$0xff] %vm489_vm0, %v3083_v31  ;;  %v2798_v28 = vadd.f32 %v2797_v51, %v9188_v19  ;;  %v2799_v37 = vpop.f32.mrb[225].mxu1  ;;  %v9335_v19 = vpack.c.bf16 %v7441_v55, %v7440_v6  ;;  %v9363_v51 = vpop.permute.xlu0 %2988 }
 0x4fa   :  { %10709 = vst [vmem:[#allocation51_spill] sm:$0xff] %v9363_v51 }
 0x4fb   :  { %v3084_v53 = vadd.f32 %v9324_v35, %v2798_v28  ;;  %7139 = vmatprep.subr.bf16.mxu1 %v9335_v19 }
 0x4fc   :  { %v2802_v47 = vpop.f32.mrb[226].mxu1 }
 0x4fd   :  { %3116 = vst.msk [vmem:[#allocation8 + $0x40] sm:$0xff] %vm489_vm0, %v3084_v53  ;;  %v2803_v46 = vadd.f32 %v2802_v47, %v9192_v5  ;;  %v2804_v13 = vpop.f32.mrb[227].mxu1  ;;  %v9368_v47 = vpop.permute.xlu1 %2993 }
 0x4fe   :  { %10710 = vst [vmem:[#allocation62_spill] sm:$0xff] %v9368_v47 }
 0x4ff   :  { %v3085_v62 = vadd.f32 %v9337_v21, %v2803_v46 }
 0x500   :  { %v2807_v42 = vpop.f32.mrb[228].mxu1 }
 0x501   :  { %3117 = vst.msk [vmem:[#allocation8 + $0x48] sm:$0xff] %vm489_vm0, %v3085_v62  ;;  %v2808_v5 = vadd.f32 %v2807_v42, %v9196_v32  ;;  %v2809_v36 = vpop.f32.mrb[229].mxu1  ;;  %v9375_v62 = vpop.permute.xlu0 %2998 }
 0x502   :  { %10711 = vst [vmem:[#allocation52_spill] sm:$0xff] %v9375_v62 }
 0x503   :  { %v3086_v7 = vadd.f32 %v9343_v4, %v2808_v5  ;;  %v7620_v4 = vld [vmem:[#allocation7 + $0x88] sm:$0xff] }
 0x504   :  { %v2812_v34 = vpop.f32.mrb[230].mxu1 }
 0x505   :  { %3118 = vst.msk [vmem:[#allocation8 + $0x50] sm:$0xff] %vm489_vm0, %v3086_v7  ;;  %v2813_v24 = vadd.f32 %v2812_v34, %v9200_v38  ;;  %v2814_v45 = vpop.f32.mrb[231].mxu1 }
 0x507   :  { %v3087_v40 = vadd.f32 %v9348_v58, %v2813_v24  ;;  %v9382_v24 = vpop.permute.xlu1 %3003  ;;  %v7618_v58 = vld [vmem:[#allocation7 + $0x58] sm:$0xff] }
 0x508   :  { %v2817_v25 = vpop.f32.mrb[232].mxu1  ;;  %10712 = vst [vmem:[#allocation67_spill] sm:$0xff] %v9382_v24 }
 0x509   :  { %3119 = vst.msk [vmem:[#allocation8 + $0x58] sm:$0xff] %vm489_vm0, %v3087_v40  ;;  %v2818_v32 = vadd.f32 %v2817_v25, %v9205_v60  ;;  %v2819_v1 = vpop.f32.mrb[233].mxu1 }
 0x50b   :  { %v3088_v49 = vadd.f32 %v9353_v0, %v2818_v32  ;;  %v7616_v0 = vld [vmem:[#allocation7 + $0x28] sm:$0xff] }
 0x50c   :  { %v2822_v54 = vpop.f32.mrb[234].mxu1 }
 0x50d   :  { %3120 = vst.msk [vmem:[#allocation8 + $0x60] sm:$0xff] %vm489_vm0, %v3088_v49  ;;  %v2823_v38 = vadd.f32 %v2822_v54, %v9209_v50  ;;  %v2824_v17 = vpop.f32.mrb[235].mxu1  ;;  %v9389_v49 = vpop.permute.xlu0 %3008 }
 0x50e   :  { %10713 = vst [vmem:[#allocation54_spill] sm:$0xff] %v9389_v49 }
 0x50f   :  { %v3089_v15 = vadd.f32 %v9358_v52, %v2823_v38 }
 0x510   :  { %v2827_v41 = vpop.f32.mrb[236].mxu1 }
 0x511   :  { %3121 = vst.msk [vmem:[#allocation8 + $0x68] sm:$0xff] %vm489_vm0, %v3089_v15  ;;  %v2828_v60 = vadd.f32 %v2827_v41, %v9213_v23  ;;  %v2829_v31 = vpop.f32.mrb[237].mxu1 }
 0x513   :  { %v3090_v28 = vadd.f32 %v9363_v51, %v2828_v60  ;;  %v9396_v60 = vpop.permute.xlu1 %3013 }
 0x514   :  { %v2832_v37 = vpop.f32.mrb[238].mxu1  ;;  %10714 = vst [vmem:[#allocation65_spill] sm:$0xff] %v9396_v60 }
 0x515   :  { %3122 = vst.msk [vmem:[#allocation8 + $0x70] sm:$0xff] %vm489_vm0, %v3090_v28  ;;  %v2833_v50 = vadd.f32 %v2832_v37, %v9217_v26  ;;  %v2834_v53 = vpop.f32.mrb[239].mxu1 }
 0x517   :  { %v3091_v46 = vadd.f32 %v9368_v47, %v2833_v50 }
 0x518   :  { %v2837_v13 = vpop.f32.mrb[240].mxu1 }
 0x519   :  { %3123 = vst.msk [vmem:[#allocation8 + $0x78] sm:$0xff] %vm489_vm0, %v3091_v46  ;;  %v2838_v23 = vadd.f32 %v2837_v13, %v9221_v11  ;;  %v9373_v6 = vpop.f32.mrb[176].mxu0  ;;  %v2839_v55 = vpop.f32.mrb[241].mxu1 }
 0x51a   :  { %v3579_v42 = vpop.f32.mrb[177].mxu0  ;;  %v9403_v46 = vpop.permute.xlu0 %3018 }
 0x51b   :  { %v3092_v5 = vadd.f32 %v9375_v62, %v2838_v23  ;;  %10715 = vst [vmem:[#allocation57_spill] sm:$0xff] %v9403_v46 }
 0x51c   :  { %v2842_v36 = vpop.f32.mrb[242].mxu1 }
 0x51d   :  { %3124 = vst.msk [vmem:[#allocation8 + $0x80] sm:$0xff] %vm489_vm0, %v3092_v5  ;;  %v2843_v26 = vadd.f32 %v2842_v36, %v9225_v33  ;;  %v9380_v7 = vpop.f32.mrb[178].mxu0  ;;  %v2844_v34 = vpop.f32.mrb[243].mxu1 }
 0x51e   :  { %v3584_v45 = vpop.f32.mrb[179].mxu0  ;;  %v9410_v36 = vpop.permute.xlu1 %3023 }
 0x51f   :  { %v3093_v11 = vadd.f32 %v9382_v24, %v2843_v26  ;;  %10716 = vst [vmem:[#allocation70_spill] sm:$0xff] %v9410_v36 }
 0x520   :  { %v2847_v40 = vpop.f32.mrb[244].mxu1 }
 0x521   :  { %3125 = vst.msk [vmem:[#allocation8 + $0x88] sm:$0xff] %vm489_vm0, %v3093_v11  ;;  %v2848_v25 = vadd.f32 %v2847_v40, %v9229_v61  ;;  %v9387_v32 = vpop.f32.mrb[180].mxu0  ;;  %v2849_v1 = vpop.f32.mrb[245].mxu1 }
 0x522   :  { %v3589_v54 = vpop.f32.mrb[181].mxu0 }
 0x523   :  { %v3094_v33 = vadd.f32 %v9389_v49, %v2848_v25  ;;  %v9417_v25 = vpop.permute.xlu0 %3028 }
 0x524   :  { %v2852_v38 = vpop.f32.mrb[246].mxu1  ;;  %10717 = vst [vmem:[#allocation60_spill] sm:$0xff] %v9417_v25 }
 0x525   :  { %3126 = vst.msk [vmem:[#allocation8 + $0x90] sm:$0xff] %vm489_vm0, %v3094_v33  ;;  %v2853_v17 = vadd.f32 %v2852_v38, %v9233_v27  ;;  %v9394_v15 = vpop.f32.mrb[182].mxu0  ;;  %v2854_v41 = vpop.f32.mrb[247].mxu1 }
 0x526   :  { %v3594_v31 = vpop.f32.mrb[183].mxu0  ;;  %v9424_v41 = vpop.permute.xlu1 %3033 }
 0x527   :  { %v3095_v61 = vadd.f32 %v9396_v60, %v2853_v17  ;;  %10718 = vst [vmem:[#allocation68_spill] sm:$0xff] %v9424_v41 }
 0x528   :  { %v2857_v28 = vpop.f32.mrb[248].mxu1 }
 0x529   :  { %3127 = vst.msk [vmem:[#allocation8 + $0x98] sm:$0xff] %vm489_vm0, %v3095_v61  ;;  %v2858_v37 = vadd.f32 %v2857_v28, %v9237_v30  ;;  %v9401_v50 = vpop.f32.mrb[184].mxu0  ;;  %v2859_v53 = vpop.f32.mrb[249].mxu1 }
 0x52a   :  { %v3599_v13 = vpop.f32.mrb[185].mxu0 }
 0x52b   :  { %v3096_v27 = vadd.f32 %v9403_v46, %v2858_v37  ;;  %v9431_v13 = vpop.permute.xlu0 %3038  ;;  %v7602_v46 = vld [vmem:[#allocation7 + $0x4b8] sm:$0xff] }
 0x52c   :  { %v2862_v23 = vpop.f32.mrb[250].mxu1  ;;  %10719 = vst [vmem:[#allocation63_spill] sm:$0xff] %v9431_v13 }
 0x52d   :  { %3128 = vst.msk [vmem:[#allocation8 + $0xa0] sm:$0xff] %vm489_vm0, %v3096_v27  ;;  %v2863_v55 = vadd.f32 %v2862_v23, %v9241_v56  ;;  %v9408_v42 = vpop.f32.mrb[186].mxu0  ;;  %v2864_v5 = vpop.f32.mrb[251].mxu1 }
 0x52e   :  { %v3604_v26 = vpop.f32.mrb[187].mxu0 }
 0x52f   :  { %v3097_v30 = vadd.f32 %v9410_v36, %v2863_v55 }
 0x530   :  { %v2867_v34 = vpop.f32.mrb[252].mxu1 }
 0x531   :  { %3129 = vst.msk [vmem:[#allocation8 + $0xa8] sm:$0xff] %vm489_vm0, %v3097_v30  ;;  %v2868_v45 = vadd.f32 %v2867_v34, %v9245_v18  ;;  %v9415_v11 = vpop.f32.mrb[188].mxu0  ;;  %v2869_v40 = vpop.f32.mrb[253].mxu1 }
 0x532   :  { %v3609_v1 = vpop.f32.mrb[189].mxu0  ;;  %v9438_v30 = vpop.permute.xlu1 %3043 }
 0x533   :  { %v3098_v56 = vadd.f32 %v9417_v25, %v2868_v45  ;;  %10720 = vst [vmem:[#allocation73_spill] sm:$0xff] %v9438_v30 }
 0x534   :  { %v2872_v54 = vpop.f32.mrb[254].mxu1 }
 0x535   :  { %3130 = vst.msk [vmem:[#allocation8 + $0xb0] sm:$0xff] %vm489_vm0, %v3098_v56  ;;  %v2873_v33 = vadd.f32 %v2872_v54, %v9249_v8  ;;  %v9422_v38 = vpop.f32.mrb[190].mxu0  ;;  %v2874_v17 = vpop.f32.mrb[255].mxu1 }
 0x536   :  { %v3614_v31 = vpop.f32.mrb[191].mxu0  ;;  %v9445_v54 = vpop.permute.xlu0 %3048 }
 0x537   :  { %v3099_v18 = vadd.f32 %v9424_v41, %v2873_v33  ;;  %10721 = vst [vmem:[#allocation66_spill] sm:$0xff] %v9445_v54 }
 0x538   :  { %v2877_v61 = vpop.f32.mrb[0].mxu1 }
 0x539   :  { %3131 = vst.msk [vmem:[#allocation8 + $0xb8] sm:$0xff] %vm489_vm0, %v3099_v18  ;;  %v2878_v28 = vadd.f32 %v2877_v61, %v9253_v57  ;;  %v9429_v37 = vpop.f32.mrb[192].mxu0  ;;  %v2879_v53 = vpop.f32.mrb[1].mxu1 }
 0x53a   :  { %v3619_v27 = vpop.f32.mrb[193].mxu0 }
 0x53b   :  { %v3100_v8 = vadd.f32 %v9431_v13, %v2878_v28  ;;  %v9452_v28 = vpop.permute.xlu1 %3053 }
 0x53c   :  { %v2882_v23 = vpop.f32.mrb[2].mxu1  ;;  %10722 = vst [vmem:[#allocation71_spill] sm:$0xff] %v9452_v28 }
 0x53d   :  { %3132 = vst.msk [vmem:[#allocation8 + $0xc0] sm:$0xff] %vm489_vm0, %v3100_v8  ;;  %v2883_v55 = vadd.f32 %v2882_v23, %v9257_v10  ;;  %v9436_v5 = vpop.f32.mrb[194].mxu0  ;;  %v2884_v26 = vpop.f32.mrb[3].mxu1 }
 0x53e   :  { %v3624_v34 = vpop.f32.mrb[195].mxu0  ;;  %v9459_v26 = vpop.permute.xlu0 %3058 }
 0x53f   :  { %v3101_v57 = vadd.f32 %v9438_v30, %v2883_v55  ;;  %10723 = vst [vmem:[#allocation69_spill] sm:$0xff] %v9459_v26 }
 0x540   :  { %v2887_v45 = vpop.f32.mrb[4].mxu1 }
 0x541   :  { %3133 = vst.msk [vmem:[#allocation8 + $0xc8] sm:$0xff] %vm489_vm0, %v3101_v57  ;;  %v2888_v40 = vadd.f32 %v2887_v45, %v9261_v44  ;;  %v9443_v1 = vpop.f32.mrb[196].mxu0  ;;  %v2889_v56 = vpop.f32.mrb[5].mxu1 }
 0x542   :  { %v3629_v33 = vpop.f32.mrb[197].mxu0 }
 0x543   :  { %v3102_v10 = vadd.f32 %v9445_v54, %v2888_v40  ;;  %v9466_v33 = vpop.permute.xlu1 %3063  ;;  %v10749_v54 = vld [vmem:[#allocation35_spill] sm:$0xff] }
 0x544   :  { %v2892_v17 = vpop.f32.mrb[6].mxu1  ;;  %10724 = vst [vmem:[#allocation76_spill] sm:$0xff] %v9466_v33 }
 0x545   :  { %3134 = vst.msk [vmem:[#allocation8 + $0xd0] sm:$0xff] %vm489_vm0, %v3102_v10  ;;  %v2893_v31 = vadd.f32 %v2892_v17, %v9265_v3  ;;  %v9450_v18 = vpop.f32.mrb[198].mxu0  ;;  %v2894_v61 = vpop.f32.mrb[7].mxu1 }
 0x546   :  { %v3634_v53 = vpop.f32.mrb[199].mxu0 }
 0x547   :  { %v3103_v44 = vadd.f32 %v9452_v28, %v2893_v31 }
 0x548   :  { %v2897_v27 = vpop.f32.mrb[8].mxu1 }
 0x549   :  { %3135 = vst.msk [vmem:[#allocation8 + $0xd8] sm:$0xff] %vm489_vm0, %v3103_v44  ;;  %v2898_v8 = vadd.f32 %v2897_v27, %v9269_v12  ;;  %v9457_v23 = vpop.f32.mrb[200].mxu0  ;;  %v2899_v55 = vpop.f32.mrb[9].mxu1 }
 0x54a   :  { %v3639_v34 = vpop.f32.mrb[201].mxu0  ;;  %v9473_v44 = vpop.permute.xlu0 %3068 }
 0x54b   :  { %v3104_v3 = vadd.f32 %v9459_v26, %v2898_v8  ;;  %10725 = vst [vmem:[#allocation72_spill] sm:$0xff] %v9473_v44 }
 0x54c   :  { %v2902_v57 = vpop.f32.mrb[10].mxu1 }
 0x54d   :  { %3136 = vst.msk [vmem:[#allocation8 + $0xe0] sm:$0xff] %vm489_vm0, %v3104_v3  ;;  %v2903_v45 = vadd.f32 %v2902_v57, %v9273_v14  ;;  %v9464_v40 = vpop.f32.mrb[202].mxu0  ;;  %v2904_v56 = vpop.f32.mrb[11].mxu1 }
 0x54e   :  { %v3644_v10 = vpop.f32.mrb[203].mxu0  ;;  %v9480_v57 = vpop.permute.xlu1 %3073 }
 0x54f   :  { %v3105_v12 = vadd.f32 %v9466_v33, %v2903_v45  ;;  %10726 = vst [vmem:[#allocation74_spill] sm:$0xff] %v9480_v57 }
 0x550   :  { %v2907_v17 = vpop.f32.mrb[12].mxu1 }
 0x551   :  { %3137 = vst.msk [vmem:[#allocation8 + $0xe8] sm:$0xff] %vm489_vm0, %v3105_v12  ;;  %v2908_v31 = vadd.f32 %v2907_v17, %v9277_v9  ;;  %v9471_v61 = vpop.f32.mrb[204].mxu0  ;;  %v2909_v53 = vpop.f32.mrb[13].mxu1  ;;  %v10727_v9 = vld [vmem:[#allocation13_spill] sm:$0xff]  ;;  %v10728_v12 = vld [vmem:[#allocation12_spill] sm:$0xff] }
 0x552   :  { %v3649_v27 = vpop.f32.mrb[205].mxu0  ;;  %v3583_v56 = vadd.f32 %v9380_v7, %v10727_v9  ;;  %v3578_v17 = vadd.f32 %v9373_v6, %v10728_v12  ;;  %v10730_v7 = vld [vmem:[#allocation14_spill] sm:$0xff] }
 0x553   :  { %v3106_v14 = vadd.f32 %v9473_v44, %v2908_v31 }
 0x554   :  { %v2912_v8 = vpop.f32.mrb[14].mxu1 }
 0x555   :  { %3138 = vst.msk [vmem:[#allocation8 + $0xf0] sm:$0xff] %vm489_vm0, %v3106_v14  ;;  %v2913_v55 = vadd.f32 %v2912_v8, %v9281_v43  ;;  %v9478_v34 = vpop.f32.mrb[206].mxu0  ;;  %v2914_v3 = vpop.f32.mrb[15].mxu1 }
 0x556   :  { %v3654_v45 = vpop.f32.mrb[207].mxu0  ;;  %v10729_v3 = vld [vmem:[#allocation15_spill] sm:$0xff] }
 0x557   :  { %v3107_v10 = vadd.f32 %v9480_v57, %v2913_v55  ;;  %v3593_v45 = vadd.f32 %v9394_v15, %v10729_v3  ;;  %v3588_v55 = vadd.f32 %v9387_v32, %v10730_v7  ;;  %v7443_v15 = vld [vmem:[%s10522_s0 + $0x98] sm:$0xff]  ;;  %v10732_v3 = vld [vmem:[#allocation16_spill] sm:$0xff] }
 0x558   :  { %v6540_v31 = vpop.f32.mrb[16].mxu1 }
 0x559   :  { %3139 = vst.msk [vmem:[#allocation8 + $0xf8] sm:$0xff] %vm489_vm0, %v3107_v10  ;;  %v3808_v53 = vadd.f32 %v6540_v31, %v3583_v56  ;;  %v9488_v27 = vpop.f32.mrb[208].mxu0  ;;  %v3802_v43 = vpop.f32.mrb[17].mxu1  ;;  %v7442_v10 = vld [vmem:[%s10522_s0 + $0x90] sm:$0xff] }
 0x55a   :  { %v3803_v14 = vadd.f32 %v3802_v43, %v3578_v17  ;;  %v3659_v8 = vpop.f32.mrb[209].mxu0  ;;  %v7142_v17 = vpack.c.bf16 %v7443_v15, %v7442_v10  ;;  %v10731_v43 = vld [vmem:[#allocation17_spill] sm:$0xff]  ;;  %v7445_v10 = vld [vmem:[%s10522_s0 + $0xa8] sm:$0xff] }
 0x55b   :  { %v9492_v44 = vmax.f32 %v3808_v53, 0.0 }
 0x55c   :  { %v9496_v9 = vmax.f32 %v3803_v14, 0.0  ;;  %v6543_v6 = vpop.f32.mrb[18].mxu1  ;;  %v3603_v14 = vadd.f32 %v9408_v42, %v10731_v43 }
 0x55d   :  { %v3818_v12 = vadd.f32 %v6543_v6, %v3593_v45  ;;  %v9498_v57 = vpop.f32.mrb[210].mxu0  ;;  %v3812_v56 = vpop.f32.mrb[19].mxu1  ;;  %v3598_v45 = vadd.f32 %v9401_v50, %v10732_v3  ;;  %v10734_v3 = vld [vmem:[#allocation18_spill] sm:$0xff] }
 0x55e   :  { %v3813_v32 = vadd.f32 %v3812_v56, %v3588_v55  ;;  %6590 = vmatprep.mubr.msk.f32.mxu1 %vm489_vm0, %v9496_v9  ;;  %6642 = vmatprep.mubr.msk.f32.mxu0 %vm489_vm0, %v9496_v9  ;;  %v3664_v53 = vpop.f32.mrb[211].mxu0 }
 0x55f   :  { %v9514_v8 = vmax.f32 %v3818_v12, 0.0  ;;  %6591 = vmatmul.mubr.msk.f32.vlgmr.msra.gmra.mrb[48].mxu1 %vm489_vm0, %v9492_v44  ;;  %6643 = vmatmul.mubr.msk.f32.vlgmr.msra.gmra.mrb[240].mxu0 %vm489_vm0, %v9492_v44  ;;  %v7444_v12 = vld [vmem:[%s10522_s0 + $0xa0] sm:$0xff]  ;;  %v10733_v53 = vld [vmem:[#allocation19_spill] sm:$0xff] }
 0x560   :  { %v9522_v7 = vmax.f32 %v3813_v32, 0.0  ;;  %v6546_v55 = vpop.f32.mrb[20].mxu1  ;;  %7141 = vmatpush3.bf16.msra.mxu1 %v9335_v19  ;;  %v7146_v15 = vpack.c.bf16 %v7445_v10, %v7444_v12  ;;  %v3613_v43 = vadd.f32 %v9422_v38, %v10733_v53  ;;  %v7446_v38 = vld [vmem:[%s10522_s0 + $0xb0] sm:$0xff] }
 0x561   :  { %v3828_v6 = vadd.f32 %v6546_v55, %v3603_v14  ;;  %v9525_v56 = vpop.f32.mrb[212].mxu0  ;;  %v3822_v42 = vpop.f32.mrb[21].mxu1  ;;  %7143 = vmatprep.subr.bf16.mxu1 %v7142_v17 }
 0x562   :  { %v3823_v32 = vadd.f32 %v3822_v42, %v3598_v45  ;;  %6593 = vmatprep.mubr.msk.f32.mxu1 %vm489_vm0, %v9522_v7  ;;  %6645 = vmatprep.mubr.msk.f32.mxu0 %vm489_vm0, %v9522_v7  ;;  %v3669_v19 = vpop.f32.mrb[213].mxu0  ;;  %v3608_v45 = vadd.f32 %v9415_v11, %v10734_v3 }
 0x563   :  { %v9541_v14 = vmax.f32 %v3828_v6, 0.0  ;;  %6594 = vmatmul.mubr.msk.f32.gmra.mrb[50].mxu1 %vm489_vm0, %v9514_v8  ;;  %6646 = vmatmul.mubr.msk.f32.gmra.mrb[242].mxu0 %vm489_vm0, %v9514_v8  ;;  %v7447_v6 = vld [vmem:[%s10522_s0 + $0xb8] sm:$0xff] }
 0x564   :  { %v9549_v55 = vmax.f32 %v3823_v32, 0.0  ;;  %v6549_v42 = vpop.f32.mrb[22].mxu1  ;;  %7145 = vmatpush3.bf16.msra.mxu1 %v7142_v17  ;;  %v7150_v53 = vpack.c.bf16 %v7447_v6, %v7446_v38  ;;  %v10736_v38 = vld [vmem:[#allocation20_spill] sm:$0xff] }
 0x565   :  { %v3838_v12 = vadd.f32 %v6549_v42, %v3613_v43  ;;  %v9551_v10 = vpop.f32.mrb[214].mxu0  ;;  %v3832_v19 = vpop.f32.mrb[23].mxu1  ;;  %7147 = vmatprep.subr.bf16.mxu1 %v7146_v15  ;;  %v10735_v43 = vld [vmem:[#allocation21_spill] sm:$0xff] }
 0x566   :  { %v3833_v32 = vadd.f32 %v3832_v19, %v3608_v45  ;;  %6596 = vmatprep.mubr.msk.f32.mxu1 %vm489_vm0, %v9549_v55  ;;  %6648 = vmatprep.mubr.msk.f32.mxu0 %vm489_vm0, %v9549_v55  ;;  %v3674_v17 = vpop.f32.mrb[215].mxu0  ;;  %v3623_v3 = vadd.f32 %v9436_v5, %v10735_v43  ;;  %v3618_v45 = vadd.f32 %v9429_v37, %v10736_v38  ;;  %v7448_v5 = vld [vmem:[%s10522_s0 + $0xc0] sm:$0xff] }
 0x567   :  { %v9567_v42 = vmax.f32 %v3838_v12, 0.0  ;;  %6597 = vmatmul.mubr.msk.f32.gmra.mrb[52].mxu1 %vm489_vm0, %v9541_v14  ;;  %6649 = vmatmul.mubr.msk.f32.gmra.mrb[244].mxu0 %vm489_vm0, %v9541_v14  ;;  %v7449_v12 = vld [vmem:[%s10522_s0 + $0xc8] sm:$0xff] }
 0x568   :  { %v9575_v19 = vmax.f32 %v3833_v32, 0.0  ;;  %v6552_v6 = vpop.f32.mrb[24].mxu1  ;;  %7149 = vmatpush3.bf16.msra.mxu1 %v7146_v15  ;;  %v7154_v43 = vpack.c.bf16 %v7449_v12, %v7448_v5  ;;  %v10738_v5 = vld [vmem:[#allocation22_spill] sm:$0xff] }
 0x569   :  { %v3848_v11 = vadd.f32 %v6552_v6, %v3623_v3  ;;  %v9577_v17 = vpop.f32.mrb[216].mxu0  ;;  %v3842_v50 = vpop.f32.mrb[25].mxu1  ;;  %7151 = vmatprep.subr.bf16.mxu1 %v7150_v53  ;;  %v10737_v3 = vld [vmem:[#allocation23_spill] sm:$0xff] }
 0x56a   :  { %v3843_v32 = vadd.f32 %v3842_v50, %v3618_v45  ;;  %6599 = vmatprep.mubr.msk.f32.mxu1 %vm489_vm0, %v9575_v19  ;;  %6651 = vmatprep.mubr.msk.f32.mxu0 %vm489_vm0, %v9575_v19  ;;  %v3679_v15 = vpop.f32.mrb[217].mxu0  ;;  %v3633_v38 = vadd.f32 %v9450_v18, %v10737_v3  ;;  %v3628_v50 = vadd.f32 %v9443_v1, %v10738_v5  ;;  %v7450_v18 = vld [vmem:[%s10522_s0 + $0xd0] sm:$0xff] }
 0x56b   :  { %v9593_v6 = vmax.f32 %v3848_v11, 0.0  ;;  %6600 = vmatmul.mubr.msk.f32.gmra.mrb[54].mxu1 %vm489_vm0, %v9567_v42  ;;  %6652 = vmatmul.mubr.msk.f32.gmra.mrb[246].mxu0 %vm489_vm0, %v9567_v42  ;;  %v7451_v11 = vld [vmem:[%s10522_s0 + $0xd8] sm:$0xff] }
 0x56c   :  { %v9601_v45 = vmax.f32 %v3843_v32, 0.0  ;;  %v6555_v12 = vpop.f32.mrb[26].mxu1  ;;  %7153 = vmatpush3.bf16.msra.mxu1 %v7150_v53  ;;  %v7158_v3 = vpack.c.bf16 %v7451_v11, %v7450_v18  ;;  %v10740_v18 = vld [vmem:[#allocation24_spill] sm:$0xff] }
 0x56d   :  { %v3858_v37 = vadd.f32 %v6555_v12, %v3633_v38  ;;  %v9603_v15 = vpop.f32.mrb[218].mxu0  ;;  %v3852_v31 = vpop.f32.mrb[27].mxu1  ;;  %7155 = vmatprep.subr.bf16.mxu1 %v7154_v43  ;;  %v10739_v38 = vld [vmem:[#allocation25_spill] sm:$0xff] }
 0x56e   :  { %v3853_v32 = vadd.f32 %v3852_v31, %v3628_v50  ;;  %6602 = vmatprep.mubr.msk.f32.mxu1 %vm489_vm0, %v9601_v45  ;;  %6654 = vmatprep.mubr.msk.f32.mxu0 %vm489_vm0, %v9601_v45  ;;  %v3684_v53 = vpop.f32.mrb[219].mxu0  ;;  %v3643_v5 = vadd.f32 %v9464_v40, %v10739_v38  ;;  %v3638_v31 = vadd.f32 %v9457_v23, %v10740_v18  ;;  %v7452_v40 = vld [vmem:[%s10522_s0 + $0xe0] sm:$0xff] }
 0x56f   :  { %v9619_v12 = vmax.f32 %v3858_v37, 0.0  ;;  %6603 = vmatmul.mubr.msk.f32.gmra.mrb[56].mxu1 %vm489_vm0, %v9593_v6  ;;  %6655 = vmatmul.mubr.msk.f32.gmra.mrb[248].mxu0 %vm489_vm0, %v9593_v6  ;;  %v7453_v37 = vld [vmem:[%s10522_s0 + $0xe8] sm:$0xff] }
 0x570   :  { %v9627_v50 = vmax.f32 %v3853_v32, 0.0  ;;  %v6558_v11 = vpop.f32.mrb[28].mxu1  ;;  %7157 = vmatpush3.bf16.msra.mxu1 %v7154_v43  ;;  %v7162_v38 = vpack.c.bf16 %v7453_v37, %v7452_v40  ;;  %v10742_v40 = vld [vmem:[#allocation26_spill] sm:$0xff] }
 0x571   :  { %v3868_v1 = vadd.f32 %v6558_v11, %v3643_v5  ;;  %v9629_v53 = vpop.f32.mrb[220].mxu0  ;;  %v3862_v33 = vpop.f32.mrb[29].mxu1  ;;  %7159 = vmatprep.subr.bf16.mxu1 %v7158_v3  ;;  %v10741_v5 = vld [vmem:[#allocation27_spill] sm:$0xff] }
 0x572   :  { %v3863_v32 = vadd.f32 %v3862_v33, %v3638_v31  ;;  %6605 = vmatprep.mubr.msk.f32.mxu1 %vm489_vm0, %v9627_v50  ;;  %6657 = vmatprep.mubr.msk.f32.mxu0 %vm489_vm0, %v9627_v50  ;;  %v3689_v43 = vpop.f32.mrb[221].mxu0  ;;  %v3653_v18 = vadd.f32 %v9478_v34, %v10741_v5  ;;  %v3648_v33 = vadd.f32 %v9471_v61, %v10742_v40  ;;  %v7454_v34 = vld [vmem:[%s10522_s0 + $0xf0] sm:$0xff] }
 0x573   :  { %v9645_v11 = vmax.f32 %v3868_v1, 0.0  ;;  %6606 = vmatmul.mubr.msk.f32.gmra.mrb[58].mxu1 %vm489_vm0, %v9619_v12  ;;  %6658 = vmatmul.mubr.msk.f32.gmra.mrb[250].mxu0 %vm489_vm0, %v9619_v12  ;;  %v7455_v1 = vld [vmem:[%s10522_s0 + $0xf8] sm:$0xff] }
 0x574   :  { %v9653_v31 = vmax.f32 %v3863_v32, 0.0  ;;  %v6561_v37 = vpop.f32.mrb[30].mxu1  ;;  %7161 = vmatpush3.bf16.msra.mxu1 %v7158_v3  ;;  %v7166_v5 = vpack.c.bf16 %v7455_v1, %v7454_v34  ;;  %v10744_v34 = vld [vmem:[#allocation28_spill] sm:$0xff] }
 0x575   :  { %v3878_v23 = vadd.f32 %v6561_v37, %v3653_v18  ;;  %v3692_v43 = vpop.f32.mrb[222].mxu0  ;;  %v3872_v26 = vpop.f32.mrb[31].mxu1  ;;  %7163 = vmatprep.subr.bf16.mxu1 %v7162_v38  ;;  %v10743_v18 = vld [vmem:[#allocation29_spill] sm:$0xff] }
 0x576   :  { %v3873_v32 = vadd.f32 %v3872_v26, %v3648_v33  ;;  %6608 = vmatprep.mubr.msk.f32.mxu1 %vm489_vm0, %v9653_v31  ;;  %6660 = vmatprep.mubr.msk.f32.mxu0 %vm489_vm0, %v9653_v31  ;;  %v3694_v3 = vpop.f32.mrb[223].mxu0  ;;  %v3663_v40 = vadd.f32 %v9498_v57, %v10743_v18  ;;  %v3658_v26 = vadd.f32 %v9488_v27, %v10744_v34  ;;  %v10745_v27 = vld [vmem:[#allocation31_spill] sm:$0xff] }
 0x577   :  { %v9669_v37 = vmax.f32 %v3878_v23, 0.0  ;;  %6609 = vmatmul.mubr.msk.f32.gmra.mrb[60].mxu1 %vm489_vm0, %v9645_v11  ;;  %6661 = vmatmul.mubr.msk.f32.gmra.mrb[252].mxu0 %vm489_vm0, %v9645_v11  ;;  %v3693_v30 = vadd.f32 %v3692_v43, %v10749_v54 }
 0x578   :  { %v9677_v33 = vmax.f32 %v3873_v32, 0.0  ;;  %v6564_v1 = vpop.f32.mrb[32].mxu1  ;;  %7165 = vmatpush3.bf16.msra.mxu1 %v7162_v38  ;;  %v3673_v32 = vadd.f32 %v9551_v10, %v10745_v27  ;;  %v10746_v38 = vld [vmem:[#allocation30_spill] sm:$0xff] }
 0x579   :  { %v3888_v61 = vadd.f32 %v6564_v1, %v3663_v40  ;;  %v3697_v3 = vpop.f32.mrb[224].mxu0  ;;  %v3882_v28 = vpop.f32.mrb[33].mxu1  ;;  %7167 = vmatprep.subr.bf16.mxu1 %v7166_v5 }
 0x57a   :  { %v3883_v23 = vadd.f32 %v3882_v28, %v3658_v26  ;;  %6611 = vmatprep.mubr.msk.f32.mxu1 %vm489_vm0, %v9677_v33  ;;  %6663 = vmatprep.mubr.msk.f32.mxu0 %vm489_vm0, %v9677_v33  ;;  %v3699_v18 = vpop.f32.mrb[225].mxu0  ;;  %v3668_v28 = vadd.f32 %v9525_v56, %v10746_v38 }
 0x57b   :  { %v9687_v34 = vmax.f32 %v3888_v61, 0.0  ;;  %6612 = vmatmul.mubr.msk.f32.gmra.mrb[62].mxu1 %vm489_vm0, %v9669_v37  ;;  %6664 = vmatmul.mubr.msk.f32.gmra.mrb[254].mxu0 %vm489_vm0, %v9669_v37 }
 0x57c   :  { %v9695_v40 = vmax.f32 %v3883_v23, 0.0  ;;  %v6567_v26 = vpop.f32.mrb[34].mxu1  ;;  %7169 = vmatpush3.bf16.msra.mxu1 %v7166_v5  ;;  %v10747_v23 = vld [vmem:[#allocation33_spill] sm:$0xff] }
 0x57d   :  { %v3898_v1 = vadd.f32 %v6567_v26, %v3673_v32  ;;  %v3702_v18 = vpop.f32.mrb[226].mxu0  ;;  %v3892_v57 = vpop.f32.mrb[35].mxu1  ;;  %7218 = vmatprep.subr.bf16.mxu1 %v10661_v16  ;;  %v3683_v27 = vadd.f32 %v9603_v15, %v10747_v23  ;;  %v10748_v32 = vld [vmem:[#allocation32_spill] sm:$0xff] }
 0x57e   :  { %v3893_v61 = vadd.f32 %v3892_v57, %v3668_v28  ;;  %6614 = vmatprep.mubr.msk.f32.mxu1 %vm489_vm0, %v9695_v40  ;;  %6666 = vmatprep.mubr.msk.f32.mxu0 %vm489_vm0, %v9695_v40  ;;  %v3704_v56 = vpop.f32.mrb[227].mxu0  ;;  %v3678_v57 = vadd.f32 %v9577_v17, %v10748_v32 }
 0x57f   :  { %v9706_v5 = vmax.f32 %v3898_v1, 0.0  ;;  %6615 = vmatmul.mubr.msk.f32.gmra.mrb[64].mxu1 %vm489_vm0, %v9687_v34  ;;  %6667 = vmatmul.mubr.msk.f32.gmra.mrb[0].mxu0 %vm489_vm0, %v9687_v34 }
 0x580   :  { %v9714_v38 = vmax.f32 %v3893_v61, 0.0  ;;  %v6570_v28 = vpop.f32.mrb[36].mxu1  ;;  %v10750_v61 = vld [vmem:[#allocation34_spill] sm:$0xff] }
 0x581   :  { %v3908_v26 = vadd.f32 %v6570_v28, %v3683_v27  ;;  %v3707_v10 = vpop.f32.mrb[228].mxu0  ;;  %v3902_v56 = vpop.f32.mrb[37].mxu1  ;;  %v3688_v27 = vadd.f32 %v9629_v53, %v10750_v61 }
 0x582   :  { %v3903_v1 = vadd.f32 %v3902_v56, %v3678_v57  ;;  %6617 = vmatprep.mubr.msk.f32.mxu1 %vm489_vm0, %v9714_v38  ;;  %6669 = vmatprep.mubr.msk.f32.mxu0 %vm489_vm0, %v9714_v38  ;;  %v3709_v23 = vpop.f32.mrb[229].mxu0 }
 0x583   :  { %v9723_v17 = vmax.f32 %v3908_v26, 0.0  ;;  %6618 = vmatmul.mubr.msk.f32.gmra.mrb[66].mxu1 %vm489_vm0, %v9706_v5  ;;  %6670 = vmatmul.mubr.msk.f32.gmra.mrb[2].mxu0 %vm489_vm0, %v9706_v5  ;;  %v10751_v23 = vld [vmem:[#allocation37_spill] sm:$0xff] }
 0x584   :  { %v9731_v32 = vmax.f32 %v3903_v1, 0.0  ;;  %v6573_v57 = vpop.f32.mrb[38].mxu1  ;;  %v3703_v13 = vadd.f32 %v3702_v18, %v10751_v23  ;;  %v10753_v23 = vld [vmem:[#allocation39_spill] sm:$0xff] }
 0x585   :  { %v3918_v28 = vadd.f32 %v6573_v57, %v3693_v30  ;;  %v3712_v56 = vpop.f32.mrb[230].mxu0  ;;  %v3912_v15 = vpop.f32.mrb[39].mxu1  ;;  %v10752_v30 = vld [vmem:[#allocation36_spill] sm:$0xff] }
 0x586   :  { %v3913_v43 = vadd.f32 %v3912_v15, %v3688_v27  ;;  %6620 = vmatprep.mubr.msk.f32.mxu1 %vm489_vm0, %v9731_v32  ;;  %6672 = vmatprep.mubr.msk.f32.mxu0 %vm489_vm0, %v9731_v32  ;;  %v3714_v26 = vpop.f32.mrb[231].mxu0  ;;  %v3698_v1 = vadd.f32 %v3697_v3, %v10752_v30  ;;  %v3713_v41 = vadd.f32 %v3712_v56, %v10753_v23  ;;  %v10755_v56 = vld [vmem:[#allocation41_spill] sm:$0xff] }
 0x587   :  { %v9740_v53 = vmax.f32 %v3918_v28, 0.0  ;;  %6621 = vmatmul.mubr.msk.f32.gmra.mrb[68].mxu1 %vm489_vm0, %v9723_v17  ;;  %6673 = vmatmul.mubr.msk.f32.gmra.mrb[4].mxu0 %vm489_vm0, %v9723_v17 }
 0x588   :  { %v9747_v15 = vmax.f32 %v3913_v43, 0.0  ;;  %v6576_v61 = vpop.f32.mrb[40].mxu1 }
 0x589   :  { %v3928_v27 = vadd.f32 %v6576_v61, %v3703_v13  ;;  %v3717_v57 = vpop.f32.mrb[232].mxu0  ;;  %v3922_v54 = vpop.f32.mrb[41].mxu1  ;;  %v10754_v13 = vld [vmem:[#allocation38_spill] sm:$0xff] }
 0x58a   :  { %v3923_v18 = vadd.f32 %v3922_v54, %v3698_v1  ;;  %6623 = vmatprep.mubr.msk.f32.mxu1 %vm489_vm0, %v9747_v15  ;;  %6675 = vmatprep.mubr.msk.f32.mxu0 %vm489_vm0, %v9747_v15  ;;  %v3719_v28 = vpop.f32.mrb[233].mxu0  ;;  %v3708_v43 = vadd.f32 %v3707_v10, %v10754_v13 }
 0x58b   :  { %v9756_v3 = vmax.f32 %v3928_v27, 0.0  ;;  %6624 = vmatmul.mubr.msk.f32.gmra.mrb[70].mxu1 %vm489_vm0, %v9740_v53  ;;  %6676 = vmatmul.mubr.msk.f32.gmra.mrb[6].mxu0 %vm489_vm0, %v9740_v53 }
 0x58c   :  { %v9763_v54 = vmax.f32 %v3923_v18, 0.0  ;;  %v6579_v30 = vpop.f32.mrb[42].mxu1 }
 0x58d   :  { %v3938_v1 = vadd.f32 %v6579_v30, %v3713_v41  ;;  %v3722_v61 = vpop.f32.mrb[234].mxu0  ;;  %v3932_v26 = vpop.f32.mrb[43].mxu1  ;;  %v10756_v41 = vld [vmem:[#allocation40_spill] sm:$0xff] }
 0x58e   :  { %v3723_v27 = vadd.f32 %v3722_v61, %v10755_v56  ;;  %v3933_v23 = vadd.f32 %v3932_v26, %v3708_v43  ;;  %6626 = vmatprep.mubr.msk.f32.mxu1 %vm489_vm0, %v9763_v54  ;;  %6678 = vmatprep.mubr.msk.f32.mxu0 %vm489_vm0, %v9763_v54  ;;  %v3724_v25 = vpop.f32.mrb[235].mxu0  ;;  %v3718_v18 = vadd.f32 %v3717_v57, %v10756_v41  ;;  %v10757_v57 = vld [vmem:[#allocation42_spill] sm:$0xff]  ;;  %v10758_v56 = vld [vmem:[#allocation43_spill] sm:$0xff] }
 0x58f   :  { %v9772_v10 = vmax.f32 %v3938_v1, 0.0  ;;  %6627 = vmatmul.mubr.msk.f32.gmra.mrb[72].mxu1 %vm489_vm0, %v9756_v3  ;;  %6679 = vmatmul.mubr.msk.f32.gmra.mrb[8].mxu0 %vm489_vm0, %v9756_v3 }
 0x590   :  { %v9779_v13 = vmax.f32 %v3933_v23, 0.0  ;;  %v6582_v26 = vpop.f32.mrb[44].mxu1 }
 0x591   :  { %v3948_v43 = vadd.f32 %v6582_v26, %v3723_v27  ;;  %v3727_v30 = vpop.f32.mrb[236].mxu0  ;;  %v3942_v61 = vpop.f32.mrb[45].mxu1 }
 0x592   :  { %v3943_v25 = vadd.f32 %v3942_v61, %v3718_v18  ;;  %6629 = vmatprep.mubr.msk.f32.mxu1 %vm489_vm0, %v9779_v13  ;;  %6681 = vmatprep.mubr.msk.f32.mxu0 %vm489_vm0, %v9779_v13  ;;  %v3729_v1 = vpop.f32.mrb[237].mxu0  ;;  %v3728_v27 = vadd.f32 %v3727_v30, %v10757_v57 }
 0x593   :  { %v9787_v28 = vmax.f32 %v3948_v43, 0.0  ;;  %6630 = vmatmul.mubr.msk.f32.gmra.mrb[74].mxu1 %vm489_vm0, %v9772_v10  ;;  %6682 = vmatmul.mubr.msk.f32.gmra.mrb[10].mxu0 %vm489_vm0, %v9772_v10 }
 0x594   :  { %v9794_v23 = vmax.f32 %v3943_v25, 0.0  ;;  %v6585_v41 = vpop.f32.mrb[46].mxu1 }
 0x595   :  { %v3732_v18 = vpop.f32.mrb[238].mxu0  ;;  %v3952_v26 = vpop.f32.mrb[47].mxu1 }
 0x596   :  { %v7261_v61 = vpack.c.bf16 %v9787_v28, %v9794_v23  ;;  %v3733_v1 = vadd.f32 %v3732_v18, %v10758_v56  ;;  %v3953_v43 = vadd.f32 %v3952_v26, %v3728_v27  ;;  %6632 = vmatprep.mubr.msk.f32.mxu1 %vm489_vm0, %v9794_v23  ;;  %6684 = vmatprep.mubr.msk.f32.mxu0 %vm489_vm0, %v9794_v23  ;;  %v3734_v36 = vpop.f32.mrb[239].mxu0  ;;  %v7456_v56 = vld [vmem:[%s10528_s6] sm:$0xff]  ;;  %v7457_v27 = vld [vmem:[#allocation7 + $0x8] sm:$0xff]  ;;  %v7459_v26 = vld [vmem:[%s10528_s6 + $0x10] sm:$0xff] }
 0x597   :  { %6633 = vmatmul.mubr.msk.f32.gmra.mrb[76].mxu1 %vm489_vm0, %v9787_v28  ;;  %6685 = vmatmul.mubr.msk.f32.gmra.mrb[12].mxu0 %vm489_vm0, %v9787_v28  ;;  %v10759_v18 = vpack.c.bf16 %v9492_v44, %v9496_v9  ;;  %v7461_v44 = vld [vmem:[%s10528_s6 + $0x20] sm:$0xff]  ;;  %v7462_v9 = vld [vmem:[%s10528_s6 + $0x28] sm:$0xff]  ;;  %v7491_v23 = vld [vmem:[#allocation7 + $0x48] sm:$0xff] }
 0x598   :  { %v3958_v30 = vadd.f32 %v6585_v41, %v3733_v1  ;;  %v9807_v25 = vmax.f32 %v3953_v43, 0.0  ;;  %v7458_v41 = vld [vmem:[%s10528_s6 + $0x8] sm:$0xff]  ;;  %v7460_v1 = vld [vmem:[%s10528_s6 + $0x18] sm:$0xff]  ;;  %v10760_v43 = vpack.c.bf16 %v9514_v8, %v9522_v7  ;;  %v7463_v8 = vld [vmem:[%s10528_s6 + $0x30] sm:$0xff] }
 0x599   :  { %v7464_v7 = vld [vmem:[%s10528_s6 + $0x38] sm:$0xff]  ;;  %v7490_v28 = vld [vmem:[#allocation7 + $0x10] sm:$0xff] }
 0x59a   :  { %v9809_v57 = vmax.f32 %v3958_v30, 0.0  ;;  %6635 = vmatprep.mubr.msk.f32.mxu1 %vm489_vm0, %v9807_v25  ;;  %6687 = vmatprep.mubr.msk.f32.mxu0 %vm489_vm0, %v9807_v25  ;;  %v10761_v30 = vpack.c.bf16 %v9541_v14, %v9549_v55  ;;  %v7465_v14 = vld [vmem:[%s10528_s6 + $0x40] sm:$0xff]  ;;  %v7466_v55 = vld [vmem:[%s10528_s6 + $0x48] sm:$0xff] }
 0x59c   :  { %v7264_v36 = vpack.c.bf16 %v9809_v57, %v9807_v25  ;;  %6636 = vmatmul.mubr.msk.f32.gmra.mrb[78].mxu1 %vm489_vm0, %v9809_v57  ;;  %6688 = vmatmul.mubr.msk.f32.gmra.mrb[14].mxu0 %vm489_vm0, %v9809_v57  ;;  %v7498_v25 = vld [vmem:[#allocation7 + $0xd0] sm:$0xff]  ;;  %v7499_v57 = vld [vmem:[#allocation7 + $0x108] sm:$0xff] }
 0x59d   :  { %6722 = vmatprep.mubr.f32.mxu1 %v7456_v56  ;;  %4828 = vmatprep.mubr.f32.mxu0 %v7457_v27  ;;  %v10762_v56 = vpack.c.bf16 %v9567_v42, %v9575_v19  ;;  %v10763_v27 = vpack.c.bf16 %v9593_v6, %v9601_v45  ;;  %v7467_v42 = vld [vmem:[%s10528_s6 + $0x50] sm:$0xff]  ;;  %v7468_v19 = vld [vmem:[%s10528_s6 + $0x58] sm:$0xff]  ;;  %v7469_v6 = vld [vmem:[%s10528_s6 + $0x60] sm:$0xff] }
 0x59e   :  { %v7470_v45 = vld [vmem:[%s10528_s6 + $0x68] sm:$0xff] }
 0x5a0   :  { %6723 = vmatmul.mubr.f32.vlgmr.msra.gmra.mrb[80].mxu1 %v7458_v41  ;;  %v10764_v41 = vpack.c.bf16 %v9619_v12, %v9627_v50  ;;  %v7471_v12 = vld [vmem:[%s10528_s6 + $0x70] sm:$0xff]  ;;  %v7472_v50 = vld [vmem:[%s10528_s6 + $0x78] sm:$0xff] }
 0x5a1   :  { %7220 = vmatpush1.bf16.msra.mxu1 %v10759_v18  ;;  %6725 = vmatprep.mubr.f32.mxu1 %v7459_v26  ;;  %v10765_v18 = vpack.c.bf16 %v9645_v11, %v9653_v31  ;;  %v10766_v26 = vpack.c.bf16 %v9669_v37, %v9677_v33  ;;  %v7473_v11 = vld [vmem:[%s10528_s6 + $0x80] sm:$0xff]  ;;  %v7474_v31 = vld [vmem:[%s10528_s6 + $0x88] sm:$0xff]  ;;  %v7475_v37 = vld [vmem:[%s10528_s6 + $0x90] sm:$0xff] }
 0x5a2   :  { %7221 = vmatprep.subr.bf16.mxu1 %v10661_v16  ;;  %v7476_v33 = vld [vmem:[%s10528_s6 + $0x98] sm:$0xff] }
 0x5a4   :  { %6726 = vmatmul.mubr.f32.gmra.mrb[82].mxu1 %v7460_v1  ;;  %v10767_v1 = vpack.c.bf16 %v9687_v34, %v9695_v40  ;;  %v7477_v34 = vld [vmem:[%s10528_s6 + $0xa0] sm:$0xff]  ;;  %v7478_v40 = vld [vmem:[%s10528_s6 + $0xa8] sm:$0xff] }
 0x5a5   :  { %7223 = vmatpush1.bf16.msra.mxu1 %v10760_v43  ;;  %6728 = vmatprep.mubr.f32.mxu1 %v7461_v44  ;;  %v10768_v43 = vpack.c.bf16 %v9706_v5, %v9714_v38  ;;  %v10769_v44 = vpack.c.bf16 %v9723_v17, %v9731_v32  ;;  %v7479_v5 = vld [vmem:[%s10528_s6 + $0xb0] sm:$0xff]  ;;  %v7480_v38 = vld [vmem:[%s10528_s6 + $0xb8] sm:$0xff]  ;;  %v7481_v17 = vld [vmem:[%s10528_s6 + $0xc0] sm:$0xff] }
 0x5a6   :  { %7224 = vmatprep.subr.bf16.mxu1 %v10661_v16  ;;  %v7482_v32 = vld [vmem:[%s10528_s6 + $0xc8] sm:$0xff] }
 0x5a8   :  { %6729 = vmatmul.mubr.f32.gmra.mrb[84].mxu1 %v7462_v9  ;;  %v10770_v9 = vpack.c.bf16 %v9740_v53, %v9747_v15  ;;  %v7483_v53 = vld [vmem:[%s10528_s6 + $0xd0] sm:$0xff]  ;;  %v7484_v15 = vld [vmem:[%s10528_s6 + $0xd8] sm:$0xff] }
 0x5a9   :  { %7226 = vmatpush1.bf16.msra.mxu1 %v10761_v30  ;;  %6731 = vmatprep.mubr.f32.mxu1 %v7463_v8  ;;  %v10771_v30 = vpack.c.bf16 %v9756_v3, %v9763_v54  ;;  %v10772_v8 = vpack.c.bf16 %v9772_v10, %v9779_v13  ;;  %v7485_v3 = vld [vmem:[%s10528_s6 + $0xe0] sm:$0xff]  ;;  %v7486_v54 = vld [vmem:[%s10528_s6 + $0xe8] sm:$0xff]  ;;  %v7487_v10 = vld [vmem:[%s10528_s6 + $0xf0] sm:$0xff] }
 0x5aa   :  { %7227 = vmatprep.subr.bf16.mxu1 %v10661_v16  ;;  %v7488_v13 = vld [vmem:[%s10528_s6 + $0xf8] sm:$0xff]  ;;  %s7785_s6 = smov [#allocation8]  }
 0x5ab   :  { %s5509_s19 = sshll.u32 %s7785_s6, 4  ;;  %s5510_s19 = int_to_ptr.vmem [resolvable:$true] %s5509_s19 }
 0x5ac   :  { %6732 = vmatmul.mubr.f32.gmra.mrb[86].mxu1 %v7464_v7  ;;  %v7489_v7 = vld [vmem:[#allocation7 + $0x18] sm:$0xff]  ;;  %s7746_s20 = scalar_lea.vmem %s5510_s19, 8192  ;;  %p7751_p11 = scmp.lt.s32.totalorder %s5510_s19, %s5510_s19 }
 0x5ad   :  { %7229 = vmatpush1.bf16.msra.mxu1 %v10762_v56  ;;  %6734 = vmatprep.mubr.f32.mxu1 %v7465_v14  ;;  %v7493_v56 = vld [vmem:[#allocation7 + $0x78] sm:$0xff]  ;;  %v7494_v14 = vld [vmem:[#allocation7 + $0x70] sm:$0xff]  ;;  %p7747_p10 = scmp.ne.s32.totalorder %s5510_s19, %s7746_s20  ;;  %p7752_p12 = scmp.lt.s32.totalorder %s7746_s20, %s7746_s20 }
 0x5ae   :  { %7230 = vmatprep.subr.bf16.mxu1 %v10661_v16 }
 0x5af   :  { %p7753_p13 = por %p7752_p12, %p7751_p11 }
 0x5b0   :  { %6735 = vmatmul.mubr.f32.gmra.mrb[88].mxu1 %v7466_v55  ;;  %v7495_v55 = vld [vmem:[#allocation7 + $0xa8] sm:$0xff] }
 0x5b1   :  { %7232 = vmatpush1.bf16.msra.mxu1 %v10763_v27  ;;  %6737 = vmatprep.mubr.f32.mxu1 %v7467_v42  ;;  %v7496_v27 = vld [vmem:[#allocation7 + $0xa0] sm:$0xff]  ;;  %v7497_v42 = vld [vmem:[#allocation7 + $0xd8] sm:$0xff]  ;;  %p7754_p0 = pnand %p7753_p13, %p7747_p10 }
 0x5b2   :  { %7233 = vmatprep.subr.bf16.mxu1 %v10661_v16 }
 0x5b4   :  { %6738 = vmatmul.mubr.f32.gmra.mrb[90].mxu1 %v7468_v19  ;;  %v7501_v19 = vld [vmem:[#allocation7 + $0x138] sm:$0xff] }
 0x5b5   :  { %7235 = vmatpush1.bf16.msra.mxu1 %v10764_v41  ;;  %6740 = vmatprep.mubr.f32.mxu1 %v7469_v6  ;;  %v7502_v41 = vld [vmem:[#allocation7 + $0x130] sm:$0xff]  ;;  %v7503_v6 = vld [vmem:[#allocation7 + $0x168] sm:$0xff] }
 0x5b6   :  { %7236 = vmatprep.subr.bf16.mxu1 %v10661_v16 }
 0x5b8   :  { %6741 = vmatmul.mubr.f32.gmra.mrb[92].mxu1 %v7470_v45  ;;  %v7504_v45 = vld [vmem:[#allocation7 + $0x160] sm:$0xff] }
 0x5b9   :  { %7238 = vmatpush1.bf16.msra.mxu1 %v10765_v18  ;;  %6743 = vmatprep.mubr.f32.mxu1 %v7471_v12  ;;  %v7505_v18 = vld [vmem:[#allocation7 + $0x198] sm:$0xff]  ;;  %v7506_v12 = vld [vmem:[#allocation7 + $0x190] sm:$0xff] }
 0x5ba   :  { %7239 = vmatprep.subr.bf16.mxu1 %v10661_v16 }
 0x5bc   :  { %6744 = vmatmul.mubr.f32.gmra.mrb[94].mxu1 %v7472_v50  ;;  %v7507_v50 = vld [vmem:[#allocation7 + $0x1c8] sm:$0xff] }
 0x5bd   :  { %7241 = vmatpush1.bf16.msra.mxu1 %v10766_v26  ;;  %6746 = vmatprep.mubr.f32.mxu1 %v7473_v11  ;;  %v7508_v26 = vld [vmem:[#allocation7 + $0x1c0] sm:$0xff]  ;;  %v7509_v11 = vld [vmem:[#allocation7 + $0x1f8] sm:$0xff] }
 0x5be   :  { %7242 = vmatprep.subr.bf16.mxu1 %v10661_v16 }
 0x5c0   :  { %6747 = vmatmul.mubr.f32.gmra.mrb[96].mxu1 %v7474_v31  ;;  %v7510_v31 = vld [vmem:[#allocation7 + $0x1f0] sm:$0xff] }
 0x5c1   :  { %7244 = vmatpush1.bf16.msra.mxu1 %v10767_v1  ;;  %6749 = vmatprep.mubr.f32.mxu1 %v7475_v37  ;;  %v7511_v1 = vld [vmem:[#allocation7 + $0x228] sm:$0xff]  ;;  %v7512_v37 = vld [vmem:[#allocation7 + $0x220] sm:$0xff] }
 0x5c2   :  { %7245 = vmatprep.subr.bf16.mxu1 %v10661_v16 }
 0x5c4   :  { %6750 = vmatmul.mubr.f32.gmra.mrb[98].mxu1 %v7476_v33  ;;  %v7513_v33 = vld [vmem:[#allocation7 + $0x258] sm:$0xff] }
 0x5c5   :  { %7247 = vmatpush1.bf16.msra.mxu1 %v10768_v43  ;;  %6752 = vmatprep.mubr.f32.mxu1 %v7477_v34  ;;  %v7514_v43 = vld [vmem:[#allocation7 + $0x250] sm:$0xff]  ;;  %v7515_v34 = vld [vmem:[#allocation7 + $0x288] sm:$0xff] }
 0x5c6   :  { %7248 = vmatprep.subr.bf16.mxu1 %v10661_v16 }
 0x5c8   :  { %6753 = vmatmul.mubr.f32.gmra.mrb[100].mxu1 %v7478_v40  ;;  %v7516_v40 = vld [vmem:[#allocation7 + $0x280] sm:$0xff] }
 0x5c9   :  { %7250 = vmatpush1.bf16.msra.mxu1 %v10769_v44  ;;  %6755 = vmatprep.mubr.f32.mxu1 %v7479_v5  ;;  %v7517_v44 = vld [vmem:[#allocation7 + $0x2b8] sm:$0xff]  ;;  %v7518_v5 = vld [vmem:[#allocation7 + $0x2b0] sm:$0xff] }
 0x5ca   :  { %7251 = vmatprep.subr.bf16.mxu1 %v10661_v16 }
 0x5cc   :  { %6756 = vmatmul.mubr.f32.gmra.mrb[102].mxu1 %v7480_v38  ;;  %v7519_v38 = vld [vmem:[#allocation7 + $0x2e8] sm:$0xff] }
 0x5cd   :  { %7253 = vmatpush1.bf16.msra.mxu1 %v10770_v9  ;;  %6758 = vmatprep.mubr.f32.mxu1 %v7481_v17  ;;  %v7520_v9 = vld [vmem:[#allocation7 + $0x2e0] sm:$0xff]  ;;  %v7521_v17 = vld [vmem:[#allocation7 + $0x318] sm:$0xff] }
 0x5ce   :  { %7254 = vmatprep.subr.bf16.mxu1 %v10661_v16 }
 0x5d0   :  { %6759 = vmatmul.mubr.f32.gmra.mrb[104].mxu1 %v7482_v32  ;;  %v7522_v32 = vld [vmem:[#allocation7 + $0x310] sm:$0xff] }
 0x5d1   :  { %7256 = vmatpush1.bf16.msra.mxu1 %v10771_v30  ;;  %6761 = vmatprep.mubr.f32.mxu1 %v7483_v53  ;;  %v7523_v30 = vld [vmem:[#allocation7 + $0x348] sm:$0xff]  ;;  %v7524_v53 = vld [vmem:[#allocation7 + $0x340] sm:$0xff] }
 0x5d2   :  { %7257 = vmatprep.subr.bf16.mxu1 %v10661_v16 }
 0x5d4   :  { %6762 = vmatmul.mubr.f32.gmra.mrb[106].mxu1 %v7484_v15  ;;  %v7525_v15 = vld [vmem:[#allocation7 + $0x378] sm:$0xff] }
 0x5d5   :  { %7259 = vmatpush1.bf16.msra.mxu1 %v10772_v8  ;;  %6764 = vmatprep.mubr.f32.mxu1 %v7485_v3  ;;  %v7526_v8 = vld [vmem:[#allocation7 + $0x370] sm:$0xff]  ;;  %v7527_v3 = vld [vmem:[#allocation7 + $0x3a8] sm:$0xff] }
 0x5d6   :  { %7260 = vmatprep.subr.bf16.mxu1 %v10661_v16 }
 0x5d8   :  { %6765 = vmatmul.mubr.f32.gmra.mrb[108].mxu1 %v7486_v54  ;;  %v7528_v54 = vld [vmem:[#allocation7 + $0x3a0] sm:$0xff] }
 0x5d9   :  { %7262 = vmatpush1.bf16.msra.mxu1 %v7261_v61  ;;  %6767 = vmatprep.mubr.f32.mxu1 %v7487_v10  ;;  %v7492_v61 = vld [vmem:[#allocation7 + $0x40] sm:$0xff]  ;;  %v7529_v10 = vld [vmem:[#allocation7 + $0x3d8] sm:$0xff] }
 0x5da   :  { %7263 = vmatprep.subr.bf16.mxu1 %v10661_v16 }
 0x5dc   :  { %6768 = vmatmul.mubr.f32.gmra.mrb[110].mxu1 %v7488_v13  ;;  %v7530_v13 = vld [vmem:[#allocation7 + $0x3d0] sm:$0xff] }
 0x5dd   :  { %7265 = vmatpush1.bf16.msra.mxu1 %v7264_v36  ;;  %5053 = vmatprep.mubr.f32.mxu1 %v7489_v7  ;;  %v7500_v36 = vld [vmem:[#allocation7 + $0x100] sm:$0xff]  ;;  %v7531_v7 = vld [vmem:[#allocation7 + $0x408] sm:$0xff] }
 0x5e0   :  { %5054 = vmatmul.mubr.f32.vlgmr.msra.gmra.mrb[112].mxu1 %v7490_v28 }
 0x5e1   :  { %5058 = vmatprep.mubr.f32.mxu1 %v7491_v23 }
 0x5e4   :  { %5059 = vmatmul.mubr.f32.gmra.mrb[114].mxu1 %v7492_v61 }
 0x5e5   :  { %5063 = vmatprep.mubr.f32.mxu1 %v7493_v56 }
 0x5e8   :  { %5064 = vmatmul.mubr.f32.gmra.mrb[116].mxu1 %v7494_v14 }
 0x5e9   :  { %5068 = vmatprep.mubr.f32.mxu1 %v7495_v55 }
 0x5ec   :  { %5069 = vmatmul.mubr.f32.gmra.mrb[118].mxu1 %v7496_v27  ;;  %v7532_v27 = vld [vmem:[#allocation7 + $0x400] sm:$0xff] }
 0x5ed   :  { %5073 = vmatprep.mubr.f32.mxu1 %v7497_v42  ;;  %v7533_v42 = vld [vmem:[#allocation7 + $0x438] sm:$0xff] }
 0x5f0   :  { %5074 = vmatmul.mubr.f32.gmra.mrb[120].mxu1 %v7498_v25 }
 0x5f1   :  { %5078 = vmatprep.mubr.f32.mxu1 %v7499_v57 }
 0x5f4   :  { %5079 = vmatmul.mubr.f32.gmra.mrb[122].mxu1 %v7500_v36 }
 0x5f5   :  { %5083 = vmatprep.mubr.f32.mxu1 %v7501_v19 }
 0x5f8   :  { %5084 = vmatmul.mubr.f32.gmra.mrb[124].mxu1 %v7502_v41 }
 0x5f9   :  { %5088 = vmatprep.mubr.f32.mxu1 %v7503_v6 }
 0x5fc   :  { %5089 = vmatmul.mubr.f32.gmra.mrb[126].mxu1 %v7504_v45  ;;  %v7534_v45 = vld [vmem:[#allocation7 + $0x430] sm:$0xff] }
 0x5fd   :  { %5093 = vmatprep.mubr.f32.mxu1 %v7505_v18  ;;  %v7535_v18 = vld [vmem:[#allocation7 + $0x468] sm:$0xff] }
 0x600   :  { %5094 = vmatmul.mubr.f32.gmra.mrb[128].mxu1 %v7506_v12 }
 0x601   :  { %5098 = vmatprep.mubr.f32.mxu1 %v7507_v50 }
 0x604   :  { %5099 = vmatmul.mubr.f32.gmra.mrb[130].mxu1 %v7508_v26 }
 0x605   :  { %5103 = vmatprep.mubr.f32.mxu1 %v7509_v11 }
 0x608   :  { %5104 = vmatmul.mubr.f32.gmra.mrb[132].mxu1 %v7510_v31 }
 0x609   :  { %5108 = vmatprep.mubr.f32.mxu1 %v7511_v1 }
 0x60c   :  { %5109 = vmatmul.mubr.f32.gmra.mrb[134].mxu1 %v7512_v37  ;;  %v7536_v37 = vld [vmem:[#allocation7 + $0x460] sm:$0xff] }
 0x60d   :  { %5113 = vmatprep.mubr.f32.mxu1 %v7513_v33  ;;  %v7537_v33 = vld [vmem:[#allocation7 + $0x498] sm:$0xff] }
 0x610   :  { %5114 = vmatmul.mubr.f32.gmra.mrb[136].mxu1 %v7514_v43 }
 0x611   :  { %5118 = vmatprep.mubr.f32.mxu1 %v7515_v34 }
 0x614   :  { %5119 = vmatmul.mubr.f32.gmra.mrb[138].mxu1 %v7516_v40 }
 0x615   :  { %5123 = vmatprep.mubr.f32.mxu1 %v7517_v44 }
 0x618   :  { %5124 = vmatmul.mubr.f32.gmra.mrb[140].mxu1 %v7518_v5 }
 0x619   :  { %5128 = vmatprep.mubr.f32.mxu1 %v7519_v38 }
 0x61c   :  { %5129 = vmatmul.mubr.f32.gmra.mrb[142].mxu1 %v7520_v9  ;;  %v7538_v9 = vld [vmem:[#allocation7 + $0x490] sm:$0xff] }
 0x61d   :  { %5133 = vmatprep.mubr.f32.mxu1 %v7521_v17  ;;  %v7539_v17 = vld [vmem:[#allocation7 + $0x4c8] sm:$0xff] }
 0x620   :  { %5134 = vmatmul.mubr.f32.gmra.mrb[144].mxu1 %v7522_v32 }
 0x621   :  { %5138 = vmatprep.mubr.f32.mxu1 %v7523_v30 }
 0x624   :  { %5139 = vmatmul.mubr.f32.gmra.mrb[146].mxu1 %v7524_v53 }
 0x625   :  { %5143 = vmatprep.mubr.f32.mxu1 %v7525_v15 }
 0x628   :  { %5144 = vmatmul.mubr.f32.gmra.mrb[148].mxu1 %v7526_v8 }
 0x629   :  { %5148 = vmatprep.mubr.f32.mxu1 %v7527_v3 }
 0x62c   :  { %5149 = vmatmul.mubr.f32.gmra.mrb[150].mxu1 %v7528_v54  ;;  %v7540_v54 = vld [vmem:[#allocation7 + $0x4c0] sm:$0xff] }
 0x62d   :  { %5153 = vmatprep.mubr.f32.mxu1 %v7529_v10  ;;  %v7541_v10 = vld [vmem:[#allocation7 + $0x4f8] sm:$0xff] }
 0x630   :  { %5154 = vmatmul.mubr.f32.gmra.mrb[152].mxu1 %v7530_v13 }
 0x631   :  { %5158 = vmatprep.mubr.f32.mxu1 %v7531_v7 }
 0x632   :  { %v6592_v28 = vpop.f32.mrb[48].mxu1  ;;  %v9980_v23 = vpop.f32.mrb[240].mxu0 }
 0x633   :  { %v4155_v61 = vpop.f32.mrb[49].mxu1  ;;  %v9982_v56 = vpop.f32.mrb[241].mxu0 }
 0x634   :  { %v7171_v14 = vpack.c.bf16 %v6592_v28, %v4155_v61  ;;  %v7267_v55 = vpack.c.bf16 %v9980_v23, %v9982_v56  ;;  %5159 = vmatmul.mubr.f32.gmra.mrb[154].mxu1 %v7532_v27  ;;  %v7558_v56 = vld [vmem:[#allocation7 + $0x98] sm:$0xff] }
 0x635   :  { %5163 = vmatprep.mubr.f32.mxu1 %v7533_v42  ;;  %v7542_v42 = vld [vmem:[#allocation7 + $0x4f0] sm:$0xff] }
 0x636   :  { %v6595_v25 = vpop.f32.mrb[50].mxu1  ;;  %v9986_v57 = vpop.f32.mrb[242].mxu0  ;;  %7172 = vmatpush1.bf16.msra.mxu0 %v7171_v14 }
 0x637   :  { %v4165_v36 = vpop.f32.mrb[51].mxu1  ;;  %v9988_v19 = vpop.f32.mrb[243].mxu0  ;;  %7173 = vmatprep.subr.bf16.mxu0 %v10661_v16 }
 0x638   :  { %v7174_v41 = vpack.c.bf16 %v6595_v25, %v4165_v36  ;;  %v7270_v6 = vpack.c.bf16 %v9986_v57, %v9988_v19  ;;  %5164 = vmatmul.mubr.f32.gmra.mrb[156].mxu1 %v7534_v45  ;;  %v7543_v25 = vld [vmem:[#allocation7 + $0x528] sm:$0xff] }
 0x639   :  { %5168 = vmatprep.mubr.f32.mxu1 %v7535_v18  ;;  %v7560_v19 = vld [vmem:[#allocation7 + $0xc8] sm:$0xff] }
 0x63a   :  { %v6598_v12 = vpop.f32.mrb[52].mxu1  ;;  %v9993_v50 = vpop.f32.mrb[244].mxu0  ;;  %7175 = vmatpush1.bf16.msra.mxu0 %v7174_v41 }
 0x63b   :  { %v4175_v26 = vpop.f32.mrb[53].mxu1  ;;  %v9995_v11 = vpop.f32.mrb[245].mxu0  ;;  %7176 = vmatprep.subr.bf16.mxu0 %v10661_v16 }
 0x63c   :  { %v7177_v31 = vpack.c.bf16 %v6598_v12, %v4175_v26  ;;  %5169 = vmatmul.mubr.f32.gmra.mrb[158].mxu1 %v7536_v37  ;;  %v7545_v37 = vld [vmem:[#allocation7 + $0x558] sm:$0xff]  ;;  %v10773_v23 = vpack.c.bf16 %v9993_v50, %v9995_v11 }
 0x63d   :  { %5173 = vmatprep.mubr.f32.mxu1 %v7537_v33  ;;  %v7562_v11 = vld [vmem:[#allocation7 + $0xf8] sm:$0xff] }
 0x63e   :  { %v6601_v43 = vpop.f32.mrb[54].mxu1  ;;  %v10000_v34 = vpop.f32.mrb[246].mxu0  ;;  %7178 = vmatpush1.bf16.msra.mxu0 %v7177_v31  ;;  %v7544_v31 = vld [vmem:[#allocation7 + $0x520] sm:$0xff] }
 0x63f   :  { %v4185_v40 = vpop.f32.mrb[55].mxu1  ;;  %v10002_v44 = vpop.f32.mrb[247].mxu0  ;;  %7179 = vmatprep.subr.bf16.mxu0 %v10661_v16 }
 0x640   :  { %v7180_v5 = vpack.c.bf16 %v6601_v43, %v4185_v40  ;;  %5174 = vmatmul.mubr.f32.gmra.mrb[160].mxu1 %v7538_v9  ;;  %v10774_v57 = vpack.c.bf16 %v10000_v34, %v10002_v44  ;;  %v7564_v44 = vld [vmem:[#allocation7 + $0x128] sm:$0xff] }
 0x641   :  { %5178 = vmatprep.mubr.f32.mxu1 %v7539_v17 }
 0x642   :  { %v6604_v32 = vpop.f32.mrb[56].mxu1  ;;  %v10007_v30 = vpop.f32.mrb[248].mxu0  ;;  %7181 = vmatpush1.bf16.msra.mxu0 %v7180_v5 }
 0x643   :  { %v4195_v53 = vpop.f32.mrb[57].mxu1  ;;  %v10009_v15 = vpop.f32.mrb[249].mxu0  ;;  %7182 = vmatprep.subr.bf16.mxu0 %v10661_v16 }
 0x644   :  { %v7183_v8 = vpack.c.bf16 %v6604_v32, %v4195_v53  ;;  %5179 = vmatmul.mubr.f32.gmra.mrb[162].mxu1 %v7540_v54  ;;  %v7546_v32 = vld [vmem:[#allocation7 + $0x550] sm:$0xff]  ;;  %v7547_v53 = vld [vmem:[#allocation7 + $0x588] sm:$0xff]  ;;  %v10775_v50 = vpack.c.bf16 %v10007_v30, %v10009_v15  ;;  %v7566_v15 = vld [vmem:[#allocation7 + $0x158] sm:$0xff] }
 0x645   :  { %5183 = vmatprep.mubr.f32.mxu1 %v7541_v10 }
 0x646   :  { %v6607_v13 = vpop.f32.mrb[58].mxu1  ;;  %v10014_v7 = vpop.f32.mrb[250].mxu0  ;;  %7184 = vmatpush1.bf16.msra.mxu0 %v7183_v8 }
 0x647   :  { %v4205_v28 = vpop.f32.mrb[59].mxu1  ;;  %v10016_v61 = vpop.f32.mrb[251].mxu0  ;;  %7185 = vmatprep.subr.bf16.mxu0 %v10661_v16 }
 0x648   :  { %v7186_v14 = vpack.c.bf16 %v6607_v13, %v4205_v28  ;;  %5184 = vmatmul.mubr.f32.gmra.mrb[164].mxu1 %v7542_v42  ;;  %v7548_v42 = vld [vmem:[#allocation7 + $0x580] sm:$0xff]  ;;  %v10776_v34 = vpack.c.bf16 %v10014_v7, %v10016_v61  ;;  %v7568_v61 = vld [vmem:[#allocation7 + $0x188] sm:$0xff] }
 0x649   :  { %5188 = vmatprep.mubr.f32.mxu1 %v7543_v25  ;;  %v7549_v25 = vld [vmem:[#allocation7 + $0x5b8] sm:$0xff] }
 0x64a   :  { %v6610_v36 = vpop.f32.mrb[60].mxu1  ;;  %v10021_v41 = vpop.f32.mrb[252].mxu0  ;;  %7187 = vmatpush1.bf16.msra.mxu0 %v7186_v14 }
 0x64b   :  { %v4215_v45 = vpop.f32.mrb[61].mxu1  ;;  %v10023_v18 = vpop.f32.mrb[253].mxu0  ;;  %7188 = vmatprep.subr.bf16.mxu0 %v10661_v16 }
 0x64c   :  { %v7189_v12 = vpack.c.bf16 %v6610_v36, %v4215_v45  ;;  %5189 = vmatmul.mubr.f32.gmra.mrb[166].mxu1 %v7544_v31  ;;  %v10777_v30 = vpack.c.bf16 %v10021_v41, %v10023_v18  ;;  %v7570_v18 = vld [vmem:[#allocation7 + $0x1b8] sm:$0xff] }
 0x64d   :  { %5193 = vmatprep.mubr.f32.mxu1 %v7545_v37 }
 0x64e   :  { %v6613_v33 = vpop.f32.mrb[62].mxu1  ;;  %v10028_v43 = vpop.f32.mrb[254].mxu0  ;;  %7190 = vmatpush1.bf16.msra.mxu0 %v7189_v12 }
 0x64f   :  { %v4225_v40 = vpop.f32.mrb[63].mxu1  ;;  %v10030_v5 = vpop.f32.mrb[255].mxu0  ;;  %7191 = vmatprep.subr.bf16.mxu0 %v10661_v16 }
 0x650   :  { %v7192_v9 = vpack.c.bf16 %v6613_v33, %v4225_v40  ;;  %5194 = vmatmul.mubr.f32.gmra.mrb[168].mxu1 %v7546_v32  ;;  %v7550_v40 = vld [vmem:[#allocation7 + $0x5b0] sm:$0xff]  ;;  %v10778_v7 = vpack.c.bf16 %v10028_v43, %v10030_v5  ;;  %v7572_v5 = vld [vmem:[#allocation7 + $0x1e8] sm:$0xff] }
 0x651   :  { %5198 = vmatprep.mubr.f32.mxu1 %v7547_v53 }
 0x652   :  { %v6616_v8 = vpop.f32.mrb[64].mxu1  ;;  %v10035_v54 = vpop.f32.mrb[0].mxu0  ;;  %7193 = vmatpush1.bf16.msra.mxu0 %v7192_v9  ;;  %v7551_v9 = vld [vmem:[#allocation7 + $0x5e8] sm:$0xff] }
 0x653   :  { %v4235_v10 = vpop.f32.mrb[65].mxu1  ;;  %v10037_v13 = vpop.f32.mrb[1].mxu0  ;;  %7194 = vmatprep.subr.bf16.mxu0 %v10661_v16 }
 0x654   :  { %v7195_v28 = vpack.c.bf16 %v6616_v8, %v4235_v10  ;;  %5199 = vmatmul.mubr.f32.gmra.mrb[170].mxu1 %v7548_v42  ;;  %v10779_v41 = vpack.c.bf16 %v10035_v54, %v10037_v13  ;;  %v7574_v13 = vld [vmem:[#allocation7 + $0x218] sm:$0xff] }
 0x655   :  { %5203 = vmatprep.mubr.f32.mxu1 %v7549_v25  ;;  %v7552_v25 = vld [vmem:[#allocation7 + $0x5e0] sm:$0xff] }
 0x656   :  { %v6619_v36 = vpop.f32.mrb[66].mxu1  ;;  %v10042_v45 = vpop.f32.mrb[2].mxu0  ;;  %7196 = vmatpush1.bf16.msra.mxu0 %v7195_v28 }
 0x657   :  { %v4245_v12 = vpop.f32.mrb[67].mxu1  ;;  %v10044_v31 = vpop.f32.mrb[3].mxu0  ;;  %7197 = vmatprep.subr.bf16.mxu0 %v10661_v16 }
 0x658   :  { %v7198_v37 = vpack.c.bf16 %v6619_v36, %v4245_v12  ;;  %5204 = vmatmul.mubr.f32.gmra.mrb[172].mxu1 %v7550_v40  ;;  %v10780_v43 = vpack.c.bf16 %v10042_v45, %v10044_v31  ;;  %v7576_v31 = vld [vmem:[#allocation7 + $0x248] sm:$0xff] }
 0x659   :  { %5208 = vmatprep.mubr.f32.mxu1 %v7551_v9 }
 0x65a   :  { %v6622_v32 = vpop.f32.mrb[68].mxu1  ;;  %v10049_v53 = vpop.f32.mrb[4].mxu0  ;;  %7199 = vmatpush1.bf16.msra.mxu0 %v7198_v37 }
 0x65b   :  { %v4255_v8 = vpop.f32.mrb[69].mxu1  ;;  %v10051_v10 = vpop.f32.mrb[5].mxu0  ;;  %7200 = vmatprep.subr.bf16.mxu0 %v10661_v16 }
 0x65c   :  { %v7201_v28 = vpack.c.bf16 %v6622_v32, %v4255_v8  ;;  %5209 = vmatmul.mubr.f32.gmra.mrb[174].mxu1 %v7552_v25  ;;  %v10781_v54 = vpack.c.bf16 %v10049_v53, %v10051_v10  ;;  %v7578_v10 = vld [vmem:[#allocation7 + $0x278] sm:$0xff] }
 0x65e   :  { %v6625_v36 = vpop.f32.mrb[70].mxu1  ;;  %v10056_v12 = vpop.f32.mrb[6].mxu0  ;;  %7202 = vmatpush1.bf16.msra.mxu0 %v7201_v28 }
 0x65f   :  { %v4265_v40 = vpop.f32.mrb[71].mxu1  ;;  %v10058_v9 = vpop.f32.mrb[7].mxu0  ;;  %7203 = vmatprep.subr.bf16.mxu0 %v10661_v16 }
 0x660   :  { %v7204_v37 = vpack.c.bf16 %v6625_v36, %v4265_v40  ;;  %v10782_v45 = vpack.c.bf16 %v10056_v12, %v10058_v9  ;;  %v7580_v9 = vld [vmem:[#allocation7 + $0x2a8] sm:$0xff] }
 0x662   :  { %v6628_v14 = vpop.f32.mrb[72].mxu1  ;;  %v10063_v32 = vpop.f32.mrb[8].mxu0  ;;  %7205 = vmatpush1.bf16.msra.mxu0 %v7204_v37 }
 0x663   :  { %v4275_v8 = vpop.f32.mrb[73].mxu1  ;;  %v10065_v42 = vpop.f32.mrb[9].mxu0  ;;  %7206 = vmatprep.subr.bf16.mxu0 %v10661_v16 }
 0x664   :  { %v7207_v25 = vpack.c.bf16 %v6628_v14, %v4275_v8  ;;  %v10783_v53 = vpack.c.bf16 %v10063_v32, %v10065_v42  ;;  %v7581_v42 = vld [vmem:[#allocation7 + $0x2a0] sm:$0xff] }
 0x666   :  { %v6631_v17 = vpop.f32.mrb[74].mxu1  ;;  %v10070_v26 = vpop.f32.mrb[10].mxu0  ;;  %7208 = vmatpush1.bf16.msra.mxu0 %v7207_v25 }
 0x667   :  { %v4285_v36 = vpop.f32.mrb[75].mxu1  ;;  %v10072_v40 = vpop.f32.mrb[11].mxu0  ;;  %7209 = vmatprep.subr.bf16.mxu0 %v10661_v16 }
 0x668   :  { %v7210_v33 = vpack.c.bf16 %v6631_v17, %v4285_v36  ;;  %v10784_v12 = vpack.c.bf16 %v10070_v26, %v10072_v40 }
 0x66a   :  { %v6634_v27 = vpop.f32.mrb[76].mxu1  ;;  %v10077_v3 = vpop.f32.mrb[12].mxu0  ;;  %7211 = vmatpush1.bf16.msra.mxu0 %v7210_v33 }
 0x66b   :  { %v4295_v14 = vpop.f32.mrb[77].mxu1  ;;  %v10079_v8 = vpop.f32.mrb[13].mxu0  ;;  %7212 = vmatprep.subr.bf16.mxu0 %v10661_v16 }
 0x66c   :  { %v7213_v28 = vpack.c.bf16 %v6634_v27, %v4295_v14  ;;  %v7309_v25 = vpack.c.bf16 %v10077_v3, %v10079_v8  ;;  %v7553_v27 = vld [vmem:[#allocation7] sm:$0xff]  ;;  %v7555_v14 = vld [vmem:[#allocation7 + $0x30] sm:$0xff]  ;;  %v7584_v3 = vld [vmem:[#allocation7 + $0x308] sm:$0xff] }
 0x66e   :  { %7214 = vmatpush1.bf16.msra.mxu0 %v7213_v28  ;;  %v7554_v28 = vld [vmem:[#allocation7 + $0x38] sm:$0xff] }
 0x66f   :  { %v6637_v38 = vpop.f32.mrb[78].mxu1  ;;  %v10084_v1 = vpop.f32.mrb[14].mxu0  ;;  %7215 = vmatprep.subr.bf16.mxu0 %v10661_v16 }
 0x670   :  { %v4305_v17 = vpop.f32.mrb[79].mxu1  ;;  %v10087_v36 = vpop.f32.mrb[15].mxu0 }
 0x671   :  { %v7216_v37 = vpack.c.bf16 %v6637_v38, %v4305_v17  ;;  %v7312_v33 = vpack.c.bf16 %v10084_v1, %v10087_v36  ;;  %v7556_v38 = vld [vmem:[#allocation7 + $0x68] sm:$0xff]  ;;  %v7563_v17 = vld [vmem:[#allocation7 + $0xf0] sm:$0xff] }
 0x672   :  { %v7587_v36 = vld [vmem:[#allocation7 + $0x330] sm:$0xff] }
 0x673   :  { %7217 = vmatpush1.bf16.msra.mxu0 %v7216_v37  ;;  %v7557_v37 = vld [vmem:[#allocation7 + $0x60] sm:$0xff] }
 0x674   :  { %7266 = vmatprep.subr.bf16.mxu0 %v10661_v16 }
 0x676   :  { %4829 = vmatmul.mubr.f32.vlgmr.msra.gmra.mrb[16].mxu0 %v7553_v27  ;;  %v7565_v27 = vld [vmem:[#allocation7 + $0x120] sm:$0xff] }
 0x677   :  { %7268 = vmatpush1.bf16.msra.mxu0 %v7267_v55  ;;  %4833 = vmatprep.mubr.f32.mxu0 %v7554_v28  ;;  %v7559_v55 = vld [vmem:[#allocation7 + $0x90] sm:$0xff] }
 0x678   :  { %7269 = vmatprep.subr.bf16.mxu0 %v10661_v16  ;;  %v7567_v28 = vld [vmem:[#allocation7 + $0x150] sm:$0xff] }
 0x67a   :  { %4834 = vmatmul.mubr.f32.gmra.mrb[18].mxu0 %v7555_v14  ;;  %v7569_v14 = vld [vmem:[#allocation7 + $0x180] sm:$0xff] }
 0x67b   :  { %7271 = vmatpush1.bf16.msra.mxu0 %v7270_v6  ;;  %4838 = vmatprep.mubr.f32.mxu0 %v7556_v38  ;;  %v7561_v6 = vld [vmem:[#allocation7 + $0xc0] sm:$0xff]  ;;  %v7571_v38 = vld [vmem:[#allocation7 + $0x1b0] sm:$0xff] }
 0x67c   :  { %7272 = vmatprep.subr.bf16.mxu0 %v10661_v16 }
 0x67e   :  { %4839 = vmatmul.mubr.f32.gmra.mrb[20].mxu0 %v7557_v37  ;;  %v7573_v37 = vld [vmem:[#allocation7 + $0x1e0] sm:$0xff] }
 0x67f   :  { %7274 = vmatpush1.bf16.msra.mxu0 %v10773_v23  ;;  %4843 = vmatprep.mubr.f32.mxu0 %v7558_v56  ;;  %v7575_v23 = vld [vmem:[#allocation7 + $0x210] sm:$0xff]  ;;  %v7577_v56 = vld [vmem:[#allocation7 + $0x240] sm:$0xff] }
 0x680   :  { %7275 = vmatprep.subr.bf16.mxu0 %v10661_v16 }
 0x682   :  { %4844 = vmatmul.mubr.f32.gmra.mrb[22].mxu0 %v7559_v55  ;;  %v7579_v55 = vld [vmem:[#allocation7 + $0x270] sm:$0xff] }
 0x683   :  { %7277 = vmatpush1.bf16.msra.mxu0 %v10774_v57  ;;  %4848 = vmatprep.mubr.f32.mxu0 %v7560_v19  ;;  %v10148_v57 = vpop.f32.mrb[80].mxu1 }
 0x684   :  { %7278 = vmatprep.subr.bf16.mxu0 %v10661_v16  ;;  %v10150_v19 = vpop.f32.mrb[81].mxu1 }
 0x685   :  { %v10152_v32 = vpop.f32.mrb[82].mxu1 }
 0x686   :  { %4849 = vmatmul.mubr.f32.gmra.mrb[24].mxu0 %v7561_v6  ;;  %v7582_v6 = vld [vmem:[#allocation7 + $0x2d8] sm:$0xff]  ;;  %v10157_v26 = vpop.f32.mrb[83].mxu1 }
 0x687   :  { %7280 = vmatpush1.bf16.msra.mxu0 %v10775_v50  ;;  %4853 = vmatprep.mubr.f32.mxu0 %v7562_v11  ;;  %v10160_v40 = vpop.f32.mrb[84].mxu1  ;;  %v7583_v11 = vld [vmem:[#allocation7 + $0x2d0] sm:$0xff] }
 0x688   :  { %7281 = vmatprep.subr.bf16.mxu0 %v10661_v16  ;;  %v10162_v50 = vpop.f32.mrb[85].mxu1 }
 0x68a   :  { %4854 = vmatmul.mubr.f32.gmra.mrb[26].mxu0 %v7563_v17  ;;  %v10164_v17 = vpop.f32.mrb[86].mxu1 }
 0x68b   :  { %7283 = vmatpush1.bf16.msra.mxu0 %v10776_v34  ;;  %4858 = vmatprep.mubr.f32.mxu0 %v7564_v44  ;;  %v10169_v8 = vpop.f32.mrb[87].mxu1 }
 0x68c   :  { %7284 = vmatprep.subr.bf16.mxu0 %v10661_v16 }
 0x68e   :  { %4859 = vmatmul.mubr.f32.gmra.mrb[28].mxu0 %v7565_v27  ;;  %v7586_v27 = vld [vmem:[#allocation7 + $0x338] sm:$0xff] }
 0x68f   :  { %7286 = vmatpush1.bf16.msra.mxu0 %v10777_v30  ;;  %4863 = vmatprep.mubr.f32.mxu0 %v7566_v15 }
 0x690   :  { %7287 = vmatprep.subr.bf16.mxu0 %v10661_v16 }
 0x692   :  { %4864 = vmatmul.mubr.f32.gmra.mrb[30].mxu0 %v7567_v28  ;;  %v7588_v28 = vld [vmem:[#allocation7 + $0x368] sm:$0xff] }
 0x693   :  { %7289 = vmatpush1.bf16.msra.mxu0 %v10778_v7  ;;  %4868 = vmatprep.mubr.f32.mxu0 %v7568_v61 }
 0x694   :  { %7290 = vmatprep.subr.bf16.mxu0 %v10661_v16 }
 0x696   :  { %4869 = vmatmul.mubr.f32.gmra.mrb[32].mxu0 %v7569_v14 }
 0x697   :  { %7292 = vmatpush1.bf16.msra.mxu0 %v10779_v41  ;;  %4873 = vmatprep.mubr.f32.mxu0 %v7570_v18  ;;  %v7589_v41 = vld [vmem:[#allocation7 + $0x360] sm:$0xff] }
 0x698   :  { %7293 = vmatprep.subr.bf16.mxu0 %v10661_v16 }
 0x69a   :  { %4874 = vmatmul.mubr.f32.gmra.mrb[34].mxu0 %v7571_v38  ;;  %v7590_v38 = vld [vmem:[#allocation7 + $0x398] sm:$0xff] }
 0x69b   :  { %7295 = vmatpush1.bf16.msra.mxu0 %v10780_v43  ;;  %4878 = vmatprep.mubr.f32.mxu0 %v7572_v5 }
 0x69c   :  { %7296 = vmatprep.subr.bf16.mxu0 %v10661_v16 }
 0x69e   :  { %4879 = vmatmul.mubr.f32.gmra.mrb[36].mxu0 %v7573_v37 }
 0x69f   :  { %7298 = vmatpush1.bf16.msra.mxu0 %v10781_v54  ;;  %4883 = vmatprep.mubr.f32.mxu0 %v7574_v13  ;;  %v7591_v54 = vld [vmem:[#allocation7 + $0x390] sm:$0xff] }
 0x6a0   :  { %7299 = vmatprep.subr.bf16.mxu0 %v10661_v16 }
 0x6a2   :  { %4884 = vmatmul.mubr.f32.gmra.mrb[38].mxu0 %v7575_v23  ;;  %v7592_v23 = vld [vmem:[#allocation7 + $0x3c8] sm:$0xff] }
 0x6a3   :  { %7301 = vmatpush1.bf16.msra.mxu0 %v10782_v45  ;;  %4888 = vmatprep.mubr.f32.mxu0 %v7576_v31 }
 0x6a4   :  { %7302 = vmatprep.subr.bf16.mxu0 %v10661_v16 }
 0x6a6   :  { %4889 = vmatmul.mubr.f32.gmra.mrb[40].mxu0 %v7577_v56 }
 0x6a7   :  { %7304 = vmatpush1.bf16.msra.mxu0 %v10783_v53  ;;  %4893 = vmatprep.mubr.f32.mxu0 %v7578_v10  ;;  %v7593_v53 = vld [vmem:[#allocation7 + $0x3c0] sm:$0xff] }
 0x6a8   :  { %7305 = vmatprep.subr.bf16.mxu0 %v10661_v16 }
 0x6aa   :  { %4894 = vmatmul.mubr.f32.gmra.mrb[42].mxu0 %v7579_v55  ;;  %v7594_v55 = vld [vmem:[#allocation7 + $0x3f8] sm:$0xff] }
 0x6ab   :  { %7307 = vmatpush1.bf16.msra.mxu0 %v10784_v12  ;;  %4898 = vmatprep.mubr.f32.mxu0 %v7580_v9 }
 0x6ac   :  { %7308 = vmatprep.subr.bf16.mxu0 %v10661_v16 }
 0x6ae   :  { %4899 = vmatmul.mubr.f32.gmra.mrb[44].mxu0 %v7581_v42 }
 0x6af   :  { %7310 = vmatpush1.bf16.msra.mxu0 %v7309_v25  ;;  %4903 = vmatprep.mubr.f32.mxu0 %v7582_v6  ;;  %v10171_v25 = vpop.f32.mrb[88].mxu1  ;;  %v7595_v6 = vld [vmem:[#allocation7 + $0x3f0] sm:$0xff] }
 0x6b0   :  { %7311 = vmatprep.subr.bf16.mxu0 %v10661_v16  ;;  %v10173_v34 = vpop.f32.mrb[89].mxu1  ;;  %v7585_v16 = vld [vmem:[#allocation7 + $0x300] sm:$0xff] }
 0x6b1   :  { %v10175_v44 = vpop.f32.mrb[90].mxu1 }
 0x6b2   :  { %4904 = vmatmul.mubr.f32.gmra.mrb[46].mxu0 %v7583_v11  ;;  %v10177_v30 = vpop.f32.mrb[91].mxu1 }
 0x6b3   :  { %7313 = vmatpush1.bf16.msra.mxu0 %v7312_v33  ;;  %4908 = vmatprep.mubr.f32.mxu0 %v7584_v3  ;;  %v10179_v15 = vpop.f32.mrb[92].mxu1  ;;  %v7596_v3 = vld [vmem:[#allocation7 + $0x428] sm:$0xff] }
 0x6b4   :  { %v10181_v1 = vpop.f32.mrb[93].mxu1 }
 0x6b5   :  { %v10183_v33 = vpop.f32.mrb[94].mxu1 }
 0x6b6   :  { %4909 = vmatmul.mubr.f32.gmra.mrb[48].mxu0 %v7585_v16  ;;  %v10185_v7 = vpop.f32.mrb[95].mxu1 }
 0x6b7   :  { %4913 = vmatprep.mubr.f32.mxu0 %v7586_v27  ;;  %v10187_v61 = vpop.f32.mrb[96].mxu1 }
 0x6b8   :  { %v10189_v14 = vpop.f32.mrb[97].mxu1 }
 0x6b9   :  { %v10191_v18 = vpop.f32.mrb[98].mxu1 }
 0x6ba   :  { %4914 = vmatmul.mubr.f32.gmra.mrb[50].mxu0 %v7587_v36  ;;  %v10193_v43 = vpop.f32.mrb[99].mxu1 }
 0x6bb   :  { %4918 = vmatprep.mubr.f32.mxu0 %v7588_v28  ;;  %v10195_v5 = vpop.f32.mrb[100].mxu1  ;;  %v7597_v28 = vld [vmem:[#allocation7 + $0x420] sm:$0xff] }
 0x6bc   :  { %v10197_v37 = vpop.f32.mrb[101].mxu1 }
 0x6bd   :  { %v10199_v13 = vpop.f32.mrb[102].mxu1 }
 0x6be   :  { %4919 = vmatmul.mubr.f32.gmra.mrb[52].mxu0 %v7589_v41  ;;  %v10201_v45 = vpop.f32.mrb[103].mxu1  ;;  %v7598_v41 = vld [vmem:[#allocation7 + $0x458] sm:$0xff] }
 0x6bf   :  { %4923 = vmatprep.mubr.f32.mxu0 %v7590_v38  ;;  %v10203_v31 = vpop.f32.mrb[104].mxu1 }
 0x6c0   :  { %v10205_v56 = vpop.f32.mrb[105].mxu1 }
 0x6c1   :  { %v10207_v10 = vpop.f32.mrb[106].mxu1 }
 0x6c2   :  { %4924 = vmatmul.mubr.f32.gmra.mrb[54].mxu0 %v7591_v54  ;;  %10785 = vst [vmem:[#allocation75_spill] sm:$0xff] %v10207_v10  ;;  %v10209_v12 = vpop.f32.mrb[107].mxu1 }
 0x6c3   :  { %4928 = vmatprep.mubr.f32.mxu0 %v7592_v23  ;;  %10786 = vst [vmem:[#allocation13_spill] sm:$0xff] %v10209_v12  ;;  %v10211_v9 = vpop.f32.mrb[108].mxu1  ;;  %v7599_v23 = vld [vmem:[#allocation7 + $0x450] sm:$0xff] }
 0x6c4   :  { %10787 = vst [vmem:[#allocation12_spill] sm:$0xff] %v10211_v9  ;;  %v10213_v42 = vpop.f32.mrb[109].mxu1 }
 0x6c5   :  { %10788 = vst [vmem:[#allocation15_spill] sm:$0xff] %v10213_v42  ;;  %v10215_v11 = vpop.f32.mrb[110].mxu1 }
 0x6c6   :  { %4929 = vmatmul.mubr.f32.gmra.mrb[56].mxu0 %v7593_v53  ;;  %10789 = vst [vmem:[#allocation14_spill] sm:$0xff] %v10215_v11  ;;  %v10217_v16 = vpop.f32.mrb[111].mxu1  ;;  %v7600_v53 = vld [vmem:[#allocation7 + $0x488] sm:$0xff] }
 0x6c7   :  { %4933 = vmatprep.mubr.f32.mxu0 %v7594_v55  ;;  %10790 = vst [vmem:[#allocation17_spill] sm:$0xff] %v10217_v16  ;;  %v10219_v27 = vpop.f32.mrb[112].mxu1 }
 0x6c8   :  { %v5057_v36 = vpop.f32.mrb[113].mxu1 }
 0x6c9   :  { %v10221_v38 = vpop.f32.mrb[114].mxu1 }
 0x6ca   :  { %4934 = vmatmul.mubr.f32.gmra.mrb[58].mxu0 %v7595_v6  ;;  %v5062_v54 = vpop.f32.mrb[115].mxu1 }
 0x6cb   :  { %4938 = vmatprep.mubr.f32.mxu0 %v7596_v3  ;;  %v10223_v55 = vpop.f32.mrb[116].mxu1  ;;  %v7601_v3 = vld [vmem:[#allocation7 + $0x480] sm:$0xff] }
 0x6cc   :  { %v5067_v6 = vpop.f32.mrb[117].mxu1 }
 0x6cd   :  { %v10225_v60 = vpop.f32.mrb[118].mxu1 }
 0x6ce   :  { %4939 = vmatmul.mubr.f32.gmra.mrb[60].mxu0 %v7597_v28  ;;  %v5072_v36 = vpop.f32.mrb[119].mxu1  ;;  %v7603_v28 = vld [vmem:[#allocation7 + $0x4b0] sm:$0xff] }
 0x6cf   :  { %4943 = vmatprep.mubr.f32.mxu0 %v7598_v41  ;;  %v7604_v41 = vld [vmem:[#allocation7 + $0x4e8] sm:$0xff]  ;;  %v10227_v49 = vpop.f32.mrb[120].mxu1 }
 0x6d0   :  { %v5077_v54 = vpop.f32.mrb[121].mxu1 }
 0x6d1   :  { %v10229_v24 = vpop.f32.mrb[122].mxu1 }
 0x6d2   :  { %4944 = vmatmul.mubr.f32.gmra.mrb[62].mxu0 %v7599_v23  ;;  %v7605_v23 = vld [vmem:[#allocation7 + $0x4e0] sm:$0xff]  ;;  %v5082_v6 = vpop.f32.mrb[123].mxu1 }
 0x6d3   :  { %4948 = vmatprep.mubr.f32.mxu0 %v7600_v53  ;;  %v7606_v53 = vld [vmem:[#allocation7 + $0x518] sm:$0xff]  ;;  %v10231_v62 = vpop.f32.mrb[124].mxu1 }
 0x6d4   :  { %v5087_v36 = vpop.f32.mrb[125].mxu1 }
 0x6d5   :  { %v10233_v47 = vpop.f32.mrb[126].mxu1 }
 0x6d6   :  { %4949 = vmatmul.mubr.f32.gmra.mrb[64].mxu0 %v7601_v3  ;;  %v7607_v3 = vld [vmem:[#allocation7 + $0x510] sm:$0xff]  ;;  %v5092_v54 = vpop.f32.mrb[127].mxu1 }
 0x6d7   :  { %4953 = vmatprep.mubr.f32.mxu0 %v7602_v46  ;;  %v7608_v46 = vld [vmem:[#allocation7 + $0x548] sm:$0xff]  ;;  %v10235_v51 = vpop.f32.mrb[128].mxu1 }
 0x6d8   :  { %v5097_v6 = vpop.f32.mrb[129].mxu1 }
 0x6d9   :  { %v10237_v52 = vpop.f32.mrb[130].mxu1 }
 0x6da   :  { %4954 = vmatmul.mubr.f32.gmra.mrb[66].mxu0 %v7603_v28  ;;  %v7609_v28 = vld [vmem:[#allocation7 + $0x540] sm:$0xff]  ;;  %v5102_v36 = vpop.f32.mrb[131].mxu1 }
 0x6db   :  { %4958 = vmatprep.mubr.f32.mxu0 %v7604_v41  ;;  %v7610_v41 = vld [vmem:[#allocation7 + $0x578] sm:$0xff] }
 0x6de   :  { %4959 = vmatmul.mubr.f32.gmra.mrb[68].mxu0 %v7605_v23  ;;  %v7611_v23 = vld [vmem:[#allocation7 + $0x570] sm:$0xff] }
 0x6df   :  { %4963 = vmatprep.mubr.f32.mxu0 %v7606_v53  ;;  %v7612_v53 = vld [vmem:[#allocation7 + $0x5a8] sm:$0xff] }
 0x6e2   :  { %4964 = vmatmul.mubr.f32.gmra.mrb[70].mxu0 %v7607_v3  ;;  %v7613_v3 = vld [vmem:[#allocation7 + $0x5a0] sm:$0xff] }
 0x6e3   :  { %4968 = vmatprep.mubr.f32.mxu0 %v7608_v46  ;;  %v7614_v46 = vld [vmem:[#allocation7 + $0x5d8] sm:$0xff] }
 0x6e6   :  { %4969 = vmatmul.mubr.f32.gmra.mrb[72].mxu0 %v7609_v28  ;;  %v7615_v28 = vld [vmem:[#allocation7 + $0x5d0] sm:$0xff] }
 0x6e7   :  { %4973 = vmatprep.mubr.f32.mxu0 %v7610_v41  ;;  %v10239_v41 = vpop.f32.mrb[132].mxu1 }
 0x6e8   :  { %v5107_v54 = vpop.f32.mrb[133].mxu1 }
 0x6ea   :  { %4974 = vmatmul.mubr.f32.gmra.mrb[74].mxu0 %v7611_v23  ;;  %v7617_v23 = vld [vmem:[#allocation7 + $0x20] sm:$0xff] }
 0x6eb   :  { %4978 = vmatprep.mubr.f32.mxu0 %v7612_v53  ;;  %v10241_v53 = vpop.f32.mrb[134].mxu1 }
 0x6ec   :  { %v5112_v6 = vpop.f32.mrb[135].mxu1 }
 0x6ee   :  { %4979 = vmatmul.mubr.f32.gmra.mrb[76].mxu0 %v7613_v3  ;;  %v7619_v3 = vld [vmem:[#allocation7 + $0x50] sm:$0xff] }
 0x6ef   :  { %4983 = vmatprep.mubr.f32.mxu0 %v7614_v46  ;;  %v10243_v46 = vpop.f32.mrb[136].mxu1 }
 0x6f0   :  { %v5117_v36 = vpop.f32.mrb[137].mxu1 }
 0x6f1   :  { %v10245_v21 = vpop.f32.mrb[138].mxu1 }
 0x6f2   :  { %4984 = vmatmul.mubr.f32.gmra.mrb[78].mxu0 %v7615_v28  ;;  %v7621_v28 = vld [vmem:[#allocation7 + $0x80] sm:$0xff]  ;;  %v5122_v54 = vpop.f32.mrb[139].mxu1 }
 0x6f3   :  { %5278 = vmatprep.mubr.f32.mxu0 %v7616_v0  ;;  %v7622_v0 = vld [vmem:[#allocation7 + $0xb8] sm:$0xff]  ;;  %v10247_v35 = vpop.f32.mrb[140].mxu1 }
 0x6f4   :  { %v5127_v6 = vpop.f32.mrb[141].mxu1 }
 0x6f6   :  { %5279 = vmatmul.mubr.f32.vlgmr.msra.gmra.mrb[80].mxu0 %v7617_v23  ;;  %v7623_v23 = vld [vmem:[#allocation7 + $0xb0] sm:$0xff] }
 0x6f7   :  { %5283 = vmatprep.mubr.f32.mxu0 %v7618_v58  ;;  %v7624_v58 = vld [vmem:[#allocation7 + $0xe8] sm:$0xff] }
 0x6fa   :  { %5284 = vmatmul.mubr.f32.gmra.mrb[82].mxu0 %v7619_v3  ;;  %v7625_v3 = vld [vmem:[#allocation7 + $0xe0] sm:$0xff] }
 0x6fb   :  { %5288 = vmatprep.mubr.f32.mxu0 %v7620_v4  ;;  %v10249_v4 = vpop.f32.mrb[142].mxu1 }
 0x6fc   :  { %v5132_v36 = vpop.f32.mrb[143].mxu1 }
 0x6fe   :  { %5289 = vmatmul.mubr.f32.gmra.mrb[84].mxu0 %v7621_v28  ;;  %v7627_v28 = vld [vmem:[#allocation7 + $0x110] sm:$0xff] }
 0x6ff   :  { %5293 = vmatprep.mubr.f32.mxu0 %v7622_v0  ;;  %v10251_v0 = vpop.f32.mrb[144].mxu1 }
 0x700   :  { %v5137_v54 = vpop.f32.mrb[145].mxu1 }
 0x702   :  { %5294 = vmatmul.mubr.f32.gmra.mrb[86].mxu0 %v7623_v23  ;;  %v7629_v23 = vld [vmem:[#allocation7 + $0x140] sm:$0xff] }
 0x703   :  { %5298 = vmatprep.mubr.f32.mxu0 %v7624_v58  ;;  %v10253_v58 = vpop.f32.mrb[146].mxu1 }
 0x704   :  { %v5142_v6 = vpop.f32.mrb[147].mxu1 }
 0x705   :  { %v10255_v20 = vpop.f32.mrb[148].mxu1 }
 0x706   :  { %5299 = vmatmul.mubr.f32.gmra.mrb[88].mxu0 %v7625_v3  ;;  %v7631_v3 = vld [vmem:[#allocation7 + $0x170] sm:$0xff]  ;;  %v5147_v36 = vpop.f32.mrb[149].mxu1 }
 0x707   :  { %5303 = vmatprep.mubr.f32.mxu0 %v7626_v48  ;;  %v7632_v48 = vld [vmem:[#allocation7 + $0x1a8] sm:$0xff]  ;;  %v10257_v29 = vpop.f32.mrb[150].mxu1 }
 0x708   :  { %v5152_v54 = vpop.f32.mrb[151].mxu1 }
 0x709   :  { %v10259_v39 = vpop.f32.mrb[152].mxu1 }
 0x70a   :  { %5304 = vmatmul.mubr.f32.gmra.mrb[90].mxu0 %v7627_v28  ;;  %v7633_v28 = vld [vmem:[#allocation7 + $0x1a0] sm:$0xff]  ;;  %v5157_v6 = vpop.f32.mrb[153].mxu1 }
 0x70b   :  { %5308 = vmatprep.mubr.f32.mxu0 %v7628_v2  ;;  %v7634_v2 = vld [vmem:[#allocation7 + $0x1d8] sm:$0xff]  ;;  %v10261_v22 = vpop.f32.mrb[154].mxu1 }
 0x70c   :  { %v5162_v36 = vpop.f32.mrb[155].mxu1 }
 0x70d   :  { %v10263_v59 = vpop.f32.mrb[156].mxu1 }
 0x70e   :  { %5309 = vmatmul.mubr.f32.gmra.mrb[92].mxu0 %v7629_v23  ;;  %v7635_v23 = vld [vmem:[#allocation7 + $0x1d0] sm:$0xff]  ;;  %v5167_v54 = vpop.f32.mrb[157].mxu1 }
 0x70f   :  { %5313 = vmatprep.mubr.f32.mxu0 %v7630_v63  ;;  %v7636_v63 = vld [vmem:[#allocation7 + $0x208] sm:$0xff]  ;;  %v10265_v11 = vpop.f32.mrb[158].mxu1 }
 0x710   :  { %v5172_v6 = vpop.f32.mrb[159].mxu1 }
 0x712   :  { %5314 = vmatmul.mubr.f32.gmra.mrb[94].mxu0 %v7631_v3  ;;  %v7637_v3 = vld [vmem:[#allocation7 + $0x200] sm:$0xff] }
 0x713   :  { %5318 = vmatprep.mubr.f32.mxu0 %v7632_v48  ;;  %v7638_v48 = vld [vmem:[#allocation7 + $0x238] sm:$0xff]  ;;  %v10267_v16 = vpop.f32.mrb[160].mxu1 }
 0x714   :  { %v5177_v36 = vpop.f32.mrb[161].mxu1 }
 0x716   :  { %5319 = vmatmul.mubr.f32.gmra.mrb[96].mxu0 %v7633_v28  ;;  %v7639_v28 = vld [vmem:[#allocation7 + $0x230] sm:$0xff] }
 0x717   :  { %5323 = vmatprep.mubr.f32.mxu0 %v7634_v2  ;;  %v7640_v2 = vld [vmem:[#allocation7 + $0x268] sm:$0xff]  ;;  %v10269_v9 = vpop.f32.mrb[162].mxu1 }
 0x718   :  { %10791 = vst [vmem:[#allocation16_spill] sm:$0xff] %v10269_v9  ;;  %v5182_v54 = vpop.f32.mrb[163].mxu1  ;;  %v7659_v9 = vld [vmem:[#allocation7 + $0x410] sm:$0xff] }
 0x71a   :  { %5324 = vmatmul.mubr.f32.gmra.mrb[98].mxu0 %v7635_v23  ;;  %v7641_v23 = vld [vmem:[#allocation7 + $0x260] sm:$0xff] }
 0x71b   :  { %5328 = vmatprep.mubr.f32.mxu0 %v7636_v63  ;;  %v7642_v63 = vld [vmem:[#allocation7 + $0x298] sm:$0xff]  ;;  %v10271_v42 = vpop.f32.mrb[164].mxu1 }
 0x71c   :  { %10792 = vst [vmem:[#allocation19_spill] sm:$0xff] %v10271_v42  ;;  %v5187_v6 = vpop.f32.mrb[165].mxu1 }
 0x71e   :  { %5329 = vmatmul.mubr.f32.gmra.mrb[100].mxu0 %v7637_v3  ;;  %v7643_v3 = vld [vmem:[#allocation7 + $0x290] sm:$0xff] }
 0x71f   :  { %5333 = vmatprep.mubr.f32.mxu0 %v7638_v48  ;;  %v7644_v48 = vld [vmem:[#allocation7 + $0x2c8] sm:$0xff]  ;;  %v10273_v10 = vpop.f32.mrb[166].mxu1 }
 0x720   :  { %10793 = vst [vmem:[#allocation18_spill] sm:$0xff] %v10273_v10  ;;  %v5192_v36 = vpop.f32.mrb[167].mxu1 }
 0x722   :  { %5334 = vmatmul.mubr.f32.gmra.mrb[102].mxu0 %v7639_v28  ;;  %v7645_v28 = vld [vmem:[#allocation7 + $0x2c0] sm:$0xff] }
 0x723   :  { %5338 = vmatprep.mubr.f32.mxu0 %v7640_v2  ;;  %v7646_v2 = vld [vmem:[#allocation7 + $0x2f8] sm:$0xff]  ;;  %v10275_v12 = vpop.f32.mrb[168].mxu1 }
 0x724   :  { %10794 = vst [vmem:[#allocation21_spill] sm:$0xff] %v10275_v12  ;;  %v5197_v54 = vpop.f32.mrb[169].mxu1 }
 0x726   :  { %5339 = vmatmul.mubr.f32.gmra.mrb[104].mxu0 %v7641_v23  ;;  %v7647_v23 = vld [vmem:[#allocation7 + $0x2f0] sm:$0xff] }
 0x727   :  { %5343 = vmatprep.mubr.f32.mxu0 %v7642_v63  ;;  %v7648_v63 = vld [vmem:[#allocation7 + $0x328] sm:$0xff]  ;;  %v10277_v42 = vpop.f32.mrb[170].mxu1 }
 0x728   :  { %10795 = vst [vmem:[#allocation20_spill] sm:$0xff] %v10277_v42  ;;  %v5202_v6 = vpop.f32.mrb[171].mxu1  ;;  %v7660_v42 = vld [vmem:[#allocation7 + $0x448] sm:$0xff] }
 0x72a   :  { %5344 = vmatmul.mubr.f32.gmra.mrb[106].mxu0 %v7643_v3  ;;  %v7649_v3 = vld [vmem:[#allocation7 + $0x320] sm:$0xff] }
 0x72b   :  { %5348 = vmatprep.mubr.f32.mxu0 %v7644_v48  ;;  %v7650_v48 = vld [vmem:[#allocation7 + $0x358] sm:$0xff]  ;;  %v10279_v10 = vpop.f32.mrb[172].mxu1 }
 0x72c   :  { %10796 = vst [vmem:[#allocation23_spill] sm:$0xff] %v10279_v10  ;;  %v5207_v36 = vpop.f32.mrb[173].mxu1  ;;  %v7662_v10 = vld [vmem:[#allocation7 + $0x478] sm:$0xff] }
 0x72d   :  { %v7661_v36 = vld [vmem:[#allocation7 + $0x440] sm:$0xff] }
 0x72e   :  { %5349 = vmatmul.mubr.f32.gmra.mrb[108].mxu0 %v7645_v28  ;;  %v7651_v28 = vld [vmem:[#allocation7 + $0x350] sm:$0xff] }
 0x72f   :  { %5353 = vmatprep.mubr.f32.mxu0 %v7646_v2  ;;  %v7652_v2 = vld [vmem:[#allocation7 + $0x388] sm:$0xff]  ;;  %v10281_v12 = vpop.f32.mrb[174].mxu1 }
 0x730   :  { %10797 = vst [vmem:[#allocation22_spill] sm:$0xff] %v10281_v12  ;;  %v7663_v12 = vld [vmem:[#allocation7 + $0x470] sm:$0xff] }
 0x732   :  { %5354 = vmatmul.mubr.f32.gmra.mrb[110].mxu0 %v7647_v23  ;;  %v7653_v23 = vld [vmem:[#allocation7 + $0x380] sm:$0xff] }
 0x733   :  { %5358 = vmatprep.mubr.f32.mxu0 %v7648_v63  ;;  %v7654_v63 = vld [vmem:[#allocation7 + $0x3b8] sm:$0xff] }
 0x736   :  { %5359 = vmatmul.mubr.f32.gmra.mrb[112].mxu0 %v7649_v3  ;;  %v7655_v3 = vld [vmem:[#allocation7 + $0x3b0] sm:$0xff] }
 0x737   :  { %5363 = vmatprep.mubr.f32.mxu0 %v7650_v48  ;;  %v7656_v48 = vld [vmem:[#allocation7 + $0x3e8] sm:$0xff] }
 0x73a   :  { %5364 = vmatmul.mubr.f32.gmra.mrb[114].mxu0 %v7651_v28  ;;  %v7657_v28 = vld [vmem:[#allocation7 + $0x3e0] sm:$0xff] }
 0x73b   :  { %5368 = vmatprep.mubr.f32.mxu0 %v7652_v2  ;;  %v7658_v2 = vld [vmem:[#allocation7 + $0x418] sm:$0xff] }
 0x73e   :  { %5369 = vmatmul.mubr.f32.gmra.mrb[116].mxu0 %v7653_v23  ;;  %v5212_v23 = vpop.f32.mrb[175].mxu1 }
 0x73f   :  { %5373 = vmatprep.mubr.f32.mxu0 %v7654_v63 }
 0x742   :  { %5374 = vmatmul.mubr.f32.gmra.mrb[118].mxu0 %v7655_v3 }
 0x743   :  { %5378 = vmatprep.mubr.f32.mxu0 %v7656_v48 }
 0x746   :  { %5379 = vmatmul.mubr.f32.gmra.mrb[120].mxu0 %v7657_v28 }
 0x747   :  { %5383 = vmatprep.mubr.f32.mxu0 %v7658_v2 }
 0x749   :  { %v4830_v54 = vpop.f32.mrb[16].mxu0 }
 0x74a   :  { %5384 = vmatmul.mubr.f32.gmra.mrb[122].mxu0 %v7659_v9  ;;  %v4831_v63 = vadd.f32 %v4830_v54, %v10150_v19  ;;  %v4832_v6 = vpop.f32.mrb[17].mxu0  ;;  %v7664_v54 = vld [vmem:[#allocation7 + $0x4a8] sm:$0xff] }
 0x74b   :  { %5388 = vmatprep.mubr.f32.mxu0 %v7660_v42  ;;  %v7665_v6 = vld [vmem:[#allocation7 + $0x4a0] sm:$0xff] }
 0x74c   :  { %v10285_v3 = vadd.f32 %v10219_v27, %v4831_v63 }
 0x74d   :  { %v4835_v48 = vpop.f32.mrb[18].mxu0 }
 0x74e   :  { %5389 = vmatmul.mubr.f32.gmra.mrb[124].mxu0 %v7661_v36  ;;  %v4836_v28 = vadd.f32 %v10148_v57, %v4835_v48  ;;  %v4837_v2 = vpop.f32.mrb[19].mxu0  ;;  %v7666_v48 = vld [vmem:[#allocation7 + $0x4d8] sm:$0xff]  ;;  %v7667_v36 = vld [vmem:[#allocation7 + $0x4d0] sm:$0xff] }
 0x74f   :  { %5393 = vmatprep.mubr.f32.mxu0 %v7662_v10  ;;  %v7668_v2 = vld [vmem:[#allocation7 + $0x508] sm:$0xff] }
 0x750   :  { %v10289_v23 = vadd.f32 %v10221_v38, %v4836_v28 }
 0x751   :  { %v4840_v9 = vpop.f32.mrb[20].mxu0 }
 0x752   :  { %5394 = vmatmul.mubr.f32.gmra.mrb[126].mxu0 %v7663_v12  ;;  %v4841_v19 = vadd.f32 %v4840_v9, %v10157_v26  ;;  %v4842_v42 = vpop.f32.mrb[21].mxu0 }
 0x753   :  { %5398 = vmatprep.mubr.f32.mxu0 %v7664_v54  ;;  %v7670_v54 = vld [vmem:[#allocation7 + $0x538] sm:$0xff] }
 0x754   :  { %v10293_v27 = vadd.f32 %v10223_v55, %v4841_v19  ;;  %v7669_v19 = vld [vmem:[#allocation7 + $0x500] sm:$0xff] }
 0x755   :  { %v4845_v63 = vpop.f32.mrb[22].mxu0 }
 0x756   :  { %5399 = vmatmul.mubr.f32.gmra.mrb[128].mxu0 %v7665_v6  ;;  %v4846_v57 = vadd.f32 %v10152_v32, %v4845_v63  ;;  %v4847_v10 = vpop.f32.mrb[23].mxu0  ;;  %v7671_v6 = vld [vmem:[#allocation7 + $0x530] sm:$0xff] }
 0x757   :  { %5403 = vmatprep.mubr.f32.mxu0 %v7666_v48  ;;  %v7672_v10 = vld [vmem:[#allocation7 + $0x568] sm:$0xff] }
 0x758   :  { %v10297_v38 = vadd.f32 %v10225_v60, %v4846_v57 }
 0x759   :  { %v4850_v12 = vpop.f32.mrb[24].mxu0 }
 0x75a   :  { %5404 = vmatmul.mubr.f32.gmra.mrb[130].mxu0 %v7667_v36  ;;  %v4851_v26 = vadd.f32 %v4850_v12, %v10162_v50  ;;  %v4852_v28 = vpop.f32.mrb[25].mxu0  ;;  %v7673_v12 = vld [vmem:[#allocation7 + $0x560] sm:$0xff] }
 0x75b   :  { %5408 = vmatprep.mubr.f32.mxu0 %v7668_v2  ;;  %v7675_v2 = vld [vmem:[#allocation7 + $0x590] sm:$0xff] }
 0x75c   :  { %v10301_v55 = vadd.f32 %v10227_v49, %v4851_v26  ;;  %v7674_v26 = vld [vmem:[#allocation7 + $0x598] sm:$0xff] }
 0x75d   :  { %v4855_v9 = vpop.f32.mrb[26].mxu0 }
 0x75e   :  { %5409 = vmatmul.mubr.f32.gmra.mrb[132].mxu0 %v7669_v19  ;;  %v4856_v32 = vadd.f32 %v10160_v40, %v4855_v9  ;;  %v4857_v42 = vpop.f32.mrb[27].mxu0  ;;  %v7676_v19 = vld [vmem:[#allocation7 + $0x5c8] sm:$0xff] }
 0x75f   :  { %5413 = vmatprep.mubr.f32.mxu0 %v7670_v54  ;;  %v7677_v42 = vld [vmem:[#allocation7 + $0x5c0] sm:$0xff] }
 0x760   :  { %v10305_v60 = vadd.f32 %v10229_v24, %v4856_v32 }
 0x761   :  { %v4860_v63 = vpop.f32.mrb[28].mxu0 }
 0x762   :  { %5414 = vmatmul.mubr.f32.gmra.mrb[134].mxu0 %v7671_v6  ;;  %v4861_v50 = vadd.f32 %v4860_v63, %v10169_v8  ;;  %v4862_v57 = vpop.f32.mrb[29].mxu0  ;;  %v7678_v63 = vld [vmem:[#allocation7 + $0x5f8] sm:$0xff] }
 0x763   :  { %5418 = vmatprep.mubr.f32.mxu0 %v7672_v10 }
 0x764   :  { %v10309_v49 = vadd.f32 %v10231_v62, %v4861_v50  ;;  %v7679_v50 = vld [vmem:[#allocation7 + $0x5f0] sm:$0xff] }
 0x765   :  { %v4865_v48 = vpop.f32.mrb[30].mxu0 }
 0x766   :  { %5419 = vmatmul.mubr.f32.gmra.mrb[136].mxu0 %v7673_v12  ;;  %v4866_v40 = vadd.f32 %v10164_v17, %v4865_v48  ;;  %v4867_v36 = vpop.f32.mrb[31].mxu0 }
 0x767   :  { %5423 = vmatprep.mubr.f32.mxu0 %v7674_v26 }
 0x768   :  { %v10313_v24 = vadd.f32 %v10233_v47, %v4866_v40 }
 0x769   :  { %v4870_v28 = vpop.f32.mrb[32].mxu0 }
 0x76a   :  { %5424 = vmatmul.mubr.f32.gmra.mrb[138].mxu0 %v7675_v2  ;;  %v4871_v8 = vadd.f32 %v4870_v28, %v10173_v34  ;;  %v4872_v9 = vpop.f32.mrb[33].mxu0 }
 0x76b   :  { %5428 = vmatprep.mubr.f32.mxu0 %v7676_v19 }
 0x76c   :  { %v10317_v62 = vadd.f32 %v10235_v51, %v4871_v8 }
 0x76d   :  { %v4875_v32 = vpop.f32.mrb[34].mxu0 }
 0x76e   :  { %5429 = vmatmul.mubr.f32.gmra.mrb[140].mxu0 %v7677_v42  ;;  %v4876_v17 = vadd.f32 %v10171_v25, %v4875_v32  ;;  %v4877_v54 = vpop.f32.mrb[35].mxu0 }
 0x76f   :  { %5433 = vmatprep.mubr.f32.mxu0 %v7678_v63 }
 0x770   :  { %v10321_v47 = vadd.f32 %v10237_v52, %v4876_v17 }
 0x771   :  { %v4880_v6 = vpop.f32.mrb[36].mxu0 }
 0x772   :  { %5434 = vmatmul.mubr.f32.gmra.mrb[142].mxu0 %v7679_v50  ;;  %v4881_v34 = vadd.f32 %v4880_v6, %v10177_v30  ;;  %v4882_v57 = vpop.f32.mrb[37].mxu0 }
 0x774   :  { %v10325_v51 = vadd.f32 %v10239_v41, %v4881_v34 }
 0x775   :  { %v4885_v10 = vpop.f32.mrb[38].mxu0 }
 0x776   :  { %v4886_v48 = vadd.f32 %v10175_v44, %v4885_v10  ;;  %v4887_v12 = vpop.f32.mrb[39].mxu0 }
 0x778   :  { %v10329_v25 = vadd.f32 %v10241_v53, %v4886_v48 }
 0x779   :  { %v4890_v40 = vpop.f32.mrb[40].mxu0 }
 0x77a   :  { %v4891_v52 = vadd.f32 %v4890_v40, %v10181_v1  ;;  %v4892_v36 = vpop.f32.mrb[41].mxu0 }
 0x77c   :  { %v10333_v26 = vadd.f32 %v10243_v46, %v4891_v52 }
 0x77d   :  { %v4895_v28 = vpop.f32.mrb[42].mxu0 }
 0x77e   :  { %v4896_v30 = vadd.f32 %v10179_v15, %v4895_v28  ;;  %v4897_v2 = vpop.f32.mrb[43].mxu0 }
 0x780   :  { %v10337_v41 = vadd.f32 %v10245_v21, %v4896_v30 }
 0x781   :  { %v4900_v8 = vpop.f32.mrb[44].mxu0 }
 0x782   :  { %v4901_v44 = vadd.f32 %v4900_v8, %v10185_v7  ;;  %v4902_v9 = vpop.f32.mrb[45].mxu0 }
 0x784   :  { %v10341_v53 = vadd.f32 %v10247_v35, %v4901_v44 }
 0x785   :  { %v4905_v19 = vpop.f32.mrb[46].mxu0 }
 0x786   :  { %v4906_v1 = vadd.f32 %v10183_v33, %v4905_v19  ;;  %v4907_v32 = vpop.f32.mrb[47].mxu0 }
 0x788   :  { %v10345_v46 = vadd.f32 %v10249_v4, %v4906_v1 }
 0x789   :  { %v4910_v42 = vpop.f32.mrb[48].mxu0 }
 0x78a   :  { %v4911_v15 = vadd.f32 %v4910_v42, %v10189_v14  ;;  %v4912_v17 = vpop.f32.mrb[49].mxu0 }
 0x78c   :  { %v10349_v21 = vadd.f32 %v10251_v0, %v4911_v15 }
 0x78d   :  { %v4915_v54 = vpop.f32.mrb[50].mxu0 }
 0x78e   :  { %v4916_v7 = vadd.f32 %v10187_v61, %v4915_v54  ;;  %v4917_v63 = vpop.f32.mrb[51].mxu0 }
 0x790   :  { %v10353_v35 = vadd.f32 %v10253_v58, %v4916_v7 }
 0x791   :  { %v4920_v6 = vpop.f32.mrb[52].mxu0 }
 0x792   :  { %v4921_v33 = vadd.f32 %v4920_v6, %v10193_v43  ;;  %v4922_v50 = vpop.f32.mrb[53].mxu0 }
 0x794   :  { %v10357_v4 = vadd.f32 %v10255_v20, %v4921_v33 }
 0x795   :  { %v4925_v34 = vpop.f32.mrb[54].mxu0 }
 0x796   :  { %v4926_v14 = vadd.f32 %v10191_v18, %v4925_v34  ;;  %v4927_v57 = vpop.f32.mrb[55].mxu0  ;;  %v10804_v34 = vld [vmem:[#allocation21_spill] sm:$0xff] }
 0x798   :  { %v10361_v0 = vadd.f32 %v10257_v29, %v4926_v14 }
 0x799   :  { %v4930_v10 = vpop.f32.mrb[56].mxu0 }
 0x79a   :  { %v4931_v61 = vadd.f32 %v4930_v10, %v10197_v37  ;;  %v4932_v48 = vpop.f32.mrb[57].mxu0  ;;  %v10805_v10 = vld [vmem:[#allocation12_spill] sm:$0xff] }
 0x79c   :  { %v10365_v58 = vadd.f32 %v10259_v39, %v4931_v61 }
 0x79d   :  { %v4935_v12 = vpop.f32.mrb[58].mxu0 }
 0x79e   :  { %v4936_v43 = vadd.f32 %v10195_v5, %v4935_v12  ;;  %v4937_v40 = vpop.f32.mrb[59].mxu0  ;;  %v10806_v12 = vld [vmem:[#allocation20_spill] sm:$0xff] }
 0x7a0   :  { %v10369_v20 = vadd.f32 %v10261_v22, %v4936_v43 }
 0x7a1   :  { %v4940_v52 = vpop.f32.mrb[60].mxu0 }
 0x7a2   :  { %v4941_v18 = vadd.f32 %v4940_v52, %v10201_v45  ;;  %v4942_v36 = vpop.f32.mrb[61].mxu0  ;;  %v10807_v52 = vld [vmem:[#allocation17_spill] sm:$0xff] }
 0x7a4   :  { %v10373_v29 = vadd.f32 %v10263_v59, %v4941_v18  ;;  %v10798_v59 = vld [vmem:[#allocation16_spill] sm:$0xff] }
 0x7a5   :  { %v4945_v28 = vpop.f32.mrb[62].mxu0 }
 0x7a6   :  { %v4946_v37 = vadd.f32 %v10199_v13, %v4945_v28  ;;  %v4947_v30 = vpop.f32.mrb[63].mxu0  ;;  %v10799_v13 = vld [vmem:[#allocation13_spill] sm:$0xff]  ;;  %v10808_v28 = vld [vmem:[#allocation23_spill] sm:$0xff] }
 0x7a8   :  { %v10377_v39 = vadd.f32 %v10265_v11, %v4946_v37  ;;  %v10800_v11 = vld [vmem:[#allocation19_spill] sm:$0xff] }
 0x7a9   :  { %v4950_v2 = vpop.f32.mrb[64].mxu0 }
 0x7aa   :  { %v4951_v5 = vadd.f32 %v4950_v2, %v10205_v56  ;;  %v4952_v8 = vpop.f32.mrb[65].mxu0  ;;  %v10801_v56 = vld [vmem:[#allocation75_spill] sm:$0xff]  ;;  %v10809_v2 = vld [vmem:[#allocation14_spill] sm:$0xff] }
 0x7ac   :  { %v10381_v22 = vadd.f32 %v10267_v16, %v4951_v5  ;;  %v10802_v16 = vld [vmem:[#allocation18_spill] sm:$0xff] }
 0x7ad   :  { %v4955_v44 = vpop.f32.mrb[66].mxu0 }
 0x7ae   :  { %v4956_v45 = vadd.f32 %v10203_v31, %v4955_v44  ;;  %v4957_v9 = vpop.f32.mrb[67].mxu0  ;;  %v10803_v31 = vld [vmem:[#allocation15_spill] sm:$0xff]  ;;  %v10810_v44 = vld [vmem:[#allocation22_spill] sm:$0xff] }
 0x7b0   :  { %v10385_v19 = vadd.f32 %v10798_v59, %v4956_v45 }
 0x7b1   :  { %v4960_v1 = vpop.f32.mrb[68].mxu0 }
 0x7b2   :  { %v4961_v32 = vadd.f32 %v4960_v1, %v10799_v13  ;;  %v4962_v42 = vpop.f32.mrb[69].mxu0  ;;  %v10811_v13 = vld [vmem:[#allocation44_spill] sm:$0xff] }
 0x7b4   :  { %v10389_v15 = vadd.f32 %v10800_v11, %v4961_v32 }
 0x7b5   :  { %v4965_v17 = vpop.f32.mrb[70].mxu0 }
 0x7b6   :  { %v4966_v54 = vadd.f32 %v10801_v56, %v4965_v17  ;;  %v4967_v7 = vpop.f32.mrb[71].mxu0  ;;  %v10812_v56 = vld [vmem:[#allocation55_spill] sm:$0xff] }
 0x7b8   :  { %v10393_v63 = vadd.f32 %v10802_v16, %v4966_v54 }
 0x7b9   :  { %v4970_v6 = vpop.f32.mrb[72].mxu0 }
 0x7ba   :  { %v4971_v33 = vadd.f32 %v4970_v6, %v10803_v31  ;;  %v4972_v50 = vpop.f32.mrb[73].mxu0  ;;  %v10813_v31 = vld [vmem:[#allocation45_spill] sm:$0xff] }
 0x7bc   :  { %v10397_v14 = vadd.f32 %v10804_v34, %v4971_v33 }
 0x7bd   :  { %v4975_v57 = vpop.f32.mrb[74].mxu0 }
 0x7be   :  { %v4976_v61 = vadd.f32 %v10805_v10, %v4975_v57  ;;  %v4977_v48 = vpop.f32.mrb[75].mxu0  ;;  %v10814_v57 = vld [vmem:[#allocation53_spill] sm:$0xff] }
 0x7c0   :  { %v10401_v43 = vadd.f32 %v10806_v12, %v4976_v61  ;;  %v10815_v12 = vld [vmem:[#allocation46_spill] sm:$0xff] }
 0x7c1   :  { %v4980_v40 = vpop.f32.mrb[76].mxu0 }
 0x7c2   :  { %v4981_v18 = vadd.f32 %v4980_v40, %v10807_v52  ;;  %v4982_v36 = vpop.f32.mrb[77].mxu0 }
 0x7c3   :  { %v10816_v36 = vld [vmem:[#allocation58_spill] sm:$0xff] }
 0x7c4   :  { %v10405_v37 = vadd.f32 %v10808_v28, %v4981_v18 }
 0x7c5   :  { %v4985_v30 = vpop.f32.mrb[78].mxu0 }
 0x7c6   :  { %v4986_v5 = vadd.f32 %v10809_v2, %v4985_v30  ;;  %v4987_v8 = vpop.f32.mrb[79].mxu0 }
 0x7c8   :  { %v10409_v45 = vadd.f32 %v10810_v44, %v4986_v5  ;;  %v10817_v5 = vld [vmem:[#allocation47_spill] sm:$0xff] }
 0x7c9   :  { %v5280_v9 = vpop.f32.mrb[80].mxu0 }
 0x7ca   :  { %v5281_v59 = vadd.f32 %v5280_v9, %v10285_v3  ;;  %v5282_v1 = vpop.f32.mrb[81].mxu0 }
 0x7cc   :  { %v5439_v32 = vadd.f32 %v5281_v59, %v10811_v13  ;;  %v10818_v59 = vld [vmem:[#allocation56_spill] sm:$0xff] }
 0x7cd   :  { %v5285_v42 = vpop.f32.mrb[82].mxu0 }
 0x7ce   :  { %5472 = vst.msk [vmem:[#allocation8 + $0x100] sm:$0xff] %vm489_vm0, %v5439_v32  ;;  %v5286_v11 = vadd.f32 %v5285_v42, %v10289_v23  ;;  %v5287_v17 = vpop.f32.mrb[83].mxu0  ;;  %v10819_v42 = vld [vmem:[#allocation48_spill] sm:$0xff] }
 0x7d0   :  { %v5440_v54 = vadd.f32 %v5286_v11, %v10812_v56 }
 0x7d1   :  { %v5290_v7 = vpop.f32.mrb[84].mxu0 }
 0x7d2   :  { %5473 = vst.msk [vmem:[#allocation8 + $0x108] sm:$0xff] %vm489_vm0, %v5440_v54  ;;  %v5291_v16 = vadd.f32 %v5290_v7, %v10293_v27  ;;  %v5292_v6 = vpop.f32.mrb[85].mxu0  ;;  %v10820_v54 = vld [vmem:[#allocation61_spill] sm:$0xff] }
 0x7d4   :  { %v5441_v33 = vadd.f32 %v5291_v16, %v10813_v31  ;;  %v10821_v31 = vld [vmem:[#allocation49_spill] sm:$0xff] }
 0x7d5   :  { %v5295_v3 = vpop.f32.mrb[86].mxu0 }
 0x7d6   :  { %5474 = vst.msk [vmem:[#allocation8 + $0x110] sm:$0xff] %vm489_vm0, %v5441_v33  ;;  %v5296_v50 = vadd.f32 %v5295_v3, %v10297_v38  ;;  %v5297_v34 = vpop.f32.mrb[87].mxu0 }
 0x7d7   :  { %v10822_v34 = vld [vmem:[#allocation59_spill] sm:$0xff] }
 0x7d8   :  { %v5442_v10 = vadd.f32 %v5296_v50, %v10814_v57 }
 0x7d9   :  { %v5300_v23 = vpop.f32.mrb[88].mxu0 }
 0x7da   :  { %5475 = vst.msk [vmem:[#allocation8 + $0x118] sm:$0xff] %vm489_vm0, %v5442_v10  ;;  %v5301_v61 = vadd.f32 %v5300_v23, %v10301_v55  ;;  %v5302_v48 = vpop.f32.mrb[89].mxu0 }
 0x7dc   :  { %v5443_v40 = vadd.f32 %v5301_v61, %v10815_v12  ;;  %v10823_v61 = vld [vmem:[#allocation50_spill] sm:$0xff] }
 0x7dd   :  { %v5305_v27 = vpop.f32.mrb[90].mxu0 }
 0x7de   :  { %5476 = vst.msk [vmem:[#allocation8 + $0x120] sm:$0xff] %vm489_vm0, %v5443_v40  ;;  %v5306_v52 = vadd.f32 %v5305_v27, %v10305_v60  ;;  %v5307_v18 = vpop.f32.mrb[91].mxu0  ;;  %v10824_v27 = vld [vmem:[#allocation64_spill] sm:$0xff] }
 0x7e0   :  { %v5444_v28 = vadd.f32 %v5306_v52, %v10816_v36 }
 0x7e1   :  { %v5310_v38 = vpop.f32.mrb[92].mxu0 }
 0x7e2   :  { %5477 = vst.msk [vmem:[#allocation8 + $0x128] sm:$0xff] %vm489_vm0, %v5444_v28  ;;  %v5311_v30 = vadd.f32 %v5310_v38, %v10309_v49  ;;  %v5312_v2 = vpop.f32.mrb[93].mxu0  ;;  %v10825_v28 = vld [vmem:[#allocation51_spill] sm:$0xff] }
 0x7e4   :  { %v5445_v8 = vadd.f32 %v5311_v30, %v10817_v5  ;;  %v10826_v5 = vld [vmem:[#allocation62_spill] sm:$0xff] }
 0x7e5   :  { %v5315_v55 = vpop.f32.mrb[94].mxu0 }
 0x7e6   :  { %5478 = vst.msk [vmem:[#allocation8 + $0x130] sm:$0xff] %vm489_vm0, %v5445_v8  ;;  %v5316_v44 = vadd.f32 %v5315_v55, %v10313_v24  ;;  %v5317_v9 = vpop.f32.mrb[95].mxu0 }
 0x7e7   :  { %v10827_v9 = vld [vmem:[#allocation52_spill] sm:$0xff] }
 0x7e8   :  { %v5446_v1 = vadd.f32 %v5316_v44, %v10818_v59 }
 0x7e9   :  { %v5320_v60 = vpop.f32.mrb[96].mxu0 }
 0x7ea   :  { %5479 = vst.msk [vmem:[#allocation8 + $0x138] sm:$0xff] %vm489_vm0, %v5446_v1  ;;  %v5321_v13 = vadd.f32 %v5320_v60, %v10317_v62  ;;  %v5322_v32 = vpop.f32.mrb[97].mxu0 }
 0x7ec   :  { %v5447_v11 = vadd.f32 %v5321_v13, %v10819_v42  ;;  %v10828_v13 = vld [vmem:[#allocation67_spill] sm:$0xff] }
 0x7ed   :  { %v5325_v49 = vpop.f32.mrb[98].mxu0 }
 0x7ee   :  { %5480 = vst.msk [vmem:[#allocation8 + $0x140] sm:$0xff] %vm489_vm0, %v5447_v11  ;;  %v5326_v17 = vadd.f32 %v5325_v49, %v10321_v47  ;;  %v5327_v56 = vpop.f32.mrb[99].mxu0  ;;  %v10829_v49 = vld [vmem:[#allocation54_spill] sm:$0xff] }
 0x7f0   :  { %v5448_v7 = vadd.f32 %v5326_v17, %v10820_v54 }
 0x7f1   :  { %v5330_v24 = vpop.f32.mrb[100].mxu0 }
 0x7f2   :  { %5481 = vst.msk [vmem:[#allocation8 + $0x148] sm:$0xff] %vm489_vm0, %v5448_v7  ;;  %v5331_v16 = vadd.f32 %v5330_v24, %v10325_v51  ;;  %v5332_v6 = vpop.f32.mrb[101].mxu0  ;;  %v10830_v7 = vld [vmem:[#allocation65_spill] sm:$0xff] }
 0x7f4   :  { %v5449_v33 = vadd.f32 %v5331_v16, %v10821_v31  ;;  %v10831_v31 = vld [vmem:[#allocation57_spill] sm:$0xff] }
 0x7f5   :  { %v5335_v62 = vpop.f32.mrb[102].mxu0 }
 0x7f6   :  { %5482 = vst.msk [vmem:[#allocation8 + $0x150] sm:$0xff] %vm489_vm0, %v5449_v33  ;;  %v5336_v3 = vadd.f32 %v5335_v62, %v10329_v25  ;;  %v5337_v50 = vpop.f32.mrb[103].mxu0 }
 0x7f7   :  { %v10832_v50 = vld [vmem:[#allocation70_spill] sm:$0xff] }
 0x7f8   :  { %v5450_v57 = vadd.f32 %v5336_v3, %v10822_v34 }
 0x7f9   :  { %v5340_v47 = vpop.f32.mrb[104].mxu0 }
 0x7fa   :  { %5483 = vst.msk [vmem:[#allocation8 + $0x158] sm:$0xff] %vm489_vm0, %v5450_v57  ;;  %v5341_v10 = vadd.f32 %v5340_v47, %v10333_v26  ;;  %v5342_v23 = vpop.f32.mrb[105].mxu0 }
 0x7fc   :  { %v5451_v48 = vadd.f32 %v5341_v10, %v10823_v61  ;;  %v10833_v10 = vld [vmem:[#allocation60_spill] sm:$0xff] }
 0x7fd   :  { %v5345_v51 = vpop.f32.mrb[106].mxu0 }
 0x7fe   :  { %5484 = vst.msk [vmem:[#allocation8 + $0x160] sm:$0xff] %vm489_vm0, %v5451_v48  ;;  %v5346_v12 = vadd.f32 %v5345_v51, %v10337_v41  ;;  %v5347_v40 = vpop.f32.mrb[107].mxu0  ;;  %v10834_v51 = vld [vmem:[#allocation68_spill] sm:$0xff] }
 0x800   :  { %v5452_v52 = vadd.f32 %v5346_v12, %v10824_v27 }
 0x801   :  { %v5350_v25 = vpop.f32.mrb[108].mxu0 }
 0x802   :  { %5485 = vst.msk [vmem:[#allocation8 + $0x168] sm:$0xff] %vm489_vm0, %v5452_v52  ;;  %v5351_v18 = vadd.f32 %v5350_v25, %v10341_v53  ;;  %v5352_v36 = vpop.f32.mrb[109].mxu0  ;;  %v10835_v52 = vld [vmem:[#allocation63_spill] sm:$0xff] }
 0x804   :  { %v5453_v38 = vadd.f32 %v5351_v18, %v10825_v28  ;;  %v10836_v28 = vld [vmem:[#allocation73_spill] sm:$0xff] }
 0x805   :  { %v5355_v26 = vpop.f32.mrb[110].mxu0 }
 0x806   :  { %5486 = vst.msk [vmem:[#allocation8 + $0x170] sm:$0xff] %vm489_vm0, %v5453_v38  ;;  %v5356_v30 = vadd.f32 %v5355_v26, %v10345_v46  ;;  %v5357_v2 = vpop.f32.mrb[111].mxu0 }
 0x807   :  { %v10837_v2 = vld [vmem:[#allocation66_spill] sm:$0xff] }
 0x808   :  { %v5454_v8 = vadd.f32 %v5356_v30, %v10826_v5 }
 0x809   :  { %v5360_v41 = vpop.f32.mrb[112].mxu0 }
 0x80a   :  { %5487 = vst.msk [vmem:[#allocation8 + $0x178] sm:$0xff] %vm489_vm0, %v5454_v8  ;;  %v5361_v55 = vadd.f32 %v5360_v41, %v10349_v21  ;;  %v5362_v44 = vpop.f32.mrb[113].mxu0 }
 0x80c   :  { %v5455_v59 = vadd.f32 %v5361_v55, %v10827_v9  ;;  %v10838_v55 = vld [vmem:[#allocation71_spill] sm:$0xff] }
 0x80d   :  { %v5365_v53 = vpop.f32.mrb[114].mxu0 }
 0x80e   :  { %5488 = vst.msk [vmem:[#allocation8 + $0x180] sm:$0xff] %vm489_vm0, %v5455_v59  ;;  %v5366_v1 = vadd.f32 %v5365_v53, %v10353_v35  ;;  %v5367_v60 = vpop.f32.mrb[115].mxu0  ;;  %v10839_v53 = vld [vmem:[#allocation69_spill] sm:$0xff] }
 0x810   :  { %v5456_v32 = vadd.f32 %v5366_v1, %v10828_v13 }
 0x811   :  { %v5370_v46 = vpop.f32.mrb[116].mxu0 }
 0x812   :  { %5489 = vst.msk [vmem:[#allocation8 + $0x188] sm:$0xff] %vm489_vm0, %v5456_v32  ;;  %v5371_v42 = vadd.f32 %v5370_v46, %v10357_v4  ;;  %v5372_v11 = vpop.f32.mrb[117].mxu0  ;;  %v10840_v32 = vld [vmem:[#allocation76_spill] sm:$0xff] }
 0x814   :  { %v5457_v17 = vadd.f32 %v5371_v42, %v10829_v49  ;;  %v10841_v49 = vld [vmem:[#allocation72_spill] sm:$0xff] }
 0x815   :  { %v5375_v21 = vpop.f32.mrb[118].mxu0 }
 0x816   :  { %5490 = vst.msk [vmem:[#allocation8 + $0x190] sm:$0xff] %vm489_vm0, %v5457_v17  ;;  %v5376_v56 = vadd.f32 %v5375_v21, %v10361_v0  ;;  %v5377_v54 = vpop.f32.mrb[119].mxu0 }
 0x818   :  { %v5458_v24 = vadd.f32 %v5376_v56, %v10830_v7 }
 0x819   :  { %v5380_v35 = vpop.f32.mrb[120].mxu0 }
 0x81a   :  { %5491 = vst.msk [vmem:[#allocation8 + $0x198] sm:$0xff] %vm489_vm0, %v5458_v24  ;;  %v5381_v16 = vadd.f32 %v5380_v35, %v10365_v58  ;;  %v5382_v6 = vpop.f32.mrb[121].mxu0 }
 0x81c   :  { %v5459_v33 = vadd.f32 %v5381_v16, %v10831_v31 }
 0x81d   :  { %v5385_v4 = vpop.f32.mrb[122].mxu0 }
 0x81e   :  { %5492 = vst.msk [vmem:[#allocation8 + $0x1a0] sm:$0xff] %vm489_vm0, %v5459_v33  ;;  %v5386_v62 = vadd.f32 %v5385_v4, %v10369_v20  ;;  %v5387_v3 = vpop.f32.mrb[123].mxu0 }
 0x820   :  { %v5460_v34 = vadd.f32 %v5386_v62, %v10832_v50 }
 0x821   :  { %v5390_v0 = vpop.f32.mrb[124].mxu0 }
 0x822   :  { %5493 = vst.msk [vmem:[#allocation8 + $0x1a8] sm:$0xff] %vm489_vm0, %v5460_v34  ;;  %v5391_v57 = vadd.f32 %v5390_v0, %v10373_v29  ;;  %v5392_v47 = vpop.f32.mrb[125].mxu0 }
 0x824   :  { %v5461_v23 = vadd.f32 %v5391_v57, %v10833_v10 }
 0x825   :  { %v5395_v58 = vpop.f32.mrb[126].mxu0 }
 0x826   :  { %5494 = vst.msk [vmem:[#allocation8 + $0x1b0] sm:$0xff] %vm489_vm0, %v5461_v23  ;;  %v5396_v61 = vadd.f32 %v5395_v58, %v10377_v39  ;;  %v5397_v48 = vpop.f32.mrb[127].mxu0 }
 0x828   :  { %v5462_v12 = vadd.f32 %v5396_v61, %v10834_v51 }
 0x829   :  { %v5400_v20 = vpop.f32.mrb[128].mxu0 }
 0x82a   :  { %5495 = vst.msk [vmem:[#allocation8 + $0x1b8] sm:$0xff] %vm489_vm0, %v5462_v12  ;;  %v5401_v40 = vadd.f32 %v5400_v20, %v10381_v22  ;;  %v5402_v27 = vpop.f32.mrb[129].mxu0 }
 0x82c   :  { %v5463_v25 = vadd.f32 %v5401_v40, %v10835_v52 }
 0x82d   :  { %v5405_v29 = vpop.f32.mrb[130].mxu0 }
 0x82e   :  { %5496 = vst.msk [vmem:[#allocation8 + $0x1c0] sm:$0xff] %vm489_vm0, %v5463_v25  ;;  %v5406_v18 = vadd.f32 %v5405_v29, %v10385_v19  ;;  %v5407_v36 = vpop.f32.mrb[131].mxu0 }
 0x830   :  { %v5464_v38 = vadd.f32 %v5406_v18, %v10836_v28 }
 0x831   :  { %v5410_v39 = vpop.f32.mrb[132].mxu0 }
 0x832   :  { %5497 = vst.msk [vmem:[#allocation8 + $0x1c8] sm:$0xff] %vm489_vm0, %v5464_v38  ;;  %v5411_v26 = vadd.f32 %v5410_v39, %v10389_v15  ;;  %v5412_v30 = vpop.f32.mrb[133].mxu0 }
 0x834   :  { %v5465_v5 = vadd.f32 %v5411_v26, %v10837_v2 }
 0x835   :  { %v5415_v22 = vpop.f32.mrb[134].mxu0 }
 0x836   :  { %5498 = vst.msk [vmem:[#allocation8 + $0x1d0] sm:$0xff] %vm489_vm0, %v5465_v5  ;;  %v5416_v8 = vadd.f32 %v5415_v22, %v10393_v63  ;;  %v5417_v41 = vpop.f32.mrb[135].mxu0 }
 0x838   :  { %v5466_v44 = vadd.f32 %v5416_v8, %v10838_v55 }
 0x839   :  { %v5420_v19 = vpop.f32.mrb[136].mxu0 }
 0x83a   :  { %5499 = vst.msk [vmem:[#allocation8 + $0x1d8] sm:$0xff] %vm489_vm0, %v5466_v44  ;;  %v5421_v9 = vadd.f32 %v5420_v19, %v10397_v14  ;;  %v5422_v59 = vpop.f32.mrb[137].mxu0 }
 0x83c   :  { %v5467_v1 = vadd.f32 %v5421_v9, %v10839_v53 }
 0x83d   :  { %v5425_v15 = vpop.f32.mrb[138].mxu0 }
 0x83e   :  { %5500 = vst.msk [vmem:[#allocation8 + $0x1e0] sm:$0xff] %vm489_vm0, %v5467_v1  ;;  %v5426_v60 = vadd.f32 %v5425_v15, %v10401_v43  ;;  %v5427_v13 = vpop.f32.mrb[139].mxu0  ;;  %v10842_v43 = vld [vmem:[#allocation74_spill] sm:$0xff] }
 0x840   :  { %v5468_v46 = vadd.f32 %v5426_v60, %v10840_v32 }
 0x841   :  { %v5430_v63 = vpop.f32.mrb[140].mxu0 }
 0x842   :  { %5501 = vst.msk [vmem:[#allocation8 + $0x1e8] sm:$0xff] %vm489_vm0, %v5468_v46  ;;  %v5431_v42 = vadd.f32 %v5430_v63, %v10405_v37  ;;  %v5432_v11 = vpop.f32.mrb[141].mxu0 }
 0x844   :  { %v5469_v17 = vadd.f32 %v5431_v42, %v10841_v49 }
 0x845   :  { %v5435_v14 = vpop.f32.mrb[142].mxu0 }
 0x846   :  { %5502 = vst.msk [vmem:[#allocation8 + $0x1f0] sm:$0xff] %vm489_vm0, %v5469_v17  ;;  %v5436_v21 = vadd.f32 %v5435_v14, %v10409_v45  ;;  %v5437_v56 = vpop.f32.mrb[143].mxu0 }
 0x848   :  { %v5470_v54 = vadd.f32 %v5436_v21, %v10842_v43 }
 0x84a   :  { %5503 = vst.msk [vmem:[#allocation8 + $0x1f8] sm:$0xff] %vm489_vm0, %v5470_v54 }
 0x84b   :  { %7757 = shalt.err (!%p7754_p0)
}
 0x84c   :  { %s7758_s22 = scalar_lea.hbm %s10529_s7, 8192 }
 0x84d   :  { %p7759_p1 = scmp.ne.s32.totalorder %s10529_s7, %s7758_s22  ;;  %p7762_p2 = scmp.lt.u32.totalorder %s7758_s22, %s10529_s7 }
 0x84f   :  { %p7764_p3 = pnand %p7762_p2, %p7759_p1 }
 0x851   :  { %7767 = shalt.err (!%p7764_p3)
}
 0x852   :  { %5515 = dma.vmem_to_hbm [thread:$0]  %s5510_s19, 8192, %s10529_s7, [#allocation4], %s7778_s2, %s7778_s2, %s7779_s25  }
 0x853   :  { %7772 = dma.done.wait [#allocation4], 8192  }
 0x854   :  { %7773 = vsyncadd [#allocation4], 4294959104 }
 0x855   :  { %5519 = vsyncpa [#allocation3], 1 }
 0x856   :  { %5520 = vsyncpa [#allocation6], 1 }
 0x857   :  { %5521 = vsyncpa [#allocation4], 1 }

</bundles_post_ra>
